<compile_context>
chip_gen: v6e
topology: v6e:2x2x1
jax: 0.10.0
libtpu: 0.0.40
codegen_flags: <defaults>
</compile_context>

<pallas_src>
import jax
import jax.numpy as jnp
from jax.experimental import pallas as pl
from jax.experimental.pallas import tpu as pltpu


def _round_up(x, m):
    return (x + m - 1) // m * m


def _h3_kernel(u_ref, wqkv_ref, bqkv_ref, fwd_ref, inv_ref, kkf_ref, ssmf_ref,
               wo_ref, bo_ref, out_ref):
    f32 = jnp.float32
    lfp = kkf_ref.shape[0] // 2            # padded rfft length (multiple of 128)
    tD = kkf_ref.shape[1]                  # channel-tile width
    j = pl.program_id(1)

    # Fused q/k/v projection: one (L, D) x (D, 3*tD) bf16 MXU matmul with f32
    # accumulation.  The wrapper packs the fused weight tile-major so this
    # block's three tD-wide column groups are exactly [q_j | k_j | v_j].
    x = u_ref[...]                                              # (L, D) bf16
    qkv = (jnp.dot(x, wqkv_ref[...], preferred_element_type=f32)
           + bqkv_ref[...])                                     # (L, 3*tD) f32
    q = qkv[:, :tD]
    k = qkv[:, tD:2 * tD]
    v = qkv[:, 2 * tD:]

    # DFT matrices are grid-invariant: load once per invocation (hoisted).
    fwd = fwd_ref[...]                                          # (2*Lfp, L) f32
    inv = inv_ref[...]                                          # (L, 2*Lfp) f32
    inv_r = inv[:, :lfp]                                        # lane-aligned slices
    inv_i = inv[:, lfp:]

    def spectral_causal_conv(sig, kf_ref):
        # out[t, d] = sum_{s<=t} kern[s, d] * sig[t-s, d]
        #   == irfft(rfft(kern, 2L) * rfft(sig, 2L), 2L)[..., :L]  (reference),
        # realized as real matmuls on the MXU (channel-independent DFT bases).
        sf = jnp.dot(fwd, sig, preferred_element_type=f32)      # (2*Lfp, tD)
        sr, si = sf[:lfp], sf[lfp:]
        kf = kf_ref[...]                                        # (2*Lfp, tD)
        kr, ki = kf[:lfp], kf[lfp:]
        yr = kr * sr - ki * si                                  # complex mult (VPU)
        yi = kr * si + ki * sr
        return (jnp.dot(inv_r, yr, preferred_element_type=f32)  # irfft[..., :L]
                + jnp.dot(inv_i, yi, preferred_element_type=f32))

    # Shift-SSM on k (k_D skip folded into kkf), gated state passing, diag-SSM
    # on kv (D skip folded into ssmf), then the q gate.  head_dim == 1.
    k = spectral_causal_conv(k, kkf_ref)                        # (L, tD) f32
    kv = k * v
    y = spectral_causal_conv(kv, ssmf_ref)
    y = y * q

    # Output projection: accumulate this channel tile's contribution into the
    # resident (L, D) f32 output block (reduction over grid axis 1).
    contrib = jnp.dot(y.astype(jnp.bfloat16), wo_ref[...],
                      preferred_element_type=f32)               # (L, D) f32

    @pl.when(j == 0)
    def _init():
        out_ref[...] = contrib + bo_ref[...]

    @pl.when(j != 0)
    def _accum():
        out_ref[...] += contrib


def _pick_d_tile(D, d_tile):
    if d_tile is not None:
        if D % d_tile != 0:
            raise ValueError(f"d_tile={d_tile} must divide d_model={D}")
        return d_tile
    if D % 128 != 0:
        return D                       # small / unaligned d_model: no channel tiling
    tD = min(D, 512)
    while D % tD != 0:
        tD -= 128
    return tD


def _dft_matrices(L, lfp):
    """Real-matmul factorization of rfft(n=2L) and irfft(., n=2L)[..., :L].

    fwd : (2*lfp, L)  stacked [cos(2*pi*f*t/2L) ; -sin(2*pi*f*t/2L)], zero rows
          for padded bins f >= L+1.
    inv : (L, 2*lfp)  stacked [inv_r | inv_i] such that
          irfft(Y)[:L] == inv_r @ Yr + inv_i @ Yi  (Hermitian weights folded).
    """
    N = 2 * L
    Lf = L + 1
    f = jnp.arange(lfp, dtype=jnp.float32)
    t = jnp.arange(L, dtype=jnp.float32)
    theta = 2.0 * jnp.pi * f[:, None] * t[None, :] / N          # (lfp, L)
    fvalid = (f < Lf)[:, None]
    fwd = jnp.concatenate([jnp.where(fvalid, jnp.cos(theta), 0.0),
                           jnp.where(fvalid, -jnp.sin(theta), 0.0)], axis=0)
    w = jnp.where((f == 0) | (f == L), 1.0, 2.0) / N            # Hermitian weights / N
    theta_t = theta.T                                           # (L, lfp)
    inv_r = jnp.where(fvalid.T, w[None, :] * jnp.cos(theta_t), 0.0)
    inv_i = jnp.where(fvalid.T & (f[None, :] != 0) & (f[None, :] != L),
                      -w[None, :] * jnp.sin(theta_t), 0.0)      # DC/Nyquist imag ignored
    inv = jnp.concatenate([inv_r, inv_i], axis=1)               # (L, 2*lfp)
    return fwd.astype(jnp.float32), inv.astype(jnp.float32)


def _kernel_rfft_stack(kern, skip, lfp, N):
    """rfft of the (D, L) depthwise kernel, skip folded into the real part
    (rfft of skip*delta_0 == skip at every bin), padded to lfp bins, stacked
    [real ; imag] -> (2*lfp, D) f32."""
    kf = jnp.fft.rfft(kern.astype(jnp.float32), n=N, axis=-1)   # (D, L+1) complex64
    kr = jnp.real(kf).T + skip[None, :].astype(jnp.float32)     # (L+1, D)
    ki = jnp.imag(kf).T
    pad = jnp.zeros((lfp - kr.shape[0], kr.shape[1]), jnp.float32)
    return jnp.concatenate([kr, pad, ki, pad], axis=0)          # (2*lfp, D)


def _vmem_limit_bytes(L, D, tD, lfp):
    bf, f4 = 2, 4
    two_lfp = 2 * lfp
    est = (2 * L * D * bf                                       # u (double buffered)
           + 2 * L * D * f4                                     # out (double buffered)
           + 2 * (D * 3 * tD * bf + 3 * tD * f4)                # wqkv, bqkv
           + 2 * (two_lfp * L + L * two_lfp) * f4               # fwd / inv DFT matrices
           + 2 * 2 * two_lfp * tD * f4                          # kernel rffts (k + ssm)
           + 2 * (tD * D * bf + D * f4)                         # wo, bo
           + (4 * L * tD + 6 * two_lfp * tD + 8 * L * tD) * f4  # live f32 intermediates
           + 2 * L * D * f4)                                    # qkv + out-proj contribution
    return int(min(64 * (1 << 20), max(32 * (1 << 20), int(1.5 * est))))


def _h3_forward_impl(u, params, d_tile, single_buffer_dft):
    B, L, D = u.shape
    f32, bf16 = jnp.float32, jnp.bfloat16
    tD = _pick_d_tile(D, d_tile)
    n_dt = D // tD
    N = 2 * L
    lfp = _round_up(L + 1, 128)        # padded rfft length: lane-aligned slices/matmuls

    # --- parameter prep (wrapper side, once) --------------------------------
    # Fused tile-major QKV weight: column block j (width 3*tD) = [Wq_j|Wk_j|Wv_j].
    def cols(w):                       # (out, in) PyTorch weight -> transposed tiles
        return w.T.reshape(D, n_dt, tD)

    wqkv = jnp.stack([cols(params["wq"]), cols(params["wk"]), cols(params["wv"])],
                     axis=2).reshape(D, 3 * D).astype(bf16)         # (D, 3D) bf16

    def vec(b):
        return b.reshape(n_dt, tD)

    bqkv = jnp.stack([vec(params["bq"]), vec(params["bk"]), vec(params["bv"])],
                     axis=1).reshape(1, 3 * D).astype(f32)          # (1, 3D) f32

    fwd, inv = _dft_matrices(L, lfp)                                # (2lfp,L), (L,2lfp)
    kkf = _kernel_rfft_stack(params["k_kernel"], params["k_D"], lfp, N)   # (2lfp, D)
    ssmf = _kernel_rfft_stack(params["ssm_kernel"], params["D"], lfp, N)  # (2lfp, D)
    wo = params["wo"].T.astype(bf16)              # (D, D) pre-transposed, bf16
    bo = params["bo"][None, :].astype(f32)        # (1, D)

    # --- specs ---------------------------------------------------------------
    def dft_spec(shape):
        # The DFT matrices never change across the grid: skip the default double
        # buffering to save VMEM (they are the largest grid-invariant operands).
        if single_buffer_dft:
            return pl.BlockSpec(shape, lambda b, j: (0, 0), pipeline_mode=pl.Buffered(1))
        return pl.BlockSpec(shape, lambda b, j: (0, 0))

    grid_spec = pltpu.PrefetchScalarGridSpec(
        num_scalar_prefetch=0,
        grid=(B, n_dt),                            # channel-tile (reduction) axis last
        in_specs=[
            pl.BlockSpec((pl.Squeezed(), L, D), lambda b, j: (b, 0, 0)),   # u
            pl.BlockSpec((D, 3 * tD), lambda b, j: (0, j)),                # [Wq|Wk|Wv]^T
            pl.BlockSpec((1, 3 * tD), lambda b, j: (0, j)),                # [bq|bk|bv]
            dft_spec((2 * lfp, L)),                                        # forward DFT
            dft_spec((L, 2 * lfp)),                                        # inverse DFT
            pl.BlockSpec((2 * lfp, tD), lambda b, j: (0, j)),              # rfft(k_kernel)+k_D
            pl.BlockSpec((2 * lfp, tD), lambda b, j: (0, j)),              # rfft(ssm_kernel)+D
            pl.BlockSpec((tD, D), lambda b, j: (j, 0)),                    # Wo^T rows
            pl.BlockSpec((1, D), lambda b, j: (0, 0)),                     # bo
        ],
        out_specs=pl.BlockSpec((pl.Squeezed(), L, D), lambda b, j: (b, 0, 0)),
    )

    return pl.pallas_call(
        _h3_kernel,
        out_shape=jax.ShapeDtypeStruct((B, L, D), f32),
        grid_spec=grid_spec,
        compiler_params=pltpu.CompilerParams(
            dimension_semantics=("parallel", "arbitrary"),
            vmem_limit_bytes=_vmem_limit_bytes(L, D, tD, lfp)),
    )(u.astype(bf16), wqkv, bqkv, fwd, inv, kkf, ssmf, wo, bo)


def h3_conv_forward(u, params, *, d_tile=None):
    try:
        return _h3_forward_impl(u, params, d_tile, single_buffer_dft=True)
    except Exception:
        # pl.Buffered(1) single-buffering may be unsupported on this jax build;
        # fall back to the default double-buffered pipeline (same math).
        return _h3_forward_impl(u, params, d_tile, single_buffer_dft=False)


def h3_conv_reference(u, params):
    """Pure-JAX reference mirroring the PyTorch forward (FFT path, head_dim=1)."""
    B, L, D = u.shape
    x = u.reshape(B * L, D)
    q = (x @ params["wq"].T + params["bq"]).reshape(B, L, D).transpose(0, 2, 1)
    k = (x @ params["wk"].T + params["bk"]).reshape(B, L, D).transpose(0, 2, 1)
    v = (x @ params["wv"].T + params["bv"]).reshape(B, L, D).transpose(0, 2, 1)

    n = 2 * L
    kk_f = jnp.fft.rfft(params["k_kernel"], n=n, axis=-1)
    k_f = jnp.fft.rfft(k, n=n, axis=-1)
    shift_k = jnp.fft.irfft(kk_f * k_f, n=n, axis=-1)[..., :L]
    k = shift_k + params["k_D"][:, None] * k

    kv = k * v
    ssm_f = jnp.fft.rfft(params["ssm_kernel"], n=n, axis=-1)
    kv_f = jnp.fft.rfft(kv, n=n, axis=-1)
    y = jnp.fft.irfft(kv_f * ssm_f, n=n, axis=-1)[..., :L]
    y = y + params["D"][:, None] * kv
    y = y * q                                  # head_dim == 1
    y = y.transpose(0, 2, 1)                   # (B, L, D)
    return y @ params["wo"].T + params["bo"]


def init_params(key, d_model, L):
    ks = jax.random.split(key, 12)
    scale = 1.0 / jnp.sqrt(d_model)

    def linear(kw, kb):
        w = jax.random.uniform(kw, (d_model, d_model), jnp.float32, -scale, scale)
        b = jax.random.uniform(kb, (d_model,), jnp.float32, -scale, scale)
        return w, b

    wq, bq = linear(ks[0], ks[1])
    wk, bk = linear(ks[2], ks[3])
    wv, bv = linear(ks[4], ks[5])
    wo, bo = linear(ks[6], ks[7])
    # LongConvKernel outputs are synthesized deterministically as (d_model, L).
    k_kernel = 0.1 * jax.random.normal(ks[8], (d_model, L), jnp.float32)
    ssm_kernel = 0.1 * jax.random.normal(ks[9], (d_model, L), jnp.float32)
    k_D = jax.random.normal(ks[10], (d_model,), jnp.float32)
    Dp = jax.random.normal(ks[11], (d_model,), jnp.float32)   # self.D, H == d_model
    return dict(wq=wq, bq=bq, wk=wk, bk=bk, wv=wv, bv=bv, wo=wo, bo=bo,
                k_kernel=k_kernel, ssm_kernel=ssm_kernel, k_D=k_D, D=Dp)


if __name__ == "__main__":
    B, L, d_model = 2, 16, 256
    key = jax.random.PRNGKey(0)
    pkey, ukey = jax.random.split(key)
    params = init_params(pkey, d_model, L)
    u = jax.random.normal(ukey, (B, L, d_model), jnp.float32)

    ref = h3_conv_reference(u, params)

    # Default channel tiling (single tile at this size) ...
    out = jax.block_until_ready(h3_conv_forward(u, params))
    # ... and an explicitly D-tiled run (2 channel tiles: exercises the
    # output-projection accumulation across the reduction grid axis).
    out_tiled = jax.block_until_ready(h3_conv_forward(u, params, d_tile=128))

    assert out.shape == (B, L, d_model)
    assert out_tiled.shape == (B, L, d_model)
    for got in (out, out_tiled):
        err = float(jnp.max(jnp.abs(got - ref)))
        assert jnp.allclose(got, ref, atol=5e-2, rtol=5e-2), err
    print("KERNEL_OK")
</pallas_src>

<mosaic_0001>
module attributes {stable_mosaic.version = 11 : i64} {
  func.func @_h3_kernel(%arg0: i32, %arg1: i32, %arg2: memref<1x16x256xbf16, #tpu.memory_space<vmem>>, %arg3: memref<256x768xbf16, #tpu.memory_space<vmem>>, %arg4: memref<1x768xf32, #tpu.memory_space<vmem>>, %arg5: memref<256x16xf32, #tpu.memory_space<vmem>>, %arg6: memref<16x256xf32, #tpu.memory_space<vmem>>, %arg7: memref<256x256xf32, #tpu.memory_space<vmem>>, %arg8: memref<256x256xf32, #tpu.memory_space<vmem>>, %arg9: memref<256x256xbf16, #tpu.memory_space<vmem>>, %arg10: memref<1x256xf32, #tpu.memory_space<vmem>>, %arg11: memref<1x16x256xf32, #tpu.memory_space<vmem>>) attributes {dimension_semantics = [#tpu.dimension_semantics<parallel>, #tpu.dimension_semantics<arbitrary>], iteration_bounds = array<i64: 2, 1>, scalar_prefetch = 0 : i64, scratch_operands = 0 : i64, tpu.core_type = #tpu.core_type<tc>, window_params = [{transform_indices = @transform_0, window_bounds = array<i64: 1, 16, 256>}, {transform_indices = @transform_1, window_bounds = array<i64: 256, 768>}, {transform_indices = @transform_2, window_bounds = array<i64: 1, 768>}, {pipeline_mode = #tpu.pipeline_mode<synchronous>, transform_indices = @transform_3, window_bounds = array<i64: 256, 16>}, {pipeline_mode = #tpu.pipeline_mode<synchronous>, transform_indices = @transform_4, window_bounds = array<i64: 16, 256>}, {transform_indices = @transform_5, window_bounds = array<i64: 256, 256>}, {transform_indices = @transform_6, window_bounds = array<i64: 256, 256>}, {transform_indices = @transform_7, window_bounds = array<i64: 256, 256>}, {pipeline_mode = #tpu.pipeline_mode<synchronous>, transform_indices = @transform_8, window_bounds = array<i64: 1, 256>}, {transform_indices = @transform_9, window_bounds = array<i64: 1, 16, 256>}]} {
    %c0 = arith.constant 0 : index
    %c0_0 = arith.constant 0 : index
    %c0_1 = arith.constant 0 : index
    %0 = vector.load %arg2[%c0, %c0_0, %c0_1] : memref<1x16x256xbf16, #tpu.memory_space<vmem>>, vector<1x16x256xbf16>
    %1 = vector.shape_cast %0 : vector<1x16x256xbf16> to vector<16x256xbf16>
    %c0_2 = arith.constant 0 : index
    %c0_3 = arith.constant 0 : index
    %2 = vector.load %arg3[%c0_2, %c0_3] : memref<256x768xbf16, #tpu.memory_space<vmem>>, vector<256x768xbf16>
    %cst = arith.constant dense<0.000000e+00> : vector<16x768xf32>
    %3 = tpu.matmul %1, %2, %cst {dimension_numbers = #tpu.dot_dimension_numbers<[1], [0], [0], [1], [0, 0, 1, 1], [], []>} : vector<16x256xbf16>, vector<256x768xbf16>, vector<16x768xf32> -> vector<16x768xf32>
    %c0_4 = arith.constant 0 : index
    %c0_5 = arith.constant 0 : index
    %4 = vector.load %arg4[%c0_4, %c0_5] : memref<1x768xf32, #tpu.memory_space<vmem>>, vector<1x768xf32>
    %5 = vector.broadcast %4 : vector<1x768xf32> to vector<16x768xf32>
    %6 = arith.addf %3, %5 : vector<16x768xf32>
    %7 = vector.extract_strided_slice %6 {offsets = [0, 0], sizes = [16, 256], strides = [1, 1]} : vector<16x768xf32> to vector<16x256xf32>
    %8 = vector.extract_strided_slice %6 {offsets = [0, 256], sizes = [16, 256], strides = [1, 1]} : vector<16x768xf32> to vector<16x256xf32>
    %9 = vector.extract_strided_slice %6 {offsets = [0, 512], sizes = [16, 256], strides = [1, 1]} : vector<16x768xf32> to vector<16x256xf32>
    %c0_6 = arith.constant 0 : index
    %c0_7 = arith.constant 0 : index
    %10 = vector.load %arg5[%c0_6, %c0_7] : memref<256x16xf32, #tpu.memory_space<vmem>>, vector<256x16xf32>
    %c0_8 = arith.constant 0 : index
    %c0_9 = arith.constant 0 : index
    %11 = vector.load %arg6[%c0_8, %c0_9] : memref<16x256xf32, #tpu.memory_space<vmem>>, vector<16x256xf32>
    %12 = vector.extract_strided_slice %11 {offsets = [0, 0], sizes = [16, 128], strides = [1, 1]} : vector<16x256xf32> to vector<16x128xf32>
    %13 = vector.extract_strided_slice %11 {offsets = [0, 128], sizes = [16, 128], strides = [1, 1]} : vector<16x256xf32> to vector<16x128xf32>
    %cst_10 = arith.constant dense<0.000000e+00> : vector<256x256xf32>
    %14 = tpu.matmul %10, %8, %cst_10 {dimension_numbers = #tpu.dot_dimension_numbers<[1], [0], [0], [1], [0, 0, 1, 1], [], []>} : vector<256x16xf32>, vector<16x256xf32>, vector<256x256xf32> -> vector<256x256xf32>
    %15 = vector.extract_strided_slice %14 {offsets = [0, 0], sizes = [128, 256], strides = [1, 1]} : vector<256x256xf32> to vector<128x256xf32>
    %16 = vector.extract_strided_slice %14 {offsets = [128, 0], sizes = [128, 256], strides = [1, 1]} : vector<256x256xf32> to vector<128x256xf32>
    %c0_11 = arith.constant 0 : index
    %c0_12 = arith.constant 0 : index
    %17 = vector.load %arg7[%c0_11, %c0_12] : memref<256x256xf32, #tpu.memory_space<vmem>>, vector<256x256xf32>
    %18 = vector.extract_strided_slice %17 {offsets = [0, 0], sizes = [128, 256], strides = [1, 1]} : vector<256x256xf32> to vector<128x256xf32>
    %19 = vector.extract_strided_slice %17 {offsets = [128, 0], sizes = [128, 256], strides = [1, 1]} : vector<256x256xf32> to vector<128x256xf32>
    %20 = arith.mulf %18, %15 : vector<128x256xf32>
    %21 = arith.mulf %19, %16 : vector<128x256xf32>
    %22 = arith.subf %20, %21 : vector<128x256xf32>
    %23 = arith.mulf %18, %16 : vector<128x256xf32>
    %24 = arith.mulf %19, %15 : vector<128x256xf32>
    %25 = arith.addf %23, %24 : vector<128x256xf32>
    %cst_13 = arith.constant dense<0.000000e+00> : vector<16x256xf32>
    %26 = tpu.matmul %12, %22, %cst_13 {dimension_numbers = #tpu.dot_dimension_numbers<[1], [0], [0], [1], [0, 0, 1, 1], [], []>} : vector<16x128xf32>, vector<128x256xf32>, vector<16x256xf32> -> vector<16x256xf32>
    %cst_14 = arith.constant dense<0.000000e+00> : vector<16x256xf32>
    %27 = tpu.matmul %13, %25, %cst_14 {dimension_numbers = #tpu.dot_dimension_numbers<[1], [0], [0], [1], [0, 0, 1, 1], [], []>} : vector<16x128xf32>, vector<128x256xf32>, vector<16x256xf32> -> vector<16x256xf32>
    %28 = arith.addf %26, %27 : vector<16x256xf32>
    %29 = arith.mulf %28, %9 : vector<16x256xf32>
    %cst_15 = arith.constant dense<0.000000e+00> : vector<256x256xf32>
    %30 = tpu.matmul %10, %29, %cst_15 {dimension_numbers = #tpu.dot_dimension_numbers<[1], [0], [0], [1], [0, 0, 1, 1], [], []>} : vector<256x16xf32>, vector<16x256xf32>, vector<256x256xf32> -> vector<256x256xf32>
    %31 = vector.extract_strided_slice %30 {offsets = [0, 0], sizes = [128, 256], strides = [1, 1]} : vector<256x256xf32> to vector<128x256xf32>
    %32 = vector.extract_strided_slice %30 {offsets = [128, 0], sizes = [128, 256], strides = [1, 1]} : vector<256x256xf32> to vector<128x256xf32>
    %c0_16 = arith.constant 0 : index
    %c0_17 = arith.constant 0 : index
    %33 = vector.load %arg8[%c0_16, %c0_17] : memref<256x256xf32, #tpu.memory_space<vmem>>, vector<256x256xf32>
    %34 = vector.extract_strided_slice %33 {offsets = [0, 0], sizes = [128, 256], strides = [1, 1]} : vector<256x256xf32> to vector<128x256xf32>
    %35 = vector.extract_strided_slice %33 {offsets = [128, 0], sizes = [128, 256], strides = [1, 1]} : vector<256x256xf32> to vector<128x256xf32>
    %36 = arith.mulf %34, %31 : vector<128x256xf32>
    %37 = arith.mulf %35, %32 : vector<128x256xf32>
    %38 = arith.subf %36, %37 : vector<128x256xf32>
    %39 = arith.mulf %34, %32 : vector<128x256xf32>
    %40 = arith.mulf %35, %31 : vector<128x256xf32>
    %41 = arith.addf %39, %40 : vector<128x256xf32>
    %cst_18 = arith.constant dense<0.000000e+00> : vector<16x256xf32>
    %42 = tpu.matmul %12, %38, %cst_18 {dimension_numbers = #tpu.dot_dimension_numbers<[1], [0], [0], [1], [0, 0, 1, 1], [], []>} : vector<16x128xf32>, vector<128x256xf32>, vector<16x256xf32> -> vector<16x256xf32>
    %cst_19 = arith.constant dense<0.000000e+00> : vector<16x256xf32>
    %43 = tpu.matmul %13, %41, %cst_19 {dimension_numbers = #tpu.dot_dimension_numbers<[1], [0], [0], [1], [0, 0, 1, 1], [], []>} : vector<16x128xf32>, vector<128x256xf32>, vector<16x256xf32> -> vector<16x256xf32>
    %44 = arith.addf %42, %43 : vector<16x256xf32>
    %45 = arith.mulf %44, %7 : vector<16x256xf32>
    %46 = arith.truncf %45 : vector<16x256xf32> to vector<16x256xbf16>
    %c0_20 = arith.constant 0 : index
    %c0_21 = arith.constant 0 : index
    %47 = vector.load %arg9[%c0_20, %c0_21] : memref<256x256xbf16, #tpu.memory_space<vmem>>, vector<256x256xbf16>
    %cst_22 = arith.constant dense<0.000000e+00> : vector<16x256xf32>
    %48 = tpu.matmul %46, %47, %cst_22 {dimension_numbers = #tpu.dot_dimension_numbers<[1], [0], [0], [1], [0, 0, 1, 1], [], []>} : vector<16x256xbf16>, vector<256x256xbf16>, vector<16x256xf32> -> vector<16x256xf32>
    %c0_i32 = arith.constant 0 : i32
    %49 = arith.cmpi eq, %arg1, %c0_i32 : i32
    %50 = arith.extui %49 : i1 to i32
    %c0_i32_23 = arith.constant 0 : i32
    %51 = arith.cmpi ne, %50, %c0_i32_23 : i32
    scf.if %51 {
      %c0_26 = arith.constant 0 : index
      %c0_27 = arith.constant 0 : index
      %55 = vector.load %arg10[%c0_26, %c0_27] : memref<1x256xf32, #tpu.memory_space<vmem>>, vector<1x256xf32>
      %56 = vector.broadcast %55 : vector<1x256xf32> to vector<16x256xf32>
      %57 = arith.addf %48, %56 : vector<16x256xf32>
      %c0_28 = arith.constant 0 : index
      %c0_29 = arith.constant 0 : index
      %c0_30 = arith.constant 0 : index
      %58 = vector.load %arg11[%c0_28, %c0_29, %c0_30] : memref<1x16x256xf32, #tpu.memory_space<vmem>>, vector<1x16x256xf32>
      %59 = vector.shape_cast %58 : vector<1x16x256xf32> to vector<16x256xf32>
      %60 = vector.shape_cast %57 : vector<16x256xf32> to vector<1x16x256xf32>
      tpu.vector_store %arg11[%c0_28, %c0_29, %c0_30], %60 {strides = array<i32>} : memref<1x16x256xf32, #tpu.memory_space<vmem>>, vector<1x16x256xf32>,
    } else {
    }
    %c0_i32_24 = arith.constant 0 : i32
    %52 = arith.cmpi ne, %arg1, %c0_i32_24 : i32
    %53 = arith.extui %52 : i1 to i32
    %c0_i32_25 = arith.constant 0 : i32
    %54 = arith.cmpi ne, %53, %c0_i32_25 : i32
    scf.if %54 {
      %c0_26 = arith.constant 0 : index
      %c0_27 = arith.constant 0 : index
      %c0_28 = arith.constant 0 : index
      %55 = vector.load %arg11[%c0_26, %c0_27, %c0_28] : memref<1x16x256xf32, #tpu.memory_space<vmem>>, vector<1x16x256xf32>
      %56 = vector.shape_cast %55 : vector<1x16x256xf32> to vector<16x256xf32>
      %57 = arith.addf %56, %48 : vector<16x256xf32>
      %c0_29 = arith.constant 0 : index
      %c0_30 = arith.constant 0 : index
      %c0_31 = arith.constant 0 : index
      %58 = vector.load %arg11[%c0_29, %c0_30, %c0_31] : memref<1x16x256xf32, #tpu.memory_space<vmem>>, vector<1x16x256xf32>
      %59 = vector.shape_cast %58 : vector<1x16x256xf32> to vector<16x256xf32>
      %60 = vector.shape_cast %57 : vector<16x256xf32> to vector<1x16x256xf32>
      tpu.vector_store %arg11[%c0_29, %c0_30, %c0_31], %60 {strides = array<i32>} : memref<1x16x256xf32, #tpu.memory_space<vmem>>, vector<1x16x256xf32>,
    } else {
    }
    return
  }
  func.func @transform_0(%arg0: i32, %arg1: i32) -> (i32, i32, i32) {
    %c0_i32 = arith.constant 0 : i32
    %c0_i32_0 = arith.constant 0 : i32
    %c0_i32_1 = arith.constant 0 : i32
    return %arg0, %c0_i32, %c0_i32_0 : i32, i32, i32
  }
  func.func @transform_1(%arg0: i32, %arg1: i32) -> (i32, i32) {
    %c0_i32 = arith.constant 0 : i32
    %c0_i32_0 = arith.constant 0 : i32
    return %c0_i32, %arg1 : i32, i32
  }
  func.func @transform_2(%arg0: i32, %arg1: i32) -> (i32, i32) {
    %c0_i32 = arith.constant 0 : i32
    %c0_i32_0 = arith.constant 0 : i32
    return %c0_i32, %arg1 : i32, i32
  }
  func.func @transform_3(%arg0: i32, %arg1: i32) -> (i32, i32) {
    %c0_i32 = arith.constant 0 : i32
    %c0_i32_0 = arith.constant 0 : i32
    %c0_i32_1 = arith.constant 0 : i32
    return %c0_i32, %c0_i32_0 : i32, i32
  }
  func.func @transform_4(%arg0: i32, %arg1: i32) -> (i32, i32) {
    %c0_i32 = arith.constant 0 : i32
    %c0_i32_0 = arith.constant 0 : i32
    %c0_i32_1 = arith.constant 0 : i32
    return %c0_i32, %c0_i32_0 : i32, i32
  }
  func.func @transform_5(%arg0: i32, %arg1: i32) -> (i32, i32) {
    %c0_i32 = arith.constant 0 : i32
    %c0_i32_0 = arith.constant 0 : i32
    return %c0_i32, %arg1 : i32, i32
  }
  func.func @transform_6(%arg0: i32, %arg1: i32) -> (i32, i32) {
    %c0_i32 = arith.constant 0 : i32
    %c0_i32_0 = arith.constant 0 : i32
    return %c0_i32, %arg1 : i32, i32
  }
  func.func @transform_7(%arg0: i32, %arg1: i32) -> (i32, i32) {
    %c0_i32 = arith.constant 0 : i32
    %c0_i32_0 = arith.constant 0 : i32
    return %arg1, %c0_i32 : i32, i32
  }
  func.func @transform_8(%arg0: i32, %arg1: i32) -> (i32, i32) {
    %c0_i32 = arith.constant 0 : i32
    %c0_i32_0 = arith.constant 0 : i32
    %c0_i32_1 = arith.constant 0 : i32
    return %c0_i32, %c0_i32_0 : i32, i32
  }
  func.func @transform_9(%arg0: i32, %arg1: i32) -> (i32, i32, i32) {
    %c0_i32 = arith.constant 0 : i32
    %c0_i32_0 = arith.constant 0 : i32
    %c0_i32_1 = arith.constant 0 : i32
    return %arg0, %c0_i32, %c0_i32_0 : i32, i32, i32
  }
}

module attributes {stable_mosaic.version = 11 : i64} {
  func.func @_h3_kernel(%arg0: i32, %arg1: i32, %arg2: memref<1x16x256xbf16, #tpu.memory_space<vmem>>, %arg3: memref<256x768xbf16, #tpu.memory_space<vmem>>, %arg4: memref<1x768xf32, #tpu.memory_space<vmem>>, %arg5: memref<256x16xf32, #tpu.memory_space<vmem>>, %arg6: memref<16x256xf32, #tpu.memory_space<vmem>>, %arg7: memref<256x256xf32, #tpu.memory_space<vmem>>, %arg8: memref<256x256xf32, #tpu.memory_space<vmem>>, %arg9: memref<256x256xbf16, #tpu.memory_space<vmem>>, %arg10: memref<1x256xf32, #tpu.memory_space<vmem>>, %arg11: memref<1x16x256xf32, #tpu.memory_space<vmem>>) attributes {dimension_semantics = [#tpu.dimension_semantics<parallel>, #tpu.dimension_semantics<arbitrary>], iteration_bounds = array<i64: 2, 1>, scalar_prefetch = 0 : i64, scratch_operands = 0 : i64, tpu.core_type = #tpu.core_type<tc>, window_params = [{transform_indices = @transform_0, window_bounds = array<i64: 1, 16, 256>}, {transform_indices = @transform_1, window_bounds = array<i64: 256, 768>}, {transform_indices = @transform_2, window_bounds = array<i64: 1, 768>}, {pipeline_mode = #tpu.pipeline_mode<synchronous>, transform_indices = @transform_3, window_bounds = array<i64: 256, 16>}, {pipeline_mode = #tpu.pipeline_mode<synchronous>, transform_indices = @transform_4, window_bounds = array<i64: 16, 256>}, {transform_indices = @transform_5, window_bounds = array<i64: 256, 256>}, {transform_indices = @transform_6, window_bounds = array<i64: 256, 256>}, {transform_indices = @transform_7, window_bounds = array<i64: 256, 256>}, {pipeline_mode = #tpu.pipeline_mode<synchronous>, transform_indices = @transform_8, window_bounds = array<i64: 1, 256>}, {transform_indices = @transform_9, window_bounds = array<i64: 1, 16, 256>}]} {
    %c0 = arith.constant 0 : index
    %c0_0 = arith.constant 0 : index
    %c0_1 = arith.constant 0 : index
    %0 = vector.load %arg2[%c0, %c0_0, %c0_1] : memref<1x16x256xbf16, #tpu.memory_space<vmem>>, vector<1x16x256xbf16>
    %1 = vector.shape_cast %0 : vector<1x16x256xbf16> to vector<16x256xbf16>
    %c0_2 = arith.constant 0 : index
    %c0_3 = arith.constant 0 : index
    %2 = vector.load %arg3[%c0_2, %c0_3] : memref<256x768xbf16, #tpu.memory_space<vmem>>, vector<256x768xbf16>
    %cst = arith.constant dense<0.000000e+00> : vector<16x768xf32>
    %3 = tpu.matmul %1, %2, %cst {dimension_numbers = #tpu.dot_dimension_numbers<[1], [0], [0], [1], [0, 0, 1, 1], [], []>} : vector<16x256xbf16>, vector<256x768xbf16>, vector<16x768xf32> -> vector<16x768xf32>
    %c0_4 = arith.constant 0 : index
    %c0_5 = arith.constant 0 : index
    %4 = vector.load %arg4[%c0_4, %c0_5] : memref<1x768xf32, #tpu.memory_space<vmem>>, vector<1x768xf32>
    %5 = vector.broadcast %4 : vector<1x768xf32> to vector<16x768xf32>
    %6 = arith.addf %3, %5 : vector<16x768xf32>
    %7 = vector.extract_strided_slice %6 {offsets = [0, 0], sizes = [16, 256], strides = [1, 1]} : vector<16x768xf32> to vector<16x256xf32>
    %8 = vector.extract_strided_slice %6 {offsets = [0, 256], sizes = [16, 256], strides = [1, 1]} : vector<16x768xf32> to vector<16x256xf32>
    %9 = vector.extract_strided_slice %6 {offsets = [0, 512], sizes = [16, 256], strides = [1, 1]} : vector<16x768xf32> to vector<16x256xf32>
    %c0_6 = arith.constant 0 : index
    %c0_7 = arith.constant 0 : index
    %10 = vector.load %arg5[%c0_6, %c0_7] : memref<256x16xf32, #tpu.memory_space<vmem>>, vector<256x16xf32>
    %c0_8 = arith.constant 0 : index
    %c0_9 = arith.constant 0 : index
    %11 = vector.load %arg6[%c0_8, %c0_9] : memref<16x256xf32, #tpu.memory_space<vmem>>, vector<16x256xf32>
    %12 = vector.extract_strided_slice %11 {offsets = [0, 0], sizes = [16, 128], strides = [1, 1]} : vector<16x256xf32> to vector<16x128xf32>
    %13 = vector.extract_strided_slice %11 {offsets = [0, 128], sizes = [16, 128], strides = [1, 1]} : vector<16x256xf32> to vector<16x128xf32>
    %cst_10 = arith.constant dense<0.000000e+00> : vector<256x256xf32>
    %14 = tpu.matmul %10, %8, %cst_10 {dimension_numbers = #tpu.dot_dimension_numbers<[1], [0], [0], [1], [0, 0, 1, 1], [], []>} : vector<256x16xf32>, vector<16x256xf32>, vector<256x256xf32> -> vector<256x256xf32>
    %15 = vector.extract_strided_slice %14 {offsets = [0, 0], sizes = [128, 256], strides = [1, 1]} : vector<256x256xf32> to vector<128x256xf32>
    %16 = vector.extract_strided_slice %14 {offsets = [128, 0], sizes = [128, 256], strides = [1, 1]} : vector<256x256xf32> to vector<128x256xf32>
    %c0_11 = arith.constant 0 : index
    %c0_12 = arith.constant 0 : index
    %17 = vector.load %arg7[%c0_11, %c0_12] : memref<256x256xf32, #tpu.memory_space<vmem>>, vector<256x256xf32>
    %18 = vector.extract_strided_slice %17 {offsets = [0, 0], sizes = [128, 256], strides = [1, 1]} : vector<256x256xf32> to vector<128x256xf32>
    %19 = vector.extract_strided_slice %17 {offsets = [128, 0], sizes = [128, 256], strides = [1, 1]} : vector<256x256xf32> to vector<128x256xf32>
    %20 = arith.mulf %18, %15 : vector<128x256xf32>
    %21 = arith.mulf %19, %16 : vector<128x256xf32>
    %22 = arith.subf %20, %21 : vector<128x256xf32>
    %23 = arith.mulf %18, %16 : vector<128x256xf32>
    %24 = arith.mulf %19, %15 : vector<128x256xf32>
    %25 = arith.addf %23, %24 : vector<128x256xf32>
    %cst_13 = arith.constant dense<0.000000e+00> : vector<16x256xf32>
    %26 = tpu.matmul %12, %22, %cst_13 {dimension_numbers = #tpu.dot_dimension_numbers<[1], [0], [0], [1], [0, 0, 1, 1], [], []>} : vector<16x128xf32>, vector<128x256xf32>, vector<16x256xf32> -> vector<16x256xf32>
    %cst_14 = arith.constant dense<0.000000e+00> : vector<16x256xf32>
    %27 = tpu.matmul %13, %25, %cst_14 {dimension_numbers = #tpu.dot_dimension_numbers<[1], [0], [0], [1], [0, 0, 1, 1], [], []>} : vector<16x128xf32>, vector<128x256xf32>, vector<16x256xf32> -> vector<16x256xf32>
    %28 = arith.addf %26, %27 : vector<16x256xf32>
    %29 = arith.mulf %28, %9 : vector<16x256xf32>
    %cst_15 = arith.constant dense<0.000000e+00> : vector<256x256xf32>
    %30 = tpu.matmul %10, %29, %cst_15 {dimension_numbers = #tpu.dot_dimension_numbers<[1], [0], [0], [1], [0, 0, 1, 1], [], []>} : vector<256x16xf32>, vector<16x256xf32>, vector<256x256xf32> -> vector<256x256xf32>
    %31 = vector.extract_strided_slice %30 {offsets = [0, 0], sizes = [128, 256], strides = [1, 1]} : vector<256x256xf32> to vector<128x256xf32>
    %32 = vector.extract_strided_slice %30 {offsets = [128, 0], sizes = [128, 256], strides = [1, 1]} : vector<256x256xf32> to vector<128x256xf32>
    %c0_16 = arith.constant 0 : index
    %c0_17 = arith.constant 0 : index
    %33 = vector.load %arg8[%c0_16, %c0_17] : memref<256x256xf32, #tpu.memory_space<vmem>>, vector<256x256xf32>
    %34 = vector.extract_strided_slice %33 {offsets = [0, 0], sizes = [128, 256], strides = [1, 1]} : vector<256x256xf32> to vector<128x256xf32>
    %35 = vector.extract_strided_slice %33 {offsets = [128, 0], sizes = [128, 256], strides = [1, 1]} : vector<256x256xf32> to vector<128x256xf32>
    %36 = arith.mulf %34, %31 : vector<128x256xf32>
    %37 = arith.mulf %35, %32 : vector<128x256xf32>
    %38 = arith.subf %36, %37 : vector<128x256xf32>
    %39 = arith.mulf %34, %32 : vector<128x256xf32>
    %40 = arith.mulf %35, %31 : vector<128x256xf32>
    %41 = arith.addf %39, %40 : vector<128x256xf32>
    %cst_18 = arith.constant dense<0.000000e+00> : vector<16x256xf32>
    %42 = tpu.matmul %12, %38, %cst_18 {dimension_numbers = #tpu.dot_dimension_numbers<[1], [0], [0], [1], [0, 0, 1, 1], [], []>} : vector<16x128xf32>, vector<128x256xf32>, vector<16x256xf32> -> vector<16x256xf32>
    %cst_19 = arith.constant dense<0.000000e+00> : vector<16x256xf32>
    %43 = tpu.matmul %13, %41, %cst_19 {dimension_numbers = #tpu.dot_dimension_numbers<[1], [0], [0], [1], [0, 0, 1, 1], [], []>} : vector<16x128xf32>, vector<128x256xf32>, vector<16x256xf32> -> vector<16x256xf32>
    %44 = arith.addf %42, %43 : vector<16x256xf32>
    %45 = arith.mulf %44, %7 : vector<16x256xf32>
    %46 = arith.truncf %45 : vector<16x256xf32> to vector<16x256xbf16>
    %c0_20 = arith.constant 0 : index
    %c0_21 = arith.constant 0 : index
    %47 = vector.load %arg9[%c0_20, %c0_21] : memref<256x256xbf16, #tpu.memory_space<vmem>>, vector<256x256xbf16>
    %cst_22 = arith.constant dense<0.000000e+00> : vector<16x256xf32>
    %48 = tpu.matmul %46, %47, %cst_22 {dimension_numbers = #tpu.dot_dimension_numbers<[1], [0], [0], [1], [0, 0, 1, 1], [], []>} : vector<16x256xbf16>, vector<256x256xbf16>, vector<16x256xf32> -> vector<16x256xf32>
    %c0_i32 = arith.constant 0 : i32
    %49 = arith.cmpi eq, %arg1, %c0_i32 : i32
    %50 = arith.extui %49 : i1 to i32
    %c0_i32_23 = arith.constant 0 : i32
    %51 = arith.cmpi ne, %50, %c0_i32_23 : i32
    scf.if %51 {
      %c0_26 = arith.constant 0 : index
      %c0_27 = arith.constant 0 : index
      %55 = vector.load %arg10[%c0_26, %c0_27] : memref<1x256xf32, #tpu.memory_space<vmem>>, vector<1x256xf32>
      %56 = vector.broadcast %55 : vector<1x256xf32> to vector<16x256xf32>
      %57 = arith.addf %48, %56 : vector<16x256xf32>
      %c0_28 = arith.constant 0 : index
      %c0_29 = arith.constant 0 : index
      %c0_30 = arith.constant 0 : index
      %58 = vector.load %arg11[%c0_28, %c0_29, %c0_30] : memref<1x16x256xf32, #tpu.memory_space<vmem>>, vector<1x16x256xf32>
      %59 = vector.shape_cast %58 : vector<1x16x256xf32> to vector<16x256xf32>
      %60 = vector.shape_cast %57 : vector<16x256xf32> to vector<1x16x256xf32>
      tpu.vector_store %arg11[%c0_28, %c0_29, %c0_30], %60 {strides = array<i32>} : memref<1x16x256xf32, #tpu.memory_space<vmem>>, vector<1x16x256xf32>,
    } else {
    }
    %c0_i32_24 = arith.constant 0 : i32
    %52 = arith.cmpi ne, %arg1, %c0_i32_24 : i32
    %53 = arith.extui %52 : i1 to i32
    %c0_i32_25 = arith.constant 0 : i32
    %54 = arith.cmpi ne, %53, %c0_i32_25 : i32
    scf.if %54 {
      %c0_26 = arith.constant 0 : index
      %c0_27 = arith.constant 0 : index
      %c0_28 = arith.constant 0 : index
      %55 = vector.load %arg11[%c0_26, %c0_27, %c0_28] : memref<1x16x256xf32, #tpu.memory_space<vmem>>, vector<1x16x256xf32>
      %56 = vector.shape_cast %55 : vector<1x16x256xf32> to vector<16x256xf32>
      %57 = arith.addf %56, %48 : vector<16x256xf32>
      %c0_29 = arith.constant 0 : index
      %c0_30 = arith.constant 0 : index
      %c0_31 = arith.constant 0 : index
      %58 = vector.load %arg11[%c0_29, %c0_30, %c0_31] : memref<1x16x256xf32, #tpu.memory_space<vmem>>, vector<1x16x256xf32>
      %59 = vector.shape_cast %58 : vector<1x16x256xf32> to vector<16x256xf32>
      %60 = vector.shape_cast %57 : vector<16x256xf32> to vector<1x16x256xf32>
      tpu.vector_store %arg11[%c0_29, %c0_30, %c0_31], %60 {strides = array<i32>} : memref<1x16x256xf32, #tpu.memory_space<vmem>>, vector<1x16x256xf32>,
    } else {
    }
    return
  }
  func.func @transform_0(%arg0: i32, %arg1: i32) -> (i32, i32, i32) {
    %c0_i32 = arith.constant 0 : i32
    %c0_i32_0 = arith.constant 0 : i32
    %c0_i32_1 = arith.constant 0 : i32
    return %arg0, %c0_i32, %c0_i32_0 : i32, i32, i32
  }
  func.func @transform_1(%arg0: i32, %arg1: i32) -> (i32, i32) {
    %c0_i32 = arith.constant 0 : i32
    %c0_i32_0 = arith.constant 0 : i32
    return %c0_i32, %arg1 : i32, i32
  }
  func.func @transform_2(%arg0: i32, %arg1: i32) -> (i32, i32) {
    %c0_i32 = arith.constant 0 : i32
    %c0_i32_0 = arith.constant 0 : i32
    return %c0_i32, %arg1 : i32, i32
  }
  func.func @transform_3(%arg0: i32, %arg1: i32) -> (i32, i32) {
    %c0_i32 = arith.constant 0 : i32
    %c0_i32_0 = arith.constant 0 : i32
    %c0_i32_1 = arith.constant 0 : i32
    return %c0_i32, %c0_i32_0 : i32, i32
  }
  func.func @transform_4(%arg0: i32, %arg1: i32) -> (i32, i32) {
    %c0_i32 = arith.constant 0 : i32
    %c0_i32_0 = arith.constant 0 : i32
    %c0_i32_1 = arith.constant 0 : i32
    return %c0_i32, %c0_i32_0 : i32, i32
  }
  func.func @transform_5(%arg0: i32, %arg1: i32) -> (i32, i32) {
    %c0_i32 = arith.constant 0 : i32
    %c0_i32_0 = arith.constant 0 : i32
    return %c0_i32, %arg1 : i32, i32
  }
  func.func @transform_6(%arg0: i32, %arg1: i32) -> (i32, i32) {
    %c0_i32 = arith.constant 0 : i32
    %c0_i32_0 = arith.constant 0 : i32
    return %c0_i32, %arg1 : i32, i32
  }
  func.func @transform_7(%arg0: i32, %arg1: i32) -> (i32, i32) {
    %c0_i32 = arith.constant 0 : i32
    %c0_i32_0 = arith.constant 0 : i32
    return %arg1, %c0_i32 : i32, i32
  }
  func.func @transform_8(%arg0: i32, %arg1: i32) -> (i32, i32) {
    %c0_i32 = arith.constant 0 : i32
    %c0_i32_0 = arith.constant 0 : i32
    %c0_i32_1 = arith.constant 0 : i32
    return %c0_i32, %c0_i32_0 : i32, i32
  }
  func.func @transform_9(%arg0: i32, %arg1: i32) -> (i32, i32, i32) {
    %c0_i32 = arith.constant 0 : i32
    %c0_i32_0 = arith.constant 0 : i32
    %c0_i32_1 = arith.constant 0 : i32
    return %arg0, %c0_i32, %c0_i32_0 : i32, i32, i32
  }
}

</mosaic_0001>

<bundles_post_ra>
// kernel: tpu_custom_call.1
= control target key start
LH: loop header
LB: loop body
LE: loop exit
PB: predicated region body
PF: predicated region fallthrough
CT: control target
= control target key end

     0   :  { %s5802_s0 = inlined_call_operand.vmem [shape: bf16[2,16,256], index: 0, kind: input, shape index: {}]   ;;  %s5803_s1 = inlined_call_operand.hbm [shape: bf16[256,768], index: 1, kind: input, shape index: {}]   ;;  %s5804_s2 = inlined_call_operand.vmem [shape: f32[1,768], index: 2, kind: input, shape index: {}]   ;;  %s5805_s3 = inlined_call_operand.vmem [shape: f32[256,16], index: 3, kind: input, shape index: {}]   ;;  %s5806_s4 = inlined_call_operand.hbm [shape: f32[16,256], index: 4, kind: input, shape index: {}]   ;;  %s5807_s5 = inlined_call_operand.hbm [shape: f32[256,256], index: 5, kind: input, shape index: {}]   ;;  %s5808_s6 = inlined_call_operand.hbm [shape: f32[256,256], index: 6, kind: input, shape index: {}]   ;;  %s5809_s7 = inlined_call_operand.vmem [shape: bf16[256,256], index: 7, kind: input, shape index: {}]   ;;  %s5810_s8 = inlined_call_operand.vmem [shape: f32[1,256], index: 8, kind: input, shape index: {}]   ;;  %s5811_s9 = inlined_call_operand.hbm [shape: f32[2,16,256], index: 9, kind: output, shape index: {}]  }
   0x1   :  { %5994 = sst [smem:[#allocation119_spill]] %s5806_s4 }
   0x2   :  { %14 = vsyncpa [#allocation3], 0 }
   0x3   :  { %15 = vsyncpa [#allocation6], 0 }
   0x4   :  { %16 = vsyncpa [#allocation9], 0 }
   0x5   :  { %17 = vsyncpa [#allocation4], 0 }
   0x6   :  { %19 = vsyncpa [#allocation4 + $0x1], 0  ;;  %s3939_s30 = smov 0   ;;  %s3941_s10 = smov 0  }
   0x7   :  { %s3943_s11 = smov 0   ;;  %s3945_s12 = smov 0  }
   0x8   :  { %s3947_s13 = smov 0   ;;  %s3949_s14 = smov 0  }
   0x9 LB: > { %5995 = sst [smem:[#allocation15_spill]] %s3871_s13  ;;  %s3132_s15 = sadd.s32 4294967295, %s3875_s14   ;;  %s3875_s14 = sphi %s3949_s14, %s25_s14   ;;  %s3871_s13 = sphi %s3947_s13, %s6441_s13   ;;  %s3867_s12 = sphi %s3945_s12, %s6440_s12   ;;  %s3863_s11 = sphi %s3943_s11, %s6444_s11   ;;  %s3859_s10 = sphi %s3941_s10, %s6443_s10   ;;  %s3855_s30 = sphi %s3939_s30, %s6442_s30  }
   0xa   : > { %s3133_s16 = sadd.s32 4294967294, %s3875_s14   ;;  %s37_s17 = sadd.s32 1, %s3871_s13 }
   0xb   : > { %s263_s18 = sadd.s32 1, %s3863_s11  ;;  %p39_p0 = scmp.ge.s32.totalorder %s37_s17, 2 }
   0xc   : > { %p273_p1 = scmp.ne.s32.totalorder %s3863_s11, %s3859_s10  ;;  %p274_p2 = scmp.eq.s32.totalorder %s3132_s15, 1 }
   0xd   : > { %p279_p3 = scmp.ne.s32.totalorder %s3859_s10, %s3855_s30  ;;  %s6446_s17 = smov (%p39_p0, %s37_s17), 0 }
   0xe   : > { %5996 = sst [smem:[#allocation16_spill]] %s6446_s17  ;;  %p3979_p4 = por %p274_p2, %p273_p1 }
   0xf   : > { %p280_p5 = scmp.eq.s32.totalorder %s3133_s16, 1  ;;  %s260_s20 = ssub.s32 %s3871_s13, %s6446_s17 }
  0x10   : > { %p3134_p6 = scmp.ge.s32.totalorder %s3875_s14, 1  ;;  %p261_p7 = scmp.eq.s32.totalorder %s260_s20, 0 }
  0x11   : > { %p3986_p8 = por %p280_p5, %p279_p3  ;;  %p287_p9 = scmp.lt.s32.totalorder %s3875_s14, 3 }
  0x12   : > { %s3992_s22 = scalar_select %p261_p7, %s3863_s11, %s263_s18  }
  0x13   : > { %p3994_p10 = pnand %p3134_p6, %p287_p9  ;;  %p3998_p11 = scmp.eq.s32.totalorder %s3132_s15, 0 }
  0x14   : > { %s3877_s25 = smov [#allocation5]   ;;  %s3878_s28 = smov [#allocation2]  }
  0x15   : > { %p3369_p12 = pneg %p3994_p10  ;;  %s326_s26 = sshll.u32 %s3877_s25, 4  ;;  %s327_s26 = int_to_ptr.vmem [resolvable:$true] %s326_s26 }
  0x16   : > { %s302_s29 = sshll.u32 %s3878_s28, 4  ;;  %s3694_s15 = scalar_lea.vmem %s327_s26, 512  ;;  %s303_s29 = int_to_ptr.vmem [resolvable:$true] %s302_s29 }
  0x17   : > { %p4006_p13 = pnand %p3998_p11, %p3369_p12  ;;  %p3695_p1 = scmp.ne.s32.totalorder %s327_s26, %s3694_s15 }
  0x18   : > { %p3702_p5 = scmp.lt.s32.totalorder %s327_s26, %s327_s26  ;;  %p3703_p6 = scmp.lt.s32.totalorder %s3694_s15, %s3694_s15 }
  0x19   : > { %p3685_p0 = pneg %p4006_p13 }
  0x1a   : > { %p3704_p7 = por %p3703_p6, %p3702_p5 }
  0x1b   : > { %p3697_p2 = pnand %p3695_p1, %p3685_p0 }
  0x1d   : > { %p3698_p3 = pneg %p3697_p2 }
  0x1f   : > { %p3705_p9 = pnand %p3704_p7, %p3698_p3 }
  0x21   : > { %3708 = shalt.err (!%p3705_p9)
}
  0x22   : > { %s5814_s16 = smov 256   ;;  %s5816_s18 = smov 16  }
  0x23   : > { %s6002_s4 = sld [smem:[#allocation119_spill]]  ;;  %s3720_s28 = scalar_lea.vmem %s303_s29, 12288 }
  0x24   : > { %p3721_p12 = scmp.ne.s32.totalorder %s303_s29, %s3720_s28  ;;  %p3728_p3 = scmp.lt.s32.totalorder %s303_s29, %s303_s29 }
  0x25   : > { %p3729_p5 = scmp.lt.s32.totalorder %s3720_s28, %s3720_s28 }
  0x26   : > { %p3723_p1 = pnand %p3721_p12, %p3685_p0 }
  0x27   : > { %p3730_p6 = por %p3729_p5, %p3728_p3 }
  0x28   : > { %p3724_p2 = pneg %p3723_p1 }
  0x29   : > { %3375 = dma.hbm_to_vmem [thread:$0]  (!%p4006_p13), %s6002_s4, 512, %s327_s26, [#allocation6], %s5814_s16, %s5814_s16, %s5816_s18  }
  0x2a   : > { %p3731_p7 = pnand %p3730_p6, %p3724_p2 }
  0x2c   : > { %3734 = shalt.err (!%p3731_p7)
}
  0x2d   : > { %s3881_s15 = smov 384   ;;  %s3882_s17 = smov 24  }
  0x2e   : > { %3372 = dma.hbm_to_vmem [thread:$0]  (!%p4006_p13), %s5803_s1, 12288, %s303_s29, [#allocation3], %s3881_s15, %s3881_s15, %s3882_s17  }
  0x2f   : > { %s3883_s26 = smov [#allocation7]   ;;  %s3884_s16 = smov [#allocation8]  }
  0x30   : > { %s342_s25 = sshll.u32 %s3883_s26, 4  ;;  %s358_s18 = sshll.u32 %s3884_s16, 4  ;;  %s343_s25 = int_to_ptr.vmem [resolvable:$true] %s342_s25  ;;  %s359_s18 = int_to_ptr.vmem [resolvable:$true] %s358_s18 }
  0x31   : > { %s3746_s4 = scalar_lea.vmem %s343_s25, 8192  ;;  %p3754_p2 = scmp.lt.s32.totalorder %s343_s25, %s343_s25 }
  0x32   : > { %p3747_p9 = scmp.ne.s32.totalorder %s343_s25, %s3746_s4  ;;  %p3755_p3 = scmp.lt.s32.totalorder %s3746_s4, %s3746_s4 }
  0x34   : > { %p3749_p12 = pnand %p3747_p9, %p3685_p0  ;;  %p3756_p5 = por %p3755_p3, %p3754_p2 }
  0x36   : > { %p3750_p1 = pneg %p3749_p12 }
  0x38   : > { %p3757_p6 = pnand %p3756_p5, %p3750_p1 }
  0x3a   : > { %3760 = shalt.err (!%p3757_p6)
}
  0x3b   : > { %s6003_s13 = smov 16   ;;  %s6004_s17 = smov 256  }
  0x3c   : > { %3378 = dma.hbm_to_vmem [thread:$0]  (!%p4006_p13), %s5807_s5, 8192, %s343_s25, [#allocation6], %s6004_s17, %s6004_s17, %s6003_s13  }
  0x3d   : > { %s3772_s16 = scalar_lea.vmem %s359_s18, 8192  ;;  %p3780_p2 = scmp.lt.s32.totalorder %s359_s18, %s359_s18 }
  0x3e   : > { %p3773_p7 = scmp.ne.s32.totalorder %s359_s18, %s3772_s16  ;;  %p3781_p1 = scmp.lt.s32.totalorder %s3772_s16, %s3772_s16 }
  0x40   : > { %p3775_p9 = pnand %p3773_p7, %p3685_p0  ;;  %p3782_p3 = por %p3781_p1, %p3780_p2 }
  0x42   : > { %p3776_p12 = pneg %p3775_p9 }
  0x44   : > { %p3783_p5 = pnand %p3782_p3, %p3776_p12 }
  0x46   : > { %3786 = shalt.err (!%p3783_p5)
}
  0x47   : > { %3381 = dma.hbm_to_vmem [thread:$0]  (!%p4006_p13), %s5808_s6, 8192, %s359_s18, [#allocation9], %s6004_s17, %s6004_s17, %s6003_s13  }
  0x48   : > { %395 = sbr.rel (%p3994_p10) target bundleno = 1754 (0x6da), region = 56 }
  0x4d   : > { %3838 = dma.done.wait (%p3998_p11), [#allocation3], 12288  }
  0x4e   : > { %3840 = vsyncadd (%p3998_p11), [#allocation3], 4294955008 }
  0x4f   : > { %3842 = dma.done.wait (%p3998_p11), [#allocation6], 8704  }
  0x50   : > { %3844 = vsyncadd (%p3998_p11), [#allocation6], 4294958592 }
  0x51   : > { %3846 = dma.done.wait (%p3998_p11), [#allocation9], 8192  }
  0x52   : > { %3848 = vsyncadd (%p3998_p11), [#allocation9], 4294959104  ;;  %v3454_v0 = vld [vmem:[#allocation2 + $0x15c] ss:$24 sps:$4 sm:$0xff]   ;;  %v3456_v1 = vld [vmem:[#allocation2 + $0x158] ss:$24 sps:$4 sm:$0xff]   ;;  %v573_v35 = vlaneseq }
  0x53   : > { %1136 = vmatprep.subr.bf16.mxu1 %v3454_v0  ;;  %v3457_v2 = vld [vmem:[#allocation2 + $0x12c] ss:$24 sps:$4 sm:$0xff]   ;;  %v3459_v3 = vld [vmem:[#allocation2 + $0x128] ss:$24 sps:$4 sm:$0xff]   ;;  %v3460_v4 = vld [vmem:[#allocation2 + $0xfc] ss:$24 sps:$4 sm:$0xff]  }
  0x54   : > { %1137 = vmatpush1.bf16.msra.mxu1 %v3456_v1  ;;  %v3462_v5 = vld [vmem:[#allocation2 + $0xf8] ss:$24 sps:$4 sm:$0xff]   ;;  %v3463_v6 = vld [vmem:[#allocation2 + $0xcc] ss:$24 sps:$4 sm:$0xff]   ;;  %p453_p10 = scmp.lt.s32.totalorder %s3867_s12, 1  ;;  %v5818_v34 = vmov 0.0  }
  0x55   : > { %1138 = vmatprep.subr.bf16.mxu1 %v3457_v2  ;;  %v3465_v7 = vld [vmem:[#allocation2 + $0xc8] ss:$24 sps:$4 sm:$0xff]   ;;  %v3466_v8 = vld [vmem:[#allocation2 + $0x9c] ss:$24 sps:$4 sm:$0xff]   ;;  %v3468_v9 = vld [vmem:[#allocation2 + $0x98] ss:$24 sps:$4 sm:$0xff]  }
  0x56   : > { %s454_s23 = scalar_select %p453_p10, %s3867_s12, 1  ;;  %v3469_v10 = vld [vmem:[#allocation2 + $0x6c] ss:$24 sps:$4 sm:$0xff]   ;;  %v3471_v11 = vld [vmem:[#allocation2 + $0x68] ss:$24 sps:$4 sm:$0xff]   ;;  %v4084_v36 = vshrl.u32 %v573_v35, 7 }
  0x57   : > { %v3472_v12 = vld [vmem:[#allocation2 + $0x3c] ss:$24 sps:$4 sm:$0xff]   ;;  %v3474_v13 = vld [vmem:[#allocation2 + $0x38] ss:$24 sps:$4 sm:$0xff]   ;;  %v3475_v14 = vld [vmem:[#allocation2 + $0xc] ss:$24 sps:$4 sm:$0xff]  }
  0x58   : > { %1139 = vmatpush1.bf16.msra.mxu1 %v3459_v3  ;;  %s3349_s24 = sshll.u32 %s454_s23, 4  ;;  %v3477_v16 = vld [vmem:[#allocation2 + $0x8] ss:$24 sps:$4 sm:$0xff]   ;;  %v3478_v17 = vld [vmem:[#allocation2 + $0x2dc] ss:$24 sps:$4 sm:$0xff]   ;;  %6005 = vst [vmem:[#allocation17_spill] sm:$0xff] %v4084_v36 }
  0x59   : > { %1140 = vmatprep.subr.bf16.mxu1 %v3460_v4  ;;  %s4072_s20 = scalar_lea.vmem %s5802_s0, %s3349_s24  ;;  %v3480_v18 = vld [vmem:[#allocation2 + $0x2d8] ss:$24 sps:$4 sm:$0xff]   ;;  %v3481_v19 = vld [vmem:[#allocation2 + $0x2ac] ss:$24 sps:$4 sm:$0xff]   ;;  %v3483_v20 = vld [vmem:[#allocation2 + $0x2a8] ss:$24 sps:$4 sm:$0xff]  }
  0x5a   : > { %v4075_v15 = vld [vmem:[%s4072_s20 + $0x4] ss:$8 sps:$4 sm:$0xff]   ;;  %v3484_v21 = vld [vmem:[#allocation2 + $0x27c] ss:$24 sps:$4 sm:$0xff]   ;;  %v3486_v22 = vld [vmem:[#allocation2 + $0x278] ss:$24 sps:$4 sm:$0xff]  }
  0x5b   : > { %1168 = vmatprep.mubr.bf16.mxu1 %v4075_v15  ;;  %1125 = vmatprep.mubr.bf16.mxu0 %v4075_v15  ;;  %v3487_v23 = vld [vmem:[#allocation2 + $0x24c] ss:$24 sps:$4 sm:$0xff]   ;;  %v3489_v24 = vld [vmem:[#allocation2 + $0x248] ss:$24 sps:$4 sm:$0xff]   ;;  %v3490_v25 = vld [vmem:[#allocation2 + $0x21c] ss:$24 sps:$4 sm:$0xff]  }
  0x5c   : > { %1141 = vmatpush1.bf16.msra.mxu1 %v3462_v5  ;;  %v3492_v26 = vld [vmem:[#allocation2 + $0x218] ss:$24 sps:$4 sm:$0xff]   ;;  %v3493_v27 = vld [vmem:[#allocation2 + $0x1ec] ss:$24 sps:$4 sm:$0xff]   ;;  %v3495_v28 = vld [vmem:[#allocation2 + $0x1e8] ss:$24 sps:$4 sm:$0xff]  }
  0x5d   : > { %1142 = vmatprep.subr.bf16.mxu1 %v3463_v6  ;;  %v3496_v29 = vld [vmem:[#allocation2 + $0x1bc] ss:$24 sps:$4 sm:$0xff]   ;;  %v3498_v30 = vld [vmem:[#allocation2 + $0x1b8] ss:$24 sps:$4 sm:$0xff]   ;;  %v3499_v31 = vld [vmem:[#allocation2 + $0x18c] ss:$24 sps:$4 sm:$0xff]  }
  0x5e   : > { %v3501_v32 = vld [vmem:[#allocation2 + $0x188] ss:$24 sps:$4 sm:$0xff]   ;;  %v587_v38 = vsub.s32 3, %v4084_v36  ;;  %v583_v39 = vsub.s32 2, %v4084_v36  ;;  %v3505_v49 = vld [vmem:[#allocation2 + $0x154] ss:$24 sps:$4 sm:$0xff]  }
  0x5f   : > { %v4080_v33 = vld [vmem:[%s4072_s20] ss:$8 sps:$4 sm:$0xff]   ;;  %vm1258_vm0 = vcmask 130048   ;;  %1093 = vmatprep.subr.bf16.mxu0 %v3505_v49  ;;  %v1224_v54 = vld [vmem:[%s5805_s3 + $0x10] sm:$0xff]  ;;  %v1225_v55 = vld [vmem:[%s5805_s3 + $0x18] sm:$0xff]  ;;  %s450_s13 = sand.u32 1, %s3859_s10  }
  0x60   : > { %1143 = vmatpush1.bf16.msra.mxu1 %v3465_v7  ;;  %v571_v41 = vld [vmem:[%s5804_s2] sm:$0x3f]  ;;  %v3507_v50 = vld [vmem:[#allocation2 + $0x150] ss:$24 sps:$4 sm:$0xff]   ;;  %v1229_v59 = vld [vmem:[%s5805_s3 + $0x38] sm:$0xff]  ;;  %s3147_s28 = sshll.u32 %s450_s13, 5 }
  0x61   : > { %1144 = vmatprep.subr.bf16.mxu1 %v3466_v8  ;;  %v588_v43 = vrot.slane %v571_v41, %v587_v38  ;;  %v584_v44 = vrot.slane %v571_v41, %v583_v39  ;;  %v1222_v52 = vld [vmem:[%s5805_s3] sm:$0xff]  ;;  %1094 = vmatpush1.bf16.msra.mxu0 %v3507_v50  ;;  %v1223_v53 = vld [vmem:[%s5805_s3 + $0x8] sm:$0xff]  ;;  %v1228_v58 = vld [vmem:[%s5805_s3 + $0x30] sm:$0xff]  ;;  %s452_s16 = scalar_lea.vmem [#allocation10], %s3147_s28  ;;  %s3350_s15 = sshll.u32 %s3867_s12, 9 }
  0x62   : > { %v1226_v56 = vld [vmem:[%s5805_s3 + $0x20] sm:$0xff]  ;;  %v1227_v57 = vld [vmem:[%s5805_s3 + $0x28] sm:$0xff]  ;;  %v1232_v62 = vld [vmem:[%s5805_s3 + $0x50] sm:$0xff]  ;;  %s2988_s4 = sshll.u32 %s452_s16, 4  ;;  %s5755_s27 = scalar_lea.hbm %s5811_s9, %s3350_s15  ;;  %s5750_s4 = int_to_ptr.vmem [resolvable:$true] %s2988_s4 }
  0x63   : > { %v1230_v60 = vld [vmem:[%s5805_s3 + $0x40] sm:$0xff]  ;;  %v1231_v61 = vld [vmem:[%s5805_s3 + $0x48] sm:$0xff]  ;;  %v1233_v63 = vld [vmem:[%s5805_s3 + $0x58] sm:$0xff]  ;;  %s5757_s18 = scalar_lea.sflag [#allocation4], %s450_s13  ;;  %s3787_s12 = scalar_lea.vmem %s5750_s4, 512 }
  0x64   : > { %1145 = vmatpush1.bf16.msra.mxu1 %v3468_v9  ;;  %v1234_v0 = vld [vmem:[%s5805_s3 + $0x60] sm:$0xff]  ;;  %v1235_v1 = vld [vmem:[%s5805_s3 + $0x68] sm:$0xff]  ;;  %v1236_v2 = vld [vmem:[%s5805_s3 + $0x70] sm:$0xff]  ;;  %p3788_p11 = scmp.ne.s32.totalorder %s5750_s4, %s3787_s12  ;;  %s3886_s20 = smov [#allocation10]  }
  0x65   : > { %1146 = vmatprep.subr.bf16.mxu1 %v3469_v10  ;;  %v1237_v3 = vld [vmem:[%s5805_s3 + $0x78] sm:$0xff]  ;;  %v1238_v4 = vld [vmem:[%s5805_s3 + $0x80] sm:$0xff]  ;;  %v1239_v6 = vld [vmem:[%s5805_s3 + $0x88] sm:$0xff]  ;;  %s3791_s26 = sshll.u32 %s3886_s20, 4  ;;  %s3792_s26 = int_to_ptr.vmem [resolvable:$false] %s3791_s26 }
  0x66   : > { %v3508_v5 = vld [vmem:[#allocation2 + $0x124] ss:$24 sps:$4 sm:$0xff]   ;;  %v3510_v7 = vld [vmem:[#allocation2 + $0x120] ss:$24 sps:$4 sm:$0xff]   ;;  %v3511_v8 = vld [vmem:[#allocation2 + $0xf4] ss:$24 sps:$4 sm:$0xff]   ;;  %p3789_p13 = pnand %p3788_p11, %p3979_p4  ;;  %p3794_p6 = scmp.lt.s32.totalorder %s5750_s4, %s3792_s26 }
  0x67   : > { %1095 = vmatprep.subr.bf16.mxu0 %v3508_v5  ;;  %v1240_v9 = vld [vmem:[%s5805_s3 + $0x90] sm:$0xff]  ;;  %v3538_v39 = vld [vmem:[#allocation2 + $0x244] ss:$24 sps:$4 sm:$0xff]   ;;  %v3540_v41 = vld [vmem:[#allocation2 + $0x240] ss:$24 sps:$4 sm:$0xff]   ;;  %s3793_s25 = scalar_lea.vmem %s3792_s26, 1024 }
  0x68   : > { %1147 = vmatpush1.bf16.msra.mxu1 %v3471_v11  ;;  %1096 = vmatpush1.bf16.msra.mxu0 %v3510_v7  ;;  %v3513_v10 = vld [vmem:[#allocation2 + $0xf0] ss:$24 sps:$4 sm:$0xff]   ;;  %v3514_v11 = vld [vmem:[#allocation2 + $0xc4] ss:$24 sps:$4 sm:$0xff]   ;;  %v3535_v35 = vld [vmem:[#allocation2 + $0x274] ss:$24 sps:$4 sm:$0xff]   ;;  %p3790_p0 = pneg %p3789_p13  ;;  %p3795_p7 = scmp.lt.s32.totalorder %s3793_s25, %s3787_s12 }
  0x69   : > { %1148 = vmatprep.subr.bf16.mxu1 %v3472_v12  ;;  %1097 = vmatprep.subr.bf16.mxu0 %v3511_v8  ;;  %v1241_v12 = vld [vmem:[%s5805_s3 + $0x98] sm:$0xff]  ;;  %v3537_v38 = vld [vmem:[#allocation2 + $0x270] ss:$24 sps:$4 sm:$0xff]   ;;  %v3582_v7 = vld [vmem:[#allocation2 + $0x2b4] ss:$24 sps:$4 sm:$0xff]  }
  0x6a   : > { %v1252_v49 = vld [vmem:[%s5805_s3 + $0xf0] sm:$0xff]  ;;  %v3579_v5 = vld [vmem:[#allocation2 + $0x2e4] ss:$24 sps:$4 sm:$0xff]   ;;  %p3796_p9 = por %p3795_p7, %p3794_p6 }
  0x6b   : > { %v3549_v50 = vld [vmem:[#allocation2 + $0x1b0] ss:$24 sps:$4 sm:$0xff]  }
  0x6c   : > { %1149 = vmatpush1.bf16.msra.mxu1 %v3474_v13  ;;  %1098 = vmatpush1.bf16.msra.mxu0 %v3513_v10  ;;  %v3516_v13 = vld [vmem:[#allocation2 + $0xc0] ss:$24 sps:$4 sm:$0xff]   ;;  %v3580_v8 = vld [vmem:[#allocation2 + $0x2b0] ss:$24 sps:$4 sm:$0xff]   ;;  %p3797_p12 = pnand %p3796_p9, %p3790_p0 }
  0x6d   : > { %1150 = vmatprep.subr.bf16.mxu1 %v3475_v14  ;;  %1099 = vmatprep.subr.bf16.mxu0 %v3514_v11  ;;  %v3517_v14 = vld [vmem:[#allocation2 + $0x94] ss:$24 sps:$4 sm:$0xff]   ;;  %v3583_v10 = vld [vmem:[#allocation2 + $0x280] ss:$24 sps:$4 sm:$0xff]  }
  0x6e   : > { %v3588_v11 = vld [vmem:[#allocation2 + $0x254] ss:$24 sps:$4 sm:$0xff]  }
  0x70   : > { %1151 = vmatpush1.bf16.msra.mxu1 %v3477_v16  ;;  %1100 = vmatpush1.bf16.msra.mxu0 %v3516_v13  ;;  %v1242_v16 = vld [vmem:[%s5805_s3 + $0xa0] sm:$0xff] }
  0x71   : > { %1152 = vmatprep.subr.bf16.mxu1 %v3478_v17  ;;  %v3519_v17 = vld [vmem:[#allocation2 + $0x90] ss:$24 sps:$4 sm:$0xff]   ;;  %1101 = vmatprep.subr.bf16.mxu0 %v3517_v14  ;;  %v3591_v13 = vld [vmem:[#allocation2 + $0x224] ss:$24 sps:$4 sm:$0xff]   ;;  %v3589_v14 = vld [vmem:[#allocation2 + $0x220] ss:$24 sps:$4 sm:$0xff]  }
  0x74   : > { %1153 = vmatpush2.bf16.msra.mxu1 %v3480_v18  ;;  %1102 = vmatpush1.bf16.msra.mxu0 %v3519_v17  ;;  %v3520_v18 = vld [vmem:[#allocation2 + $0x64] ss:$24 sps:$4 sm:$0xff]   ;;  %v3592_v17 = vld [vmem:[#allocation2 + $0x1f0] ss:$24 sps:$4 sm:$0xff]  }
  0x75   : > { %1154 = vmatprep.subr.bf16.mxu1 %v3481_v19  ;;  %v1243_v19 = vld [vmem:[%s5805_s3 + $0xa8] sm:$0xff]  ;;  %1103 = vmatprep.subr.bf16.mxu0 %v3520_v18  ;;  %v3597_v18 = vld [vmem:[#allocation2 + $0x1c4] ss:$24 sps:$4 sm:$0xff]  }
  0x78   : > { %1155 = vmatpush2.bf16.msra.mxu1 %v3483_v20  ;;  %v3522_v20 = vld [vmem:[#allocation2 + $0x60] ss:$24 sps:$4 sm:$0xff]  }
  0x79   : > { %1156 = vmatprep.subr.bf16.mxu1 %v3484_v21  ;;  %1104 = vmatpush1.bf16.msra.mxu0 %v3522_v20  ;;  %v3523_v21 = vld [vmem:[#allocation2 + $0x34] ss:$24 sps:$4 sm:$0xff]  }
  0x7a   : > { %1105 = vmatprep.subr.bf16.mxu0 %v3523_v21  ;;  %v3600_v20 = vld [vmem:[#allocation2 + $0x194] ss:$24 sps:$4 sm:$0xff]   ;;  %v3598_v21 = vld [vmem:[#allocation2 + $0x190] ss:$24 sps:$4 sm:$0xff]  }
  0x7c   : > { %1157 = vmatpush2.bf16.msra.mxu1 %v3486_v22  ;;  %v1244_v22 = vld [vmem:[%s5805_s3 + $0xb0] sm:$0xff] }
  0x7d   : > { %1158 = vmatprep.subr.bf16.mxu1 %v3487_v23  ;;  %v3525_v23 = vld [vmem:[#allocation2 + $0x30] ss:$24 sps:$4 sm:$0xff]  }
  0x7e   : > { %1106 = vmatpush1.bf16.msra.mxu0 %v3525_v23 }
  0x80   : > { %1159 = vmatpush2.bf16.msra.mxu1 %v3489_v24  ;;  %v3526_v24 = vld [vmem:[#allocation2 + $0x4] ss:$24 sps:$4 sm:$0xff]  }
  0x81   : > { %1160 = vmatprep.subr.bf16.mxu1 %v3490_v25  ;;  %v1245_v25 = vld [vmem:[%s5805_s3 + $0xb8] sm:$0xff]  ;;  %1107 = vmatprep.subr.bf16.mxu0 %v3526_v24 }
  0x84   : > { %1161 = vmatpush2.bf16.msra.mxu1 %v3492_v26  ;;  %v3528_v26 = vld [vmem:[#allocation2] ss:$24 sps:$4 sm:$0xff]  }
  0x85   : > { %1162 = vmatprep.subr.bf16.mxu1 %v3493_v27  ;;  %1108 = vmatpush1.bf16.msra.mxu0 %v3528_v26  ;;  %v3529_v27 = vld [vmem:[#allocation2 + $0x2d4] ss:$24 sps:$4 sm:$0xff]  }
  0x86   : > { %1109 = vmatprep.subr.bf16.mxu0 %v3529_v27 }
  0x88   : > { %1163 = vmatpush2.bf16.msra.mxu1 %v3495_v28  ;;  %v1246_v28 = vld [vmem:[%s5805_s3 + $0xc0] sm:$0xff] }
  0x89   : > { %1164 = vmatprep.subr.bf16.mxu1 %v3496_v29  ;;  %v3531_v29 = vld [vmem:[#allocation2 + $0x2d0] ss:$24 sps:$4 sm:$0xff]  }
  0x8a   : > { %1110 = vmatpush2.bf16.msra.mxu0 %v3531_v29 }
  0x8c   : > { %1165 = vmatpush2.bf16.msra.mxu1 %v3498_v30  ;;  %v3532_v30 = vld [vmem:[#allocation2 + $0x2a4] ss:$24 sps:$4 sm:$0xff]  }
  0x8d   : > { %1166 = vmatprep.subr.bf16.mxu1 %v3499_v31  ;;  %v1247_v31 = vld [vmem:[%s5805_s3 + $0xc8] sm:$0xff]  ;;  %1111 = vmatprep.subr.bf16.mxu0 %v3532_v30 }
  0x90   : > { %1167 = vmatpush2.bf16.msra.mxu1 %v3501_v32  ;;  %v3534_v32 = vld [vmem:[#allocation2 + $0x2a0] ss:$24 sps:$4 sm:$0xff]  }
  0x91   : > { %1112 = vmatpush2.bf16.msra.mxu0 %v3534_v32 }
  0x92   : > { %1113 = vmatprep.subr.bf16.mxu0 %v3535_v35 }
  0x93   : > { %1169 = vmatmul.mubr.bf16.vlgmr.msra.gmra.mxu1 %v4080_v33 }
  0x94   : > { %1419 = vmatprep.mubr.f32.mxu1 %v5818_v34 }
  0x95   : > { %1114 = vmatpush2.bf16.msra.mxu0 %v3537_v38 }
  0x96   : > { %1115 = vmatprep.subr.bf16.mxu0 %v3538_v39 }
  0x99   : > { %1116 = vmatpush2.bf16.msra.mxu0 %v3540_v41 }
 0x153   : > { %v1170_v37 = vpop.f32.mrf.mxu1 }
 0x154   : > { %v1171_v51 = vadd.f32 %v1170_v37, %v584_v44  ;;  %v1248_v37 = vld [vmem:[%s5805_s3 + $0xd0] sm:$0xff] }
 0x155   : > { %v1172_v40 = vpop.f32.mrf.mxu1 }
 0x156   : > { %v1173_v48 = vadd.f32 %v1172_v40, %v588_v43  ;;  %v1249_v40 = vld [vmem:[%s5805_s3 + $0xd8] sm:$0xff] }
 0x157   : > { %v1174_v42 = vpop.f32.mrf.mxu1 }
 0x158   : > { %v1175_v47 = vadd.f32 %v1174_v42, %v584_v44  ;;  %v3541_v42 = vld [vmem:[#allocation2 + $0x214] ss:$24 sps:$4 sm:$0xff]   ;;  %v3543_v44 = vld [vmem:[#allocation2 + $0x210] ss:$24 sps:$4 sm:$0xff]  }
 0x159   : > { %v1176_v45 = vpop.f32.mrf.mxu1  ;;  %1117 = vmatprep.subr.bf16.mxu0 %v3541_v42 }
 0x15a   : > { %v1177_v46 = vadd.f32 %v1176_v45, %v588_v43  ;;  %v1250_v43 = vld [vmem:[%s5805_s3 + $0xe0] sm:$0xff]  ;;  %1118 = vmatpush2.bf16.msra.mxu0 %v3543_v44 }
 0x15b   : > { %v3544_v45 = vld [vmem:[#allocation2 + $0x1e4] ss:$24 sps:$4 sm:$0xff]  }
 0x15c   : > { %1383 = vmatprep.subr.mxu1 %v1177_v46  ;;  %v1251_v46 = vld [vmem:[%s5805_s3 + $0xe8] sm:$0xff]  ;;  %1119 = vmatprep.subr.bf16.mxu0 %v3544_v45 }
 0x15d   : > { %1384 = vmatpush1.msra.mxu1 %v1175_v47  ;;  %v3546_v47 = vld [vmem:[#allocation2 + $0x1e0] ss:$24 sps:$4 sm:$0xff]  }
 0x15e   : > { %1385 = vmatprep.subr.mxu1 %v1173_v48  ;;  %1120 = vmatpush2.bf16.msra.mxu0 %v3546_v47  ;;  %v3547_v48 = vld [vmem:[#allocation2 + $0x1b4] ss:$24 sps:$4 sm:$0xff]  }
 0x15f   : > { %1386 = vmatpush1.msra.mxu1 %v1171_v51  ;;  %1121 = vmatprep.subr.bf16.mxu0 %v3547_v48  ;;  %v3550_v51 = vld [vmem:[#allocation2 + $0x184] ss:$24 sps:$4 sm:$0xff]  }
 0x160   : > { %3248 = vmatmul.mubr.msk.f32.vlgmr.msra.gmra.mxu1 %vm1258_vm0, %v1222_v52  ;;  %v1253_v52 = vld [vmem:[%s5805_s3 + $0xf8] sm:$0xff] }
 0x161   : > { %1425 = vmatprep.mubr.f32.mxu1 %v5818_v34 }
 0x162   : > { %1122 = vmatpush2.bf16.msra.mxu0 %v3549_v50 }
 0x163   : > { %1123 = vmatprep.subr.bf16.mxu0 %v3550_v51 }
 0x164   : > { %3249 = vmatmul.mubr.msk.f32.gmra.mxu1 %vm1258_vm0, %v1223_v53  ;;  %v3552_v53 = vld [vmem:[#allocation2 + $0x180] ss:$24 sps:$4 sm:$0xff]  }
 0x165   : > { %1431 = vmatprep.mubr.f32.mxu1 %v5818_v34 }
 0x166   : > { %1124 = vmatpush2.bf16.msra.mxu0 %v3552_v53 }
 0x168   : > { %3250 = vmatmul.mubr.msk.f32.gmra.mxu1 %vm1258_vm0, %v1224_v54  ;;  %v3555_v54 = vld [vmem:[#allocation2 + $0x164] ss:$24 sps:$4 sm:$0xff]  }
 0x169   : > { %1437 = vmatprep.mubr.f32.mxu1 %v5818_v34  ;;  %1126 = vmatmul.mubr.bf16.vlgmr.msra.gmra.mxu0 %v4080_v33 }
 0x16a   : > { %1179 = vmatprep.subr.bf16.mxu0 %v3555_v54  ;;  %1211 = vmatprep.mubr.bf16.mxu0 %v4075_v15  ;;  %v3573_v15 = vld [vmem:[#allocation2 + $0x44] ss:$24 sps:$4 sm:$0xff]  }
 0x16c   : > { %3251 = vmatmul.mubr.msk.f32.gmra.mxu1 %vm1258_vm0, %v1225_v55  ;;  %v3553_v55 = vld [vmem:[#allocation2 + $0x160] ss:$24 sps:$4 sm:$0xff]  }
 0x16d   : > { %1443 = vmatprep.mubr.f32.mxu1 %v5818_v34  ;;  %1180 = vmatpush1.bf16.msra.mxu0 %v3553_v55  ;;  %v1612_v55 = vld [vmem:[#allocation7] sm:$0xff] }
 0x170   : > { %3252 = vmatmul.mubr.msk.f32.gmra.mxu1 %vm1258_vm0, %v1226_v56  ;;  %v3558_v56 = vld [vmem:[#allocation2 + $0x134] ss:$24 sps:$4 sm:$0xff]  }
 0x171   : > { %1449 = vmatprep.mubr.f32.mxu1 %v5818_v34  ;;  %1181 = vmatprep.subr.bf16.mxu0 %v3558_v56  ;;  %v1644_v56 = vld [vmem:[#allocation7 + $0x100] sm:$0xff] }
 0x174   : > { %3253 = vmatmul.mubr.msk.f32.gmra.mxu1 %vm1258_vm0, %v1227_v57  ;;  %v3556_v57 = vld [vmem:[#allocation2 + $0x130] ss:$24 sps:$4 sm:$0xff]  }
 0x175   : > { %1455 = vmatprep.mubr.f32.mxu1 %v5818_v34  ;;  %1182 = vmatpush1.bf16.msra.mxu0 %v3556_v57 }
 0x178   : > { %3254 = vmatmul.mubr.msk.f32.gmra.mxu1 %vm1258_vm0, %v1228_v58  ;;  %v3561_v58 = vld [vmem:[#allocation2 + $0x104] ss:$24 sps:$4 sm:$0xff]  }
 0x179   : > { %1461 = vmatprep.mubr.f32.mxu1 %v5818_v34  ;;  %1183 = vmatprep.subr.bf16.mxu0 %v3561_v58  ;;  %v1613_v58 = vld [vmem:[#allocation7 + $0x8] sm:$0xff] }
 0x17c   : > { %3255 = vmatmul.mubr.msk.f32.gmra.mxu1 %vm1258_vm0, %v1229_v59  ;;  %v3559_v59 = vld [vmem:[#allocation2 + $0x100] ss:$24 sps:$4 sm:$0xff]  }
 0x17d   : > { %1467 = vmatprep.mubr.f32.mxu1 %v5818_v34  ;;  %1184 = vmatpush1.bf16.msra.mxu0 %v3559_v59  ;;  %v1645_v59 = vld [vmem:[#allocation7 + $0x108] sm:$0xff] }
 0x180   : > { %3256 = vmatmul.mubr.msk.f32.gmra.mxu1 %vm1258_vm0, %v1230_v60  ;;  %v3564_v60 = vld [vmem:[#allocation2 + $0xd4] ss:$24 sps:$4 sm:$0xff]  }
 0x181   : > { %1473 = vmatprep.mubr.f32.mxu1 %v5818_v34  ;;  %1185 = vmatprep.subr.bf16.mxu0 %v3564_v60 }
 0x184   : > { %3257 = vmatmul.mubr.msk.f32.gmra.mxu1 %vm1258_vm0, %v1231_v61  ;;  %v3562_v61 = vld [vmem:[#allocation2 + $0xd0] ss:$24 sps:$4 sm:$0xff]  }
 0x185   : > { %1479 = vmatprep.mubr.f32.mxu1 %v5818_v34  ;;  %1186 = vmatpush1.bf16.msra.mxu0 %v3562_v61 }
 0x188   : > { %3258 = vmatmul.mubr.msk.f32.gmra.mxu1 %vm1258_vm0, %v1232_v62  ;;  %v3567_v62 = vld [vmem:[#allocation2 + $0xa4] ss:$24 sps:$4 sm:$0xff]  }
 0x189   : > { %1485 = vmatprep.mubr.f32.mxu1 %v5818_v34  ;;  %1187 = vmatprep.subr.bf16.mxu0 %v3567_v62 }
 0x18c   : > { %3259 = vmatmul.mubr.msk.f32.gmra.mxu1 %vm1258_vm0, %v1233_v63  ;;  %v3565_v63 = vld [vmem:[#allocation2 + $0xa0] ss:$24 sps:$4 sm:$0xff]  }
 0x18d   : > { %1491 = vmatprep.mubr.f32.mxu1 %v5818_v34  ;;  %1188 = vmatpush1.bf16.msra.mxu0 %v3565_v63  ;;  %v1614_v63 = vld [vmem:[#allocation7 + $0x10] sm:$0xff] }
 0x190   : > { %3260 = vmatmul.mubr.msk.f32.gmra.mxu1 %vm1258_vm0, %v1234_v0  ;;  %v3570_v0 = vld [vmem:[#allocation2 + $0x74] ss:$24 sps:$4 sm:$0xff]  }
 0x191   : > { %1497 = vmatprep.mubr.f32.mxu1 %v5818_v34  ;;  %1189 = vmatprep.subr.bf16.mxu0 %v3570_v0  ;;  %v1646_v0 = vld [vmem:[#allocation7 + $0x110] sm:$0xff] }
 0x194   : > { %3261 = vmatmul.mubr.msk.f32.gmra.mxu1 %vm1258_vm0, %v1235_v1  ;;  %v3568_v1 = vld [vmem:[#allocation2 + $0x70] ss:$24 sps:$4 sm:$0xff]  }
 0x195   : > { %1503 = vmatprep.mubr.f32.mxu1 %v5818_v34  ;;  %1190 = vmatpush1.bf16.msra.mxu0 %v3568_v1 }
 0x196   : > { %1191 = vmatprep.subr.bf16.mxu0 %v3573_v15 }
 0x198   : > { %3262 = vmatmul.mubr.msk.f32.gmra.mxu1 %vm1258_vm0, %v1236_v2  ;;  %v3571_v2 = vld [vmem:[#allocation2 + $0x40] ss:$24 sps:$4 sm:$0xff]  }
 0x199   : > { %1509 = vmatprep.mubr.f32.mxu1 %v5818_v34  ;;  %1192 = vmatpush1.bf16.msra.mxu0 %v3571_v2 }
 0x19c   : > { %3263 = vmatmul.mubr.msk.f32.gmra.mxu1 %vm1258_vm0, %v1237_v3  ;;  %v3576_v3 = vld [vmem:[#allocation2 + $0x14] ss:$24 sps:$4 sm:$0xff]  }
 0x19d   : > { %1515 = vmatprep.mubr.f32.mxu1 %v5818_v34  ;;  %1193 = vmatprep.subr.bf16.mxu0 %v3576_v3 }
 0x1a0   : > { %3264 = vmatmul.mubr.msk.f32.gmra.mxu1 %vm1258_vm0, %v1238_v4  ;;  %v3574_v4 = vld [vmem:[#allocation2 + $0x10] ss:$24 sps:$4 sm:$0xff]  }
 0x1a1   : > { %1521 = vmatprep.mubr.f32.mxu1 %v5818_v34  ;;  %1194 = vmatpush1.bf16.msra.mxu0 %v3574_v4 }
 0x1a2   : > { %1195 = vmatprep.subr.bf16.mxu0 %v3579_v5  ;;  %v1615_v5 = vld [vmem:[#allocation7 + $0x18] sm:$0xff] }
 0x1a4   : > { %3265 = vmatmul.mubr.msk.f32.gmra.mxu1 %vm1258_vm0, %v1239_v6  ;;  %v3577_v6 = vld [vmem:[#allocation2 + $0x2e0] ss:$24 sps:$4 sm:$0xff]  }
 0x1a5   : > { %1527 = vmatprep.mubr.f32.mxu1 %v5818_v34  ;;  %1196 = vmatpush2.bf16.msra.mxu0 %v3577_v6  ;;  %v1647_v6 = vld [vmem:[#allocation7 + $0x118] sm:$0xff] }
 0x1a6   : > { %1197 = vmatprep.subr.bf16.mxu0 %v3582_v7 }
 0x1a8   : > { %3266 = vmatmul.mubr.msk.f32.gmra.mxu1 %vm1258_vm0, %v1240_v9  ;;  %v3585_v9 = vld [vmem:[#allocation2 + $0x284] ss:$24 sps:$4 sm:$0xff]  }
 0x1a9   : > { %1533 = vmatprep.mubr.f32.mxu1 %v5818_v34  ;;  %1198 = vmatpush2.bf16.msra.mxu0 %v3580_v8 }
 0x1aa   : > { %1199 = vmatprep.subr.bf16.mxu0 %v3585_v9 }
 0x1ac   : > { %3267 = vmatmul.mubr.msk.f32.gmra.mxu1 %vm1258_vm0, %v1241_v12  ;;  %v3586_v12 = vld [vmem:[#allocation2 + $0x250] ss:$24 sps:$4 sm:$0xff]  }
 0x1ad   : > { %1539 = vmatprep.mubr.f32.mxu1 %v5818_v34  ;;  %1200 = vmatpush2.bf16.msra.mxu0 %v3583_v10 }
 0x1ae   : > { %1201 = vmatprep.subr.bf16.mxu0 %v3588_v11 }
 0x1b0   : > { %3268 = vmatmul.mubr.msk.f32.gmra.mxu1 %vm1258_vm0, %v1242_v16  ;;  %v3594_v16 = vld [vmem:[#allocation2 + $0x1f4] ss:$24 sps:$4 sm:$0xff]  }
 0x1b1   : > { %1545 = vmatprep.mubr.f32.mxu1 %v5818_v34  ;;  %1202 = vmatpush2.bf16.msra.mxu0 %v3586_v12 }
 0x1b2   : > { %1203 = vmatprep.subr.bf16.mxu0 %v3591_v13 }
 0x1b4   : > { %3269 = vmatmul.mubr.msk.f32.gmra.mxu1 %vm1258_vm0, %v1243_v19  ;;  %v3595_v19 = vld [vmem:[#allocation2 + $0x1c0] ss:$24 sps:$4 sm:$0xff]  }
 0x1b5   : > { %1551 = vmatprep.mubr.f32.mxu1 %v5818_v34  ;;  %1204 = vmatpush2.bf16.msra.mxu0 %v3589_v14  ;;  %v1616_v14 = vld [vmem:[#allocation7 + $0x20] sm:$0xff] }
 0x1b6   : > { %1205 = vmatprep.subr.bf16.mxu0 %v3594_v16  ;;  %v1648_v16 = vld [vmem:[#allocation7 + $0x120] sm:$0xff] }
 0x1b8   : > { %3270 = vmatmul.mubr.msk.f32.gmra.mxu1 %vm1258_vm0, %v1244_v22 }
 0x1b9   : > { %1557 = vmatprep.mubr.f32.mxu1 %v5818_v34  ;;  %1206 = vmatpush2.bf16.msra.mxu0 %v3592_v17 }
 0x1ba   : > { %1207 = vmatprep.subr.bf16.mxu0 %v3597_v18 }
 0x1bc   : > { %3271 = vmatmul.mubr.msk.f32.gmra.mxu1 %vm1258_vm0, %v1245_v25 }
 0x1bd   : > { %1563 = vmatprep.mubr.f32.mxu1 %v5818_v34  ;;  %1208 = vmatpush2.bf16.msra.mxu0 %v3595_v19 }
 0x1be   : > { %1209 = vmatprep.subr.bf16.mxu0 %v3600_v20 }
 0x1c0   : > { %3272 = vmatmul.mubr.msk.f32.gmra.mxu1 %vm1258_vm0, %v1246_v28 }
 0x1c1   : > { %1569 = vmatprep.mubr.f32.mxu1 %v5818_v34  ;;  %1210 = vmatpush2.bf16.msra.mxu0 %v3598_v21 }
 0x1c4   : > { %3273 = vmatmul.mubr.msk.f32.gmra.mxu1 %vm1258_vm0, %v1247_v31  ;;  %1212 = vmatmul.mubr.bf16.vlgmr.msra.gmra.mxu0 %v4080_v33 }
 0x1c5   : > { %1575 = vmatprep.mubr.f32.mxu1 %v5818_v34  ;;  %1932 = vmatprep.mubr.f32.mxu0 %v5818_v34 }
 0x1c8   : > { %3274 = vmatmul.mubr.msk.f32.gmra.mxu1 %vm1258_vm0, %v1248_v37 }
 0x1c9   : > { %1581 = vmatprep.mubr.f32.mxu1 %v5818_v34 }
 0x1cc   : > { %3275 = vmatmul.mubr.msk.f32.gmra.mxu1 %vm1258_vm0, %v1249_v40 }
 0x1cd   : > { %1587 = vmatprep.mubr.f32.mxu1 %v5818_v34 }
 0x1d0   : > { %3276 = vmatmul.mubr.msk.f32.gmra.mxu1 %vm1258_vm0, %v1250_v43 }
 0x1d1   : > { %1593 = vmatprep.mubr.f32.mxu1 %v5818_v34 }
 0x1d4   : > { %3277 = vmatmul.mubr.msk.f32.gmra.mxu1 %vm1258_vm0, %v1251_v46 }
 0x1d5   : > { %1599 = vmatprep.mubr.f32.mxu1 %v5818_v34 }
 0x1d8   : > { %3278 = vmatmul.mubr.msk.f32.gmra.mxu1 %vm1258_vm0, %v1252_v49 }
 0x1d9   : > { %1605 = vmatprep.mubr.f32.mxu1 %v5818_v34 }
 0x1dc   : > { %3279 = vmatmul.mubr.msk.f32.gmra.mxu1 %vm1258_vm0, %v1253_v52 }
 0x1dd   : > { %2603 = vmatprep.mubr.f32.mxu1 %v5818_v34 }
 0x220   : > { %v1421_v22 = vpop.f32.mrf.mxu1 }
 0x221   : > { %v4311_v61 = vmul.f32 %v1612_v55, %v1421_v22  ;;  %v1804_v62 = vmul.f32 %v1644_v56, %v1421_v22 }
 0x222   : > { %v1423_v23 = vpop.f32.mrf.mxu1 }
 0x223   : > { %6017 = vst [vmem:[#allocation29_spill] sm:$0xff] %v4311_v61  ;;  %v4315_v2 = vmul.f32 %v1613_v58, %v1423_v23  ;;  %v1805_v3 = vmul.f32 %v1645_v59, %v1423_v23 }
 0x224   : > { %v1427_v24 = vpop.f32.mrf.mxu1 }
 0x225   : > { %6019 = vst [vmem:[#allocation31_spill] sm:$0xff] %v4315_v2  ;;  %v4323_v11 = vmul.f32 %v1614_v63, %v1427_v24  ;;  %v1806_v12 = vmul.f32 %v1646_v0, %v1427_v24  ;;  %v1652_v24 = vld [vmem:[#allocation7 + $0x140] sm:$0xff] }
 0x226   : > { %v1429_v25 = vpop.f32.mrf.mxu1 }
 0x227   : > { %6022 = vst [vmem:[#allocation34_spill] sm:$0xff] %v4323_v11  ;;  %v4331_v21 = vmul.f32 %v1615_v5, %v1429_v25  ;;  %v1807_v22 = vmul.f32 %v1647_v6, %v1429_v25  ;;  %v4451_v11 = vld [vmem:[#allocation7 + $0x168] sm:$0xff] }
 0x228   : > { %v4255_v26 = vpop.f32.mrf.mxu1  ;;  %6063 = vst [vmem:[#allocation75_spill] sm:$0xff] %v4451_v11 }
 0x229   : > { %6025 = vst [vmem:[#allocation37_spill] sm:$0xff] %v4331_v21 }
 0x22a   : > { %v4257_v27 = vpop.f32.mrf.mxu1 }
 0x22c   : > { %v4259_v28 = vpop.f32.mrf.mxu1 }
 0x22e   : > { %v4261_v29 = vpop.f32.mrf.mxu1 }
 0x230   : > { %v4263_v30 = vpop.f32.mrf.mxu1 }
 0x232   : > { %v4265_v31 = vpop.f32.mrf.mxu1 }
 0x234   : > { %v4267_v32 = vpop.f32.mrf.mxu1 }
 0x235   : > { %6006 = vst [vmem:[#allocation18_spill] sm:$0xff] %v4267_v32 }
 0x236   : > { %v4269_v33 = vpop.f32.mrf.mxu1 }
 0x237   : > { %6007 = vst [vmem:[#allocation19_spill] sm:$0xff] %v4269_v33 }
 0x238   : > { %v4271_v35 = vpop.f32.mrf.mxu1 }
 0x239   : > { %6008 = vst [vmem:[#allocation20_spill] sm:$0xff] %v4271_v35 }
 0x23a   : > { %v4273_v37 = vpop.f32.mrf.mxu1 }
 0x23b   : > { %6009 = vst [vmem:[#allocation21_spill] sm:$0xff] %v4273_v37 }
 0x23c   : > { %v4275_v38 = vpop.f32.mrf.mxu1 }
 0x23d   : > { %6010 = vst [vmem:[#allocation22_spill] sm:$0xff] %v4275_v38 }
 0x23e   : > { %v4277_v39 = vpop.f32.mrf.mxu1 }
 0x240   : > { %v4279_v40 = vpop.f32.mrf.mxu1 }
 0x242   : > { %v4281_v41 = vpop.f32.mrf.mxu1 }
 0x244   : > { %v4283_v42 = vpop.f32.mrf.mxu1 }
 0x246   : > { %v4285_v43 = vpop.f32.mrf.mxu1 }
 0x248   : > { %v4287_v44 = vpop.f32.mrf.mxu1 }
 0x24a   : > { %v4289_v45 = vpop.f32.mrf.mxu1 }
 0x24c   : > { %v4291_v46 = vpop.f32.mrf.mxu1 }
 0x24e   : > { %v4293_v47 = vpop.f32.mrf.mxu1 }
 0x250   : > { %v4295_v48 = vpop.f32.mrf.mxu1 }
 0x251   : > { %6011 = vst [vmem:[#allocation23_spill] sm:$0xff] %v4295_v48 }
 0x252   : > { %v4297_v49 = vpop.f32.mrf.mxu1 }
 0x254   : > { %v4299_v50 = vpop.f32.mrf.mxu1 }
 0x255   : > { %6012 = vst [vmem:[#allocation24_spill] sm:$0xff] %v4299_v50 }
 0x256   : > { %v4301_v51 = vpop.f32.mrf.mxu1 }
 0x257   : > { %6013 = vst [vmem:[#allocation25_spill] sm:$0xff] %v4301_v51 }
 0x258   : > { %v4303_v52 = vpop.f32.mrf.mxu1 }
 0x25a   : > { %v4305_v53 = vpop.f32.mrf.mxu1 }
 0x25b   : > { %6014 = vst [vmem:[#allocation26_spill] sm:$0xff] %v4305_v53 }
 0x25c   : > { %v4307_v54 = vpop.f32.mrf.mxu1 }
 0x25d   : > { %6015 = vst [vmem:[#allocation27_spill] sm:$0xff] %v4307_v54 }
 0x25e   : > { %v4309_v57 = vpop.f32.mrf.mxu1 }
 0x25f   : > { %6016 = vst [vmem:[#allocation28_spill] sm:$0xff] %v4309_v57 }
 0x260   : > { %v1517_v60 = vpop.f32.mrf.mxu1 }
 0x261   : > { %v4313_v1 = vmul.f32 %v1644_v56, %v1517_v60  ;;  %v1772_v15 = vmul.f32 %v1612_v55, %v1517_v60  ;;  %v1617_v55 = vld [vmem:[#allocation7 + $0x28] sm:$0xff] }
 0x262   : > { %v1519_v4 = vpop.f32.mrf.mxu1  ;;  %v1649_v56 = vld [vmem:[#allocation7 + $0x128] sm:$0xff] }
 0x263   : > { %6018 = vst [vmem:[#allocation30_spill] sm:$0xff] %v4313_v1  ;;  %v4319_v8 = vadd.f32 %v1804_v62, %v1772_v15  ;;  %v4321_v9 = vmul.f32 %v1645_v59, %v1519_v4  ;;  %v1773_v10 = vmul.f32 %v1613_v58, %v1519_v4  ;;  %v4340_v62 = vmul.f32 %v1616_v14, %v4255_v26  ;;  %v1618_v15 = vld [vmem:[#allocation7 + $0x30] sm:$0xff] }
 0x264   : > { %v1523_v13 = vpop.f32.mrf.mxu1 }
 0x265   : > { %6020 = vst [vmem:[#allocation32_spill] sm:$0xff] %v4319_v8  ;;  %6021 = vst [vmem:[#allocation33_spill] sm:$0xff] %v4321_v9  ;;  %v4327_v18 = vadd.f32 %v1805_v3, %v1773_v10  ;;  %v4329_v19 = vmul.f32 %v1646_v0, %v1523_v13  ;;  %v1774_v20 = vmul.f32 %v1614_v63, %v1523_v13  ;;  %v1650_v3 = vld [vmem:[#allocation7 + $0x130] sm:$0xff] }
 0x266   : > { %v1525_v23 = vpop.f32.mrf.mxu1  ;;  %6028 = vst [vmem:[#allocation40_spill] sm:$0xff] %v4340_v62  ;;  %v1808_v0 = vmul.f32 %v1648_v16, %v4255_v26  ;;  %v1653_v26 = vld [vmem:[#allocation7 + $0x148] sm:$0xff] }
 0x267   : > { %6023 = vst [vmem:[#allocation35_spill] sm:$0xff] %v4327_v18  ;;  %6024 = vst [vmem:[#allocation36_spill] sm:$0xff] %v4329_v19  ;;  %v4335_v58 = vadd.f32 %v1806_v12, %v1774_v20  ;;  %v4337_v59 = vmul.f32 %v1647_v6, %v1525_v23  ;;  %v1775_v60 = vmul.f32 %v1615_v5, %v1525_v23  ;;  %v1619_v20 = vld [vmem:[#allocation7 + $0x38] sm:$0xff] }
 0x268   : > { %v1529_v63 = vpop.f32.mrf.mxu1  ;;  %v4350_v6 = vmul.f32 %v1617_v55, %v4257_v27  ;;  %v1809_v5 = vmul.f32 %v1649_v56, %v4257_v27  ;;  %v1651_v23 = vld [vmem:[#allocation7 + $0x138] sm:$0xff] }
 0x269   : > { %6026 = vst [vmem:[#allocation38_spill] sm:$0xff] %v4335_v58  ;;  %6027 = vst [vmem:[#allocation39_spill] sm:$0xff] %v4337_v59  ;;  %v4345_v4 = vadd.f32 %v1807_v22, %v1775_v60  ;;  %v4347_v10 = vmul.f32 %v1648_v16, %v1529_v63  ;;  %v1776_v12 = vmul.f32 %v1616_v14, %v1529_v63  ;;  %v1620_v63 = vld [vmem:[#allocation7 + $0x40] sm:$0xff]  ;;  %v4453_v59 = vld [vmem:[#allocation7 + $0x70] sm:$0xff] }
 0x26a   : > { %6031 = vst [vmem:[#allocation43_spill] sm:$0xff] %v4350_v6  ;;  %v1531_v13 = vpop.f32.mrf.mxu1  ;;  %v4360_v16 = vmul.f32 %v1618_v15, %v4259_v28  ;;  %v1810_v14 = vmul.f32 %v1650_v3, %v4259_v28  ;;  %v4469_v6 = vld [vmem:[#allocation7 + $0x78] sm:$0xff] }
 0x26b   : > { %6029 = vst [vmem:[#allocation41_spill] sm:$0xff] %v4345_v4  ;;  %6030 = vst [vmem:[#allocation42_spill] sm:$0xff] %v4347_v10  ;;  %v4355_v7 = vadd.f32 %v1808_v0, %v1776_v12  ;;  %v4357_v17 = vmul.f32 %v1649_v56, %v1531_v13  ;;  %v1777_v22 = vmul.f32 %v1617_v55, %v1531_v13  ;;  %v1621_v13 = vld [vmem:[#allocation7 + $0x48] sm:$0xff] }
 0x26c   : > { %6034 = vst [vmem:[#allocation46_spill] sm:$0xff] %v4360_v16  ;;  %v1535_v60 = vpop.f32.mrf.mxu1  ;;  %v4370_v56 = vmul.f32 %v1619_v20, %v4261_v29  ;;  %v1811_v55 = vmul.f32 %v1651_v23, %v4261_v29  ;;  %v4475_v16 = vmul.f32 %v4453_v59, %v4275_v38  ;;  %v4627_v38 = vld [vmem:[#allocation7 + $0x1d8] sm:$0xff] }
 0x26d   : > { %6032 = vst [vmem:[#allocation44_spill] sm:$0xff] %v4355_v7  ;;  %6033 = vst [vmem:[#allocation45_spill] sm:$0xff] %v4357_v17  ;;  %v4365_v25 = vadd.f32 %v1809_v5, %v1777_v22  ;;  %v4367_v34 = vmul.f32 %v1650_v3, %v1535_v60  ;;  %v1778_v0 = vmul.f32 %v1618_v15, %v1535_v60  ;;  %v4467_v17 = vld [vmem:[#allocation7 + $0x170] sm:$0xff] }
 0x26e   : > { %6037 = vst [vmem:[#allocation49_spill] sm:$0xff] %v4370_v56  ;;  %v1537_v12 = vpop.f32.mrf.mxu1  ;;  %v4380_v3 = vmul.f32 %v1620_v63, %v4263_v30  ;;  %v1812_v15 = vmul.f32 %v1652_v24, %v4263_v30  ;;  %6067 = vst [vmem:[#allocation79_spill] sm:$0xff] %v4467_v17  ;;  %v4483_v56 = vld [vmem:[#allocation7 + $0x178] sm:$0xff] }
 0x26f   : > { %6035 = vst [vmem:[#allocation47_spill] sm:$0xff] %v4365_v25  ;;  %6036 = vst [vmem:[#allocation48_spill] sm:$0xff] %v4367_v34  ;;  %v4375_v36 = vadd.f32 %v1810_v14, %v1778_v0  ;;  %v4377_v1 = vmul.f32 %v1651_v23, %v1537_v12  ;;  %v1779_v5 = vmul.f32 %v1619_v20, %v1537_v12  ;;  %v4393_v20 = vld [vmem:[#allocation7 + $0x50] sm:$0xff] }
 0x270   : > { %6040 = vst [vmem:[#allocation52_spill] sm:$0xff] %v4380_v3  ;;  %v1541_v22 = vpop.f32.mrf.mxu1  ;;  %v4390_v14 = vmul.f32 %v1621_v13, %v4265_v31  ;;  %v1813_v23 = vmul.f32 %v1653_v26, %v4265_v31  ;;  %6044 = vst [vmem:[#allocation56_spill] sm:$0xff] %v4393_v20  ;;  %v4409_v31 = vmul.f32 %v4393_v20, %v4267_v32 }
 0x271   : > { %6038 = vst [vmem:[#allocation50_spill] sm:$0xff] %v4375_v36  ;;  %6039 = vst [vmem:[#allocation51_spill] sm:$0xff] %v4377_v1  ;;  %v4385_v60 = vadd.f32 %v1811_v55, %v1779_v5  ;;  %v4387_v27 = vmul.f32 %v1652_v24, %v1541_v22  ;;  %v1780_v61 = vmul.f32 %v1620_v63, %v1541_v22  ;;  %v4401_v5 = vld [vmem:[#allocation7 + $0x150] sm:$0xff]  ;;  %v4403_v24 = vld [vmem:[#allocation7 + $0x58] sm:$0xff] }
 0x272   : > { %6043 = vst [vmem:[#allocation55_spill] sm:$0xff] %v4390_v14  ;;  %v1543_v0 = vpop.f32.mrf.mxu1  ;;  %6047 = vst [vmem:[#allocation59_spill] sm:$0xff] %v4401_v5  ;;  %v4437_v22 = vld [vmem:[#allocation7 + $0x68] sm:$0xff] }
 0x273   : > { %6041 = vst [vmem:[#allocation53_spill] sm:$0xff] %v4385_v60  ;;  %6042 = vst [vmem:[#allocation54_spill] sm:$0xff] %v4387_v27  ;;  %v4397_v12 = vadd.f32 %v1812_v15, %v1780_v61  ;;  %v4399_v28 = vmul.f32 %v1653_v26, %v1543_v0  ;;  %v1781_v55 = vmul.f32 %v1621_v13, %v1543_v0  ;;  %v4419_v26 = vld [vmem:[#allocation7 + $0x158] sm:$0xff]  ;;  %v4421_v13 = vld [vmem:[#allocation7 + $0x60] sm:$0xff] }
 0x274   : > { %6048 = vst [vmem:[#allocation60_spill] sm:$0xff] %v4403_v24  ;;  %v4405_v63 = vpop.f32.mrf.mxu1  ;;  %6050 = vst [vmem:[#allocation62_spill] sm:$0xff] %v4409_v31  ;;  %v4427_v0 = vmul.f32 %v4403_v24, %v4269_v33  ;;  %v4443_v2 = vmul.f32 %v4421_v13, %v4271_v35  ;;  %v4459_v10 = vmul.f32 %v4437_v22, %v4273_v37  ;;  %v4485_v27 = vld [vmem:[#allocation7 + $0x80] sm:$0xff]  ;;  %v4501_v31 = vld [vmem:[#allocation7 + $0x88] sm:$0xff] }
 0x275   : > { %6045 = vst [vmem:[#allocation57_spill] sm:$0xff] %v4397_v12  ;;  %6046 = vst [vmem:[#allocation58_spill] sm:$0xff] %v4399_v28  ;;  %v4413_v29 = vadd.f32 %v1813_v23, %v1781_v55  ;;  %v4417_v61 = vmul.f32 %v4401_v5, %v4405_v63  ;;  %v4435_v55 = vld [vmem:[#allocation7 + $0x160] sm:$0xff]  ;;  %v4491_v28 = vmul.f32 %v4469_v6, %v4277_v39  ;;  %v4597_v33 = vld [vmem:[#allocation7 + $0x1f8] sm:$0xff] }
 0x276   : > { %6049 = vst [vmem:[#allocation61_spill] sm:$0xff] %v4405_v63  ;;  %6053 = vst [vmem:[#allocation65_spill] sm:$0xff] %v4419_v26  ;;  %v4423_v15 = vpop.f32.mrf.mxu1  ;;  %v4607_v63 = vld [vmem:[#allocation7 + $0x1e8] sm:$0xff]  ;;  %v1835_v37 = vmul.f32 %v4597_v33, %v4309_v57 }
 0x277   : > { %6051 = vst [vmem:[#allocation63_spill] sm:$0xff] %v4413_v29  ;;  %6052 = vst [vmem:[#allocation64_spill] sm:$0xff] %v4417_v61  ;;  %v4433_v23 = vmul.f32 %v4419_v26, %v4423_v15  ;;  %v4499_v61 = vld [vmem:[#allocation7 + $0x180] sm:$0xff]  ;;  %v4641_v57 = vld [vmem:[#allocation7 + $0xc8] sm:$0xff] }
 0x278   : > { %6054 = vst [vmem:[#allocation66_spill] sm:$0xff] %v4421_v13  ;;  %6055 = vst [vmem:[#allocation67_spill] sm:$0xff] %v4423_v15  ;;  %v4439_v9 = vpop.f32.mrf.mxu1  ;;  %v4615_v15 = vld [vmem:[#allocation7 + $0xe0] sm:$0xff] }
 0x279   : > { %6056 = vst [vmem:[#allocation68_spill] sm:$0xff] %v4427_v0  ;;  %6057 = vst [vmem:[#allocation69_spill] sm:$0xff] %v4433_v23  ;;  %v4449_v30 = vmul.f32 %v4435_v55, %v4439_v9  ;;  %v4507_v0 = vmul.f32 %v4485_v27, %v4279_v40 }
 0x27a   : > { %6058 = vst [vmem:[#allocation70_spill] sm:$0xff] %v4435_v55  ;;  %6059 = vst [vmem:[#allocation71_spill] sm:$0xff] %v4437_v22  ;;  %v4455_v21 = vpop.f32.mrf.mxu1  ;;  %v4609_v55 = vld [vmem:[#allocation7 + $0xf8] sm:$0xff]  ;;  %v4633_v22 = vld [vmem:[#allocation7 + $0xd0] sm:$0xff] }
 0x27b   : > { %6060 = vst [vmem:[#allocation72_spill] sm:$0xff] %v4439_v9  ;;  %6061 = vst [vmem:[#allocation73_spill] sm:$0xff] %v4443_v2  ;;  %v4465_v19 = vmul.f32 %v4451_v11, %v4455_v21  ;;  %v4515_v2 = vld [vmem:[#allocation7 + $0x188] sm:$0xff]  ;;  %v4617_v11 = vld [vmem:[#allocation7 + $0x1e0] sm:$0xff] }
 0x27c   : > { %6062 = vst [vmem:[#allocation74_spill] sm:$0xff] %v4449_v30  ;;  %6064 = vst [vmem:[#allocation76_spill] sm:$0xff] %v4455_v21  ;;  %v4471_v34 = vpop.f32.mrf.mxu1  ;;  %v4635_v21 = vld [vmem:[#allocation7 + $0x1d0] sm:$0xff] }
 0x27d   : > { %6065 = vst [vmem:[#allocation77_spill] sm:$0xff] %v4459_v10  ;;  %6066 = vst [vmem:[#allocation78_spill] sm:$0xff] %v4465_v19  ;;  %v4481_v62 = vmul.f32 %v4467_v17, %v4471_v34  ;;  %v4517_v19 = vld [vmem:[#allocation7 + $0x90] sm:$0xff]  ;;  %v4625_v17 = vld [vmem:[#allocation7 + $0xd8] sm:$0xff] }
 0x27e   : > { %6068 = vst [vmem:[#allocation80_spill] sm:$0xff] %v4475_v16  ;;  %v4487_v3 = vpop.f32.mrf.mxu1  ;;  %6070 = vst [vmem:[#allocation82_spill] sm:$0xff] %v4491_v28  ;;  %v4533_v28 = vld [vmem:[#allocation7 + $0x98] sm:$0xff]  ;;  %v4539_v18 = vmul.f32 %v4517_v19, %v4283_v42 }
 0x27f   : > { %6069 = vst [vmem:[#allocation81_spill] sm:$0xff] %v4481_v62  ;;  %v4497_v1 = vmul.f32 %v4483_v56, %v4487_v3  ;;  %6072 = vst [vmem:[#allocation84_spill] sm:$0xff] %v4507_v0  ;;  %v4523_v62 = vmul.f32 %v4501_v31, %v4281_v41  ;;  %v4549_v0 = vld [vmem:[#allocation7 + $0xa0] sm:$0xff]  ;;  %v4555_v7 = vmul.f32 %v4533_v28, %v4285_v43 }
 0x280   : > { %v4503_v23 = vpop.f32.mrf.mxu1  ;;  %6076 = vst [vmem:[#allocation88_spill] sm:$0xff] %v4539_v18  ;;  %v4569_v36 = vmul.f32 %v4549_v0, %v4287_v44  ;;  %6086 = vst [vmem:[#allocation98_spill] sm:$0xff] %v4597_v33  ;;  %v4643_v33 = vld [vmem:[#allocation7 + $0x1c8] sm:$0xff] }
 0x281   : > { %6071 = vst [vmem:[#allocation83_spill] sm:$0xff] %v4497_v1  ;;  %v4513_v14 = vmul.f32 %v4499_v61, %v4503_v23  ;;  %6074 = vst [vmem:[#allocation86_spill] sm:$0xff] %v4523_v62  ;;  %v4531_v1 = vld [vmem:[#allocation7 + $0x190] sm:$0xff] }
 0x282   : > { %v4519_v10 = vpop.f32.mrf.mxu1  ;;  %6078 = vst [vmem:[#allocation90_spill] sm:$0xff] %v4555_v7  ;;  %6080 = vst [vmem:[#allocation92_spill] sm:$0xff] %v4569_v36  ;;  %v4605_v36 = vld [vmem:[#allocation7 + $0xe8] sm:$0xff] }
 0x283   : > { %6073 = vst [vmem:[#allocation85_spill] sm:$0xff] %v4513_v14  ;;  %v4529_v30 = vmul.f32 %v4515_v2, %v4519_v10  ;;  %v4547_v14 = vld [vmem:[#allocation7 + $0x198] sm:$0xff]  ;;  %6090 = vst [vmem:[#allocation102_spill] sm:$0xff] %v4605_v36 }
 0x284   : > { %v4535_v8 = vpop.f32.mrf.mxu1  ;;  %6091 = vst [vmem:[#allocation103_spill] sm:$0xff] %v4609_v55  ;;  %6093 = vst [vmem:[#allocation105_spill] sm:$0xff] %v4615_v15 }
 0x285   : > { %6075 = vst [vmem:[#allocation87_spill] sm:$0xff] %v4529_v30  ;;  %v4545_v16 = vmul.f32 %v4531_v1, %v4535_v8  ;;  %v4563_v30 = vld [vmem:[#allocation7 + $0x1a0] sm:$0xff]  ;;  %6094 = vst [vmem:[#allocation106_spill] sm:$0xff] %v4625_v17 }
 0x286   : > { %v4551_v4 = vpop.f32.mrf.mxu1  ;;  %6095 = vst [vmem:[#allocation107_spill] sm:$0xff] %v4633_v22  ;;  %6096 = vst [vmem:[#allocation108_spill] sm:$0xff] %v4641_v57 }
 0x287   : > { %6077 = vst [vmem:[#allocation89_spill] sm:$0xff] %v4545_v16  ;;  %v4561_v58 = vmul.f32 %v4547_v14, %v4551_v4  ;;  %v4601_v16 = vld [vmem:[#allocation7 + $0xf0] sm:$0xff] }
 0x288   : > { %v4565_v62 = vpop.f32.mrf.mxu1  ;;  %6088 = vst [vmem:[#allocation100_spill] sm:$0xff] %v4601_v16 }
 0x289   : > { %6079 = vst [vmem:[#allocation91_spill] sm:$0xff] %v4561_v58  ;;  %v4575_v12 = vmul.f32 %v4563_v30, %v4565_v62 }
 0x28a   : > { %v4577_v25 = vpop.f32.mrf.mxu1 }
 0x28b   : > { %6081 = vst [vmem:[#allocation93_spill] sm:$0xff] %v4575_v12  ;;  %v4603_v12 = vld [vmem:[#allocation7 + $0x1f0] sm:$0xff] }
 0x28c   : > { %v4581_v18 = vpop.f32.mrf.mxu1  ;;  %6089 = vst [vmem:[#allocation101_spill] sm:$0xff] %v4603_v12 }
 0x28e   : > { %v4583_v29 = vpop.f32.mrf.mxu1 }
 0x290   : > { %v4585_v5 = vpop.f32.mrf.mxu1 }
 0x292   : > { %v4587_v32 = vpop.f32.mrf.mxu1 }
 0x294   : > { %v4589_v26 = vpop.f32.mrf.mxu1 }
 0x295   : > { %6082 = vst [vmem:[#allocation94_spill] sm:$0xff] %v4589_v26 }
 0x296   : > { %v4591_v60 = vpop.f32.mrf.mxu1 }
 0x297   : > { %6083 = vst [vmem:[#allocation95_spill] sm:$0xff] %v4591_v60 }
 0x298   : > { %v4593_v58 = vpop.f32.mrf.mxu1 }
 0x299   : > { %6084 = vst [vmem:[#allocation96_spill] sm:$0xff] %v4593_v58 }
 0x29a   : > { %v4595_v7 = vpop.f32.mrf.mxu1 }
 0x29b   : > { %6085 = vst [vmem:[#allocation97_spill] sm:$0xff] %v4595_v7  ;;  %v1801_v13 = vmul.f32 %v4605_v36, %v4595_v7  ;;  %v1833_v36 = vmul.f32 %v4607_v63, %v4305_v53  ;;  %v1799_v7 = vmul.f32 %v4625_v17, %v4591_v60  ;;  %v1831_v53 = vmul.f32 %v4627_v38, %v4301_v51  ;;  %v4657_v17 = vld [vmem:[#allocation7 + $0xb8] sm:$0xff]  ;;  %v4667_v51 = vld [vmem:[#allocation7 + $0x1b0] sm:$0xff] }
 0x29c   : > { %v4599_v20 = vpop.f32.mrf.mxu1  ;;  %6098 = vst [vmem:[#allocation110_spill] sm:$0xff] %v4657_v17  ;;  %v4659_v60 = vld [vmem:[#allocation7 + $0x1b8] sm:$0xff] }
 0x29d   : > { %6087 = vst [vmem:[#allocation99_spill] sm:$0xff] %v4599_v20  ;;  %v1802_v35 = vmul.f32 %v4601_v16, %v4599_v20  ;;  %v1834_v16 = vmul.f32 %v4603_v12, %v4307_v54  ;;  %v1800_v20 = vmul.f32 %v4615_v15, %v4593_v58  ;;  %v1832_v54 = vmul.f32 %v4617_v11, %v4303_v52  ;;  %v4649_v12 = vld [vmem:[#allocation7 + $0xc0] sm:$0xff] }
 0x29e   : > { %v4613_v24 = vpop.f32.mrf.mxu1  ;;  %v1798_v15 = vmul.f32 %v4633_v22, %v4589_v26  ;;  %6097 = vst [vmem:[#allocation109_spill] sm:$0xff] %v4649_v12  ;;  %v1830_v22 = vmul.f32 %v4635_v21, %v4299_v50  ;;  %v4665_v26 = vld [vmem:[#allocation7 + $0xb0] sm:$0xff]  ;;  %v4675_v50 = vld [vmem:[#allocation7 + $0x1a8] sm:$0xff] }
 0x29f   : > { %6092 = vst [vmem:[#allocation104_spill] sm:$0xff] %v4613_v24  ;;  %v1803_v9 = vmul.f32 %v4609_v55, %v4613_v24  ;;  %v1866_v58 = vadd.f32 %v1834_v16, %v1802_v35  ;;  %v4651_v24 = vld [vmem:[#allocation7 + $0x1c0] sm:$0xff]  ;;  %v1796_v35 = vmul.f32 %v4649_v12, %v4585_v5  ;;  %v1864_v16 = vadd.f32 %v1832_v54, %v1800_v20 }
 0x2a0   : > { %v1828_v54 = vmul.f32 %v4651_v24, %v4295_v48  ;;  %v1862_v20 = vadd.f32 %v1830_v22, %v1798_v15  ;;  %v1827_v12 = vmul.f32 %v4659_v60, %v4293_v47  ;;  %v1825_v22 = vmul.f32 %v4675_v50, %v4289_v45 }
 0x2a1   : > { %v1867_v55 = vadd.f32 %v1835_v37, %v1803_v9  ;;  %v1797_v37 = vmul.f32 %v4641_v57, %v4587_v32  ;;  %v1865_v9 = vadd.f32 %v1833_v36, %v1801_v13  ;;  %v1829_v36 = vmul.f32 %v4643_v33, %v4297_v49  ;;  %v4673_v57 = vld [vmem:[#allocation7 + $0xa8] sm:$0xff] }
 0x2a2   : > { %v1795_v13 = vmul.f32 %v4657_v17, %v4583_v29  ;;  %v1793_v17 = vmul.f32 %v4673_v57, %v4577_v25  ;;  %v1860_v48 = vadd.f32 %v1828_v54, %v1796_v35  ;;  %v1791_v15 = vmul.f32 %v4533_v28, %v4551_v4 }
 0x2a3   : > { %1868 = vmatprep.subr.mxu0 %v1867_v55  ;;  %v1863_v55 = vadd.f32 %v1831_v53, %v1799_v7  ;;  %v1861_v53 = vadd.f32 %v1829_v36, %v1797_v37  ;;  %v1826_v7 = vmul.f32 %v4667_v51, %v4291_v46  ;;  %v1824_v37 = vmul.f32 %v4563_v30, %v4287_v44  ;;  %v6103_v30 = vld [vmem:[#allocation72_spill] sm:$0xff] }
 0x2a4   : > { %1869 = vmatpush1.msra.mxu0 %v1866_v58  ;;  %v1794_v58 = vmul.f32 %v4665_v26, %v4581_v18  ;;  %v1790_v36 = vmul.f32 %v4517_v19, %v4535_v8  ;;  %v1857_v35 = vadd.f32 %v1825_v22, %v1793_v17  ;;  %v1822_v4 = vmul.f32 %v4531_v1, %v4283_v42 }
 0x2a5   : > { %1870 = vmatprep.subr.mxu0 %v1865_v9  ;;  %v1792_v9 = vmul.f32 %v4549_v0, %v4565_v62  ;;  %v1823_v62 = vmul.f32 %v4547_v14, %v4285_v43  ;;  %v1789_v0 = vmul.f32 %v4501_v31, %v4519_v10  ;;  %v1788_v28 = vmul.f32 %v4485_v27, %v4503_v23  ;;  %v6099_v10 = vld [vmem:[#allocation76_spill] sm:$0xff]  ;;  %v6100_v27 = vld [vmem:[#allocation71_spill] sm:$0xff] }
 0x2a6   : > { %1871 = vmatpush1.msra.mxu0 %v1864_v16  ;;  %v1859_v16 = vadd.f32 %v1827_v12, %v1795_v13  ;;  %v1821_v8 = vmul.f32 %v4515_v2, %v4281_v41  ;;  %v1820_v17 = vmul.f32 %v4499_v61, %v4279_v40  ;;  %v1786_v19 = vmul.f32 %v4453_v59, %v4471_v34  ;;  %v6101_v2 = vld [vmem:[#allocation22_spill] sm:$0xff]  ;;  %v6105_v61 = vld [vmem:[#allocation21_spill] sm:$0xff]  ;;  %v6106_v34 = vld [vmem:[#allocation75_spill] sm:$0xff] }
 0x2a7   : > { %1872 = vmatprep.subr.mxu0 %v1863_v55  ;;  %v1858_v55 = vadd.f32 %v1826_v7, %v1794_v58  ;;  %v1856_v44 = vadd.f32 %v1824_v37, %v1792_v9  ;;  %v1855_v43 = vadd.f32 %v1823_v62, %v1791_v15  ;;  %v1854_v42 = vadd.f32 %v1822_v4, %v1790_v36  ;;  %v6104_v12 = vld [vmem:[#allocation66_spill] sm:$0xff]  ;;  %v6107_v23 = vld [vmem:[#allocation67_spill] sm:$0xff]  ;;  %v6108_v13 = vld [vmem:[#allocation60_spill] sm:$0xff] }
 0x2a8   : > { %1873 = vmatpush1.msra.mxu0 %v1862_v20  ;;  %v1819_v1 = vmul.f32 %v4483_v56, %v4277_v39  ;;  %v1785_v14 = vmul.f32 %v6100_v27, %v6099_v10  ;;  %v1853_v41 = vadd.f32 %v1821_v8, %v1789_v0  ;;  %v1784_v31 = vmul.f32 %v6104_v12, %v6103_v30  ;;  %v6109_v56 = vld [vmem:[#allocation20_spill] sm:$0xff]  ;;  %v6110_v58 = vld [vmem:[#allocation70_spill] sm:$0xff]  ;;  %v6113_v15 = vld [vmem:[#allocation19_spill] sm:$0xff] }
 0x2a9   : > { %1874 = vmatprep.subr.mxu0 %v1861_v53  ;;  %v1852_v40 = vadd.f32 %v1820_v17, %v1788_v28  ;;  %v1817_v59 = vmul.f32 %v6106_v34, %v6105_v61  ;;  %v1783_v54 = vmul.f32 %v6108_v13, %v6107_v23  ;;  %v1816_v20 = vmul.f32 %v6110_v58, %v6109_v56  ;;  %v6111_v53 = vld [vmem:[#allocation61_spill] sm:$0xff]  ;;  %v6112_v7 = vld [vmem:[#allocation56_spill] sm:$0xff]  ;;  %v6116_v62 = vld [vmem:[#allocation59_spill] sm:$0xff] }
 0x2aa   : > { %1875 = vmatpush1.msra.mxu0 %v1860_v48  ;;  %v1787_v48 = vmul.f32 %v4469_v6, %v4487_v3  ;;  %v6102_v6 = vld [vmem:[#allocation79_spill] sm:$0xff]  ;;  %v1782_v9 = vmul.f32 %v6112_v7, %v6111_v53  ;;  %v6118_v8 = vld [vmem:[#allocation57_spill] sm:$0xff]  ;;  %v6121_v17 = vld [vmem:[#allocation104_spill] sm:$0xff] }
 0x2ab   : > { %1876 = vmatprep.subr.mxu0 %v1859_v16  ;;  %v1818_v3 = vmul.f32 %v6102_v6, %v6101_v2  ;;  %v6114_v16 = vld [vmem:[#allocation65_spill] sm:$0xff]  ;;  %v1849_v36 = vadd.f32 %v1817_v59, %v1785_v14  ;;  %v6124_v10 = vld [vmem:[#allocation99_spill] sm:$0xff]  ;;  %v6127_v2 = vld [vmem:[#allocation28_spill] sm:$0xff] }
 0x2ac   : > { %1877 = vmatpush1.msra.mxu0 %v1858_v55  ;;  %v1851_v39 = vadd.f32 %v1819_v1, %v1787_v48  ;;  %v1815_v37 = vmul.f32 %v6114_v16, %v6113_v15  ;;  %v6115_v55 = vld [vmem:[#allocation18_spill] sm:$0xff]  ;;  %v6119_v48 = vld [vmem:[#allocation53_spill] sm:$0xff]  ;;  %v6123_v1 = vld [vmem:[#allocation47_spill] sm:$0xff] }
 0x2ad   : > { %1878 = vmatprep.subr.mxu0 %v1857_v35  ;;  %v1850_v22 = vadd.f32 %v1818_v3, %v1786_v19  ;;  %v1814_v0 = vmul.f32 %v6116_v62, %v6115_v55  ;;  %v1848_v35 = vadd.f32 %v1816_v20, %v1784_v31  ;;  %v6122_v19 = vld [vmem:[#allocation98_spill] sm:$0xff]  ;;  %v6125_v27 = vld [vmem:[#allocation101_spill] sm:$0xff]  ;;  %v6128_v6 = vld [vmem:[#allocation103_spill] sm:$0xff] }
 0x2ae   : > { %1879 = vmatpush1.msra.mxu0 %v1856_v44  ;;  %v1847_v4 = vadd.f32 %v1815_v37, %v1783_v54  ;;  %v6117_v44 = vld [vmem:[#allocation63_spill] sm:$0xff]  ;;  %v1738_v14 = vmul.f32 %v6125_v27, %v6124_v10  ;;  %v1707_v3 = vmul.f32 %v6128_v6, %v6127_v2  ;;  %v6129_v30 = vld [vmem:[#allocation97_spill] sm:$0xff]  ;;  %v6132_v61 = vld [vmem:[#allocation100_spill] sm:$0xff]  ;;  %v1729_v27 = vmul.f32 %v4675_v50, %v4577_v25 }
 0x2af   : > { %1880 = vmatprep.subr.mxu0 %v1855_v43  ;;  %v1846_v28 = vadd.f32 %v1814_v0, %v1782_v9  ;;  %v6120_v43 = vld [vmem:[#allocation50_spill] sm:$0xff]  ;;  %v1737_v12 = vmul.f32 %v4607_v63, %v6129_v30  ;;  %v6130_v31 = vld [vmem:[#allocation41_spill] sm:$0xff]  ;;  %v6133_v59 = vld [vmem:[#allocation96_spill] sm:$0xff]  ;;  %v1733_v0 = vmul.f32 %v4643_v33, %v4587_v32  ;;  %v1731_v32 = vmul.f32 %v4659_v60, %v4583_v29 }
 0x2b0   : > { %1881 = vmatpush1.msra.mxu0 %v1854_v42  ;;  %v1739_v42 = vmul.f32 %v6122_v19, %v6121_v17  ;;  %v1736_v23 = vmul.f32 %v4617_v11, %v6133_v59  ;;  %v6134_v13 = vld [vmem:[#allocation38_spill] sm:$0xff]  ;;  %v6138_v20 = vld [vmem:[#allocation95_spill] sm:$0xff]  ;;  %v6140_v9 = vld [vmem:[#allocation105_spill] sm:$0xff]  ;;  %v1698_v29 = vmul.f32 %v4665_v26, %v4291_v46 }
 0x2b1   : > { %1882 = vmatprep.subr.mxu0 %v1853_v41  ;;  %v6126_v41 = vld [vmem:[#allocation44_spill] sm:$0xff]  ;;  %v4753_v54 = vld [vmem:[#allocation5 + $0x8] sm:$0xff]  ;;  %v1735_v53 = vmul.f32 %v4627_v38, %v6138_v20  ;;  %v6139_v63 = vld [vmem:[#allocation35_spill] sm:$0xff] }
 0x2b2   : > { %1883 = vmatpush1.msra.mxu0 %v1852_v40  ;;  %v6131_v40 = vld [vmem:[#allocation27_spill] sm:$0xff]  ;;  %6135 = vst [vmem:[#allocation76_spill] sm:$0xff] %v4753_v54  ;;  %v6137_v56 = vld [vmem:[#allocation102_spill] sm:$0xff]  ;;  %v1771_v7 = vsub.f32 %v1707_v3, %v1739_v42  ;;  %v6142_v37 = vld [vmem:[#allocation32_spill] sm:$0xff] }
 0x2b3   : > { %1884 = vmatprep.subr.mxu0 %v1851_v39  ;;  %v1706_v34 = vmul.f32 %v6132_v61, %v6131_v40  ;;  %v6136_v39 = vld [vmem:[#allocation26_spill] sm:$0xff]  ;;  %v6145_v38 = vld [vmem:[#allocation24_spill] sm:$0xff]  ;;  %v6150_v17 = vld [vmem:[#allocation23_spill] sm:$0xff] }
 0x2b4   : > { %1885 = vmatpush1.msra.mxu0 %v1850_v22  ;;  %v1705_v58 = vmul.f32 %v6137_v56, %v6136_v39  ;;  %v1704_v22 = vmul.f32 %v6140_v9, %v4303_v52  ;;  %v6141_v15 = vld [vmem:[#allocation94_spill] sm:$0xff]  ;;  %v1732_v52 = vmul.f32 %v4651_v24, %v4585_v5  ;;  %v6151_v19 = vld [vmem:[#allocation109_spill] sm:$0xff]  ;;  %v1730_v5 = vmul.f32 %v4667_v51, %v4581_v18  ;;  %v6153_v50 = vld [vmem:[#allocation92_spill] sm:$0xff] }
 0x2b5   : > { %1886 = vmatprep.subr.mxu0 %v1849_v36  ;;  %v1734_v16 = vmul.f32 %v4635_v21, %v6141_v15  ;;  %v1770_v11 = vsub.f32 %v1706_v34, %v1738_v14  ;;  %v6143_v36 = vld [vmem:[#allocation25_spill] sm:$0xff]  ;;  %v6144_v55 = vld [vmem:[#allocation106_spill] sm:$0xff]  ;;  %v1700_v42 = vmul.f32 %v6151_v19, %v6150_v17  ;;  %v1697_v51 = vmul.f32 %v4673_v57, %v4289_v45  ;;  %v6157_v26 = vld [vmem:[#allocation91_spill] sm:$0xff] }
 0x2b6   : > { %1887 = vmatpush1.msra.mxu0 %v1848_v35  ;;  %v1703_v62 = vmul.f32 %v6144_v55, %v6143_v36  ;;  %v1769_v35 = vsub.f32 %v1705_v58, %v1737_v12  ;;  %v1768_v21 = vsub.f32 %v1704_v22, %v1736_v23  ;;  %v6154_v25 = vld [vmem:[#allocation93_spill] sm:$0xff]  ;;  %v6156_v46 = vld [vmem:[#allocation90_spill] sm:$0xff]  ;;  %v6159_v6 = vld [vmem:[#allocation88_spill] sm:$0xff] }
 0x2b7   : > { %1888 = vmatprep.subr.mxu0 %v1847_v4  ;;  %v6146_v4 = vld [vmem:[#allocation107_spill] sm:$0xff]  ;;  %v1764_v60 = vsub.f32 %v1700_v42, %v1732_v52  ;;  %v1761_v14 = vsub.f32 %v1697_v51, %v1729_v27  ;;  %v6158_v2 = vsub.f32 %v6156_v46, %v6157_v26  ;;  %v6160_v3 = vld [vmem:[#allocation89_spill] sm:$0xff]  ;;  %v6162_v45 = vld [vmem:[#allocation86_spill] sm:$0xff]  ;;  %v4866_v26 = vpop.f32.mrf.mxu0 }
 0x2b8   : > { %1889 = vmatpush1.msra.mxu0 %v1846_v28  ;;  %v1702_v28 = vmul.f32 %v6146_v4, %v6145_v38  ;;  %v1767_v33 = vsub.f32 %v1703_v62, %v1735_v53  ;;  %v6161_v30 = vsub.f32 %v6159_v6, %v6160_v3  ;;  %v6163_v57 = vld [vmem:[#allocation87_spill] sm:$0xff]  ;;  %v6166_v40 = vld [vmem:[#allocation85_spill] sm:$0xff]  ;;  %v6168_v34 = vld [vmem:[#allocation82_spill] sm:$0xff]  ;;  %6218 = vst [vmem:[#allocation72_spill] sm:$0xff] %v4866_v26 }
 0x2b9   : > { %1890 = vmatprep.subr.mxu0 %v6117_v44  ;;  %v6147_v44 = vmov 0.0   ;;  %v6164_v12 = vsub.f32 %v6162_v45, %v6163_v57  ;;  %v6169_v59 = vld [vmem:[#allocation83_spill] sm:$0xff]  ;;  %v6172_v39 = vld [vmem:[#allocation81_spill] sm:$0xff]  ;;  %v6175_v20 = vld [vmem:[#allocation78_spill] sm:$0xff] }
 0x2ba   : > { %1891 = vmatpush1.msra.mxu0 %v6118_v8  ;;  %v4775_v8 = vld [vmem:[#allocation5 + $0x18] sm:$0xff]  ;;  %v1766_v24 = vsub.f32 %v1702_v28, %v1734_v16  ;;  %v6170_v23 = vsub.f32 %v6168_v34, %v6169_v59  ;;  %v6174_v58 = vld [vmem:[#allocation77_spill] sm:$0xff]  ;;  %v6186_v55 = vld [vmem:[#allocation55_spill] sm:$0xff] }
 0x2bb   : > { %1892 = vmatprep.subr.mxu0 %v6119_v48  ;;  %6148 = vst [vmem:[#allocation71_spill] sm:$0xff] %v4775_v8  ;;  %v6149_v48 = vld [vmem:[#allocation108_spill] sm:$0xff]  ;;  %v6176_v53 = vsub.f32 %v6174_v58, %v6175_v20  ;;  %v6181_v15 = vld [vmem:[#allocation69_spill] sm:$0xff]  ;;  %v6187_v62 = vld [vmem:[#allocation58_spill] sm:$0xff] }
 0x2bc   : > { %1893 = vmatpush1.msra.mxu0 %v6120_v43  ;;  %v1701_v43 = vmul.f32 %v6149_v48, %v4297_v49  ;;  %v6180_v22 = vld [vmem:[#allocation68_spill] sm:$0xff]  ;;  %v6190_v38 = vld [vmem:[#allocation54_spill] sm:$0xff]  ;;  %v6192_v28 = vld [vmem:[#allocation49_spill] sm:$0xff] }
 0x2bd   : > { %1894 = vmatprep.subr.mxu0 %v6123_v1  ;;  %v6152_v1 = vld [vmem:[#allocation110_spill] sm:$0xff]  ;;  %v6182_v16 = vsub.f32 %v6180_v22, %v6181_v15  ;;  %v6193_v52 = vld [vmem:[#allocation51_spill] sm:$0xff]  ;;  %v6199_v17 = vld [vmem:[#allocation45_spill] sm:$0xff] }
 0x2be   : > { %1895 = vmatpush1.msra.mxu0 %v6126_v41  ;;  %v1699_v10 = vmul.f32 %v6152_v1, %v4293_v47  ;;  %v1765_v49 = vsub.f32 %v1701_v43, %v1733_v0  ;;  %v1762_v47 = vsub.f32 %v1698_v29, %v1730_v5  ;;  %v6155_v41 = vsub.f32 %v6153_v50, %v6154_v25  ;;  %v6195_v48 = vld [vmem:[#allocation46_spill] sm:$0xff]  ;;  %v6196_v43 = vld [vmem:[#allocation48_spill] sm:$0xff]  ;;  %v6204_v1 = vld [vmem:[#allocation37_spill] sm:$0xff] }
 0x2bf   : > { %1896 = vmatprep.subr.mxu0 %v6130_v31  ;;  %v6165_v31 = vld [vmem:[#allocation84_spill] sm:$0xff]  ;;  %v6188_v0 = vsub.f32 %v6186_v55, %v6187_v62  ;;  %v6202_v5 = vld [vmem:[#allocation42_spill] sm:$0xff]  ;;  %v4852_v51 = vld [vmem:[#allocation5] sm:$0xff] }
 0x2c0   : > { %1897 = vmatpush1.msra.mxu0 %v6134_v13  ;;  %v1763_v18 = vsub.f32 %v1699_v10, %v1731_v32  ;;  %v6167_v61 = vsub.f32 %v6165_v31, %v6166_v40  ;;  %v6171_v13 = vld [vmem:[#allocation80_spill] sm:$0xff]  ;;  %v6197_v32 = vsub.f32 %v6195_v48, %v6196_v43  ;;  %v6205_v10 = vld [vmem:[#allocation39_spill] sm:$0xff]  ;;  %6210 = vst [vmem:[#allocation22_spill] sm:$0xff] %v4852_v51  ;;  %v6214_v50 = vld [vmem:[#allocation29_spill] sm:$0xff] }
 0x2c1   : > { %1898 = vmatprep.subr.mxu0 %v6139_v63  ;;  %v6173_v56 = vsub.f32 %v6171_v13, %v6172_v39  ;;  %v6178_v63 = vld [vmem:[#allocation74_spill] sm:$0xff]  ;;  %v6201_v42 = vld [vmem:[#allocation40_spill] sm:$0xff]  ;;  %v6206_v27 = vsub.f32 %v6204_v1, %v6205_v10  ;;  %v4862_v46 = vld [vmem:[#allocation5 + $0x10] sm:$0xff] }
 0x2c2   : > { %1899 = vmatpush1.msra.mxu0 %v6142_v37  ;;  %v6184_v37 = vld [vmem:[#allocation64_spill] sm:$0xff]  ;;  %v6215_v25 = vld [vmem:[#allocation30_spill] sm:$0xff]  ;;  %6217 = vst [vmem:[#allocation79_spill] sm:$0xff] %v4862_v46  ;;  %v6222_v59 = vld [vmem:[#allocation17_spill] sm:$0xff] }
 0x2c3   : > { %1933 = vmatmul.mubr.f32.vlgmr.msra.gmra.mxu0 %v4753_v54  ;;  %1945 = vmatprep.subr.mxu0 %v1771_v7  ;;  %v6177_v7 = vld [vmem:[#allocation73_spill] sm:$0xff]  ;;  %v6208_v29 = vld [vmem:[#allocation36_spill] sm:$0xff]  ;;  %v591_v13 = vsub.s32 4, %v6222_v59  ;;  %v3655_v43 = vld [vmem:[%s5805_s3 + $0x28] sm:$0xff] }
 0x2c4   : > { %1946 = vmatpush1.msra.mxu0 %v1770_v11  ;;  %1938 = vmatprep.mubr.f32.mxu0 %v6147_v44  ;;  %v6179_v9 = vsub.f32 %v6177_v7, %v6178_v63  ;;  %v6183_v11 = vld [vmem:[#allocation62_spill] sm:$0xff]  ;;  %v3649_v58 = vld [vmem:[%s5804_s2] sm:$0x3f]  ;;  %v3664_v10 = vld [vmem:[%s5805_s3 + $0x70] sm:$0xff] }
 0x2c5   : > { %1947 = vmatprep.subr.mxu0 %v1769_v35  ;;  %v6185_v36 = vsub.f32 %v6183_v11, %v6184_v37  ;;  %v6189_v35 = vld [vmem:[#allocation52_spill] sm:$0xff]  ;;  %v3654_v48 = vld [vmem:[%s5805_s3 + $0x20] sm:$0xff]  ;;  %v3663_v1 = vld [vmem:[%s5805_s3 + $0x68] sm:$0xff] }
 0x2c6   : > { %1948 = vmatpush1.msra.mxu0 %v1768_v21  ;;  %v6191_v4 = vsub.f32 %v6189_v35, %v6190_v38  ;;  %v6194_v21 = vsub.f32 %v6192_v28, %v6193_v52  ;;  %v3651_v28 = vld [vmem:[%s5805_s3 + $0x8] sm:$0xff]  ;;  %v3652_v52 = vld [vmem:[%s5805_s3 + $0x10] sm:$0xff] }
 0x2c7   : > { %1949 = vmatprep.subr.mxu0 %v1767_v33  ;;  %1939 = vmatmul.mubr.f32.gmra.mxu0 %v4775_v8  ;;  %v6198_v33 = vld [vmem:[#allocation43_spill] sm:$0xff] }
 0x2c8   : > { %1950 = vmatpush1.msra.mxu0 %v1766_v24  ;;  %2009 = vmatprep.mubr.f32.mxu0 %v6147_v44  ;;  %v6200_v19 = vsub.f32 %v6198_v33, %v6199_v17  ;;  %v6203_v24 = vsub.f32 %v6201_v42, %v6202_v5  ;;  %v3657_v33 = vld [vmem:[%s5805_s3 + $0x38] sm:$0xff]  ;;  %v3658_v17 = vld [vmem:[%s5805_s3 + $0x40] sm:$0xff]  ;;  %v3660_v42 = vld [vmem:[%s5805_s3 + $0x50] sm:$0xff] }
 0x2c9   : > { %1951 = vmatprep.subr.mxu0 %v1765_v49  ;;  %v6207_v49 = vld [vmem:[#allocation34_spill] sm:$0xff]  ;;  %v3661_v5 = vld [vmem:[%s5805_s3 + $0x58] sm:$0xff] }
 0x2ca   : > { %1952 = vmatpush1.msra.mxu0 %v1764_v60  ;;  %v6209_v60 = vsub.f32 %v6207_v49, %v6208_v29  ;;  %v3666_v49 = vld [vmem:[%s5805_s3 + $0x80] sm:$0xff]  ;;  %v3667_v29 = vld [vmem:[%s5805_s3 + $0x88] sm:$0xff] }
 0x2cb   : > { %1953 = vmatprep.subr.mxu0 %v1763_v18  ;;  %v6211_v18 = vld [vmem:[#allocation31_spill] sm:$0xff] }
 0x2cc   : > { %1954 = vmatpush1.msra.mxu0 %v1762_v47  ;;  %v6212_v47 = vld [vmem:[#allocation33_spill] sm:$0xff] }
 0x2cd   : > { %1955 = vmatprep.subr.mxu0 %v1761_v14  ;;  %v6213_v14 = vsub.f32 %v6211_v18, %v6212_v47  ;;  %v3669_v18 = vld [vmem:[%s5805_s3 + $0x98] sm:$0xff]  ;;  %v3670_v47 = vld [vmem:[%s5805_s3 + $0xa0] sm:$0xff] }
 0x2ce   : > { %1956 = vmatpush1.msra.mxu0 %v6155_v41  ;;  %v6216_v41 = vsub.f32 %v6214_v50, %v6215_v25  ;;  %v3672_v50 = vld [vmem:[%s5805_s3 + $0xb0] sm:$0xff]  ;;  %v3673_v25 = vld [vmem:[%s5805_s3 + $0xb8] sm:$0xff] }
 0x2cf   : > { %1957 = vmatprep.subr.mxu0 %v6158_v2  ;;  %v4868_v2 = vpop.f32.mrf.mxu0 }
 0x2d0   : > { %1958 = vmatpush1.msra.mxu0 %v6161_v30  ;;  %6219 = vst [vmem:[#allocation66_spill] sm:$0xff] %v4868_v2 }
 0x2d1   : > { %1959 = vmatprep.subr.mxu0 %v6164_v12  ;;  %v4870_v6 = vpop.f32.mrf.mxu0 }
 0x2d2   : > { %1960 = vmatpush1.msra.mxu0 %v6167_v61  ;;  %6220 = vst [vmem:[#allocation21_spill] sm:$0xff] %v4870_v6 }
 0x2d3   : > { %1961 = vmatprep.subr.mxu0 %v6170_v23  ;;  %v4872_v3 = vpop.f32.mrf.mxu0  ;;  %v595_v23 = vsub.s32 5, %v6222_v59 }
 0x2d4   : > { %1962 = vmatpush1.msra.mxu0 %v6173_v56  ;;  %6221 = vst [vmem:[#allocation75_spill] sm:$0xff] %v4872_v3 }
 0x2d5   : > { %1963 = vmatprep.subr.mxu0 %v6176_v53  ;;  %v1213_v30 = vpop.f32.mrf.mxu0  ;;  %v596_v20 = vrot.slane %v3649_v58, %v595_v23  ;;  %v592_v53 = vrot.slane %v3649_v58, %v591_v13 }
 0x2d6   : > { %1964 = vmatpush1.msra.mxu0 %v6179_v9 }
 0x2d7   : > { %1965 = vmatprep.subr.mxu0 %v6182_v16  ;;  %v1215_v45 = vpop.f32.mrf.mxu0  ;;  %v1214_v62 = vadd.f32 %v1213_v30, %v592_v53  ;;  %v3675_v30 = vld [vmem:[%s5805_s3 + $0xc8] sm:$0xff] }
 0x2d8   : > { %1966 = vmatpush1.msra.mxu0 %v6185_v36  ;;  %v1216_v36 = vadd.f32 %v1215_v45, %v596_v20  ;;  %v3676_v45 = vld [vmem:[%s5805_s3 + $0xd0] sm:$0xff] }
 0x2d9   : > { %1967 = vmatprep.subr.mxu0 %v6188_v0  ;;  %v1217_v57 = vpop.f32.mrf.mxu0 }
 0x2da   : > { %1968 = vmatpush1.msra.mxu0 %v6191_v4  ;;  %v1218_v11 = vadd.f32 %v1217_v57, %v592_v53  ;;  %v3650_v4 = vld [vmem:[%s5805_s3] sm:$0xff]  ;;  %v3677_v57 = vld [vmem:[%s5805_s3 + $0xd8] sm:$0xff] }
 0x2db   : > { %1969 = vmatprep.subr.mxu0 %v6194_v21  ;;  %v1219_v12 = vpop.f32.mrf.mxu0  ;;  %v3653_v21 = vld [vmem:[%s5805_s3 + $0x18] sm:$0xff] }
 0x2dc   : > { %1970 = vmatpush1.msra.mxu0 %v6197_v32  ;;  %v1220_v22 = vadd.f32 %v1219_v12, %v596_v20  ;;  %v3656_v32 = vld [vmem:[%s5805_s3 + $0x30] sm:$0xff]  ;;  %v3678_v12 = vld [vmem:[%s5805_s3 + $0xe0] sm:$0xff] }
 0x2dd   : > { %1971 = vmatprep.subr.mxu0 %v6200_v19  ;;  %v3659_v19 = vld [vmem:[%s5805_s3 + $0x48] sm:$0xff] }
 0x2de   : > { %1972 = vmatpush1.msra.mxu0 %v6203_v24  ;;  %v3662_v24 = vld [vmem:[%s5805_s3 + $0x60] sm:$0xff] }
 0x2df   : > { %1973 = vmatprep.subr.mxu0 %v6206_v27  ;;  %v3665_v27 = vld [vmem:[%s5805_s3 + $0x78] sm:$0xff] }
 0x2e0   : > { %1974 = vmatpush1.msra.mxu0 %v6209_v60  ;;  %v3668_v60 = vld [vmem:[%s5805_s3 + $0x90] sm:$0xff] }
 0x2e1   : > { %1975 = vmatprep.subr.mxu0 %v6213_v14  ;;  %v3671_v14 = vld [vmem:[%s5805_s3 + $0xa8] sm:$0xff] }
 0x2e2   : > { %1976 = vmatpush1.msra.mxu0 %v6216_v41  ;;  %v3674_v41 = vld [vmem:[%s5805_s3 + $0xc0] sm:$0xff] }
 0x2e3   : > { %2010 = vmatmul.mubr.f32.vlgmr.msra.gmra.mxu0 %v4852_v51 }
 0x2e4   : > { %2015 = vmatprep.mubr.f32.mxu0 %v6147_v44 }
 0x2e7   : > { %2016 = vmatmul.mubr.f32.gmra.mxu0 %v4862_v46 }
 0x2e8   : > { %2090 = vmatprep.mubr.f32.mxu0 %v6147_v44 }
 0x383   : > { %v1934_v31 = vpop.f32.mrf.mxu0 }
 0x385   : > { %v1936_v40 = vpop.f32.mrf.mxu0 }
 0x387   : > { %v1940_v61 = vpop.f32.mrf.mxu0 }
 0x389   : > { %v1942_v34 = vpop.f32.mrf.mxu0 }
 0x3a3   : > { %v2011_v39 = vpop.f32.mrf.mxu0 }
 0x3a4   : > { %v2012_v37 = vadd.f32 %v2011_v39, %v1934_v31  ;;  %v3679_v31 = vld [vmem:[%s5805_s3 + $0xe8] sm:$0xff] }
 0x3a5   : > { %v2013_v56 = vpop.f32.mrf.mxu0 }
 0x3a6   : > { %v2014_v15 = vadd.f32 %v2013_v56, %v1936_v40  ;;  %v2022_v38 = vmul.f32 %v2012_v37, %v1214_v62  ;;  %v3680_v40 = vld [vmem:[%s5805_s3 + $0xf0] sm:$0xff] }
 0x3a7   : > { %v2017_v7 = vpop.f32.mrf.mxu0 }
 0x3a8   : > { %v2018_v63 = vadd.f32 %v2017_v7, %v1940_v61  ;;  %v2023_v35 = vmul.f32 %v2014_v15, %v1216_v36  ;;  %v3681_v61 = vld [vmem:[%s5805_s3 + $0xf8] sm:$0xff] }
 0x3a9   : > { %v2019_v9 = vpop.f32.mrf.mxu0 }
 0x3aa   : > { %v2020_v16 = vadd.f32 %v2019_v9, %v1942_v34  ;;  %v2024_v0 = vmul.f32 %v2018_v63, %v1218_v11 }
 0x3ac   : > { %v2025_v55 = vmul.f32 %v2020_v16, %v1220_v22 }
 0x3ae   : > { %2054 = vmatprep.subr.mxu0 %v2025_v55 }
 0x3af   : > { %2055 = vmatpush1.msra.mxu0 %v2024_v0 }
 0x3b0   : > { %2056 = vmatprep.subr.mxu0 %v2023_v35 }
 0x3b1   : > { %2057 = vmatpush1.msra.mxu0 %v2022_v38 }
 0x3b2   : > { %3280 = vmatmul.mubr.msk.f32.vlgmr.msra.gmra.mxu0 %vm1258_vm0, %v3650_v4 }
 0x3b3   : > { %2096 = vmatprep.mubr.f32.mxu0 %v6147_v44 }
 0x3b6   : > { %3281 = vmatmul.mubr.msk.f32.gmra.mxu0 %vm1258_vm0, %v3651_v28 }
 0x3b7   : > { %2102 = vmatprep.mubr.f32.mxu0 %v6147_v44 }
 0x3ba   : > { %3282 = vmatmul.mubr.msk.f32.gmra.mxu0 %vm1258_vm0, %v3652_v52 }
 0x3bb   : > { %2108 = vmatprep.mubr.f32.mxu0 %v6147_v44 }
 0x3be   : > { %3283 = vmatmul.mubr.msk.f32.gmra.mxu0 %vm1258_vm0, %v3653_v21 }
 0x3bf   : > { %2114 = vmatprep.mubr.f32.mxu0 %v6147_v44 }
 0x3c2   : > { %3284 = vmatmul.mubr.msk.f32.gmra.mxu0 %vm1258_vm0, %v3654_v48 }
 0x3c3   : > { %2120 = vmatprep.mubr.f32.mxu0 %v6147_v44 }
 0x3c6   : > { %3285 = vmatmul.mubr.msk.f32.gmra.mxu0 %vm1258_vm0, %v3655_v43 }
 0x3c7   : > { %2126 = vmatprep.mubr.f32.mxu0 %v6147_v44 }
 0x3ca   : > { %3286 = vmatmul.mubr.msk.f32.gmra.mxu0 %vm1258_vm0, %v3656_v32 }
 0x3cb   : > { %2132 = vmatprep.mubr.f32.mxu0 %v6147_v44 }
 0x3ce   : > { %3287 = vmatmul.mubr.msk.f32.gmra.mxu0 %vm1258_vm0, %v3657_v33 }
 0x3cf   : > { %2138 = vmatprep.mubr.f32.mxu0 %v6147_v44 }
 0x3d2   : > { %3288 = vmatmul.mubr.msk.f32.gmra.mxu0 %vm1258_vm0, %v3658_v17 }
 0x3d3   : > { %2144 = vmatprep.mubr.f32.mxu0 %v6147_v44 }
 0x3d6   : > { %3289 = vmatmul.mubr.msk.f32.gmra.mxu0 %vm1258_vm0, %v3659_v19  ;;  %v2283_v19 = vld [vmem:[#allocation8] sm:$0xff] }
 0x3d7   : > { %2150 = vmatprep.mubr.f32.mxu0 %v6147_v44 }
 0x3da   : > { %3290 = vmatmul.mubr.msk.f32.gmra.mxu0 %vm1258_vm0, %v3660_v42  ;;  %v2315_v42 = vld [vmem:[#allocation8 + $0x100] sm:$0xff] }
 0x3db   : > { %2156 = vmatprep.mubr.f32.mxu0 %v6147_v44 }
 0x3de   : > { %3291 = vmatmul.mubr.msk.f32.gmra.mxu0 %vm1258_vm0, %v3661_v5 }
 0x3df   : > { %2162 = vmatprep.mubr.f32.mxu0 %v6147_v44 }
 0x3e2   : > { %3292 = vmatmul.mubr.msk.f32.gmra.mxu0 %vm1258_vm0, %v3662_v24  ;;  %v2284_v24 = vld [vmem:[#allocation8 + $0x8] sm:$0xff] }
 0x3e3   : > { %2168 = vmatprep.mubr.f32.mxu0 %v6147_v44 }
 0x3e6   : > { %3293 = vmatmul.mubr.msk.f32.gmra.mxu0 %vm1258_vm0, %v3663_v1  ;;  %v2316_v1 = vld [vmem:[#allocation8 + $0x108] sm:$0xff] }
 0x3e7   : > { %2174 = vmatprep.mubr.f32.mxu0 %v6147_v44 }
 0x3ea   : > { %3294 = vmatmul.mubr.msk.f32.gmra.mxu0 %vm1258_vm0, %v3664_v10 }
 0x3eb   : > { %2180 = vmatprep.mubr.f32.mxu0 %v6147_v44 }
 0x3ee   : > { %3295 = vmatmul.mubr.msk.f32.gmra.mxu0 %vm1258_vm0, %v3665_v27 }
 0x3ef   : > { %2186 = vmatprep.mubr.f32.mxu0 %v6147_v44 }
 0x3f2   : > { %3296 = vmatmul.mubr.msk.f32.gmra.mxu0 %vm1258_vm0, %v3666_v49 }
 0x3f3   : > { %2192 = vmatprep.mubr.f32.mxu0 %v6147_v44 }
 0x3f6   : > { %3297 = vmatmul.mubr.msk.f32.gmra.mxu0 %vm1258_vm0, %v3667_v29  ;;  %v2285_v29 = vld [vmem:[#allocation8 + $0x10] sm:$0xff] }
 0x3f7   : > { %2198 = vmatprep.mubr.f32.mxu0 %v6147_v44 }
 0x3fa   : > { %3298 = vmatmul.mubr.msk.f32.gmra.mxu0 %vm1258_vm0, %v3668_v60  ;;  %v2317_v60 = vld [vmem:[#allocation8 + $0x110] sm:$0xff] }
 0x3fb   : > { %2204 = vmatprep.mubr.f32.mxu0 %v6147_v44 }
 0x3fe   : > { %3299 = vmatmul.mubr.msk.f32.gmra.mxu0 %vm1258_vm0, %v3669_v18 }
 0x3ff   : > { %2210 = vmatprep.mubr.f32.mxu0 %v6147_v44 }
 0x402   : > { %3300 = vmatmul.mubr.msk.f32.gmra.mxu0 %vm1258_vm0, %v3670_v47 }
 0x403   : > { %2216 = vmatprep.mubr.f32.mxu0 %v6147_v44 }
 0x406   : > { %3301 = vmatmul.mubr.msk.f32.gmra.mxu0 %vm1258_vm0, %v3671_v14 }
 0x407   : > { %2222 = vmatprep.mubr.f32.mxu0 %v6147_v44 }
 0x40a   : > { %3302 = vmatmul.mubr.msk.f32.gmra.mxu0 %vm1258_vm0, %v3672_v50 }
 0x40b   : > { %2228 = vmatprep.mubr.f32.mxu0 %v6147_v44 }
 0x40e   : > { %3303 = vmatmul.mubr.msk.f32.gmra.mxu0 %vm1258_vm0, %v3673_v25 }
 0x40f   : > { %2234 = vmatprep.mubr.f32.mxu0 %v6147_v44 }
 0x412   : > { %3304 = vmatmul.mubr.msk.f32.gmra.mxu0 %vm1258_vm0, %v3674_v41  ;;  %v2286_v41 = vld [vmem:[#allocation8 + $0x18] sm:$0xff] }
 0x413   : > { %2240 = vmatprep.mubr.f32.mxu0 %v6147_v44 }
 0x416   : > { %3305 = vmatmul.mubr.msk.f32.gmra.mxu0 %vm1258_vm0, %v3675_v30  ;;  %v2318_v30 = vld [vmem:[#allocation8 + $0x118] sm:$0xff] }
 0x417   : > { %2246 = vmatprep.mubr.f32.mxu0 %v6147_v44 }
 0x41a   : > { %3306 = vmatmul.mubr.msk.f32.gmra.mxu0 %vm1258_vm0, %v3676_v45 }
 0x41b   : > { %2252 = vmatprep.mubr.f32.mxu0 %v6147_v44 }
 0x41e   : > { %3307 = vmatmul.mubr.msk.f32.gmra.mxu0 %vm1258_vm0, %v3677_v57 }
 0x41f   : > { %2258 = vmatprep.mubr.f32.mxu0 %v6147_v44 }
 0x422   : > { %3308 = vmatmul.mubr.msk.f32.gmra.mxu0 %vm1258_vm0, %v3678_v12 }
 0x423   : > { %2264 = vmatprep.mubr.f32.mxu0 %v6147_v44 }
 0x426   : > { %3309 = vmatmul.mubr.msk.f32.gmra.mxu0 %vm1258_vm0, %v3679_v31 }
 0x427   : > { %2270 = vmatprep.mubr.f32.mxu0 %v6147_v44 }
 0x42a   : > { %3310 = vmatmul.mubr.msk.f32.gmra.mxu0 %vm1258_vm0, %v3680_v40 }
 0x42b   : > { %2276 = vmatprep.mubr.f32.mxu0 %v6147_v44 }
 0x42e   : > { %3311 = vmatmul.mubr.msk.f32.gmra.mxu0 %vm1258_vm0, %v3681_v61 }
 0x472   : > { %v2092_v34 = vpop.f32.mrf.mxu0 }
 0x473   : > { %v5094_v27 = vmul.f32 %v2283_v19, %v2092_v34  ;;  %v2475_v49 = vmul.f32 %v2315_v42, %v2092_v34 }
 0x474   : > { %v2094_v23 = vpop.f32.mrf.mxu0 }
 0x475   : > { %6234 = vst [vmem:[#allocation57_spill] sm:$0xff] %v5094_v27  ;;  %v5098_v14 = vmul.f32 %v2284_v24, %v2094_v23  ;;  %v2476_v50 = vmul.f32 %v2316_v1, %v2094_v23 }
 0x476   : > { %v2098_v13 = vpop.f32.mrf.mxu0 }
 0x477   : > { %6236 = vst [vmem:[#allocation50_spill] sm:$0xff] %v5098_v14  ;;  %v5106_v40 = vmul.f32 %v2285_v29, %v2098_v13  ;;  %v2477_v61 = vmul.f32 %v2317_v60, %v2098_v13  ;;  %v2322_v13 = vld [vmem:[#allocation8 + $0x138] sm:$0xff] }
 0x478   : > { %v2100_v39 = vpop.f32.mrf.mxu0 }
 0x479   : > { %6239 = vst [vmem:[#allocation47_spill] sm:$0xff] %v5106_v40  ;;  %v5114_v45 = vmul.f32 %v2286_v41, %v2100_v39 }
 0x47a   : > { %v5038_v56 = vpop.f32.mrf.mxu0 }
 0x47b   : > { %6242 = vst [vmem:[#allocation44_spill] sm:$0xff] %v5114_v45 }
 0x47c   : > { %v5040_v58 = vpop.f32.mrf.mxu0 }
 0x47e   : > { %v5042_v20 = vpop.f32.mrf.mxu0 }
 0x480   : > { %v5044_v53 = vpop.f32.mrf.mxu0 }
 0x482   : > { %v5046_v7 = vpop.f32.mrf.mxu0 }
 0x484   : > { %v5048_v63 = vpop.f32.mrf.mxu0 }
 0x486   : > { %v5050_v9 = vpop.f32.mrf.mxu0 }
 0x487   : > { %6223 = vst [vmem:[#allocation67_spill] sm:$0xff] %v5050_v9 }
 0x488   : > { %v5052_v22 = vpop.f32.mrf.mxu0 }
 0x489   : > { %6224 = vst [vmem:[#allocation60_spill] sm:$0xff] %v5052_v22 }
 0x48a   : > { %v5054_v15 = vpop.f32.mrf.mxu0 }
 0x48b   : > { %6225 = vst [vmem:[#allocation20_spill] sm:$0xff] %v5054_v15 }
 0x48c   : > { %v5056_v16 = vpop.f32.mrf.mxu0 }
 0x48d   : > { %6226 = vst [vmem:[#allocation70_spill] sm:$0xff] %v5056_v16 }
 0x48e   : > { %v5058_v11 = vpop.f32.mrf.mxu0 }
 0x48f   : > { %6227 = vst [vmem:[#allocation61_spill] sm:$0xff] %v5058_v11 }
 0x490   : > { %v5060_v37 = vpop.f32.mrf.mxu0 }
 0x492   : > { %v5062_v36 = vpop.f32.mrf.mxu0 }
 0x494   : > { %v5064_v55 = vpop.f32.mrf.mxu0 }
 0x496   : > { %v5066_v62 = vpop.f32.mrf.mxu0 }
 0x498   : > { %v5068_v0 = vpop.f32.mrf.mxu0 }
 0x49a   : > { %v5070_v35 = vpop.f32.mrf.mxu0 }
 0x49c   : > { %v5072_v38 = vpop.f32.mrf.mxu0 }
 0x49e   : > { %v5074_v4 = vpop.f32.mrf.mxu0 }
 0x4a0   : > { %v5076_v28 = vpop.f32.mrf.mxu0 }
 0x4a2   : > { %v5078_v52 = vpop.f32.mrf.mxu0 }
 0x4a3   : > { %6228 = vst [vmem:[#allocation56_spill] sm:$0xff] %v5078_v52 }
 0x4a4   : > { %v5080_v21 = vpop.f32.mrf.mxu0 }
 0x4a6   : > { %v5082_v48 = vpop.f32.mrf.mxu0 }
 0x4a7   : > { %6229 = vst [vmem:[#allocation19_spill] sm:$0xff] %v5082_v48 }
 0x4a8   : > { %v5084_v43 = vpop.f32.mrf.mxu0 }
 0x4a9   : > { %6230 = vst [vmem:[#allocation65_spill] sm:$0xff] %v5084_v43 }
 0x4aa   : > { %v5086_v32 = vpop.f32.mrf.mxu0 }
 0x4ac   : > { %v5088_v33 = vpop.f32.mrf.mxu0 }
 0x4ad   : > { %6231 = vst [vmem:[#allocation18_spill] sm:$0xff] %v5088_v33 }
 0x4ae   : > { %v5090_v17 = vpop.f32.mrf.mxu0 }
 0x4af   : > { %6232 = vst [vmem:[#allocation59_spill] sm:$0xff] %v5090_v17 }
 0x4b0   : > { %v5092_v5 = vpop.f32.mrf.mxu0 }
 0x4b1   : > { %6233 = vst [vmem:[#allocation63_spill] sm:$0xff] %v5092_v5 }
 0x4b2   : > { %v2188_v10 = vpop.f32.mrf.mxu0 }
 0x4b3   : > { %v5096_v18 = vmul.f32 %v2315_v42, %v2188_v10  ;;  %v2443_v47 = vmul.f32 %v2283_v19, %v2188_v10  ;;  %v2287_v42 = vld [vmem:[#allocation8 + $0x20] sm:$0xff] }
 0x4b4   : > { %v2190_v25 = vpop.f32.mrf.mxu0  ;;  %v2319_v19 = vld [vmem:[#allocation8 + $0x120] sm:$0xff] }
 0x4b5   : > { %6235 = vst [vmem:[#allocation53_spill] sm:$0xff] %v5096_v18  ;;  %v5102_v57 = vadd.f32 %v2475_v49, %v2443_v47  ;;  %v5104_v12 = vmul.f32 %v2316_v1, %v2190_v25  ;;  %v2444_v31 = vmul.f32 %v2284_v24, %v2190_v25  ;;  %v2478_v49 = vmul.f32 %v2318_v30, %v2100_v39  ;;  %v2288_v47 = vld [vmem:[#allocation8 + $0x28] sm:$0xff]  ;;  %v2323_v39 = vld [vmem:[#allocation8 + $0x140] sm:$0xff] }
 0x4b6   : > { %v2194_v34 = vpop.f32.mrf.mxu0  ;;  %v2320_v24 = vld [vmem:[#allocation8 + $0x128] sm:$0xff] }
 0x4b7   : > { %6237 = vst [vmem:[#allocation104_spill] sm:$0xff] %v5102_v57  ;;  %6238 = vst [vmem:[#allocation98_spill] sm:$0xff] %v5104_v12  ;;  %v5110_v10 = vadd.f32 %v2476_v50, %v2444_v31  ;;  %v5112_v3 = vmul.f32 %v2317_v60, %v2194_v34  ;;  %v2445_v2 = vmul.f32 %v2285_v29, %v2194_v34  ;;  %v2289_v31 = vld [vmem:[#allocation8 + $0x30] sm:$0xff] }
 0x4b8   : > { %v2196_v1 = vpop.f32.mrf.mxu0  ;;  %v5123_v50 = vmul.f32 %v2287_v42, %v5038_v56  ;;  %v2479_v60 = vmul.f32 %v2319_v19, %v5038_v56  ;;  %v2321_v34 = vld [vmem:[#allocation8 + $0x130] sm:$0xff]  ;;  %v2324_v56 = vld [vmem:[#allocation8 + $0x148] sm:$0xff] }
 0x4b9   : > { %6240 = vst [vmem:[#allocation99_spill] sm:$0xff] %v5110_v10  ;;  %6241 = vst [vmem:[#allocation101_spill] sm:$0xff] %v5112_v3  ;;  %v5118_v25 = vadd.f32 %v2477_v61, %v2445_v2  ;;  %v5120_v6 = vmul.f32 %v2318_v30, %v2196_v1  ;;  %v2446_v26 = vmul.f32 %v2286_v41, %v2196_v1  ;;  %v2290_v1 = vld [vmem:[#allocation8 + $0x38] sm:$0xff] }
 0x4ba   : > { %6245 = vst [vmem:[#allocation97_spill] sm:$0xff] %v5123_v50  ;;  %v2200_v29 = vpop.f32.mrf.mxu0  ;;  %v5133_v30 = vmul.f32 %v2288_v47, %v5040_v58  ;;  %v2480_v41 = vmul.f32 %v2320_v24, %v5040_v58  ;;  %v5236_v50 = vld [vmem:[#allocation8 + $0x70] sm:$0xff] }
 0x4bb   : > { %6243 = vst [vmem:[#allocation28_spill] sm:$0xff] %v5118_v25  ;;  %6244 = vst [vmem:[#allocation103_spill] sm:$0xff] %v5120_v6  ;;  %v5128_v23 = vadd.f32 %v2478_v49, %v2446_v26  ;;  %v5130_v59 = vmul.f32 %v2319_v19, %v2200_v29  ;;  %v2447_v2 = vmul.f32 %v2287_v42, %v2200_v29  ;;  %v2291_v29 = vld [vmem:[#allocation8 + $0x40] sm:$0xff] }
 0x4bc   : > { %6248 = vst [vmem:[#allocation100_spill] sm:$0xff] %v5133_v30  ;;  %v2202_v61 = vpop.f32.mrf.mxu0  ;;  %v5143_v19 = vmul.f32 %v2289_v31, %v5042_v20  ;;  %v2481_v42 = vmul.f32 %v2321_v34, %v5042_v20 }
 0x4bd   : > { %6246 = vst [vmem:[#allocation41_spill] sm:$0xff] %v5128_v23  ;;  %6247 = vst [vmem:[#allocation27_spill] sm:$0xff] %v5130_v59  ;;  %v5138_v46 = vadd.f32 %v2479_v60, %v2447_v2  ;;  %v5140_v51 = vmul.f32 %v2320_v24, %v2202_v61  ;;  %v2448_v26 = vmul.f32 %v2288_v47, %v2202_v61  ;;  %v2292_v61 = vld [vmem:[#allocation8 + $0x48] sm:$0xff] }
 0x4be   : > { %6251 = vst [vmem:[#allocation26_spill] sm:$0xff] %v5143_v19  ;;  %v2206_v49 = vpop.f32.mrf.mxu0  ;;  %v5153_v24 = vmul.f32 %v2290_v1, %v5044_v53  ;;  %v2482_v47 = vmul.f32 %v2322_v13, %v5044_v53  ;;  %v5234_v59 = vld [vmem:[#allocation8 + $0x168] sm:$0xff]  ;;  %v5250_v19 = vld [vmem:[#allocation8 + $0x170] sm:$0xff] }
 0x4bf   : > { %6249 = vst [vmem:[#allocation96_spill] sm:$0xff] %v5138_v46  ;;  %6250 = vst [vmem:[#allocation38_spill] sm:$0xff] %v5140_v51  ;;  %v5148_v18 = vadd.f32 %v2480_v41, %v2448_v26  ;;  %v5150_v27 = vmul.f32 %v2321_v34, %v2206_v49  ;;  %v2449_v60 = vmul.f32 %v2289_v31, %v2206_v49 }
 0x4c0   : > { %6254 = vst [vmem:[#allocation35_spill] sm:$0xff] %v5153_v24  ;;  %v2208_v2 = vpop.f32.mrf.mxu0  ;;  %v5163_v34 = vmul.f32 %v2291_v29, %v5046_v7  ;;  %v2483_v31 = vmul.f32 %v2323_v39, %v5046_v7  ;;  %6280 = vst [vmem:[#allocation77_spill] sm:$0xff] %v5234_v59 }
 0x4c1   : > { %6252 = vst [vmem:[#allocation102_spill] sm:$0xff] %v5148_v18  ;;  %6253 = vst [vmem:[#allocation95_spill] sm:$0xff] %v5150_v27  ;;  %v5158_v12 = vadd.f32 %v2481_v42, %v2449_v60  ;;  %v5160_v14 = vmul.f32 %v2322_v13, %v2208_v2  ;;  %v2450_v41 = vmul.f32 %v2290_v1, %v2208_v2  ;;  %v5176_v1 = vld [vmem:[#allocation8 + $0x50] sm:$0xff] }
 0x4c2   : > { %6257 = vst [vmem:[#allocation32_spill] sm:$0xff] %v5163_v34  ;;  %v2212_v26 = vpop.f32.mrf.mxu0  ;;  %v5173_v42 = vmul.f32 %v2292_v61, %v5048_v63  ;;  %v2484_v13 = vmul.f32 %v2324_v56, %v5048_v63  ;;  %6261 = vst [vmem:[#allocation107_spill] sm:$0xff] %v5176_v1  ;;  %v5192_v63 = vmul.f32 %v5176_v1, %v5050_v9  ;;  %v5382_v1 = vld [vmem:[#allocation8 + $0x1f8] sm:$0xff] }
 0x4c3   : > { %6255 = vst [vmem:[#allocation105_spill] sm:$0xff] %v5158_v12  ;;  %6256 = vst [vmem:[#allocation94_spill] sm:$0xff] %v5160_v14  ;;  %v5168_v49 = vadd.f32 %v2482_v47, %v2450_v41  ;;  %v5170_v58 = vmul.f32 %v2323_v39, %v2212_v26  ;;  %v2451_v3 = vmul.f32 %v2291_v29, %v2212_v26  ;;  %v5184_v41 = vld [vmem:[#allocation8 + $0x150] sm:$0xff]  ;;  %v5186_v39 = vld [vmem:[#allocation8 + $0x58] sm:$0xff] }
 0x4c4   : > { %6260 = vst [vmem:[#allocation24_spill] sm:$0xff] %v5173_v42  ;;  %v2214_v60 = vpop.f32.mrf.mxu0  ;;  %6264 = vst [vmem:[#allocation109_spill] sm:$0xff] %v5184_v41  ;;  %v5220_v26 = vld [vmem:[#allocation8 + $0x68] sm:$0xff]  ;;  %v5252_v14 = vld [vmem:[#allocation8 + $0x78] sm:$0xff] }
 0x4c5   : > { %6258 = vst [vmem:[#allocation25_spill] sm:$0xff] %v5168_v49  ;;  %6259 = vst [vmem:[#allocation106_spill] sm:$0xff] %v5170_v58  ;;  %v5180_v2 = vadd.f32 %v2483_v31, %v2451_v3  ;;  %v5182_v20 = vmul.f32 %v2324_v56, %v2214_v60  ;;  %v2452_v47 = vmul.f32 %v2292_v61, %v2214_v60  ;;  %v5202_v56 = vld [vmem:[#allocation8 + $0x158] sm:$0xff]  ;;  %v5204_v61 = vld [vmem:[#allocation8 + $0x60] sm:$0xff] }
 0x4c6   : > { %6265 = vst [vmem:[#allocation110_spill] sm:$0xff] %v5186_v39  ;;  %v5188_v29 = vpop.f32.mrf.mxu0  ;;  %6267 = vst [vmem:[#allocation93_spill] sm:$0xff] %v5192_v63  ;;  %v5210_v60 = vmul.f32 %v5186_v39, %v5052_v22  ;;  %v5226_v6 = vmul.f32 %v5204_v61, %v5054_v15  ;;  %v5242_v30 = vmul.f32 %v5220_v26, %v5056_v16  ;;  %v5268_v42 = vld [vmem:[#allocation8 + $0x80] sm:$0xff]  ;;  %v5396_v39 = vld [vmem:[#allocation8 + $0xf8] sm:$0xff] }
 0x4c7   : > { %6262 = vst [vmem:[#allocation108_spill] sm:$0xff] %v5180_v2  ;;  %6263 = vst [vmem:[#allocation23_spill] sm:$0xff] %v5182_v20  ;;  %v5196_v53 = vadd.f32 %v2484_v13, %v2452_v47  ;;  %v5200_v3 = vmul.f32 %v5184_v41, %v5188_v29  ;;  %v5218_v47 = vld [vmem:[#allocation8 + $0x160] sm:$0xff]  ;;  %v5258_v58 = vmul.f32 %v5236_v50, %v5058_v11  ;;  %v5266_v20 = vld [vmem:[#allocation8 + $0x178] sm:$0xff] }
 0x4c8   : > { %6266 = vst [vmem:[#allocation92_spill] sm:$0xff] %v5188_v29  ;;  %6270 = vst [vmem:[#allocation88_spill] sm:$0xff] %v5202_v56  ;;  %v5206_v31 = vpop.f32.mrf.mxu0  ;;  %v5274_v63 = vmul.f32 %v5252_v14, %v5060_v37  ;;  %v5390_v29 = vld [vmem:[#allocation8 + $0x1e8] sm:$0xff] }
 0x4c9   : > { %6268 = vst [vmem:[#allocation90_spill] sm:$0xff] %v5196_v53  ;;  %6269 = vst [vmem:[#allocation91_spill] sm:$0xff] %v5200_v3  ;;  %v5216_v13 = vmul.f32 %v5202_v56, %v5206_v31 }
 0x4ca   : > { %6271 = vst [vmem:[#allocation89_spill] sm:$0xff] %v5204_v61  ;;  %6272 = vst [vmem:[#allocation86_spill] sm:$0xff] %v5206_v31  ;;  %v5222_v40 = vpop.f32.mrf.mxu0  ;;  %v5398_v31 = vld [vmem:[#allocation8 + $0xe0] sm:$0xff] }
 0x4cb   : > { %6273 = vst [vmem:[#allocation87_spill] sm:$0xff] %v5210_v60  ;;  %6274 = vst [vmem:[#allocation84_spill] sm:$0xff] %v5216_v13  ;;  %v5232_v7 = vmul.f32 %v5218_v47, %v5222_v40  ;;  %v5282_v60 = vld [vmem:[#allocation8 + $0x180] sm:$0xff] }
 0x4cc   : > { %6275 = vst [vmem:[#allocation85_spill] sm:$0xff] %v5218_v47  ;;  %6276 = vst [vmem:[#allocation82_spill] sm:$0xff] %v5220_v26  ;;  %v5238_v51 = vpop.f32.mrf.mxu0  ;;  %v5416_v26 = vld [vmem:[#allocation8 + $0xd0] sm:$0xff] }
 0x4cd   : > { %6277 = vst [vmem:[#allocation83_spill] sm:$0xff] %v5222_v40  ;;  %6278 = vst [vmem:[#allocation80_spill] sm:$0xff] %v5226_v6  ;;  %v5248_v45 = vmul.f32 %v5234_v59, %v5238_v51  ;;  %v5400_v59 = vld [vmem:[#allocation8 + $0x1e0] sm:$0xff]  ;;  %v2506_v40 = vmul.f32 %v5382_v1, %v5092_v5 }
 0x4ce   : > { %6279 = vst [vmem:[#allocation81_spill] sm:$0xff] %v5232_v7  ;;  %6281 = vst [vmem:[#allocation78_spill] sm:$0xff] %v5238_v51  ;;  %v5254_v24 = vpop.f32.mrf.mxu0  ;;  %v5284_v7 = vld [vmem:[#allocation8 + $0x88] sm:$0xff]  ;;  %v5418_v51 = vld [vmem:[#allocation8 + $0x1d0] sm:$0xff] }
 0x4cf   : > { %6282 = vst [vmem:[#allocation73_spill] sm:$0xff] %v5242_v30  ;;  %6283 = vst [vmem:[#allocation74_spill] sm:$0xff] %v5248_v45  ;;  %v5264_v27 = vmul.f32 %v5250_v19, %v5254_v24  ;;  %v5290_v45 = vmul.f32 %v5268_v42, %v5062_v36  ;;  %v5306_v44 = vmul.f32 %v5284_v7, %v5064_v55 }
 0x4d0   : > { %6284 = vst [vmem:[#allocation68_spill] sm:$0xff] %v5250_v19  ;;  %6285 = vst [vmem:[#allocation69_spill] sm:$0xff] %v5258_v58  ;;  %v5270_v3 = vpop.f32.mrf.mxu0  ;;  %v5300_v58 = vld [vmem:[#allocation8 + $0x90] sm:$0xff]  ;;  %v5408_v19 = vld [vmem:[#allocation8 + $0xd8] sm:$0xff] }
 0x4d1   : > { %6286 = vst [vmem:[#allocation62_spill] sm:$0xff] %v5264_v27  ;;  %6287 = vst [vmem:[#allocation64_spill] sm:$0xff] %v5274_v63  ;;  %v5280_v34 = vmul.f32 %v5266_v20, %v5270_v3  ;;  %v5298_v27 = vld [vmem:[#allocation8 + $0x188] sm:$0xff]  ;;  %v5316_v63 = vld [vmem:[#allocation8 + $0x98] sm:$0xff]  ;;  %v5322_v10 = vmul.f32 %v5300_v58, %v5066_v62 }
 0x4d2   : > { %v5286_v6 = vpop.f32.mrf.mxu0  ;;  %6289 = vst [vmem:[#allocation58_spill] sm:$0xff] %v5290_v45  ;;  %6291 = vst [vmem:[#allocation54_spill] sm:$0xff] %v5306_v44  ;;  %v5332_v45 = vld [vmem:[#allocation8 + $0xa0] sm:$0xff]  ;;  %v5338_v46 = vmul.f32 %v5316_v63, %v5068_v0 }
 0x4d3   : > { %6288 = vst [vmem:[#allocation55_spill] sm:$0xff] %v5280_v34  ;;  %v5296_v13 = vmul.f32 %v5282_v60, %v5286_v6  ;;  %v5314_v34 = vld [vmem:[#allocation8 + $0x190] sm:$0xff]  ;;  %6293 = vst [vmem:[#allocation51_spill] sm:$0xff] %v5322_v10  ;;  %v5352_v12 = vmul.f32 %v5332_v45, %v5070_v35 }
 0x4d4   : > { %v5302_v8 = vpop.f32.mrf.mxu0  ;;  %6295 = vst [vmem:[#allocation48_spill] sm:$0xff] %v5338_v46  ;;  %6304 = vst [vmem:[#allocation31_spill] sm:$0xff] %v5382_v1  ;;  %v5426_v1 = vld [vmem:[#allocation8 + $0x1c8] sm:$0xff] }
 0x4d5   : > { %6290 = vst [vmem:[#allocation52_spill] sm:$0xff] %v5296_v13  ;;  %v5312_v30 = vmul.f32 %v5298_v27, %v5302_v8  ;;  %v5330_v13 = vld [vmem:[#allocation8 + $0x198] sm:$0xff]  ;;  %6297 = vst [vmem:[#allocation45_spill] sm:$0xff] %v5352_v12  ;;  %v5388_v12 = vld [vmem:[#allocation8 + $0xe8] sm:$0xff] }
 0x4d6   : > { %v5318_v57 = vpop.f32.mrf.mxu0  ;;  %6307 = vst [vmem:[#allocation30_spill] sm:$0xff] %v5388_v12  ;;  %6309 = vst [vmem:[#allocation112_spill] sm:$0xff] %v5396_v39 }
 0x4d7   : > { %6292 = vst [vmem:[#allocation49_spill] sm:$0xff] %v5312_v30  ;;  %v5328_v54 = vmul.f32 %v5314_v34, %v5318_v57  ;;  %v5346_v30 = vld [vmem:[#allocation8 + $0x1a0] sm:$0xff]  ;;  %6310 = vst [vmem:[#allocation113_spill] sm:$0xff] %v5398_v31 }
 0x4d8   : > { %v5334_v23 = vpop.f32.mrf.mxu0  ;;  %6311 = vst [vmem:[#allocation114_spill] sm:$0xff] %v5408_v19  ;;  %6312 = vst [vmem:[#allocation115_spill] sm:$0xff] %v5416_v26 }
 0x4d9   : > { %6294 = vst [vmem:[#allocation46_spill] sm:$0xff] %v5328_v54  ;;  %v5344_v25 = vmul.f32 %v5330_v13, %v5334_v23  ;;  %v5384_v54 = vld [vmem:[#allocation8 + $0xf0] sm:$0xff] }
 0x4da   : > { %v5348_v44 = vpop.f32.mrf.mxu0  ;;  %6305 = vst [vmem:[#allocation33_spill] sm:$0xff] %v5384_v54 }
 0x4db   : > { %6296 = vst [vmem:[#allocation43_spill] sm:$0xff] %v5344_v25  ;;  %v5358_v2 = vmul.f32 %v5346_v30, %v5348_v44 }
 0x4dc   : > { %v5360_v18 = vpop.f32.mrf.mxu0 }
 0x4dd   : > { %6298 = vst [vmem:[#allocation40_spill] sm:$0xff] %v5358_v2  ;;  %v5386_v2 = vld [vmem:[#allocation8 + $0x1f0] sm:$0xff] }
 0x4de   : > { %v5364_v10 = vpop.f32.mrf.mxu0  ;;  %6306 = vst [vmem:[#allocation29_spill] sm:$0xff] %v5386_v2 }
 0x4e0   : > { %v5366_v53 = vpop.f32.mrf.mxu0 }
 0x4e2   : > { %v5368_v41 = vpop.f32.mrf.mxu0 }
 0x4e4   : > { %v5370_v9 = vpop.f32.mrf.mxu0 }
 0x4e6   : > { %v5372_v56 = vpop.f32.mrf.mxu0 }
 0x4e7   : > { %6299 = vst [vmem:[#allocation42_spill] sm:$0xff] %v5372_v56 }
 0x4e8   : > { %v5374_v49 = vpop.f32.mrf.mxu0 }
 0x4e9   : > { %6300 = vst [vmem:[#allocation37_spill] sm:$0xff] %v5374_v49 }
 0x4ea   : > { %v5376_v25 = vpop.f32.mrf.mxu0 }
 0x4eb   : > { %6301 = vst [vmem:[#allocation39_spill] sm:$0xff] %v5376_v25  ;;  %v2471_v11 = vmul.f32 %v5398_v31, %v5376_v25  ;;  %v2469_v31 = vmul.f32 %v5416_v26, %v5372_v56  ;;  %v2501_v26 = vmul.f32 %v5418_v51, %v5082_v48  ;;  %v5448_v56 = vld [vmem:[#allocation8 + $0xb0] sm:$0xff]  ;;  %v5458_v48 = vld [vmem:[#allocation8 + $0x1a8] sm:$0xff] }
 0x4ec   : > { %v5378_v46 = vpop.f32.mrf.mxu0 }
 0x4ed   : > { %6302 = vst [vmem:[#allocation34_spill] sm:$0xff] %v5378_v46  ;;  %v2472_v16 = vmul.f32 %v5388_v12, %v5378_v46  ;;  %v2504_v12 = vmul.f32 %v5390_v29, %v5088_v33  ;;  %v5424_v46 = vld [vmem:[#allocation8 + $0xc8] sm:$0xff] }
 0x4ee   : > { %v5380_v22 = vpop.f32.mrf.mxu0  ;;  %6313 = vst [vmem:[#allocation116_spill] sm:$0xff] %v5424_v46 }
 0x4ef   : > { %6303 = vst [vmem:[#allocation36_spill] sm:$0xff] %v5380_v22  ;;  %v2473_v47 = vmul.f32 %v5384_v54, %v5380_v22  ;;  %v5410_v54 = vld [vmem:[#allocation8 + $0x1d8] sm:$0xff]  ;;  %v2505_v22 = vmul.f32 %v5386_v2, %v5090_v17  ;;  %v2503_v17 = vmul.f32 %v5400_v59, %v5086_v32  ;;  %v5432_v2 = vld [vmem:[#allocation8 + $0xc0] sm:$0xff] }
 0x4f0   : > { %v5394_v15 = vpop.f32.mrf.mxu0  ;;  %6314 = vst [vmem:[#allocation117_spill] sm:$0xff] %v5432_v2  ;;  %v2502_v33 = vmul.f32 %v5410_v54, %v5084_v43  ;;  %v5450_v43 = vld [vmem:[#allocation8 + $0x1b0] sm:$0xff] }
 0x4f1   : > { %6308 = vst [vmem:[#allocation111_spill] sm:$0xff] %v5394_v15  ;;  %v2474_v61 = vmul.f32 %v5396_v39, %v5394_v15  ;;  %v2470_v39 = vmul.f32 %v5408_v19, %v5374_v49  ;;  %v2537_v25 = vadd.f32 %v2505_v22, %v2473_v47  ;;  %v5434_v15 = vld [vmem:[#allocation8 + $0x1c0] sm:$0xff]  ;;  %v5440_v19 = vld [vmem:[#allocation8 + $0xb8] sm:$0xff]  ;;  %v2467_v22 = vmul.f32 %v5432_v2, %v5368_v41 }
 0x4f2   : > { %6315 = vst [vmem:[#allocation118_spill] sm:$0xff] %v5440_v19  ;;  %v5442_v49 = vld [vmem:[#allocation8 + $0x1b8] sm:$0xff]  ;;  %v2535_v47 = vadd.f32 %v2503_v17, %v2471_v11  ;;  %v2499_v11 = vmul.f32 %v5434_v15, %v5078_v52  ;;  %v2465_v17 = vmul.f32 %v5448_v56, %v5364_v10 }
 0x4f3   : > { %v2538_v5 = vadd.f32 %v2506_v40, %v2474_v61  ;;  %v2468_v40 = vmul.f32 %v5424_v46, %v5370_v9  ;;  %v2536_v61 = vadd.f32 %v2504_v12, %v2472_v16  ;;  %v2500_v16 = vmul.f32 %v5426_v1, %v5080_v21  ;;  %v5456_v46 = vld [vmem:[#allocation8 + $0xa8] sm:$0xff] }
 0x4f4   : > { %v2534_v12 = vadd.f32 %v2502_v33, %v2470_v39  ;;  %v2498_v2 = vmul.f32 %v5442_v49, %v5076_v28  ;;  %v2497_v39 = vmul.f32 %v5450_v43, %v5074_v4  ;;  %v2531_v52 = vadd.f32 %v2499_v11, %v2467_v22 }
 0x4f5   : > { %2539 = vmatprep.subr.mxu1 %v2538_v5  ;;  %v2466_v5 = vmul.f32 %v5440_v19, %v5366_v53  ;;  %v2464_v19 = vmul.f32 %v5456_v46, %v5360_v18  ;;  %v2532_v33 = vadd.f32 %v2500_v16, %v2468_v40  ;;  %v2495_v40 = vmul.f32 %v5346_v30, %v5070_v35 }
 0x4f6   : > { %2540 = vmatpush1.msra.mxu1 %v2537_v25  ;;  %v2533_v25 = vadd.f32 %v2501_v26, %v2469_v31  ;;  %v2496_v26 = vmul.f32 %v5458_v48, %v5072_v38  ;;  %v2462_v31 = vmul.f32 %v5316_v63, %v5334_v23  ;;  %v2461_v16 = vmul.f32 %v5300_v58, %v5318_v57  ;;  %v6317_v58 = vld [vmem:[#allocation82_spill] sm:$0xff]  ;;  %v6321_v63 = vld [vmem:[#allocation89_spill] sm:$0xff] }
 0x4f7   : > { %2541 = vmatprep.subr.mxu1 %v2536_v61  ;;  %v2463_v61 = vmul.f32 %v5332_v45, %v5348_v44  ;;  %v2494_v44 = vmul.f32 %v5330_v13, %v5068_v0  ;;  %v2460_v45 = vmul.f32 %v5284_v7, %v5302_v8  ;;  %v2493_v23 = vmul.f32 %v5314_v34, %v5066_v62  ;;  %v6320_v7 = vld [vmem:[#allocation83_spill] sm:$0xff]  ;;  %v6324_v13 = vld [vmem:[#allocation86_spill] sm:$0xff] }
 0x4f8   : > { %2542 = vmatpush1.msra.mxu1 %v2535_v47  ;;  %v2530_v47 = vadd.f32 %v2498_v2, %v2466_v5  ;;  %v2528_v22 = vadd.f32 %v2496_v26, %v2464_v19  ;;  %v2459_v2 = vmul.f32 %v5268_v42, %v5286_v6  ;;  %v2492_v57 = vmul.f32 %v5298_v27, %v5064_v55  ;;  %v6316_v19 = vld [vmem:[#allocation78_spill] sm:$0xff]  ;;  %v6318_v27 = vld [vmem:[#allocation61_spill] sm:$0xff] }
 0x4f9   : > { %2543 = vmatprep.subr.mxu1 %v2534_v12  ;;  %v2529_v12 = vadd.f32 %v2497_v39, %v2465_v17  ;;  %v2527_v35 = vadd.f32 %v2495_v40, %v2463_v61  ;;  %v2526_v0 = vadd.f32 %v2494_v44, %v2462_v31  ;;  %v2491_v8 = vmul.f32 %v5282_v60, %v5062_v36  ;;  %v6322_v60 = vld [vmem:[#allocation70_spill] sm:$0xff]  ;;  %v6327_v17 = vld [vmem:[#allocation85_spill] sm:$0xff]  ;;  %v6329_v39 = vld [vmem:[#allocation107_spill] sm:$0xff] }
 0x4fa   : > { %2544 = vmatpush1.msra.mxu1 %v2533_v25  ;;  %v2457_v30 = vmul.f32 %v5236_v50, %v5254_v24  ;;  %v2525_v62 = vadd.f32 %v2493_v23, %v2461_v16  ;;  %v2490_v6 = vmul.f32 %v5266_v20, %v5060_v37  ;;  %v2456_v34 = vmul.f32 %v6317_v58, %v6316_v19  ;;  %v6323_v50 = vld [vmem:[#allocation77_spill] sm:$0xff]  ;;  %v6325_v5 = vld [vmem:[#allocation110_spill] sm:$0xff]  ;;  %v6326_v20 = vld [vmem:[#allocation20_spill] sm:$0xff] }
 0x4fb   : > { %2545 = vmatprep.subr.mxu1 %v2532_v33  ;;  %v2524_v55 = vadd.f32 %v2492_v57, %v2460_v45  ;;  %v2523_v36 = vadd.f32 %v2491_v8, %v2459_v2  ;;  %v2488_v24 = vmul.f32 %v6323_v50, %v6322_v60  ;;  %v2454_v11 = vmul.f32 %v6325_v5, %v6324_v13  ;;  %v6328_v33 = vld [vmem:[#allocation92_spill] sm:$0xff]  ;;  %v6333_v44 = vld [vmem:[#allocation109_spill] sm:$0xff]  ;;  %v6338_v8 = vld [vmem:[#allocation111_spill] sm:$0xff] }
 0x4fc   : > { %2546 = vmatpush1.msra.mxu1 %v2531_v52  ;;  %v2458_v52 = vmul.f32 %v5252_v14, %v5270_v3  ;;  %v6319_v14 = vld [vmem:[#allocation68_spill] sm:$0xff]  ;;  %v2455_v3 = vmul.f32 %v6321_v63, %v6320_v7  ;;  %v2487_v25 = vmul.f32 %v6327_v17, %v6326_v20  ;;  %v2453_v61 = vmul.f32 %v6329_v39, %v6328_v33  ;;  %v6342_v58 = vld [vmem:[#allocation29_spill] sm:$0xff]  ;;  %v6355_v33 = vld [vmem:[#allocation99_spill] sm:$0xff] }
 0x4fd   : > { %2547 = vmatprep.subr.mxu1 %v2530_v47  ;;  %v2489_v42 = vmul.f32 %v6319_v14, %v6318_v27  ;;  %v6330_v31 = vld [vmem:[#allocation60_spill] sm:$0xff]  ;;  %v2520_v16 = vadd.f32 %v2488_v24, %v2456_v34  ;;  %v6344_v27 = vld [vmem:[#allocation34_spill] sm:$0xff]  ;;  %v6349_v60 = vld [vmem:[#allocation33_spill] sm:$0xff] }
 0x4fe   : > { %2548 = vmatpush1.msra.mxu1 %v2529_v12  ;;  %v2522_v37 = vadd.f32 %v2490_v6, %v2458_v52  ;;  %v6331_v47 = vld [vmem:[#allocation88_spill] sm:$0xff]  ;;  %v6332_v12 = vld [vmem:[#allocation67_spill] sm:$0xff]  ;;  %v6336_v52 = vld [vmem:[#allocation25_spill] sm:$0xff]  ;;  %v2408_v14 = vmul.f32 %v5390_v29, %v6344_v27 }
 0x4ff   : > { %2549 = vmatprep.subr.mxu1 %v2528_v22  ;;  %v2521_v26 = vadd.f32 %v2489_v42, %v2457_v30  ;;  %v2486_v40 = vmul.f32 %v6331_v47, %v6330_v31  ;;  %v2485_v45 = vmul.f32 %v6333_v44, %v6332_v12  ;;  %v2519_v22 = vadd.f32 %v2487_v25, %v2455_v3  ;;  %v6335_v57 = vld [vmem:[#allocation108_spill] sm:$0xff]  ;;  %v6339_v30 = vld [vmem:[#allocation31_spill] sm:$0xff]  ;;  %v6340_v6 = vld [vmem:[#allocation102_spill] sm:$0xff] }
 0x500   : > { %2550 = vmatpush1.msra.mxu1 %v2527_v35  ;;  %v6334_v35 = vld [vmem:[#allocation90_spill] sm:$0xff]  ;;  %v6341_v19 = vld [vmem:[#allocation36_spill] sm:$0xff]  ;;  %v6345_v42 = vld [vmem:[#allocation63_spill] sm:$0xff]  ;;  %v2404_v44 = vmul.f32 %v5426_v1, %v5370_v9  ;;  %v2402_v9 = vmul.f32 %v5442_v49, %v5366_v53  ;;  %v2369_v53 = vmul.f32 %v5448_v56, %v5074_v4 }
 0x501   : > { %2551 = vmatprep.subr.mxu1 %v2526_v0  ;;  %v2518_v23 = vadd.f32 %v2486_v40, %v2454_v11  ;;  %v2517_v2 = vadd.f32 %v2485_v45, %v2453_v61  ;;  %v6337_v0 = vld [vmem:[#allocation105_spill] sm:$0xff]  ;;  %v2409_v34 = vmul.f32 %v6342_v58, %v6341_v19  ;;  %v6346_v7 = vld [vmem:[#allocation112_spill] sm:$0xff]  ;;  %v6350_v24 = vld [vmem:[#allocation39_spill] sm:$0xff]  ;;  %v2400_v19 = vmul.f32 %v5458_v48, %v5360_v18 }
 0x502   : > { %2552 = vmatpush1.msra.mxu1 %v2525_v62  ;;  %v2410_v62 = vmul.f32 %v6339_v30, %v6338_v8  ;;  %v2378_v63 = vmul.f32 %v6346_v7, %v6345_v42  ;;  %v6347_v3 = vld [vmem:[#allocation41_spill] sm:$0xff]  ;;  %v2407_v13 = vmul.f32 %v5400_v59, %v6350_v24  ;;  %v6351_v5 = vld [vmem:[#allocation28_spill] sm:$0xff]  ;;  %v6352_v11 = vld [vmem:[#allocation18_spill] sm:$0xff] }
 0x503   : > { %2553 = vmatprep.subr.mxu1 %v2524_v55  ;;  %v6343_v55 = vld [vmem:[#allocation96_spill] sm:$0xff]  ;;  %v6354_v17 = vld [vmem:[#allocation37_spill] sm:$0xff]  ;;  %v6369_v58 = vld [vmem:[#allocation71_spill] sm:$0xff] }
 0x504   : > { %2554 = vmatpush1.msra.mxu1 %v2523_v36  ;;  %v6348_v36 = vld [vmem:[#allocation59_spill] sm:$0xff]  ;;  %v2406_v25 = vmul.f32 %v5410_v54, %v6354_v17  ;;  %v2442_v29 = vsub.f32 %v2378_v63, %v2410_v62  ;;  %v6356_v39 = vld [vmem:[#allocation113_spill] sm:$0xff]  ;;  %v6358_v40 = vld [vmem:[#allocation104_spill] sm:$0xff]  ;;  %v2401_v62 = vmul.f32 %v5450_v43, %v5364_v10  ;;  %v2368_v43 = vmul.f32 %v5456_v46, %v5072_v38 }
 0x505   : > { %2555 = vmatprep.subr.mxu1 %v2522_v37  ;;  %v2377_v50 = vmul.f32 %v6349_v60, %v6348_v36  ;;  %v6353_v37 = vld [vmem:[#allocation30_spill] sm:$0xff]  ;;  %v2375_v61 = vmul.f32 %v6356_v39, %v5086_v32  ;;  %v6359_v59 = vld [vmem:[#allocation65_spill] sm:$0xff]  ;;  %v6361_v54 = vld [vmem:[#allocation76_spill] sm:$0xff]  ;;  %v2403_v32 = vmul.f32 %v5434_v15, %v5368_v41 }
 0x506   : > { %2556 = vmatpush1.msra.mxu1 %v2521_v26  ;;  %v2376_v20 = vmul.f32 %v6353_v37, %v6352_v11  ;;  %v6357_v26 = vld [vmem:[#allocation42_spill] sm:$0xff]  ;;  %v6367_v8 = vld [vmem:[#allocation117_spill] sm:$0xff]  ;;  %v6371_v18 = vld [vmem:[#allocation40_spill] sm:$0xff] }
 0x507   : > { %2557 = vmatprep.subr.mxu1 %v2520_v16  ;;  %v2405_v31 = vmul.f32 %v5418_v51, %v6357_v26  ;;  %v2441_v47 = vsub.f32 %v2377_v50, %v2409_v34  ;;  %v6360_v16 = vld [vmem:[#allocation114_spill] sm:$0xff]  ;;  %v2439_v51 = vsub.f32 %v2375_v61, %v2407_v13  ;;  %v2432_v34 = vsub.f32 %v2368_v43, %v2400_v19  ;;  %v6370_v48 = vld [vmem:[#allocation45_spill] sm:$0xff]  ;;  %v6373_v4 = vld [vmem:[#allocation48_spill] sm:$0xff] }
 0x508   : > { %2558 = vmatpush1.msra.mxu1 %v2519_v22  ;;  %v2374_v12 = vmul.f32 %v6360_v16, %v6359_v59  ;;  %v2440_v45 = vsub.f32 %v2376_v20, %v2408_v14  ;;  %v6362_v22 = vld [vmem:[#allocation19_spill] sm:$0xff]  ;;  %v6368_v15 = vld [vmem:[#allocation118_spill] sm:$0xff]  ;;  %v6380_v38 = vld [vmem:[#allocation49_spill] sm:$0xff] }
 0x509   : > { %2559 = vmatprep.subr.mxu1 %v2518_v23  ;;  %v6363_v23 = vld [vmem:[#allocation115_spill] sm:$0xff]  ;;  %v2370_v41 = vmul.f32 %v6368_v15, %v5076_v28  ;;  %v2433_v28 = vsub.f32 %v2369_v53, %v2401_v62  ;;  %v6377_v42 = vld [vmem:[#allocation46_spill] sm:$0xff]  ;;  %v6383_v36 = vld [vmem:[#allocation52_spill] sm:$0xff] }
 0x50a   : > { %2560 = vmatpush1.msra.mxu1 %v2517_v2  ;;  %v2373_v2 = vmul.f32 %v6363_v23, %v6362_v22  ;;  %v2438_v1 = vsub.f32 %v2374_v12, %v2406_v25  ;;  %v6374_v56 = vld [vmem:[#allocation43_spill] sm:$0xff]  ;;  %v6379_v46 = vld [vmem:[#allocation54_spill] sm:$0xff]  ;;  %v6385_v50 = vld [vmem:[#allocation64_spill] sm:$0xff] }
 0x50b   : > { %2561 = vmatprep.subr.mxu1 %v6334_v35  ;;  %v6364_v35 = vmov 0.0   ;;  %v2434_v10 = vsub.f32 %v2370_v41, %v2402_v9  ;;  %v6375_v27 = vsub.f32 %v6373_v4, %v6374_v56  ;;  %v6376_v14 = vld [vmem:[#allocation51_spill] sm:$0xff]  ;;  %v6381_v63 = vsub.f32 %v6379_v46, %v6380_v38  ;;  %v6389_v11 = vld [vmem:[#allocation62_spill] sm:$0xff]  ;;  %v6391_v20 = vld [vmem:[#allocation73_spill] sm:$0xff] }
 0x50c   : > { %2562 = vmatpush1.msra.mxu1 %v6335_v57  ;;  %v6365_v57 = vld [vmem:[#allocation116_spill] sm:$0xff]  ;;  %v6378_v7 = vsub.f32 %v6376_v14, %v6377_v42  ;;  %v6386_v24 = vld [vmem:[#allocation55_spill] sm:$0xff]  ;;  %v6392_v17 = vld [vmem:[#allocation74_spill] sm:$0xff] }
 0x50d   : > { %2563 = vmatprep.subr.mxu1 %v6336_v52  ;;  %v2372_v52 = vmul.f32 %v6365_v57, %v5080_v21  ;;  %v6387_v13 = vsub.f32 %v6385_v50, %v6386_v24  ;;  %v6393_v25 = vsub.f32 %v6391_v20, %v6392_v17  ;;  %v6397_v61 = vld [vmem:[#allocation87_spill] sm:$0xff]  ;;  %v6398_v26 = vld [vmem:[#allocation84_spill] sm:$0xff]  ;;  %v6427_v43 = vld [vmem:[#allocation50_spill] sm:$0xff] }
 0x50e   : > { %2564 = vmatpush1.msra.mxu1 %v6337_v0  ;;  %v6366_v0 = vld [vmem:[#allocation56_spill] sm:$0xff]  ;;  %v6404_v12 = vld [vmem:[#allocation23_spill] sm:$0xff]  ;;  %v6433_v4 = vld [vmem:[#allocation22_spill] sm:$0xff] }
 0x50f   : > { %2565 = vmatprep.subr.mxu1 %v6340_v6  ;;  %v2371_v30 = vmul.f32 %v6367_v8, %v6366_v0  ;;  %v2437_v6 = vsub.f32 %v2373_v2, %v2405_v31  ;;  %v2436_v21 = vsub.f32 %v2372_v52, %v2404_v44  ;;  %v6399_v31 = vsub.f32 %v6397_v61, %v6398_v26  ;;  %v6403_v16 = vld [vmem:[#allocation24_spill] sm:$0xff]  ;;  %v6409_v23 = vld [vmem:[#allocation35_spill] sm:$0xff]  ;;  %v6410_v2 = vld [vmem:[#allocation94_spill] sm:$0xff] }
 0x510   : > { %2566 = vmatpush1.msra.mxu1 %v6343_v55  ;;  %v6372_v55 = vsub.f32 %v6370_v48, %v6371_v18  ;;  %v6405_v44 = vsub.f32 %v6403_v16, %v6404_v12  ;;  %v6413_v57 = vld [vmem:[#allocation95_spill] sm:$0xff]  ;;  %v6415_v9 = vld [vmem:[#allocation100_spill] sm:$0xff]  ;;  %v6418_v8 = vld [vmem:[#allocation97_spill] sm:$0xff] }
 0x511   : > { %2567 = vmatprep.subr.mxu1 %v6347_v3  ;;  %v2435_v49 = vsub.f32 %v2371_v30, %v2403_v32  ;;  %v6382_v3 = vld [vmem:[#allocation58_spill] sm:$0xff]  ;;  %v6411_v32 = vsub.f32 %v6409_v23, %v6410_v2  ;;  %v6419_v30 = vld [vmem:[#allocation27_spill] sm:$0xff]  ;;  %v6430_v48 = vld [vmem:[#allocation57_spill] sm:$0xff] }
 0x512   : > { %2568 = vmatpush1.msra.mxu1 %v6351_v5  ;;  %v6384_v60 = vsub.f32 %v6382_v3, %v6383_v36  ;;  %v6388_v5 = vld [vmem:[#allocation69_spill] sm:$0xff]  ;;  %v6420_v62 = vsub.f32 %v6418_v8, %v6419_v30  ;;  %v6422_v15 = vld [vmem:[#allocation103_spill] sm:$0xff] }
 0x513   : > { %2569 = vmatprep.subr.mxu1 %v6355_v33  ;;  %v6390_v37 = vsub.f32 %v6388_v5, %v6389_v11  ;;  %v6395_v33 = vld [vmem:[#allocation81_spill] sm:$0xff]  ;;  %v3603_v19 = vld [vmem:[%s5809_s7 + $0x74] ss:$8 sps:$4 sm:$0xff]   ;;  %v3607_v42 = vld [vmem:[%s5809_s7 + $0x50] ss:$8 sps:$4 sm:$0xff]  }
 0x514   : > { %2570 = vmatpush1.msra.mxu1 %v6358_v40  ;;  %v6401_v40 = vld [vmem:[#allocation91_spill] sm:$0xff]  ;;  %v6431_v18 = vld [vmem:[#allocation53_spill] sm:$0xff] }
 0x515   : > { %2616 = vmatprep.subr.mxu1 %v2442_v29  ;;  %2604 = vmatmul.mubr.f32.vlgmr.msra.gmra.mxu1 %v6361_v54  ;;  %v6394_v29 = vld [vmem:[#allocation80_spill] sm:$0xff]  ;;  %v6407_v54 = vld [vmem:[#allocation106_spill] sm:$0xff]  ;;  %v6434_v14 = vld [vmem:[#allocation79_spill] sm:$0xff] }
 0x516   : > { %2617 = vmatpush1.msra.mxu1 %v2441_v47  ;;  %2609 = vmatprep.mubr.f32.mxu1 %v6364_v35  ;;  %v6396_v39 = vsub.f32 %v6394_v29, %v6395_v33  ;;  %v6400_v47 = vld [vmem:[#allocation93_spill] sm:$0xff]  ;;  %v3615_v46 = vld [vmem:[%s5809_s7 + $0x34] ss:$8 sps:$4 sm:$0xff]   ;;  %v3613_v38 = vld [vmem:[%s5809_s7 + $0x30] ss:$8 sps:$4 sm:$0xff]  }
 0x517   : > { %2618 = vmatprep.subr.mxu1 %v2440_v45  ;;  %v6402_v59 = vsub.f32 %v6400_v47, %v6401_v40  ;;  %v6406_v45 = vld [vmem:[#allocation32_spill] sm:$0xff]  ;;  %v3604_v56 = vld [vmem:[%s5809_s7 + $0x60] ss:$8 sps:$4 sm:$0xff]   ;;  %v3624_v50 = vld [vmem:[%s5809_s7 + $0x4] ss:$8 sps:$4 sm:$0xff]  }
 0x518   : > { %2619 = vmatpush1.msra.mxu1 %v2439_v51  ;;  %v6408_v22 = vsub.f32 %v6406_v45, %v6407_v54  ;;  %v6412_v51 = vld [vmem:[#allocation26_spill] sm:$0xff]  ;;  %v3621_v36 = vld [vmem:[%s5809_s7 + $0x14] ss:$8 sps:$4 sm:$0xff]   ;;  %v3625_v5 = vld [vmem:[%s5809_s7 + $0xf0] ss:$8 sps:$4 sm:$0xff]  }
 0x519   : > { %2620 = vmatprep.subr.mxu1 %v2438_v1  ;;  %2610 = vmatmul.mubr.f32.gmra.mxu1 %v6369_v58  ;;  %v6414_v52 = vsub.f32 %v6412_v51, %v6413_v57  ;;  %v6416_v1 = vld [vmem:[#allocation38_spill] sm:$0xff]  ;;  %v6425_v58 = vld [vmem:[#allocation101_spill] sm:$0xff]  ;;  %v3633_v20 = vld [vmem:[%s5809_s7 + $0xd4] ss:$8 sps:$4 sm:$0xff]  }
 0x51a   : > { %2621 = vmatpush1.msra.mxu1 %v2437_v6  ;;  %2680 = vmatprep.mubr.f32.mxu1 %v6364_v35  ;;  %v6417_v0 = vsub.f32 %v6415_v9, %v6416_v1  ;;  %v6421_v6 = vld [vmem:[#allocation44_spill] sm:$0xff]  ;;  %v3616_v3 = vld [vmem:[%s5809_s7 + $0x20] ss:$8 sps:$4 sm:$0xff]   ;;  %v3630_v11 = vld [vmem:[%s5809_s7 + $0xe4] ss:$8 sps:$4 sm:$0xff]  }
 0x51b   : > { %2622 = vmatprep.subr.mxu1 %v2436_v21  ;;  %v6423_v41 = vsub.f32 %v6421_v6, %v6422_v15  ;;  %v6424_v21 = vld [vmem:[#allocation47_spill] sm:$0xff]  ;;  %v3622_v24 = vld [vmem:[%s5809_s7] ss:$8 sps:$4 sm:$0xff]   ;;  %v3642_v61 = vld [vmem:[%s5809_s7 + $0xa4] ss:$8 sps:$4 sm:$0xff]  }
 0x51c   : > { %2623 = vmatpush1.msra.mxu1 %v2435_v49  ;;  %v6426_v53 = vsub.f32 %v6424_v21, %v6425_v58  ;;  %v3601_v49 = vld [vmem:[%s5809_s7 + $0x70] ss:$8 sps:$4 sm:$0xff]   ;;  %v3634_v29 = vld [vmem:[%s5809_s7 + $0xc0] ss:$8 sps:$4 sm:$0xff]   ;;  %v3639_v33 = vld [vmem:[%s5809_s7 + $0xb4] ss:$8 sps:$4 sm:$0xff]  }
 0x51d   : > { %2624 = vmatprep.subr.mxu1 %v2434_v10  ;;  %v6428_v10 = vld [vmem:[#allocation98_spill] sm:$0xff]  ;;  %v3631_v17 = vld [vmem:[%s5809_s7 + $0xd0] ss:$8 sps:$4 sm:$0xff]   ;;  %v6435_v45 = vld [vmem:[#allocation17_spill] sm:$0xff] }
 0x51e   : > { %2625 = vmatpush1.msra.mxu1 %v2433_v28  ;;  %v6429_v28 = vsub.f32 %v6427_v43, %v6428_v10  ;;  %v3640_v26 = vld [vmem:[%s5809_s7 + $0xa0] ss:$8 sps:$4 sm:$0xff]   ;;  %v3643_v47 = vld [vmem:[%s5809_s7 + $0x90] ss:$8 sps:$4 sm:$0xff]   ;;  %v3648_v40 = vld [vmem:[%s5809_s7 + $0x84] ss:$8 sps:$4 sm:$0xff]  }
 0x51f   : > { %2626 = vmatprep.subr.mxu1 %v2432_v34  ;;  %v3606_v34 = vld [vmem:[%s5809_s7 + $0x64] ss:$8 sps:$4 sm:$0xff]   ;;  %v575_v54 = vsub.s32 0, %v6435_v45  ;;  %v6439_v58 = vld [vmem:[#allocation75_spill] sm:$0xff] }
 0x520   : > { %2627 = vmatpush1.msra.mxu1 %v6372_v55  ;;  %v6432_v55 = vsub.f32 %v6430_v48, %v6431_v18  ;;  %v6437_v30 = vld [vmem:[#allocation21_spill] sm:$0xff] }
 0x521   : > { %2628 = vmatprep.subr.mxu1 %v6375_v27  ;;  %v3609_v27 = vld [vmem:[%s5809_s7 + $0x54] ss:$8 sps:$4 sm:$0xff]  }
 0x522   : > { %2629 = vmatpush1.msra.mxu1 %v6378_v7  ;;  %v3610_v7 = vld [vmem:[%s5809_s7 + $0x40] ss:$8 sps:$4 sm:$0xff]  }
 0x523   : > { %2630 = vmatprep.subr.mxu1 %v6381_v63  ;;  %v3618_v63 = vld [vmem:[%s5809_s7 + $0x24] ss:$8 sps:$4 sm:$0xff]  }
 0x524   : > { %2631 = vmatpush1.msra.mxu1 %v6384_v60  ;;  %v3619_v60 = vld [vmem:[%s5809_s7 + $0x10] ss:$8 sps:$4 sm:$0xff]  }
 0x525   : > { %2632 = vmatprep.subr.mxu1 %v6387_v13  ;;  %v3627_v13 = vld [vmem:[%s5809_s7 + $0xf4] ss:$8 sps:$4 sm:$0xff]  }
 0x526   : > { %2633 = vmatpush1.msra.mxu1 %v6390_v37  ;;  %v3628_v37 = vld [vmem:[%s5809_s7 + $0xe0] ss:$8 sps:$4 sm:$0xff]  }
 0x527   : > { %2634 = vmatprep.subr.mxu1 %v6393_v25  ;;  %v3636_v25 = vld [vmem:[%s5809_s7 + $0xc4] ss:$8 sps:$4 sm:$0xff]  }
 0x528   : > { %2635 = vmatpush1.msra.mxu1 %v6396_v39  ;;  %v3637_v39 = vld [vmem:[%s5809_s7 + $0xb0] ss:$8 sps:$4 sm:$0xff]  }
 0x529   : > { %2636 = vmatprep.subr.mxu1 %v6399_v31  ;;  %v3645_v31 = vld [vmem:[%s5809_s7 + $0x94] ss:$8 sps:$4 sm:$0xff]  }
 0x52a   : > { %2637 = vmatpush1.msra.mxu1 %v6402_v59  ;;  %v3646_v59 = vld [vmem:[%s5809_s7 + $0x80] ss:$8 sps:$4 sm:$0xff]  }
 0x52b   : > { %2638 = vmatprep.subr.mxu1 %v6405_v44 }
 0x52c   : > { %2639 = vmatpush1.msra.mxu1 %v6408_v22  ;;  %v579_v22 = vsub.s32 1, %v6435_v45 }
 0x52d   : > { %2640 = vmatprep.subr.mxu1 %v6411_v32  ;;  %v3682_v32 = vld [vmem:[%s5804_s2] sm:$0x3f] }
 0x52e   : > { %2641 = vmatpush1.msra.mxu1 %v6414_v52  ;;  %v576_v51 = vrot.slane %v3682_v32, %v575_v54  ;;  %v580_v57 = vrot.slane %v3682_v32, %v579_v22 }
 0x52f   : > { %2642 = vmatprep.subr.mxu1 %v6417_v0  ;;  %v6436_v0 = vld [vmem:[#allocation72_spill] sm:$0xff] }
 0x530   : > { %2643 = vmatpush1.msra.mxu1 %v6420_v62  ;;  %v1128_v8 = vadd.f32 %v6436_v0, %v576_v51  ;;  %v1132_v62 = vadd.f32 %v6437_v30, %v576_v51 }
 0x531   : > { %2644 = vmatprep.subr.mxu1 %v6423_v41  ;;  %v6438_v41 = vld [vmem:[#allocation66_spill] sm:$0xff] }
 0x532   : > { %2645 = vmatpush1.msra.mxu1 %v6426_v53  ;;  %v1134_v53 = vadd.f32 %v6439_v58, %v580_v57 }
 0x533   : > { %2646 = vmatprep.subr.mxu1 %v6429_v28 }
 0x534   : > { %2647 = vmatpush1.msra.mxu1 %v6432_v55  ;;  %v2938_v55 = vld [vmem:[%s5810_s8] sm:$0x3] }
 0x535   : > { %2681 = vmatmul.mubr.f32.vlgmr.msra.gmra.mxu1 %v6433_v4  ;;  %2891 = vmatprep.subr.bf16.mxu1 %v3603_v19  ;;  %v1130_v19 = vadd.f32 %v6438_v41, %v580_v57  ;;  %v2943_v4 = vrot.slane %v2938_v55, %v575_v54 }
 0x536   : > { %2686 = vmatprep.mubr.f32.mxu1 %v6364_v35  ;;  %2892 = vmatpush1.bf16.msra.mxu1 %v3601_v49  ;;  %v3612_v35 = vld [vmem:[%s5809_s7 + $0x44] ss:$8 sps:$4 sm:$0xff]  }
 0x537   : > { %2893 = vmatprep.subr.bf16.mxu1 %v3606_v34 }
 0x539   : > { %2687 = vmatmul.mubr.f32.gmra.mxu1 %v6434_v14 }
 0x53a   : > { %2894 = vmatpush1.bf16.msra.mxu1 %v3604_v56  ;;  %v2947_v56 = vrot.slane %v2938_v55, %v579_v22 }
 0x53b   : > { %2895 = vmatprep.subr.bf16.mxu1 %v3609_v27 }
 0x53e   : > { %2896 = vmatpush1.bf16.msra.mxu1 %v3607_v42 }
 0x53f   : > { %2897 = vmatprep.subr.bf16.mxu1 %v3612_v35 }
 0x542   : > { %2898 = vmatpush1.bf16.msra.mxu1 %v3610_v7 }
 0x543   : > { %2899 = vmatprep.subr.bf16.mxu1 %v3615_v46 }
 0x546   : > { %2900 = vmatpush1.bf16.msra.mxu1 %v3613_v38 }
 0x547   : > { %2901 = vmatprep.subr.bf16.mxu1 %v3618_v63 }
 0x54a   : > { %2902 = vmatpush1.bf16.msra.mxu1 %v3616_v3 }
 0x54b   : > { %2903 = vmatprep.subr.bf16.mxu1 %v3621_v36 }
 0x54e   : > { %2904 = vmatpush1.bf16.msra.mxu1 %v3619_v60 }
 0x54f   : > { %2905 = vmatprep.subr.bf16.mxu1 %v3624_v50 }
 0x552   : > { %2906 = vmatpush1.bf16.msra.mxu1 %v3622_v24 }
 0x553   : > { %2907 = vmatprep.subr.bf16.mxu1 %v3627_v13 }
 0x556   : > { %2908 = vmatpush2.bf16.msra.mxu1 %v3625_v5 }
 0x557   : > { %2909 = vmatprep.subr.bf16.mxu1 %v3630_v11 }
 0x55a   : > { %2910 = vmatpush2.bf16.msra.mxu1 %v3628_v37 }
 0x55b   : > { %2911 = vmatprep.subr.bf16.mxu1 %v3633_v20 }
 0x55e   : > { %2912 = vmatpush2.bf16.msra.mxu1 %v3631_v17 }
 0x55f   : > { %2913 = vmatprep.subr.bf16.mxu1 %v3636_v25 }
 0x562   : > { %2914 = vmatpush2.bf16.msra.mxu1 %v3634_v29 }
 0x563   : > { %2915 = vmatprep.subr.bf16.mxu1 %v3639_v33 }
 0x566   : > { %2916 = vmatpush2.bf16.msra.mxu1 %v3637_v39 }
 0x567   : > { %2917 = vmatprep.subr.bf16.mxu1 %v3642_v61 }
 0x56a   : > { %2918 = vmatpush2.bf16.msra.mxu1 %v3640_v26 }
 0x56b   : > { %2919 = vmatprep.subr.bf16.mxu1 %v3645_v31 }
 0x56e   : > { %2920 = vmatpush2.bf16.msra.mxu1 %v3643_v47 }
 0x56f   : > { %2921 = vmatprep.subr.bf16.mxu1 %v3648_v40 }
 0x572   : > { %2922 = vmatpush2.bf16.msra.mxu1 %v3646_v59 }
 0x5d5   : > { %v2605_v16 = vpop.f32.mrf.mxu1 }
 0x5d7   : > { %v2607_v12 = vpop.f32.mrf.mxu1 }
 0x5d9   : > { %v2611_v44 = vpop.f32.mrf.mxu1 }
 0x5db   : > { %v2613_v23 = vpop.f32.mrf.mxu1 }
 0x5f5   : > { %v2682_v2 = vpop.f32.mrf.mxu1 }
 0x5f6   : > { %v2683_v9 = vadd.f32 %v2682_v2, %v2605_v16 }
 0x5f7   : > { %v2684_v52 = vpop.f32.mrf.mxu1 }
 0x5f8   : > { %v2685_v6 = vadd.f32 %v2684_v52, %v2607_v12  ;;  %v2693_v49 = vmul.f32 %v2683_v9, %v1128_v8 }
 0x5f9   : > { %v2688_v1 = vpop.f32.mrf.mxu1 }
 0x5fa   : > { %v2689_v15 = vadd.f32 %v2688_v1, %v2611_v44  ;;  %v2694_v28 = vmul.f32 %v2685_v6, %v1130_v19 }
 0x5fb   : > { %v2690_v21 = vpop.f32.mrf.mxu1 }
 0x5fc   : > { %v2695_v43 = vmul.f32 %v2689_v15, %v1132_v62  ;;  %v2691_v10 = vadd.f32 %v2690_v21, %v2613_v23 }
 0x5fe   : > { %v2697_v34 = vpack.c.bf16 %v2695_v43, %v2693_v49  ;;  %v2696_v48 = vmul.f32 %v2691_v10, %v1134_v53 }
 0x600   : > { %v2698_v18 = vpack.c.bf16 %v2696_v48, %v2694_v28 }
 0x602   : > { %2923 = vmatprep.mubr.bf16.mxu1 %v2698_v18 }
 0x603   : > { %2924 = vmatmul.mubr.bf16.vlgmr.msra.gmra.mxu1 %v2697_v34 }
 0x6c3   : > { %v2925_v27 = vpop.f32.mrf.mxu1 }
 0x6c4   : > { %v2950_v14 = vadd.f32 %v2943_v4, %v2925_v27 }
 0x6c5   : > { %v2927_v42 = vpop.f32.mrf.mxu1 }
 0x6c6   : > { %2954 = vst [vmem:[%s452_s16] sm:$0xff] %v2950_v14  ;;  %v2951_v35 = vadd.f32 %v2947_v56, %v2927_v42 }
 0x6c7   : > { %v2929_v7 = vpop.f32.mrf.mxu1 }
 0x6c8   : > { %2955 = vst [vmem:[%s452_s16 + $0x8] sm:$0xff] %v2951_v35  ;;  %v2952_v46 = vadd.f32 %v2943_v4, %v2929_v7 }
 0x6c9   : > { %v2931_v38 = vpop.f32.mrf.mxu1 }
 0x6ca   : > { %2956 = vst [vmem:[%s452_s16 + $0x10] sm:$0xff] %v2952_v46  ;;  %v2953_v63 = vadd.f32 %v2947_v56, %v2931_v38 }
 0x6cc   : > { %2957 = vst [vmem:[%s452_s16 + $0x18] sm:$0xff] %v2953_v63 }
 0x6cd   : > { %3800 = shalt.err (!%p3797_p12)
}
 0x6ce   : > { %s3801_s13 = scalar_lea.hbm %s5755_s27, 512  ;;  %s3805_s28 = scalar_lea.hbm %s5811_s9, 1024 }
 0x6cf   : > { %p3802_p2 = scmp.ne.s32.totalorder %s5755_s27, %s3801_s13  ;;  %p3806_p5 = scmp.lt.s32.totalorder %s5755_s27, %s5811_s9 }
 0x6d0   : > { %p3807_p10 = scmp.lt.s32.totalorder %s3805_s28, %s3801_s13 }
 0x6d1   : > { %p3803_p1 = pnand %p3802_p2, %p3979_p4 }
 0x6d2   : > { %p3808_p11 = por %p3807_p10, %p3806_p5 }
 0x6d3   : > { %p3804_p3 = pneg %p3803_p1 }
 0x6d5   : > { %p3809_p13 = pnand %p3808_p11, %p3804_p3 }
 0x6d7   : > { %3812 = shalt.err (!%p3809_p13)
}
 0x6d8   : > { %s3887_s23 = smov 256   ;;  %s3888_s24 = smov 16  }
 0x6d9   : > { %3367 = dma.vmem_to_hbm [thread:$0]  (%p3979_p4), %s5750_s4, 512, %s5755_s27, %s5757_s18, %s3887_s23, %s3887_s23, %s3888_s24  }
 0x6da PF: > { %p3394_p0 = scmp.ge.s32.totalorder %s3875_s14, 2  ;;  %s3003_s12 = sand.u32 1, %s3855_s30  }
 0x6db   : > { %s3004_s20 = scalar_lea.sflag [#allocation4], %s3003_s12 }
 0x6dc   : > { %p3383_p6 = pnand %p3394_p0, %p3986_p8 }
 0x6de   : > { %p3384_p7 = pneg %p3383_p6 }
 0x6e0   : > { %3850 = dma.done.wait (%p3384_p7), %s3004_s20, 512  }
 0x6e1   : > { %3852 = vsyncadd (%p3384_p7), %s3004_s20, 4294966784  ;;  %s25_s14 = sadd.s32 1, %s3875_s14   ;;  %s6440_s12 = sld [smem:[#allocation15_spill]] }
 0x6e2   : > { %p22_p9 = scmp.ge.s32.totalorder %s25_s14, 4   ;;  %s6441_s13 = sld [smem:[#allocation16_spill]] }
 0x6e3   : > { %s6442_s30 = smov %s3859_s10  ;;  %s6443_s10 = smov %s3863_s11 }
 0x6e4   : > { %s6444_s11 = smov %s3992_s22  ;;  %24 = sbr.rel (!%p22_p9) target bundleno = 9 (0x9), region = 125 }
 0x6e9   :  { %3009 = vsyncpa [#allocation3], 1 }
 0x6ea   :  { %3011 = vsyncpa [#allocation3 + $0x1], 1 }
 0x6eb   :  { %3012 = vsyncpa [#allocation6], 1 }
 0x6ec   :  { %3013 = vsyncpa [#allocation9], 1 }
 0x6ed   :  { %3014 = vsyncpa [#allocation4], 1 }
 0x6ee   :  { %3016 = vsyncpa [#allocation4 + $0x1], 1 }

// kernel: tpu_custom_call.1
= control target key start
LH: loop header
LB: loop body
LE: loop exit
PB: predicated region body
PF: predicated region fallthrough
CT: control target
= control target key end

     0   :  { %s5802_s0 = inlined_call_operand.vmem [shape: bf16[2,16,256], index: 0, kind: input, shape index: {}]   ;;  %s5803_s1 = inlined_call_operand.hbm [shape: bf16[256,768], index: 1, kind: input, shape index: {}]   ;;  %s5804_s2 = inlined_call_operand.vmem [shape: f32[1,768], index: 2, kind: input, shape index: {}]   ;;  %s5805_s3 = inlined_call_operand.vmem [shape: f32[256,16], index: 3, kind: input, shape index: {}]   ;;  %s5806_s4 = inlined_call_operand.hbm [shape: f32[16,256], index: 4, kind: input, shape index: {}]   ;;  %s5807_s5 = inlined_call_operand.hbm [shape: f32[256,256], index: 5, kind: input, shape index: {}]   ;;  %s5808_s6 = inlined_call_operand.hbm [shape: f32[256,256], index: 6, kind: input, shape index: {}]   ;;  %s5809_s7 = inlined_call_operand.vmem [shape: bf16[256,256], index: 7, kind: input, shape index: {}]   ;;  %s5810_s8 = inlined_call_operand.vmem [shape: f32[1,256], index: 8, kind: input, shape index: {}]   ;;  %s5811_s9 = inlined_call_operand.hbm [shape: f32[2,16,256], index: 9, kind: output, shape index: {}]  }
   0x1   :  { %5994 = sst [smem:[#allocation119_spill]] %s5806_s4 }
   0x2   :  { %14 = vsyncpa [#allocation3], 0 }
   0x3   :  { %15 = vsyncpa [#allocation6], 0 }
   0x4   :  { %16 = vsyncpa [#allocation9], 0 }
   0x5   :  { %17 = vsyncpa [#allocation4], 0 }
   0x6   :  { %19 = vsyncpa [#allocation4 + $0x1], 0  ;;  %s3939_s30 = smov 0   ;;  %s3941_s10 = smov 0  }
   0x7   :  { %s3943_s11 = smov 0   ;;  %s3945_s12 = smov 0  }
   0x8   :  { %s3947_s13 = smov 0   ;;  %s3949_s14 = smov 0  }
   0x9 LB: > { %5995 = sst [smem:[#allocation15_spill]] %s3871_s13  ;;  %s3132_s15 = sadd.s32 4294967295, %s3875_s14   ;;  %s3875_s14 = sphi %s3949_s14, %s25_s14   ;;  %s3871_s13 = sphi %s3947_s13, %s6441_s13   ;;  %s3867_s12 = sphi %s3945_s12, %s6440_s12   ;;  %s3863_s11 = sphi %s3943_s11, %s6444_s11   ;;  %s3859_s10 = sphi %s3941_s10, %s6443_s10   ;;  %s3855_s30 = sphi %s3939_s30, %s6442_s30  }
   0xa   : > { %s3133_s16 = sadd.s32 4294967294, %s3875_s14   ;;  %s37_s17 = sadd.s32 1, %s3871_s13 }
   0xb   : > { %s263_s18 = sadd.s32 1, %s3863_s11  ;;  %p39_p0 = scmp.ge.s32.totalorder %s37_s17, 2 }
   0xc   : > { %p273_p1 = scmp.ne.s32.totalorder %s3863_s11, %s3859_s10  ;;  %p274_p2 = scmp.eq.s32.totalorder %s3132_s15, 1 }
   0xd   : > { %p279_p3 = scmp.ne.s32.totalorder %s3859_s10, %s3855_s30  ;;  %s6446_s17 = smov (%p39_p0, %s37_s17), 0 }
   0xe   : > { %5996 = sst [smem:[#allocation16_spill]] %s6446_s17  ;;  %p3979_p4 = por %p274_p2, %p273_p1 }
   0xf   : > { %p280_p5 = scmp.eq.s32.totalorder %s3133_s16, 1  ;;  %s260_s20 = ssub.s32 %s3871_s13, %s6446_s17 }
  0x10   : > { %p3134_p6 = scmp.ge.s32.totalorder %s3875_s14, 1  ;;  %p261_p7 = scmp.eq.s32.totalorder %s260_s20, 0 }
  0x11   : > { %p3986_p8 = por %p280_p5, %p279_p3  ;;  %p287_p9 = scmp.lt.s32.totalorder %s3875_s14, 3 }
  0x12   : > { %s3992_s22 = scalar_select %p261_p7, %s3863_s11, %s263_s18  }
  0x13   : > { %p3994_p10 = pnand %p3134_p6, %p287_p9  ;;  %p3998_p11 = scmp.eq.s32.totalorder %s3132_s15, 0 }
  0x14   : > { %s3877_s25 = smov [#allocation5]   ;;  %s3878_s28 = smov [#allocation2]  }
  0x15   : > { %p3369_p12 = pneg %p3994_p10  ;;  %s326_s26 = sshll.u32 %s3877_s25, 4  ;;  %s327_s26 = int_to_ptr.vmem [resolvable:$true] %s326_s26 }
  0x16   : > { %s302_s29 = sshll.u32 %s3878_s28, 4  ;;  %s3694_s15 = scalar_lea.vmem %s327_s26, 512  ;;  %s303_s29 = int_to_ptr.vmem [resolvable:$true] %s302_s29 }
  0x17   : > { %p4006_p13 = pnand %p3998_p11, %p3369_p12  ;;  %p3695_p1 = scmp.ne.s32.totalorder %s327_s26, %s3694_s15 }
  0x18   : > { %p3702_p5 = scmp.lt.s32.totalorder %s327_s26, %s327_s26  ;;  %p3703_p6 = scmp.lt.s32.totalorder %s3694_s15, %s3694_s15 }
  0x19   : > { %p3685_p0 = pneg %p4006_p13 }
  0x1a   : > { %p3704_p7 = por %p3703_p6, %p3702_p5 }
  0x1b   : > { %p3697_p2 = pnand %p3695_p1, %p3685_p0 }
  0x1d   : > { %p3698_p3 = pneg %p3697_p2 }
  0x1f   : > { %p3705_p9 = pnand %p3704_p7, %p3698_p3 }
  0x21   : > { %3708 = shalt.err (!%p3705_p9)
}
  0x22   : > { %s5814_s16 = smov 256   ;;  %s5816_s18 = smov 16  }
  0x23   : > { %s6002_s4 = sld [smem:[#allocation119_spill]]  ;;  %s3720_s28 = scalar_lea.vmem %s303_s29, 12288 }
  0x24   : > { %p3721_p12 = scmp.ne.s32.totalorder %s303_s29, %s3720_s28  ;;  %p3728_p3 = scmp.lt.s32.totalorder %s303_s29, %s303_s29 }
  0x25   : > { %p3729_p5 = scmp.lt.s32.totalorder %s3720_s28, %s3720_s28 }
  0x26   : > { %p3723_p1 = pnand %p3721_p12, %p3685_p0 }
  0x27   : > { %p3730_p6 = por %p3729_p5, %p3728_p3 }
  0x28   : > { %p3724_p2 = pneg %p3723_p1 }
  0x29   : > { %3375 = dma.hbm_to_vmem [thread:$0]  (!%p4006_p13), %s6002_s4, 512, %s327_s26, [#allocation6], %s5814_s16, %s5814_s16, %s5816_s18  }
  0x2a   : > { %p3731_p7 = pnand %p3730_p6, %p3724_p2 }
  0x2c   : > { %3734 = shalt.err (!%p3731_p7)
}
  0x2d   : > { %s3881_s15 = smov 384   ;;  %s3882_s17 = smov 24  }
  0x2e   : > { %3372 = dma.hbm_to_vmem [thread:$0]  (!%p4006_p13), %s5803_s1, 12288, %s303_s29, [#allocation3], %s3881_s15, %s3881_s15, %s3882_s17  }
  0x2f   : > { %s3883_s26 = smov [#allocation7]   ;;  %s3884_s16 = smov [#allocation8]  }
  0x30   : > { %s342_s25 = sshll.u32 %s3883_s26, 4  ;;  %s358_s18 = sshll.u32 %s3884_s16, 4  ;;  %s343_s25 = int_to_ptr.vmem [resolvable:$true] %s342_s25  ;;  %s359_s18 = int_to_ptr.vmem [resolvable:$true] %s358_s18 }
  0x31   : > { %s3746_s4 = scalar_lea.vmem %s343_s25, 8192  ;;  %p3754_p2 = scmp.lt.s32.totalorder %s343_s25, %s343_s25 }
  0x32   : > { %p3747_p9 = scmp.ne.s32.totalorder %s343_s25, %s3746_s4  ;;  %p3755_p3 = scmp.lt.s32.totalorder %s3746_s4, %s3746_s4 }
  0x34   : > { %p3749_p12 = pnand %p3747_p9, %p3685_p0  ;;  %p3756_p5 = por %p3755_p3, %p3754_p2 }
  0x36   : > { %p3750_p1 = pneg %p3749_p12 }
  0x38   : > { %p3757_p6 = pnand %p3756_p5, %p3750_p1 }
  0x3a   : > { %3760 = shalt.err (!%p3757_p6)
}
  0x3b   : > { %s6003_s13 = smov 16   ;;  %s6004_s17 = smov 256  }
  0x3c   : > { %3378 = dma.hbm_to_vmem [thread:$0]  (!%p4006_p13), %s5807_s5, 8192, %s343_s25, [#allocation6], %s6004_s17, %s6004_s17, %s6003_s13  }
  0x3d   : > { %s3772_s16 = scalar_lea.vmem %s359_s18, 8192  ;;  %p3780_p2 = scmp.lt.s32.totalorder %s359_s18, %s359_s18 }
  0x3e   : > { %p3773_p7 = scmp.ne.s32.totalorder %s359_s18, %s3772_s16  ;;  %p3781_p1 = scmp.lt.s32.totalorder %s3772_s16, %s3772_s16 }
  0x40   : > { %p3775_p9 = pnand %p3773_p7, %p3685_p0  ;;  %p3782_p3 = por %p3781_p1, %p3780_p2 }
  0x42   : > { %p3776_p12 = pneg %p3775_p9 }
  0x44   : > { %p3783_p5 = pnand %p3782_p3, %p3776_p12 }
  0x46   : > { %3786 = shalt.err (!%p3783_p5)
}
  0x47   : > { %3381 = dma.hbm_to_vmem [thread:$0]  (!%p4006_p13), %s5808_s6, 8192, %s359_s18, [#allocation9], %s6004_s17, %s6004_s17, %s6003_s13  }
  0x48   : > { %395 = sbr.rel (%p3994_p10) target bundleno = 1754 (0x6da), region = 56 }
  0x4d   : > { %3838 = dma.done.wait (%p3998_p11), [#allocation3], 12288  }
  0x4e   : > { %3840 = vsyncadd (%p3998_p11), [#allocation3], 4294955008 }
  0x4f   : > { %3842 = dma.done.wait (%p3998_p11), [#allocation6], 8704  }
  0x50   : > { %3844 = vsyncadd (%p3998_p11), [#allocation6], 4294958592 }
  0x51   : > { %3846 = dma.done.wait (%p3998_p11), [#allocation9], 8192  }
  0x52   : > { %3848 = vsyncadd (%p3998_p11), [#allocation9], 4294959104  ;;  %v3454_v0 = vld [vmem:[#allocation2 + $0x15c] ss:$24 sps:$4 sm:$0xff]   ;;  %v3456_v1 = vld [vmem:[#allocation2 + $0x158] ss:$24 sps:$4 sm:$0xff]   ;;  %v573_v35 = vlaneseq }
  0x53   : > { %1136 = vmatprep.subr.bf16.mxu1 %v3454_v0  ;;  %v3457_v2 = vld [vmem:[#allocation2 + $0x12c] ss:$24 sps:$4 sm:$0xff]   ;;  %v3459_v3 = vld [vmem:[#allocation2 + $0x128] ss:$24 sps:$4 sm:$0xff]   ;;  %v3460_v4 = vld [vmem:[#allocation2 + $0xfc] ss:$24 sps:$4 sm:$0xff]  }
  0x54   : > { %1137 = vmatpush1.bf16.msra.mxu1 %v3456_v1  ;;  %v3462_v5 = vld [vmem:[#allocation2 + $0xf8] ss:$24 sps:$4 sm:$0xff]   ;;  %v3463_v6 = vld [vmem:[#allocation2 + $0xcc] ss:$24 sps:$4 sm:$0xff]   ;;  %p453_p10 = scmp.lt.s32.totalorder %s3867_s12, 1  ;;  %v5818_v34 = vmov 0.0  }
  0x55   : > { %1138 = vmatprep.subr.bf16.mxu1 %v3457_v2  ;;  %v3465_v7 = vld [vmem:[#allocation2 + $0xc8] ss:$24 sps:$4 sm:$0xff]   ;;  %v3466_v8 = vld [vmem:[#allocation2 + $0x9c] ss:$24 sps:$4 sm:$0xff]   ;;  %v3468_v9 = vld [vmem:[#allocation2 + $0x98] ss:$24 sps:$4 sm:$0xff]  }
  0x56   : > { %s454_s23 = scalar_select %p453_p10, %s3867_s12, 1  ;;  %v3469_v10 = vld [vmem:[#allocation2 + $0x6c] ss:$24 sps:$4 sm:$0xff]   ;;  %v3471_v11 = vld [vmem:[#allocation2 + $0x68] ss:$24 sps:$4 sm:$0xff]   ;;  %v4084_v36 = vshrl.u32 %v573_v35, 7 }
  0x57   : > { %v3472_v12 = vld [vmem:[#allocation2 + $0x3c] ss:$24 sps:$4 sm:$0xff]   ;;  %v3474_v13 = vld [vmem:[#allocation2 + $0x38] ss:$24 sps:$4 sm:$0xff]   ;;  %v3475_v14 = vld [vmem:[#allocation2 + $0xc] ss:$24 sps:$4 sm:$0xff]  }
  0x58   : > { %1139 = vmatpush1.bf16.msra.mxu1 %v3459_v3  ;;  %s3349_s24 = sshll.u32 %s454_s23, 4  ;;  %v3477_v16 = vld [vmem:[#allocation2 + $0x8] ss:$24 sps:$4 sm:$0xff]   ;;  %v3478_v17 = vld [vmem:[#allocation2 + $0x2dc] ss:$24 sps:$4 sm:$0xff]   ;;  %6005 = vst [vmem:[#allocation17_spill] sm:$0xff] %v4084_v36 }
  0x59   : > { %1140 = vmatprep.subr.bf16.mxu1 %v3460_v4  ;;  %s4072_s20 = scalar_lea.vmem %s5802_s0, %s3349_s24  ;;  %v3480_v18 = vld [vmem:[#allocation2 + $0x2d8] ss:$24 sps:$4 sm:$0xff]   ;;  %v3481_v19 = vld [vmem:[#allocation2 + $0x2ac] ss:$24 sps:$4 sm:$0xff]   ;;  %v3483_v20 = vld [vmem:[#allocation2 + $0x2a8] ss:$24 sps:$4 sm:$0xff]  }
  0x5a   : > { %v4075_v15 = vld [vmem:[%s4072_s20 + $0x4] ss:$8 sps:$4 sm:$0xff]   ;;  %v3484_v21 = vld [vmem:[#allocation2 + $0x27c] ss:$24 sps:$4 sm:$0xff]   ;;  %v3486_v22 = vld [vmem:[#allocation2 + $0x278] ss:$24 sps:$4 sm:$0xff]  }
  0x5b   : > { %1168 = vmatprep.mubr.bf16.mxu1 %v4075_v15  ;;  %1125 = vmatprep.mubr.bf16.mxu0 %v4075_v15  ;;  %v3487_v23 = vld [vmem:[#allocation2 + $0x24c] ss:$24 sps:$4 sm:$0xff]   ;;  %v3489_v24 = vld [vmem:[#allocation2 + $0x248] ss:$24 sps:$4 sm:$0xff]   ;;  %v3490_v25 = vld [vmem:[#allocation2 + $0x21c] ss:$24 sps:$4 sm:$0xff]  }
  0x5c   : > { %1141 = vmatpush1.bf16.msra.mxu1 %v3462_v5  ;;  %v3492_v26 = vld [vmem:[#allocation2 + $0x218] ss:$24 sps:$4 sm:$0xff]   ;;  %v3493_v27 = vld [vmem:[#allocation2 + $0x1ec] ss:$24 sps:$4 sm:$0xff]   ;;  %v3495_v28 = vld [vmem:[#allocation2 + $0x1e8] ss:$24 sps:$4 sm:$0xff]  }
  0x5d   : > { %1142 = vmatprep.subr.bf16.mxu1 %v3463_v6  ;;  %v3496_v29 = vld [vmem:[#allocation2 + $0x1bc] ss:$24 sps:$4 sm:$0xff]   ;;  %v3498_v30 = vld [vmem:[#allocation2 + $0x1b8] ss:$24 sps:$4 sm:$0xff]   ;;  %v3499_v31 = vld [vmem:[#allocation2 + $0x18c] ss:$24 sps:$4 sm:$0xff]  }
  0x5e   : > { %v3501_v32 = vld [vmem:[#allocation2 + $0x188] ss:$24 sps:$4 sm:$0xff]   ;;  %v587_v38 = vsub.s32 3, %v4084_v36  ;;  %v583_v39 = vsub.s32 2, %v4084_v36  ;;  %v3505_v49 = vld [vmem:[#allocation2 + $0x154] ss:$24 sps:$4 sm:$0xff]  }
  0x5f   : > { %v4080_v33 = vld [vmem:[%s4072_s20] ss:$8 sps:$4 sm:$0xff]   ;;  %vm1258_vm0 = vcmask 130048   ;;  %1093 = vmatprep.subr.bf16.mxu0 %v3505_v49  ;;  %v1224_v54 = vld [vmem:[%s5805_s3 + $0x10] sm:$0xff]  ;;  %v1225_v55 = vld [vmem:[%s5805_s3 + $0x18] sm:$0xff]  ;;  %s450_s13 = sand.u32 1, %s3859_s10  }
  0x60   : > { %1143 = vmatpush1.bf16.msra.mxu1 %v3465_v7  ;;  %v571_v41 = vld [vmem:[%s5804_s2] sm:$0x3f]  ;;  %v3507_v50 = vld [vmem:[#allocation2 + $0x150] ss:$24 sps:$4 sm:$0xff]   ;;  %v1229_v59 = vld [vmem:[%s5805_s3 + $0x38] sm:$0xff]  ;;  %s3147_s28 = sshll.u32 %s450_s13, 5 }
  0x61   : > { %1144 = vmatprep.subr.bf16.mxu1 %v3466_v8  ;;  %v588_v43 = vrot.slane %v571_v41, %v587_v38  ;;  %v584_v44 = vrot.slane %v571_v41, %v583_v39  ;;  %v1222_v52 = vld [vmem:[%s5805_s3] sm:$0xff]  ;;  %1094 = vmatpush1.bf16.msra.mxu0 %v3507_v50  ;;  %v1223_v53 = vld [vmem:[%s5805_s3 + $0x8] sm:$0xff]  ;;  %v1228_v58 = vld [vmem:[%s5805_s3 + $0x30] sm:$0xff]  ;;  %s452_s16 = scalar_lea.vmem [#allocation10], %s3147_s28  ;;  %s3350_s15 = sshll.u32 %s3867_s12, 9 }
  0x62   : > { %v1226_v56 = vld [vmem:[%s5805_s3 + $0x20] sm:$0xff]  ;;  %v1227_v57 = vld [vmem:[%s5805_s3 + $0x28] sm:$0xff]  ;;  %v1232_v62 = vld [vmem:[%s5805_s3 + $0x50] sm:$0xff]  ;;  %s2988_s4 = sshll.u32 %s452_s16, 4  ;;  %s5755_s27 = scalar_lea.hbm %s5811_s9, %s3350_s15  ;;  %s5750_s4 = int_to_ptr.vmem [resolvable:$true] %s2988_s4 }
  0x63   : > { %v1230_v60 = vld [vmem:[%s5805_s3 + $0x40] sm:$0xff]  ;;  %v1231_v61 = vld [vmem:[%s5805_s3 + $0x48] sm:$0xff]  ;;  %v1233_v63 = vld [vmem:[%s5805_s3 + $0x58] sm:$0xff]  ;;  %s5757_s18 = scalar_lea.sflag [#allocation4], %s450_s13  ;;  %s3787_s12 = scalar_lea.vmem %s5750_s4, 512 }
  0x64   : > { %1145 = vmatpush1.bf16.msra.mxu1 %v3468_v9  ;;  %v1234_v0 = vld [vmem:[%s5805_s3 + $0x60] sm:$0xff]  ;;  %v1235_v1 = vld [vmem:[%s5805_s3 + $0x68] sm:$0xff]  ;;  %v1236_v2 = vld [vmem:[%s5805_s3 + $0x70] sm:$0xff]  ;;  %p3788_p11 = scmp.ne.s32.totalorder %s5750_s4, %s3787_s12  ;;  %s3886_s20 = smov [#allocation10]  }
  0x65   : > { %1146 = vmatprep.subr.bf16.mxu1 %v3469_v10  ;;  %v1237_v3 = vld [vmem:[%s5805_s3 + $0x78] sm:$0xff]  ;;  %v1238_v4 = vld [vmem:[%s5805_s3 + $0x80] sm:$0xff]  ;;  %v1239_v6 = vld [vmem:[%s5805_s3 + $0x88] sm:$0xff]  ;;  %s3791_s26 = sshll.u32 %s3886_s20, 4  ;;  %s3792_s26 = int_to_ptr.vmem [resolvable:$false] %s3791_s26 }
  0x66   : > { %v3508_v5 = vld [vmem:[#allocation2 + $0x124] ss:$24 sps:$4 sm:$0xff]   ;;  %v3510_v7 = vld [vmem:[#allocation2 + $0x120] ss:$24 sps:$4 sm:$0xff]   ;;  %v3511_v8 = vld [vmem:[#allocation2 + $0xf4] ss:$24 sps:$4 sm:$0xff]   ;;  %p3789_p13 = pnand %p3788_p11, %p3979_p4  ;;  %p3794_p6 = scmp.lt.s32.totalorder %s5750_s4, %s3792_s26 }
  0x67   : > { %1095 = vmatprep.subr.bf16.mxu0 %v3508_v5  ;;  %v1240_v9 = vld [vmem:[%s5805_s3 + $0x90] sm:$0xff]  ;;  %v3538_v39 = vld [vmem:[#allocation2 + $0x244] ss:$24 sps:$4 sm:$0xff]   ;;  %v3540_v41 = vld [vmem:[#allocation2 + $0x240] ss:$24 sps:$4 sm:$0xff]   ;;  %s3793_s25 = scalar_lea.vmem %s3792_s26, 1024 }
  0x68   : > { %1147 = vmatpush1.bf16.msra.mxu1 %v3471_v11  ;;  %1096 = vmatpush1.bf16.msra.mxu0 %v3510_v7  ;;  %v3513_v10 = vld [vmem:[#allocation2 + $0xf0] ss:$24 sps:$4 sm:$0xff]   ;;  %v3514_v11 = vld [vmem:[#allocation2 + $0xc4] ss:$24 sps:$4 sm:$0xff]   ;;  %v3535_v35 = vld [vmem:[#allocation2 + $0x274] ss:$24 sps:$4 sm:$0xff]   ;;  %p3790_p0 = pneg %p3789_p13  ;;  %p3795_p7 = scmp.lt.s32.totalorder %s3793_s25, %s3787_s12 }
  0x69   : > { %1148 = vmatprep.subr.bf16.mxu1 %v3472_v12  ;;  %1097 = vmatprep.subr.bf16.mxu0 %v3511_v8  ;;  %v1241_v12 = vld [vmem:[%s5805_s3 + $0x98] sm:$0xff]  ;;  %v3537_v38 = vld [vmem:[#allocation2 + $0x270] ss:$24 sps:$4 sm:$0xff]   ;;  %v3582_v7 = vld [vmem:[#allocation2 + $0x2b4] ss:$24 sps:$4 sm:$0xff]  }
  0x6a   : > { %v1252_v49 = vld [vmem:[%s5805_s3 + $0xf0] sm:$0xff]  ;;  %v3579_v5 = vld [vmem:[#allocation2 + $0x2e4] ss:$24 sps:$4 sm:$0xff]   ;;  %p3796_p9 = por %p3795_p7, %p3794_p6 }
  0x6b   : > { %v3549_v50 = vld [vmem:[#allocation2 + $0x1b0] ss:$24 sps:$4 sm:$0xff]  }
  0x6c   : > { %1149 = vmatpush1.bf16.msra.mxu1 %v3474_v13  ;;  %1098 = vmatpush1.bf16.msra.mxu0 %v3513_v10  ;;  %v3516_v13 = vld [vmem:[#allocation2 + $0xc0] ss:$24 sps:$4 sm:$0xff]   ;;  %v3580_v8 = vld [vmem:[#allocation2 + $0x2b0] ss:$24 sps:$4 sm:$0xff]   ;;  %p3797_p12 = pnand %p3796_p9, %p3790_p0 }
  0x6d   : > { %1150 = vmatprep.subr.bf16.mxu1 %v3475_v14  ;;  %1099 = vmatprep.subr.bf16.mxu0 %v3514_v11  ;;  %v3517_v14 = vld [vmem:[#allocation2 + $0x94] ss:$24 sps:$4 sm:$0xff]   ;;  %v3583_v10 = vld [vmem:[#allocation2 + $0x280] ss:$24 sps:$4 sm:$0xff]  }
  0x6e   : > { %v3588_v11 = vld [vmem:[#allocation2 + $0x254] ss:$24 sps:$4 sm:$0xff]  }
  0x70   : > { %1151 = vmatpush1.bf16.msra.mxu1 %v3477_v16  ;;  %1100 = vmatpush1.bf16.msra.mxu0 %v3516_v13  ;;  %v1242_v16 = vld [vmem:[%s5805_s3 + $0xa0] sm:$0xff] }
  0x71   : > { %1152 = vmatprep.subr.bf16.mxu1 %v3478_v17  ;;  %v3519_v17 = vld [vmem:[#allocation2 + $0x90] ss:$24 sps:$4 sm:$0xff]   ;;  %1101 = vmatprep.subr.bf16.mxu0 %v3517_v14  ;;  %v3591_v13 = vld [vmem:[#allocation2 + $0x224] ss:$24 sps:$4 sm:$0xff]   ;;  %v3589_v14 = vld [vmem:[#allocation2 + $0x220] ss:$24 sps:$4 sm:$0xff]  }
  0x74   : > { %1153 = vmatpush2.bf16.msra.mxu1 %v3480_v18  ;;  %1102 = vmatpush1.bf16.msra.mxu0 %v3519_v17  ;;  %v3520_v18 = vld [vmem:[#allocation2 + $0x64] ss:$24 sps:$4 sm:$0xff]   ;;  %v3592_v17 = vld [vmem:[#allocation2 + $0x1f0] ss:$24 sps:$4 sm:$0xff]  }
  0x75   : > { %1154 = vmatprep.subr.bf16.mxu1 %v3481_v19  ;;  %v1243_v19 = vld [vmem:[%s5805_s3 + $0xa8] sm:$0xff]  ;;  %1103 = vmatprep.subr.bf16.mxu0 %v3520_v18  ;;  %v3597_v18 = vld [vmem:[#allocation2 + $0x1c4] ss:$24 sps:$4 sm:$0xff]  }
  0x78   : > { %1155 = vmatpush2.bf16.msra.mxu1 %v3483_v20  ;;  %v3522_v20 = vld [vmem:[#allocation2 + $0x60] ss:$24 sps:$4 sm:$0xff]  }
  0x79   : > { %1156 = vmatprep.subr.bf16.mxu1 %v3484_v21  ;;  %1104 = vmatpush1.bf16.msra.mxu0 %v3522_v20  ;;  %v3523_v21 = vld [vmem:[#allocation2 + $0x34] ss:$24 sps:$4 sm:$0xff]  }
  0x7a   : > { %1105 = vmatprep.subr.bf16.mxu0 %v3523_v21  ;;  %v3600_v20 = vld [vmem:[#allocation2 + $0x194] ss:$24 sps:$4 sm:$0xff]   ;;  %v3598_v21 = vld [vmem:[#allocation2 + $0x190] ss:$24 sps:$4 sm:$0xff]  }
  0x7c   : > { %1157 = vmatpush2.bf16.msra.mxu1 %v3486_v22  ;;  %v1244_v22 = vld [vmem:[%s5805_s3 + $0xb0] sm:$0xff] }
  0x7d   : > { %1158 = vmatprep.subr.bf16.mxu1 %v3487_v23  ;;  %v3525_v23 = vld [vmem:[#allocation2 + $0x30] ss:$24 sps:$4 sm:$0xff]  }
  0x7e   : > { %1106 = vmatpush1.bf16.msra.mxu0 %v3525_v23 }
  0x80   : > { %1159 = vmatpush2.bf16.msra.mxu1 %v3489_v24  ;;  %v3526_v24 = vld [vmem:[#allocation2 + $0x4] ss:$24 sps:$4 sm:$0xff]  }
  0x81   : > { %1160 = vmatprep.subr.bf16.mxu1 %v3490_v25  ;;  %v1245_v25 = vld [vmem:[%s5805_s3 + $0xb8] sm:$0xff]  ;;  %1107 = vmatprep.subr.bf16.mxu0 %v3526_v24 }
  0x84   : > { %1161 = vmatpush2.bf16.msra.mxu1 %v3492_v26  ;;  %v3528_v26 = vld [vmem:[#allocation2] ss:$24 sps:$4 sm:$0xff]  }
  0x85   : > { %1162 = vmatprep.subr.bf16.mxu1 %v3493_v27  ;;  %1108 = vmatpush1.bf16.msra.mxu0 %v3528_v26  ;;  %v3529_v27 = vld [vmem:[#allocation2 + $0x2d4] ss:$24 sps:$4 sm:$0xff]  }
  0x86   : > { %1109 = vmatprep.subr.bf16.mxu0 %v3529_v27 }
  0x88   : > { %1163 = vmatpush2.bf16.msra.mxu1 %v3495_v28  ;;  %v1246_v28 = vld [vmem:[%s5805_s3 + $0xc0] sm:$0xff] }
  0x89   : > { %1164 = vmatprep.subr.bf16.mxu1 %v3496_v29  ;;  %v3531_v29 = vld [vmem:[#allocation2 + $0x2d0] ss:$24 sps:$4 sm:$0xff]  }
  0x8a   : > { %1110 = vmatpush2.bf16.msra.mxu0 %v3531_v29 }
  0x8c   : > { %1165 = vmatpush2.bf16.msra.mxu1 %v3498_v30  ;;  %v3532_v30 = vld [vmem:[#allocation2 + $0x2a4] ss:$24 sps:$4 sm:$0xff]  }
  0x8d   : > { %1166 = vmatprep.subr.bf16.mxu1 %v3499_v31  ;;  %v1247_v31 = vld [vmem:[%s5805_s3 + $0xc8] sm:$0xff]  ;;  %1111 = vmatprep.subr.bf16.mxu0 %v3532_v30 }
  0x90   : > { %1167 = vmatpush2.bf16.msra.mxu1 %v3501_v32  ;;  %v3534_v32 = vld [vmem:[#allocation2 + $0x2a0] ss:$24 sps:$4 sm:$0xff]  }
  0x91   : > { %1112 = vmatpush2.bf16.msra.mxu0 %v3534_v32 }
  0x92   : > { %1113 = vmatprep.subr.bf16.mxu0 %v3535_v35 }
  0x93   : > { %1169 = vmatmul.mubr.bf16.vlgmr.msra.gmra.mxu1 %v4080_v33 }
  0x94   : > { %1419 = vmatprep.mubr.f32.mxu1 %v5818_v34 }
  0x95   : > { %1114 = vmatpush2.bf16.msra.mxu0 %v3537_v38 }
  0x96   : > { %1115 = vmatprep.subr.bf16.mxu0 %v3538_v39 }
  0x99   : > { %1116 = vmatpush2.bf16.msra.mxu0 %v3540_v41 }
 0x153   : > { %v1170_v37 = vpop.f32.mrf.mxu1 }
 0x154   : > { %v1171_v51 = vadd.f32 %v1170_v37, %v584_v44  ;;  %v1248_v37 = vld [vmem:[%s5805_s3 + $0xd0] sm:$0xff] }
 0x155   : > { %v1172_v40 = vpop.f32.mrf.mxu1 }
 0x156   : > { %v1173_v48 = vadd.f32 %v1172_v40, %v588_v43  ;;  %v1249_v40 = vld [vmem:[%s5805_s3 + $0xd8] sm:$0xff] }
 0x157   : > { %v1174_v42 = vpop.f32.mrf.mxu1 }
 0x158   : > { %v1175_v47 = vadd.f32 %v1174_v42, %v584_v44  ;;  %v3541_v42 = vld [vmem:[#allocation2 + $0x214] ss:$24 sps:$4 sm:$0xff]   ;;  %v3543_v44 = vld [vmem:[#allocation2 + $0x210] ss:$24 sps:$4 sm:$0xff]  }
 0x159   : > { %v1176_v45 = vpop.f32.mrf.mxu1  ;;  %1117 = vmatprep.subr.bf16.mxu0 %v3541_v42 }
 0x15a   : > { %v1177_v46 = vadd.f32 %v1176_v45, %v588_v43  ;;  %v1250_v43 = vld [vmem:[%s5805_s3 + $0xe0] sm:$0xff]  ;;  %1118 = vmatpush2.bf16.msra.mxu0 %v3543_v44 }
 0x15b   : > { %v3544_v45 = vld [vmem:[#allocation2 + $0x1e4] ss:$24 sps:$4 sm:$0xff]  }
 0x15c   : > { %1383 = vmatprep.subr.mxu1 %v1177_v46  ;;  %v1251_v46 = vld [vmem:[%s5805_s3 + $0xe8] sm:$0xff]  ;;  %1119 = vmatprep.subr.bf16.mxu0 %v3544_v45 }
 0x15d   : > { %1384 = vmatpush1.msra.mxu1 %v1175_v47  ;;  %v3546_v47 = vld [vmem:[#allocation2 + $0x1e0] ss:$24 sps:$4 sm:$0xff]  }
 0x15e   : > { %1385 = vmatprep.subr.mxu1 %v1173_v48  ;;  %1120 = vmatpush2.bf16.msra.mxu0 %v3546_v47  ;;  %v3547_v48 = vld [vmem:[#allocation2 + $0x1b4] ss:$24 sps:$4 sm:$0xff]  }
 0x15f   : > { %1386 = vmatpush1.msra.mxu1 %v1171_v51  ;;  %1121 = vmatprep.subr.bf16.mxu0 %v3547_v48  ;;  %v3550_v51 = vld [vmem:[#allocation2 + $0x184] ss:$24 sps:$4 sm:$0xff]  }
 0x160   : > { %3248 = vmatmul.mubr.msk.f32.vlgmr.msra.gmra.mxu1 %vm1258_vm0, %v1222_v52  ;;  %v1253_v52 = vld [vmem:[%s5805_s3 + $0xf8] sm:$0xff] }
 0x161   : > { %1425 = vmatprep.mubr.f32.mxu1 %v5818_v34 }
 0x162   : > { %1122 = vmatpush2.bf16.msra.mxu0 %v3549_v50 }
 0x163   : > { %1123 = vmatprep.subr.bf16.mxu0 %v3550_v51 }
 0x164   : > { %3249 = vmatmul.mubr.msk.f32.gmra.mxu1 %vm1258_vm0, %v1223_v53  ;;  %v3552_v53 = vld [vmem:[#allocation2 + $0x180] ss:$24 sps:$4 sm:$0xff]  }
 0x165   : > { %1431 = vmatprep.mubr.f32.mxu1 %v5818_v34 }
 0x166   : > { %1124 = vmatpush2.bf16.msra.mxu0 %v3552_v53 }
 0x168   : > { %3250 = vmatmul.mubr.msk.f32.gmra.mxu1 %vm1258_vm0, %v1224_v54  ;;  %v3555_v54 = vld [vmem:[#allocation2 + $0x164] ss:$24 sps:$4 sm:$0xff]  }
 0x169   : > { %1437 = vmatprep.mubr.f32.mxu1 %v5818_v34  ;;  %1126 = vmatmul.mubr.bf16.vlgmr.msra.gmra.mxu0 %v4080_v33 }
 0x16a   : > { %1179 = vmatprep.subr.bf16.mxu0 %v3555_v54  ;;  %1211 = vmatprep.mubr.bf16.mxu0 %v4075_v15  ;;  %v3573_v15 = vld [vmem:[#allocation2 + $0x44] ss:$24 sps:$4 sm:$0xff]  }
 0x16c   : > { %3251 = vmatmul.mubr.msk.f32.gmra.mxu1 %vm1258_vm0, %v1225_v55  ;;  %v3553_v55 = vld [vmem:[#allocation2 + $0x160] ss:$24 sps:$4 sm:$0xff]  }
 0x16d   : > { %1443 = vmatprep.mubr.f32.mxu1 %v5818_v34  ;;  %1180 = vmatpush1.bf16.msra.mxu0 %v3553_v55  ;;  %v1612_v55 = vld [vmem:[#allocation7] sm:$0xff] }
 0x170   : > { %3252 = vmatmul.mubr.msk.f32.gmra.mxu1 %vm1258_vm0, %v1226_v56  ;;  %v3558_v56 = vld [vmem:[#allocation2 + $0x134] ss:$24 sps:$4 sm:$0xff]  }
 0x171   : > { %1449 = vmatprep.mubr.f32.mxu1 %v5818_v34  ;;  %1181 = vmatprep.subr.bf16.mxu0 %v3558_v56  ;;  %v1644_v56 = vld [vmem:[#allocation7 + $0x100] sm:$0xff] }
 0x174   : > { %3253 = vmatmul.mubr.msk.f32.gmra.mxu1 %vm1258_vm0, %v1227_v57  ;;  %v3556_v57 = vld [vmem:[#allocation2 + $0x130] ss:$24 sps:$4 sm:$0xff]  }
 0x175   : > { %1455 = vmatprep.mubr.f32.mxu1 %v5818_v34  ;;  %1182 = vmatpush1.bf16.msra.mxu0 %v3556_v57 }
 0x178   : > { %3254 = vmatmul.mubr.msk.f32.gmra.mxu1 %vm1258_vm0, %v1228_v58  ;;  %v3561_v58 = vld [vmem:[#allocation2 + $0x104] ss:$24 sps:$4 sm:$0xff]  }
 0x179   : > { %1461 = vmatprep.mubr.f32.mxu1 %v5818_v34  ;;  %1183 = vmatprep.subr.bf16.mxu0 %v3561_v58  ;;  %v1613_v58 = vld [vmem:[#allocation7 + $0x8] sm:$0xff] }
 0x17c   : > { %3255 = vmatmul.mubr.msk.f32.gmra.mxu1 %vm1258_vm0, %v1229_v59  ;;  %v3559_v59 = vld [vmem:[#allocation2 + $0x100] ss:$24 sps:$4 sm:$0xff]  }
 0x17d   : > { %1467 = vmatprep.mubr.f32.mxu1 %v5818_v34  ;;  %1184 = vmatpush1.bf16.msra.mxu0 %v3559_v59  ;;  %v1645_v59 = vld [vmem:[#allocation7 + $0x108] sm:$0xff] }
 0x180   : > { %3256 = vmatmul.mubr.msk.f32.gmra.mxu1 %vm1258_vm0, %v1230_v60  ;;  %v3564_v60 = vld [vmem:[#allocation2 + $0xd4] ss:$24 sps:$4 sm:$0xff]  }
 0x181   : > { %1473 = vmatprep.mubr.f32.mxu1 %v5818_v34  ;;  %1185 = vmatprep.subr.bf16.mxu0 %v3564_v60 }
 0x184   : > { %3257 = vmatmul.mubr.msk.f32.gmra.mxu1 %vm1258_vm0, %v1231_v61  ;;  %v3562_v61 = vld [vmem:[#allocation2 + $0xd0] ss:$24 sps:$4 sm:$0xff]  }
 0x185   : > { %1479 = vmatprep.mubr.f32.mxu1 %v5818_v34  ;;  %1186 = vmatpush1.bf16.msra.mxu0 %v3562_v61 }
 0x188   : > { %3258 = vmatmul.mubr.msk.f32.gmra.mxu1 %vm1258_vm0, %v1232_v62  ;;  %v3567_v62 = vld [vmem:[#allocation2 + $0xa4] ss:$24 sps:$4 sm:$0xff]  }
 0x189   : > { %1485 = vmatprep.mubr.f32.mxu1 %v5818_v34  ;;  %1187 = vmatprep.subr.bf16.mxu0 %v3567_v62 }
 0x18c   : > { %3259 = vmatmul.mubr.msk.f32.gmra.mxu1 %vm1258_vm0, %v1233_v63  ;;  %v3565_v63 = vld [vmem:[#allocation2 + $0xa0] ss:$24 sps:$4 sm:$0xff]  }
 0x18d   : > { %1491 = vmatprep.mubr.f32.mxu1 %v5818_v34  ;;  %1188 = vmatpush1.bf16.msra.mxu0 %v3565_v63  ;;  %v1614_v63 = vld [vmem:[#allocation7 + $0x10] sm:$0xff] }
 0x190   : > { %3260 = vmatmul.mubr.msk.f32.gmra.mxu1 %vm1258_vm0, %v1234_v0  ;;  %v3570_v0 = vld [vmem:[#allocation2 + $0x74] ss:$24 sps:$4 sm:$0xff]  }
 0x191   : > { %1497 = vmatprep.mubr.f32.mxu1 %v5818_v34  ;;  %1189 = vmatprep.subr.bf16.mxu0 %v3570_v0  ;;  %v1646_v0 = vld [vmem:[#allocation7 + $0x110] sm:$0xff] }
 0x194   : > { %3261 = vmatmul.mubr.msk.f32.gmra.mxu1 %vm1258_vm0, %v1235_v1  ;;  %v3568_v1 = vld [vmem:[#allocation2 + $0x70] ss:$24 sps:$4 sm:$0xff]  }
 0x195   : > { %1503 = vmatprep.mubr.f32.mxu1 %v5818_v34  ;;  %1190 = vmatpush1.bf16.msra.mxu0 %v3568_v1 }
 0x196   : > { %1191 = vmatprep.subr.bf16.mxu0 %v3573_v15 }
 0x198   : > { %3262 = vmatmul.mubr.msk.f32.gmra.mxu1 %vm1258_vm0, %v1236_v2  ;;  %v3571_v2 = vld [vmem:[#allocation2 + $0x40] ss:$24 sps:$4 sm:$0xff]  }
 0x199   : > { %1509 = vmatprep.mubr.f32.mxu1 %v5818_v34  ;;  %1192 = vmatpush1.bf16.msra.mxu0 %v3571_v2 }
 0x19c   : > { %3263 = vmatmul.mubr.msk.f32.gmra.mxu1 %vm1258_vm0, %v1237_v3  ;;  %v3576_v3 = vld [vmem:[#allocation2 + $0x14] ss:$24 sps:$4 sm:$0xff]  }
 0x19d   : > { %1515 = vmatprep.mubr.f32.mxu1 %v5818_v34  ;;  %1193 = vmatprep.subr.bf16.mxu0 %v3576_v3 }
 0x1a0   : > { %3264 = vmatmul.mubr.msk.f32.gmra.mxu1 %vm1258_vm0, %v1238_v4  ;;  %v3574_v4 = vld [vmem:[#allocation2 + $0x10] ss:$24 sps:$4 sm:$0xff]  }
 0x1a1   : > { %1521 = vmatprep.mubr.f32.mxu1 %v5818_v34  ;;  %1194 = vmatpush1.bf16.msra.mxu0 %v3574_v4 }
 0x1a2   : > { %1195 = vmatprep.subr.bf16.mxu0 %v3579_v5  ;;  %v1615_v5 = vld [vmem:[#allocation7 + $0x18] sm:$0xff] }
 0x1a4   : > { %3265 = vmatmul.mubr.msk.f32.gmra.mxu1 %vm1258_vm0, %v1239_v6  ;;  %v3577_v6 = vld [vmem:[#allocation2 + $0x2e0] ss:$24 sps:$4 sm:$0xff]  }
 0x1a5   : > { %1527 = vmatprep.mubr.f32.mxu1 %v5818_v34  ;;  %1196 = vmatpush2.bf16.msra.mxu0 %v3577_v6  ;;  %v1647_v6 = vld [vmem:[#allocation7 + $0x118] sm:$0xff] }
 0x1a6   : > { %1197 = vmatprep.subr.bf16.mxu0 %v3582_v7 }
 0x1a8   : > { %3266 = vmatmul.mubr.msk.f32.gmra.mxu1 %vm1258_vm0, %v1240_v9  ;;  %v3585_v9 = vld [vmem:[#allocation2 + $0x284] ss:$24 sps:$4 sm:$0xff]  }
 0x1a9   : > { %1533 = vmatprep.mubr.f32.mxu1 %v5818_v34  ;;  %1198 = vmatpush2.bf16.msra.mxu0 %v3580_v8 }
 0x1aa   : > { %1199 = vmatprep.subr.bf16.mxu0 %v3585_v9 }
 0x1ac   : > { %3267 = vmatmul.mubr.msk.f32.gmra.mxu1 %vm1258_vm0, %v1241_v12  ;;  %v3586_v12 = vld [vmem:[#allocation2 + $0x250] ss:$24 sps:$4 sm:$0xff]  }
 0x1ad   : > { %1539 = vmatprep.mubr.f32.mxu1 %v5818_v34  ;;  %1200 = vmatpush2.bf16.msra.mxu0 %v3583_v10 }
 0x1ae   : > { %1201 = vmatprep.subr.bf16.mxu0 %v3588_v11 }
 0x1b0   : > { %3268 = vmatmul.mubr.msk.f32.gmra.mxu1 %vm1258_vm0, %v1242_v16  ;;  %v3594_v16 = vld [vmem:[#allocation2 + $0x1f4] ss:$24 sps:$4 sm:$0xff]  }
 0x1b1   : > { %1545 = vmatprep.mubr.f32.mxu1 %v5818_v34  ;;  %1202 = vmatpush2.bf16.msra.mxu0 %v3586_v12 }
 0x1b2   : > { %1203 = vmatprep.subr.bf16.mxu0 %v3591_v13 }
 0x1b4   : > { %3269 = vmatmul.mubr.msk.f32.gmra.mxu1 %vm1258_vm0, %v1243_v19  ;;  %v3595_v19 = vld [vmem:[#allocation2 + $0x1c0] ss:$24 sps:$4 sm:$0xff]  }
 0x1b5   : > { %1551 = vmatprep.mubr.f32.mxu1 %v5818_v34  ;;  %1204 = vmatpush2.bf16.msra.mxu0 %v3589_v14  ;;  %v1616_v14 = vld [vmem:[#allocation7 + $0x20] sm:$0xff] }
 0x1b6   : > { %1205 = vmatprep.subr.bf16.mxu0 %v3594_v16  ;;  %v1648_v16 = vld [vmem:[#allocation7 + $0x120] sm:$0xff] }
 0x1b8   : > { %3270 = vmatmul.mubr.msk.f32.gmra.mxu1 %vm1258_vm0, %v1244_v22 }
 0x1b9   : > { %1557 = vmatprep.mubr.f32.mxu1 %v5818_v34  ;;  %1206 = vmatpush2.bf16.msra.mxu0 %v3592_v17 }
 0x1ba   : > { %1207 = vmatprep.subr.bf16.mxu0 %v3597_v18 }
 0x1bc   : > { %3271 = vmatmul.mubr.msk.f32.gmra.mxu1 %vm1258_vm0, %v1245_v25 }
 0x1bd   : > { %1563 = vmatprep.mubr.f32.mxu1 %v5818_v34  ;;  %1208 = vmatpush2.bf16.msra.mxu0 %v3595_v19 }
 0x1be   : > { %1209 = vmatprep.subr.bf16.mxu0 %v3600_v20 }
 0x1c0   : > { %3272 = vmatmul.mubr.msk.f32.gmra.mxu1 %vm1258_vm0, %v1246_v28 }
 0x1c1   : > { %1569 = vmatprep.mubr.f32.mxu1 %v5818_v34  ;;  %1210 = vmatpush2.bf16.msra.mxu0 %v3598_v21 }
 0x1c4   : > { %3273 = vmatmul.mubr.msk.f32.gmra.mxu1 %vm1258_vm0, %v1247_v31  ;;  %1212 = vmatmul.mubr.bf16.vlgmr.msra.gmra.mxu0 %v4080_v33 }
 0x1c5   : > { %1575 = vmatprep.mubr.f32.mxu1 %v5818_v34  ;;  %1932 = vmatprep.mubr.f32.mxu0 %v5818_v34 }
 0x1c8   : > { %3274 = vmatmul.mubr.msk.f32.gmra.mxu1 %vm1258_vm0, %v1248_v37 }
 0x1c9   : > { %1581 = vmatprep.mubr.f32.mxu1 %v5818_v34 }
 0x1cc   : > { %3275 = vmatmul.mubr.msk.f32.gmra.mxu1 %vm1258_vm0, %v1249_v40 }
 0x1cd   : > { %1587 = vmatprep.mubr.f32.mxu1 %v5818_v34 }
 0x1d0   : > { %3276 = vmatmul.mubr.msk.f32.gmra.mxu1 %vm1258_vm0, %v1250_v43 }
 0x1d1   : > { %1593 = vmatprep.mubr.f32.mxu1 %v5818_v34 }
 0x1d4   : > { %3277 = vmatmul.mubr.msk.f32.gmra.mxu1 %vm1258_vm0, %v1251_v46 }
 0x1d5   : > { %1599 = vmatprep.mubr.f32.mxu1 %v5818_v34 }
 0x1d8   : > { %3278 = vmatmul.mubr.msk.f32.gmra.mxu1 %vm1258_vm0, %v1252_v49 }
 0x1d9   : > { %1605 = vmatprep.mubr.f32.mxu1 %v5818_v34 }
 0x1dc   : > { %3279 = vmatmul.mubr.msk.f32.gmra.mxu1 %vm1258_vm0, %v1253_v52 }
 0x1dd   : > { %2603 = vmatprep.mubr.f32.mxu1 %v5818_v34 }
 0x220   : > { %v1421_v22 = vpop.f32.mrf.mxu1 }
 0x221   : > { %v4311_v61 = vmul.f32 %v1612_v55, %v1421_v22  ;;  %v1804_v62 = vmul.f32 %v1644_v56, %v1421_v22 }
 0x222   : > { %v1423_v23 = vpop.f32.mrf.mxu1 }
 0x223   : > { %6017 = vst [vmem:[#allocation29_spill] sm:$0xff] %v4311_v61  ;;  %v4315_v2 = vmul.f32 %v1613_v58, %v1423_v23  ;;  %v1805_v3 = vmul.f32 %v1645_v59, %v1423_v23 }
 0x224   : > { %v1427_v24 = vpop.f32.mrf.mxu1 }
 0x225   : > { %6019 = vst [vmem:[#allocation31_spill] sm:$0xff] %v4315_v2  ;;  %v4323_v11 = vmul.f32 %v1614_v63, %v1427_v24  ;;  %v1806_v12 = vmul.f32 %v1646_v0, %v1427_v24  ;;  %v1652_v24 = vld [vmem:[#allocation7 + $0x140] sm:$0xff] }
 0x226   : > { %v1429_v25 = vpop.f32.mrf.mxu1 }
 0x227   : > { %6022 = vst [vmem:[#allocation34_spill] sm:$0xff] %v4323_v11  ;;  %v4331_v21 = vmul.f32 %v1615_v5, %v1429_v25  ;;  %v1807_v22 = vmul.f32 %v1647_v6, %v1429_v25  ;;  %v4451_v11 = vld [vmem:[#allocation7 + $0x168] sm:$0xff] }
 0x228   : > { %v4255_v26 = vpop.f32.mrf.mxu1  ;;  %6063 = vst [vmem:[#allocation75_spill] sm:$0xff] %v4451_v11 }
 0x229   : > { %6025 = vst [vmem:[#allocation37_spill] sm:$0xff] %v4331_v21 }
 0x22a   : > { %v4257_v27 = vpop.f32.mrf.mxu1 }
 0x22c   : > { %v4259_v28 = vpop.f32.mrf.mxu1 }
 0x22e   : > { %v4261_v29 = vpop.f32.mrf.mxu1 }
 0x230   : > { %v4263_v30 = vpop.f32.mrf.mxu1 }
 0x232   : > { %v4265_v31 = vpop.f32.mrf.mxu1 }
 0x234   : > { %v4267_v32 = vpop.f32.mrf.mxu1 }
 0x235   : > { %6006 = vst [vmem:[#allocation18_spill] sm:$0xff] %v4267_v32 }
 0x236   : > { %v4269_v33 = vpop.f32.mrf.mxu1 }
 0x237   : > { %6007 = vst [vmem:[#allocation19_spill] sm:$0xff] %v4269_v33 }
 0x238   : > { %v4271_v35 = vpop.f32.mrf.mxu1 }
 0x239   : > { %6008 = vst [vmem:[#allocation20_spill] sm:$0xff] %v4271_v35 }
 0x23a   : > { %v4273_v37 = vpop.f32.mrf.mxu1 }
 0x23b   : > { %6009 = vst [vmem:[#allocation21_spill] sm:$0xff] %v4273_v37 }
 0x23c   : > { %v4275_v38 = vpop.f32.mrf.mxu1 }
 0x23d   : > { %6010 = vst [vmem:[#allocation22_spill] sm:$0xff] %v4275_v38 }
 0x23e   : > { %v4277_v39 = vpop.f32.mrf.mxu1 }
 0x240   : > { %v4279_v40 = vpop.f32.mrf.mxu1 }
 0x242   : > { %v4281_v41 = vpop.f32.mrf.mxu1 }
 0x244   : > { %v4283_v42 = vpop.f32.mrf.mxu1 }
 0x246   : > { %v4285_v43 = vpop.f32.mrf.mxu1 }
 0x248   : > { %v4287_v44 = vpop.f32.mrf.mxu1 }
 0x24a   : > { %v4289_v45 = vpop.f32.mrf.mxu1 }
 0x24c   : > { %v4291_v46 = vpop.f32.mrf.mxu1 }
 0x24e   : > { %v4293_v47 = vpop.f32.mrf.mxu1 }
 0x250   : > { %v4295_v48 = vpop.f32.mrf.mxu1 }
 0x251   : > { %6011 = vst [vmem:[#allocation23_spill] sm:$0xff] %v4295_v48 }
 0x252   : > { %v4297_v49 = vpop.f32.mrf.mxu1 }
 0x254   : > { %v4299_v50 = vpop.f32.mrf.mxu1 }
 0x255   : > { %6012 = vst [vmem:[#allocation24_spill] sm:$0xff] %v4299_v50 }
 0x256   : > { %v4301_v51 = vpop.f32.mrf.mxu1 }
 0x257   : > { %6013 = vst [vmem:[#allocation25_spill] sm:$0xff] %v4301_v51 }
 0x258   : > { %v4303_v52 = vpop.f32.mrf.mxu1 }
 0x25a   : > { %v4305_v53 = vpop.f32.mrf.mxu1 }
 0x25b   : > { %6014 = vst [vmem:[#allocation26_spill] sm:$0xff] %v4305_v53 }
 0x25c   : > { %v4307_v54 = vpop.f32.mrf.mxu1 }
 0x25d   : > { %6015 = vst [vmem:[#allocation27_spill] sm:$0xff] %v4307_v54 }
 0x25e   : > { %v4309_v57 = vpop.f32.mrf.mxu1 }
 0x25f   : > { %6016 = vst [vmem:[#allocation28_spill] sm:$0xff] %v4309_v57 }
 0x260   : > { %v1517_v60 = vpop.f32.mrf.mxu1 }
 0x261   : > { %v4313_v1 = vmul.f32 %v1644_v56, %v1517_v60  ;;  %v1772_v15 = vmul.f32 %v1612_v55, %v1517_v60  ;;  %v1617_v55 = vld [vmem:[#allocation7 + $0x28] sm:$0xff] }
 0x262   : > { %v1519_v4 = vpop.f32.mrf.mxu1  ;;  %v1649_v56 = vld [vmem:[#allocation7 + $0x128] sm:$0xff] }
 0x263   : > { %6018 = vst [vmem:[#allocation30_spill] sm:$0xff] %v4313_v1  ;;  %v4319_v8 = vadd.f32 %v1804_v62, %v1772_v15  ;;  %v4321_v9 = vmul.f32 %v1645_v59, %v1519_v4  ;;  %v1773_v10 = vmul.f32 %v1613_v58, %v1519_v4  ;;  %v4340_v62 = vmul.f32 %v1616_v14, %v4255_v26  ;;  %v1618_v15 = vld [vmem:[#allocation7 + $0x30] sm:$0xff] }
 0x264   : > { %v1523_v13 = vpop.f32.mrf.mxu1 }
 0x265   : > { %6020 = vst [vmem:[#allocation32_spill] sm:$0xff] %v4319_v8  ;;  %6021 = vst [vmem:[#allocation33_spill] sm:$0xff] %v4321_v9  ;;  %v4327_v18 = vadd.f32 %v1805_v3, %v1773_v10  ;;  %v4329_v19 = vmul.f32 %v1646_v0, %v1523_v13  ;;  %v1774_v20 = vmul.f32 %v1614_v63, %v1523_v13  ;;  %v1650_v3 = vld [vmem:[#allocation7 + $0x130] sm:$0xff] }
 0x266   : > { %v1525_v23 = vpop.f32.mrf.mxu1  ;;  %6028 = vst [vmem:[#allocation40_spill] sm:$0xff] %v4340_v62  ;;  %v1808_v0 = vmul.f32 %v1648_v16, %v4255_v26  ;;  %v1653_v26 = vld [vmem:[#allocation7 + $0x148] sm:$0xff] }
 0x267   : > { %6023 = vst [vmem:[#allocation35_spill] sm:$0xff] %v4327_v18  ;;  %6024 = vst [vmem:[#allocation36_spill] sm:$0xff] %v4329_v19  ;;  %v4335_v58 = vadd.f32 %v1806_v12, %v1774_v20  ;;  %v4337_v59 = vmul.f32 %v1647_v6, %v1525_v23  ;;  %v1775_v60 = vmul.f32 %v1615_v5, %v1525_v23  ;;  %v1619_v20 = vld [vmem:[#allocation7 + $0x38] sm:$0xff] }
 0x268   : > { %v1529_v63 = vpop.f32.mrf.mxu1  ;;  %v4350_v6 = vmul.f32 %v1617_v55, %v4257_v27  ;;  %v1809_v5 = vmul.f32 %v1649_v56, %v4257_v27  ;;  %v1651_v23 = vld [vmem:[#allocation7 + $0x138] sm:$0xff] }
 0x269   : > { %6026 = vst [vmem:[#allocation38_spill] sm:$0xff] %v4335_v58  ;;  %6027 = vst [vmem:[#allocation39_spill] sm:$0xff] %v4337_v59  ;;  %v4345_v4 = vadd.f32 %v1807_v22, %v1775_v60  ;;  %v4347_v10 = vmul.f32 %v1648_v16, %v1529_v63  ;;  %v1776_v12 = vmul.f32 %v1616_v14, %v1529_v63  ;;  %v1620_v63 = vld [vmem:[#allocation7 + $0x40] sm:$0xff]  ;;  %v4453_v59 = vld [vmem:[#allocation7 + $0x70] sm:$0xff] }
 0x26a   : > { %6031 = vst [vmem:[#allocation43_spill] sm:$0xff] %v4350_v6  ;;  %v1531_v13 = vpop.f32.mrf.mxu1  ;;  %v4360_v16 = vmul.f32 %v1618_v15, %v4259_v28  ;;  %v1810_v14 = vmul.f32 %v1650_v3, %v4259_v28  ;;  %v4469_v6 = vld [vmem:[#allocation7 + $0x78] sm:$0xff] }
 0x26b   : > { %6029 = vst [vmem:[#allocation41_spill] sm:$0xff] %v4345_v4  ;;  %6030 = vst [vmem:[#allocation42_spill] sm:$0xff] %v4347_v10  ;;  %v4355_v7 = vadd.f32 %v1808_v0, %v1776_v12  ;;  %v4357_v17 = vmul.f32 %v1649_v56, %v1531_v13  ;;  %v1777_v22 = vmul.f32 %v1617_v55, %v1531_v13  ;;  %v1621_v13 = vld [vmem:[#allocation7 + $0x48] sm:$0xff] }
 0x26c   : > { %6034 = vst [vmem:[#allocation46_spill] sm:$0xff] %v4360_v16  ;;  %v1535_v60 = vpop.f32.mrf.mxu1  ;;  %v4370_v56 = vmul.f32 %v1619_v20, %v4261_v29  ;;  %v1811_v55 = vmul.f32 %v1651_v23, %v4261_v29  ;;  %v4475_v16 = vmul.f32 %v4453_v59, %v4275_v38  ;;  %v4627_v38 = vld [vmem:[#allocation7 + $0x1d8] sm:$0xff] }
 0x26d   : > { %6032 = vst [vmem:[#allocation44_spill] sm:$0xff] %v4355_v7  ;;  %6033 = vst [vmem:[#allocation45_spill] sm:$0xff] %v4357_v17  ;;  %v4365_v25 = vadd.f32 %v1809_v5, %v1777_v22  ;;  %v4367_v34 = vmul.f32 %v1650_v3, %v1535_v60  ;;  %v1778_v0 = vmul.f32 %v1618_v15, %v1535_v60  ;;  %v4467_v17 = vld [vmem:[#allocation7 + $0x170] sm:$0xff] }
 0x26e   : > { %6037 = vst [vmem:[#allocation49_spill] sm:$0xff] %v4370_v56  ;;  %v1537_v12 = vpop.f32.mrf.mxu1  ;;  %v4380_v3 = vmul.f32 %v1620_v63, %v4263_v30  ;;  %v1812_v15 = vmul.f32 %v1652_v24, %v4263_v30  ;;  %6067 = vst [vmem:[#allocation79_spill] sm:$0xff] %v4467_v17  ;;  %v4483_v56 = vld [vmem:[#allocation7 + $0x178] sm:$0xff] }
 0x26f   : > { %6035 = vst [vmem:[#allocation47_spill] sm:$0xff] %v4365_v25  ;;  %6036 = vst [vmem:[#allocation48_spill] sm:$0xff] %v4367_v34  ;;  %v4375_v36 = vadd.f32 %v1810_v14, %v1778_v0  ;;  %v4377_v1 = vmul.f32 %v1651_v23, %v1537_v12  ;;  %v1779_v5 = vmul.f32 %v1619_v20, %v1537_v12  ;;  %v4393_v20 = vld [vmem:[#allocation7 + $0x50] sm:$0xff] }
 0x270   : > { %6040 = vst [vmem:[#allocation52_spill] sm:$0xff] %v4380_v3  ;;  %v1541_v22 = vpop.f32.mrf.mxu1  ;;  %v4390_v14 = vmul.f32 %v1621_v13, %v4265_v31  ;;  %v1813_v23 = vmul.f32 %v1653_v26, %v4265_v31  ;;  %6044 = vst [vmem:[#allocation56_spill] sm:$0xff] %v4393_v20  ;;  %v4409_v31 = vmul.f32 %v4393_v20, %v4267_v32 }
 0x271   : > { %6038 = vst [vmem:[#allocation50_spill] sm:$0xff] %v4375_v36  ;;  %6039 = vst [vmem:[#allocation51_spill] sm:$0xff] %v4377_v1  ;;  %v4385_v60 = vadd.f32 %v1811_v55, %v1779_v5  ;;  %v4387_v27 = vmul.f32 %v1652_v24, %v1541_v22  ;;  %v1780_v61 = vmul.f32 %v1620_v63, %v1541_v22  ;;  %v4401_v5 = vld [vmem:[#allocation7 + $0x150] sm:$0xff]  ;;  %v4403_v24 = vld [vmem:[#allocation7 + $0x58] sm:$0xff] }
 0x272   : > { %6043 = vst [vmem:[#allocation55_spill] sm:$0xff] %v4390_v14  ;;  %v1543_v0 = vpop.f32.mrf.mxu1  ;;  %6047 = vst [vmem:[#allocation59_spill] sm:$0xff] %v4401_v5  ;;  %v4437_v22 = vld [vmem:[#allocation7 + $0x68] sm:$0xff] }
 0x273   : > { %6041 = vst [vmem:[#allocation53_spill] sm:$0xff] %v4385_v60  ;;  %6042 = vst [vmem:[#allocation54_spill] sm:$0xff] %v4387_v27  ;;  %v4397_v12 = vadd.f32 %v1812_v15, %v1780_v61  ;;  %v4399_v28 = vmul.f32 %v1653_v26, %v1543_v0  ;;  %v1781_v55 = vmul.f32 %v1621_v13, %v1543_v0  ;;  %v4419_v26 = vld [vmem:[#allocation7 + $0x158] sm:$0xff]  ;;  %v4421_v13 = vld [vmem:[#allocation7 + $0x60] sm:$0xff] }
 0x274   : > { %6048 = vst [vmem:[#allocation60_spill] sm:$0xff] %v4403_v24  ;;  %v4405_v63 = vpop.f32.mrf.mxu1  ;;  %6050 = vst [vmem:[#allocation62_spill] sm:$0xff] %v4409_v31  ;;  %v4427_v0 = vmul.f32 %v4403_v24, %v4269_v33  ;;  %v4443_v2 = vmul.f32 %v4421_v13, %v4271_v35  ;;  %v4459_v10 = vmul.f32 %v4437_v22, %v4273_v37  ;;  %v4485_v27 = vld [vmem:[#allocation7 + $0x80] sm:$0xff]  ;;  %v4501_v31 = vld [vmem:[#allocation7 + $0x88] sm:$0xff] }
 0x275   : > { %6045 = vst [vmem:[#allocation57_spill] sm:$0xff] %v4397_v12  ;;  %6046 = vst [vmem:[#allocation58_spill] sm:$0xff] %v4399_v28  ;;  %v4413_v29 = vadd.f32 %v1813_v23, %v1781_v55  ;;  %v4417_v61 = vmul.f32 %v4401_v5, %v4405_v63  ;;  %v4435_v55 = vld [vmem:[#allocation7 + $0x160] sm:$0xff]  ;;  %v4491_v28 = vmul.f32 %v4469_v6, %v4277_v39  ;;  %v4597_v33 = vld [vmem:[#allocation7 + $0x1f8] sm:$0xff] }
 0x276   : > { %6049 = vst [vmem:[#allocation61_spill] sm:$0xff] %v4405_v63  ;;  %6053 = vst [vmem:[#allocation65_spill] sm:$0xff] %v4419_v26  ;;  %v4423_v15 = vpop.f32.mrf.mxu1  ;;  %v4607_v63 = vld [vmem:[#allocation7 + $0x1e8] sm:$0xff]  ;;  %v1835_v37 = vmul.f32 %v4597_v33, %v4309_v57 }
 0x277   : > { %6051 = vst [vmem:[#allocation63_spill] sm:$0xff] %v4413_v29  ;;  %6052 = vst [vmem:[#allocation64_spill] sm:$0xff] %v4417_v61  ;;  %v4433_v23 = vmul.f32 %v4419_v26, %v4423_v15  ;;  %v4499_v61 = vld [vmem:[#allocation7 + $0x180] sm:$0xff]  ;;  %v4641_v57 = vld [vmem:[#allocation7 + $0xc8] sm:$0xff] }
 0x278   : > { %6054 = vst [vmem:[#allocation66_spill] sm:$0xff] %v4421_v13  ;;  %6055 = vst [vmem:[#allocation67_spill] sm:$0xff] %v4423_v15  ;;  %v4439_v9 = vpop.f32.mrf.mxu1  ;;  %v4615_v15 = vld [vmem:[#allocation7 + $0xe0] sm:$0xff] }
 0x279   : > { %6056 = vst [vmem:[#allocation68_spill] sm:$0xff] %v4427_v0  ;;  %6057 = vst [vmem:[#allocation69_spill] sm:$0xff] %v4433_v23  ;;  %v4449_v30 = vmul.f32 %v4435_v55, %v4439_v9  ;;  %v4507_v0 = vmul.f32 %v4485_v27, %v4279_v40 }
 0x27a   : > { %6058 = vst [vmem:[#allocation70_spill] sm:$0xff] %v4435_v55  ;;  %6059 = vst [vmem:[#allocation71_spill] sm:$0xff] %v4437_v22  ;;  %v4455_v21 = vpop.f32.mrf.mxu1  ;;  %v4609_v55 = vld [vmem:[#allocation7 + $0xf8] sm:$0xff]  ;;  %v4633_v22 = vld [vmem:[#allocation7 + $0xd0] sm:$0xff] }
 0x27b   : > { %6060 = vst [vmem:[#allocation72_spill] sm:$0xff] %v4439_v9  ;;  %6061 = vst [vmem:[#allocation73_spill] sm:$0xff] %v4443_v2  ;;  %v4465_v19 = vmul.f32 %v4451_v11, %v4455_v21  ;;  %v4515_v2 = vld [vmem:[#allocation7 + $0x188] sm:$0xff]  ;;  %v4617_v11 = vld [vmem:[#allocation7 + $0x1e0] sm:$0xff] }
 0x27c   : > { %6062 = vst [vmem:[#allocation74_spill] sm:$0xff] %v4449_v30  ;;  %6064 = vst [vmem:[#allocation76_spill] sm:$0xff] %v4455_v21  ;;  %v4471_v34 = vpop.f32.mrf.mxu1  ;;  %v4635_v21 = vld [vmem:[#allocation7 + $0x1d0] sm:$0xff] }
 0x27d   : > { %6065 = vst [vmem:[#allocation77_spill] sm:$0xff] %v4459_v10  ;;  %6066 = vst [vmem:[#allocation78_spill] sm:$0xff] %v4465_v19  ;;  %v4481_v62 = vmul.f32 %v4467_v17, %v4471_v34  ;;  %v4517_v19 = vld [vmem:[#allocation7 + $0x90] sm:$0xff]  ;;  %v4625_v17 = vld [vmem:[#allocation7 + $0xd8] sm:$0xff] }
 0x27e   : > { %6068 = vst [vmem:[#allocation80_spill] sm:$0xff] %v4475_v16  ;;  %v4487_v3 = vpop.f32.mrf.mxu1  ;;  %6070 = vst [vmem:[#allocation82_spill] sm:$0xff] %v4491_v28  ;;  %v4533_v28 = vld [vmem:[#allocation7 + $0x98] sm:$0xff]  ;;  %v4539_v18 = vmul.f32 %v4517_v19, %v4283_v42 }
 0x27f   : > { %6069 = vst [vmem:[#allocation81_spill] sm:$0xff] %v4481_v62  ;;  %v4497_v1 = vmul.f32 %v4483_v56, %v4487_v3  ;;  %6072 = vst [vmem:[#allocation84_spill] sm:$0xff] %v4507_v0  ;;  %v4523_v62 = vmul.f32 %v4501_v31, %v4281_v41  ;;  %v4549_v0 = vld [vmem:[#allocation7 + $0xa0] sm:$0xff]  ;;  %v4555_v7 = vmul.f32 %v4533_v28, %v4285_v43 }
 0x280   : > { %v4503_v23 = vpop.f32.mrf.mxu1  ;;  %6076 = vst [vmem:[#allocation88_spill] sm:$0xff] %v4539_v18  ;;  %v4569_v36 = vmul.f32 %v4549_v0, %v4287_v44  ;;  %6086 = vst [vmem:[#allocation98_spill] sm:$0xff] %v4597_v33  ;;  %v4643_v33 = vld [vmem:[#allocation7 + $0x1c8] sm:$0xff] }
 0x281   : > { %6071 = vst [vmem:[#allocation83_spill] sm:$0xff] %v4497_v1  ;;  %v4513_v14 = vmul.f32 %v4499_v61, %v4503_v23  ;;  %6074 = vst [vmem:[#allocation86_spill] sm:$0xff] %v4523_v62  ;;  %v4531_v1 = vld [vmem:[#allocation7 + $0x190] sm:$0xff] }
 0x282   : > { %v4519_v10 = vpop.f32.mrf.mxu1  ;;  %6078 = vst [vmem:[#allocation90_spill] sm:$0xff] %v4555_v7  ;;  %6080 = vst [vmem:[#allocation92_spill] sm:$0xff] %v4569_v36  ;;  %v4605_v36 = vld [vmem:[#allocation7 + $0xe8] sm:$0xff] }
 0x283   : > { %6073 = vst [vmem:[#allocation85_spill] sm:$0xff] %v4513_v14  ;;  %v4529_v30 = vmul.f32 %v4515_v2, %v4519_v10  ;;  %v4547_v14 = vld [vmem:[#allocation7 + $0x198] sm:$0xff]  ;;  %6090 = vst [vmem:[#allocation102_spill] sm:$0xff] %v4605_v36 }
 0x284   : > { %v4535_v8 = vpop.f32.mrf.mxu1  ;;  %6091 = vst [vmem:[#allocation103_spill] sm:$0xff] %v4609_v55  ;;  %6093 = vst [vmem:[#allocation105_spill] sm:$0xff] %v4615_v15 }
 0x285   : > { %6075 = vst [vmem:[#allocation87_spill] sm:$0xff] %v4529_v30  ;;  %v4545_v16 = vmul.f32 %v4531_v1, %v4535_v8  ;;  %v4563_v30 = vld [vmem:[#allocation7 + $0x1a0] sm:$0xff]  ;;  %6094 = vst [vmem:[#allocation106_spill] sm:$0xff] %v4625_v17 }
 0x286   : > { %v4551_v4 = vpop.f32.mrf.mxu1  ;;  %6095 = vst [vmem:[#allocation107_spill] sm:$0xff] %v4633_v22  ;;  %6096 = vst [vmem:[#allocation108_spill] sm:$0xff] %v4641_v57 }
 0x287   : > { %6077 = vst [vmem:[#allocation89_spill] sm:$0xff] %v4545_v16  ;;  %v4561_v58 = vmul.f32 %v4547_v14, %v4551_v4  ;;  %v4601_v16 = vld [vmem:[#allocation7 + $0xf0] sm:$0xff] }
 0x288   : > { %v4565_v62 = vpop.f32.mrf.mxu1  ;;  %6088 = vst [vmem:[#allocation100_spill] sm:$0xff] %v4601_v16 }
 0x289   : > { %6079 = vst [vmem:[#allocation91_spill] sm:$0xff] %v4561_v58  ;;  %v4575_v12 = vmul.f32 %v4563_v30, %v4565_v62 }
 0x28a   : > { %v4577_v25 = vpop.f32.mrf.mxu1 }
 0x28b   : > { %6081 = vst [vmem:[#allocation93_spill] sm:$0xff] %v4575_v12  ;;  %v4603_v12 = vld [vmem:[#allocation7 + $0x1f0] sm:$0xff] }
 0x28c   : > { %v4581_v18 = vpop.f32.mrf.mxu1  ;;  %6089 = vst [vmem:[#allocation101_spill] sm:$0xff] %v4603_v12 }
 0x28e   : > { %v4583_v29 = vpop.f32.mrf.mxu1 }
 0x290   : > { %v4585_v5 = vpop.f32.mrf.mxu1 }
 0x292   : > { %v4587_v32 = vpop.f32.mrf.mxu1 }
 0x294   : > { %v4589_v26 = vpop.f32.mrf.mxu1 }
 0x295   : > { %6082 = vst [vmem:[#allocation94_spill] sm:$0xff] %v4589_v26 }
 0x296   : > { %v4591_v60 = vpop.f32.mrf.mxu1 }
 0x297   : > { %6083 = vst [vmem:[#allocation95_spill] sm:$0xff] %v4591_v60 }
 0x298   : > { %v4593_v58 = vpop.f32.mrf.mxu1 }
 0x299   : > { %6084 = vst [vmem:[#allocation96_spill] sm:$0xff] %v4593_v58 }
 0x29a   : > { %v4595_v7 = vpop.f32.mrf.mxu1 }
 0x29b   : > { %6085 = vst [vmem:[#allocation97_spill] sm:$0xff] %v4595_v7  ;;  %v1801_v13 = vmul.f32 %v4605_v36, %v4595_v7  ;;  %v1833_v36 = vmul.f32 %v4607_v63, %v4305_v53  ;;  %v1799_v7 = vmul.f32 %v4625_v17, %v4591_v60  ;;  %v1831_v53 = vmul.f32 %v4627_v38, %v4301_v51  ;;  %v4657_v17 = vld [vmem:[#allocation7 + $0xb8] sm:$0xff]  ;;  %v4667_v51 = vld [vmem:[#allocation7 + $0x1b0] sm:$0xff] }
 0x29c   : > { %v4599_v20 = vpop.f32.mrf.mxu1  ;;  %6098 = vst [vmem:[#allocation110_spill] sm:$0xff] %v4657_v17  ;;  %v4659_v60 = vld [vmem:[#allocation7 + $0x1b8] sm:$0xff] }
 0x29d   : > { %6087 = vst [vmem:[#allocation99_spill] sm:$0xff] %v4599_v20  ;;  %v1802_v35 = vmul.f32 %v4601_v16, %v4599_v20  ;;  %v1834_v16 = vmul.f32 %v4603_v12, %v4307_v54  ;;  %v1800_v20 = vmul.f32 %v4615_v15, %v4593_v58  ;;  %v1832_v54 = vmul.f32 %v4617_v11, %v4303_v52  ;;  %v4649_v12 = vld [vmem:[#allocation7 + $0xc0] sm:$0xff] }
 0x29e   : > { %v4613_v24 = vpop.f32.mrf.mxu1  ;;  %v1798_v15 = vmul.f32 %v4633_v22, %v4589_v26  ;;  %6097 = vst [vmem:[#allocation109_spill] sm:$0xff] %v4649_v12  ;;  %v1830_v22 = vmul.f32 %v4635_v21, %v4299_v50  ;;  %v4665_v26 = vld [vmem:[#allocation7 + $0xb0] sm:$0xff]  ;;  %v4675_v50 = vld [vmem:[#allocation7 + $0x1a8] sm:$0xff] }
 0x29f   : > { %6092 = vst [vmem:[#allocation104_spill] sm:$0xff] %v4613_v24  ;;  %v1803_v9 = vmul.f32 %v4609_v55, %v4613_v24  ;;  %v1866_v58 = vadd.f32 %v1834_v16, %v1802_v35  ;;  %v4651_v24 = vld [vmem:[#allocation7 + $0x1c0] sm:$0xff]  ;;  %v1796_v35 = vmul.f32 %v4649_v12, %v4585_v5  ;;  %v1864_v16 = vadd.f32 %v1832_v54, %v1800_v20 }
 0x2a0   : > { %v1828_v54 = vmul.f32 %v4651_v24, %v4295_v48  ;;  %v1862_v20 = vadd.f32 %v1830_v22, %v1798_v15  ;;  %v1827_v12 = vmul.f32 %v4659_v60, %v4293_v47  ;;  %v1825_v22 = vmul.f32 %v4675_v50, %v4289_v45 }
 0x2a1   : > { %v1867_v55 = vadd.f32 %v1835_v37, %v1803_v9  ;;  %v1797_v37 = vmul.f32 %v4641_v57, %v4587_v32  ;;  %v1865_v9 = vadd.f32 %v1833_v36, %v1801_v13  ;;  %v1829_v36 = vmul.f32 %v4643_v33, %v4297_v49  ;;  %v4673_v57 = vld [vmem:[#allocation7 + $0xa8] sm:$0xff] }
 0x2a2   : > { %v1795_v13 = vmul.f32 %v4657_v17, %v4583_v29  ;;  %v1793_v17 = vmul.f32 %v4673_v57, %v4577_v25  ;;  %v1860_v48 = vadd.f32 %v1828_v54, %v1796_v35  ;;  %v1791_v15 = vmul.f32 %v4533_v28, %v4551_v4 }
 0x2a3   : > { %1868 = vmatprep.subr.mxu0 %v1867_v55  ;;  %v1863_v55 = vadd.f32 %v1831_v53, %v1799_v7  ;;  %v1861_v53 = vadd.f32 %v1829_v36, %v1797_v37  ;;  %v1826_v7 = vmul.f32 %v4667_v51, %v4291_v46  ;;  %v1824_v37 = vmul.f32 %v4563_v30, %v4287_v44  ;;  %v6103_v30 = vld [vmem:[#allocation72_spill] sm:$0xff] }
 0x2a4   : > { %1869 = vmatpush1.msra.mxu0 %v1866_v58  ;;  %v1794_v58 = vmul.f32 %v4665_v26, %v4581_v18  ;;  %v1790_v36 = vmul.f32 %v4517_v19, %v4535_v8  ;;  %v1857_v35 = vadd.f32 %v1825_v22, %v1793_v17  ;;  %v1822_v4 = vmul.f32 %v4531_v1, %v4283_v42 }
 0x2a5   : > { %1870 = vmatprep.subr.mxu0 %v1865_v9  ;;  %v1792_v9 = vmul.f32 %v4549_v0, %v4565_v62  ;;  %v1823_v62 = vmul.f32 %v4547_v14, %v4285_v43  ;;  %v1789_v0 = vmul.f32 %v4501_v31, %v4519_v10  ;;  %v1788_v28 = vmul.f32 %v4485_v27, %v4503_v23  ;;  %v6099_v10 = vld [vmem:[#allocation76_spill] sm:$0xff]  ;;  %v6100_v27 = vld [vmem:[#allocation71_spill] sm:$0xff] }
 0x2a6   : > { %1871 = vmatpush1.msra.mxu0 %v1864_v16  ;;  %v1859_v16 = vadd.f32 %v1827_v12, %v1795_v13  ;;  %v1821_v8 = vmul.f32 %v4515_v2, %v4281_v41  ;;  %v1820_v17 = vmul.f32 %v4499_v61, %v4279_v40  ;;  %v1786_v19 = vmul.f32 %v4453_v59, %v4471_v34  ;;  %v6101_v2 = vld [vmem:[#allocation22_spill] sm:$0xff]  ;;  %v6105_v61 = vld [vmem:[#allocation21_spill] sm:$0xff]  ;;  %v6106_v34 = vld [vmem:[#allocation75_spill] sm:$0xff] }
 0x2a7   : > { %1872 = vmatprep.subr.mxu0 %v1863_v55  ;;  %v1858_v55 = vadd.f32 %v1826_v7, %v1794_v58  ;;  %v1856_v44 = vadd.f32 %v1824_v37, %v1792_v9  ;;  %v1855_v43 = vadd.f32 %v1823_v62, %v1791_v15  ;;  %v1854_v42 = vadd.f32 %v1822_v4, %v1790_v36  ;;  %v6104_v12 = vld [vmem:[#allocation66_spill] sm:$0xff]  ;;  %v6107_v23 = vld [vmem:[#allocation67_spill] sm:$0xff]  ;;  %v6108_v13 = vld [vmem:[#allocation60_spill] sm:$0xff] }
 0x2a8   : > { %1873 = vmatpush1.msra.mxu0 %v1862_v20  ;;  %v1819_v1 = vmul.f32 %v4483_v56, %v4277_v39  ;;  %v1785_v14 = vmul.f32 %v6100_v27, %v6099_v10  ;;  %v1853_v41 = vadd.f32 %v1821_v8, %v1789_v0  ;;  %v1784_v31 = vmul.f32 %v6104_v12, %v6103_v30  ;;  %v6109_v56 = vld [vmem:[#allocation20_spill] sm:$0xff]  ;;  %v6110_v58 = vld [vmem:[#allocation70_spill] sm:$0xff]  ;;  %v6113_v15 = vld [vmem:[#allocation19_spill] sm:$0xff] }
 0x2a9   : > { %1874 = vmatprep.subr.mxu0 %v1861_v53  ;;  %v1852_v40 = vadd.f32 %v1820_v17, %v1788_v28  ;;  %v1817_v59 = vmul.f32 %v6106_v34, %v6105_v61  ;;  %v1783_v54 = vmul.f32 %v6108_v13, %v6107_v23  ;;  %v1816_v20 = vmul.f32 %v6110_v58, %v6109_v56  ;;  %v6111_v53 = vld [vmem:[#allocation61_spill] sm:$0xff]  ;;  %v6112_v7 = vld [vmem:[#allocation56_spill] sm:$0xff]  ;;  %v6116_v62 = vld [vmem:[#allocation59_spill] sm:$0xff] }
 0x2aa   : > { %1875 = vmatpush1.msra.mxu0 %v1860_v48  ;;  %v1787_v48 = vmul.f32 %v4469_v6, %v4487_v3  ;;  %v6102_v6 = vld [vmem:[#allocation79_spill] sm:$0xff]  ;;  %v1782_v9 = vmul.f32 %v6112_v7, %v6111_v53  ;;  %v6118_v8 = vld [vmem:[#allocation57_spill] sm:$0xff]  ;;  %v6121_v17 = vld [vmem:[#allocation104_spill] sm:$0xff] }
 0x2ab   : > { %1876 = vmatprep.subr.mxu0 %v1859_v16  ;;  %v1818_v3 = vmul.f32 %v6102_v6, %v6101_v2  ;;  %v6114_v16 = vld [vmem:[#allocation65_spill] sm:$0xff]  ;;  %v1849_v36 = vadd.f32 %v1817_v59, %v1785_v14  ;;  %v6124_v10 = vld [vmem:[#allocation99_spill] sm:$0xff]  ;;  %v6127_v2 = vld [vmem:[#allocation28_spill] sm:$0xff] }
 0x2ac   : > { %1877 = vmatpush1.msra.mxu0 %v1858_v55  ;;  %v1851_v39 = vadd.f32 %v1819_v1, %v1787_v48  ;;  %v1815_v37 = vmul.f32 %v6114_v16, %v6113_v15  ;;  %v6115_v55 = vld [vmem:[#allocation18_spill] sm:$0xff]  ;;  %v6119_v48 = vld [vmem:[#allocation53_spill] sm:$0xff]  ;;  %v6123_v1 = vld [vmem:[#allocation47_spill] sm:$0xff] }
 0x2ad   : > { %1878 = vmatprep.subr.mxu0 %v1857_v35  ;;  %v1850_v22 = vadd.f32 %v1818_v3, %v1786_v19  ;;  %v1814_v0 = vmul.f32 %v6116_v62, %v6115_v55  ;;  %v1848_v35 = vadd.f32 %v1816_v20, %v1784_v31  ;;  %v6122_v19 = vld [vmem:[#allocation98_spill] sm:$0xff]  ;;  %v6125_v27 = vld [vmem:[#allocation101_spill] sm:$0xff]  ;;  %v6128_v6 = vld [vmem:[#allocation103_spill] sm:$0xff] }
 0x2ae   : > { %1879 = vmatpush1.msra.mxu0 %v1856_v44  ;;  %v1847_v4 = vadd.f32 %v1815_v37, %v1783_v54  ;;  %v6117_v44 = vld [vmem:[#allocation63_spill] sm:$0xff]  ;;  %v1738_v14 = vmul.f32 %v6125_v27, %v6124_v10  ;;  %v1707_v3 = vmul.f32 %v6128_v6, %v6127_v2  ;;  %v6129_v30 = vld [vmem:[#allocation97_spill] sm:$0xff]  ;;  %v6132_v61 = vld [vmem:[#allocation100_spill] sm:$0xff]  ;;  %v1729_v27 = vmul.f32 %v4675_v50, %v4577_v25 }
 0x2af   : > { %1880 = vmatprep.subr.mxu0 %v1855_v43  ;;  %v1846_v28 = vadd.f32 %v1814_v0, %v1782_v9  ;;  %v6120_v43 = vld [vmem:[#allocation50_spill] sm:$0xff]  ;;  %v1737_v12 = vmul.f32 %v4607_v63, %v6129_v30  ;;  %v6130_v31 = vld [vmem:[#allocation41_spill] sm:$0xff]  ;;  %v6133_v59 = vld [vmem:[#allocation96_spill] sm:$0xff]  ;;  %v1733_v0 = vmul.f32 %v4643_v33, %v4587_v32  ;;  %v1731_v32 = vmul.f32 %v4659_v60, %v4583_v29 }
 0x2b0   : > { %1881 = vmatpush1.msra.mxu0 %v1854_v42  ;;  %v1739_v42 = vmul.f32 %v6122_v19, %v6121_v17  ;;  %v1736_v23 = vmul.f32 %v4617_v11, %v6133_v59  ;;  %v6134_v13 = vld [vmem:[#allocation38_spill] sm:$0xff]  ;;  %v6138_v20 = vld [vmem:[#allocation95_spill] sm:$0xff]  ;;  %v6140_v9 = vld [vmem:[#allocation105_spill] sm:$0xff]  ;;  %v1698_v29 = vmul.f32 %v4665_v26, %v4291_v46 }
 0x2b1   : > { %1882 = vmatprep.subr.mxu0 %v1853_v41  ;;  %v6126_v41 = vld [vmem:[#allocation44_spill] sm:$0xff]  ;;  %v4753_v54 = vld [vmem:[#allocation5 + $0x8] sm:$0xff]  ;;  %v1735_v53 = vmul.f32 %v4627_v38, %v6138_v20  ;;  %v6139_v63 = vld [vmem:[#allocation35_spill] sm:$0xff] }
 0x2b2   : > { %1883 = vmatpush1.msra.mxu0 %v1852_v40  ;;  %v6131_v40 = vld [vmem:[#allocation27_spill] sm:$0xff]  ;;  %6135 = vst [vmem:[#allocation76_spill] sm:$0xff] %v4753_v54  ;;  %v6137_v56 = vld [vmem:[#allocation102_spill] sm:$0xff]  ;;  %v1771_v7 = vsub.f32 %v1707_v3, %v1739_v42  ;;  %v6142_v37 = vld [vmem:[#allocation32_spill] sm:$0xff] }
 0x2b3   : > { %1884 = vmatprep.subr.mxu0 %v1851_v39  ;;  %v1706_v34 = vmul.f32 %v6132_v61, %v6131_v40  ;;  %v6136_v39 = vld [vmem:[#allocation26_spill] sm:$0xff]  ;;  %v6145_v38 = vld [vmem:[#allocation24_spill] sm:$0xff]  ;;  %v6150_v17 = vld [vmem:[#allocation23_spill] sm:$0xff] }
 0x2b4   : > { %1885 = vmatpush1.msra.mxu0 %v1850_v22  ;;  %v1705_v58 = vmul.f32 %v6137_v56, %v6136_v39  ;;  %v1704_v22 = vmul.f32 %v6140_v9, %v4303_v52  ;;  %v6141_v15 = vld [vmem:[#allocation94_spill] sm:$0xff]  ;;  %v1732_v52 = vmul.f32 %v4651_v24, %v4585_v5  ;;  %v6151_v19 = vld [vmem:[#allocation109_spill] sm:$0xff]  ;;  %v1730_v5 = vmul.f32 %v4667_v51, %v4581_v18  ;;  %v6153_v50 = vld [vmem:[#allocation92_spill] sm:$0xff] }
 0x2b5   : > { %1886 = vmatprep.subr.mxu0 %v1849_v36  ;;  %v1734_v16 = vmul.f32 %v4635_v21, %v6141_v15  ;;  %v1770_v11 = vsub.f32 %v1706_v34, %v1738_v14  ;;  %v6143_v36 = vld [vmem:[#allocation25_spill] sm:$0xff]  ;;  %v6144_v55 = vld [vmem:[#allocation106_spill] sm:$0xff]  ;;  %v1700_v42 = vmul.f32 %v6151_v19, %v6150_v17  ;;  %v1697_v51 = vmul.f32 %v4673_v57, %v4289_v45  ;;  %v6157_v26 = vld [vmem:[#allocation91_spill] sm:$0xff] }
 0x2b6   : > { %1887 = vmatpush1.msra.mxu0 %v1848_v35  ;;  %v1703_v62 = vmul.f32 %v6144_v55, %v6143_v36  ;;  %v1769_v35 = vsub.f32 %v1705_v58, %v1737_v12  ;;  %v1768_v21 = vsub.f32 %v1704_v22, %v1736_v23  ;;  %v6154_v25 = vld [vmem:[#allocation93_spill] sm:$0xff]  ;;  %v6156_v46 = vld [vmem:[#allocation90_spill] sm:$0xff]  ;;  %v6159_v6 = vld [vmem:[#allocation88_spill] sm:$0xff] }
 0x2b7   : > { %1888 = vmatprep.subr.mxu0 %v1847_v4  ;;  %v6146_v4 = vld [vmem:[#allocation107_spill] sm:$0xff]  ;;  %v1764_v60 = vsub.f32 %v1700_v42, %v1732_v52  ;;  %v1761_v14 = vsub.f32 %v1697_v51, %v1729_v27  ;;  %v6158_v2 = vsub.f32 %v6156_v46, %v6157_v26  ;;  %v6160_v3 = vld [vmem:[#allocation89_spill] sm:$0xff]  ;;  %v6162_v45 = vld [vmem:[#allocation86_spill] sm:$0xff]  ;;  %v4866_v26 = vpop.f32.mrf.mxu0 }
 0x2b8   : > { %1889 = vmatpush1.msra.mxu0 %v1846_v28  ;;  %v1702_v28 = vmul.f32 %v6146_v4, %v6145_v38  ;;  %v1767_v33 = vsub.f32 %v1703_v62, %v1735_v53  ;;  %v6161_v30 = vsub.f32 %v6159_v6, %v6160_v3  ;;  %v6163_v57 = vld [vmem:[#allocation87_spill] sm:$0xff]  ;;  %v6166_v40 = vld [vmem:[#allocation85_spill] sm:$0xff]  ;;  %v6168_v34 = vld [vmem:[#allocation82_spill] sm:$0xff]  ;;  %6218 = vst [vmem:[#allocation72_spill] sm:$0xff] %v4866_v26 }
 0x2b9   : > { %1890 = vmatprep.subr.mxu0 %v6117_v44  ;;  %v6147_v44 = vmov 0.0   ;;  %v6164_v12 = vsub.f32 %v6162_v45, %v6163_v57  ;;  %v6169_v59 = vld [vmem:[#allocation83_spill] sm:$0xff]  ;;  %v6172_v39 = vld [vmem:[#allocation81_spill] sm:$0xff]  ;;  %v6175_v20 = vld [vmem:[#allocation78_spill] sm:$0xff] }
 0x2ba   : > { %1891 = vmatpush1.msra.mxu0 %v6118_v8  ;;  %v4775_v8 = vld [vmem:[#allocation5 + $0x18] sm:$0xff]  ;;  %v1766_v24 = vsub.f32 %v1702_v28, %v1734_v16  ;;  %v6170_v23 = vsub.f32 %v6168_v34, %v6169_v59  ;;  %v6174_v58 = vld [vmem:[#allocation77_spill] sm:$0xff]  ;;  %v6186_v55 = vld [vmem:[#allocation55_spill] sm:$0xff] }
 0x2bb   : > { %1892 = vmatprep.subr.mxu0 %v6119_v48  ;;  %6148 = vst [vmem:[#allocation71_spill] sm:$0xff] %v4775_v8  ;;  %v6149_v48 = vld [vmem:[#allocation108_spill] sm:$0xff]  ;;  %v6176_v53 = vsub.f32 %v6174_v58, %v6175_v20  ;;  %v6181_v15 = vld [vmem:[#allocation69_spill] sm:$0xff]  ;;  %v6187_v62 = vld [vmem:[#allocation58_spill] sm:$0xff] }
 0x2bc   : > { %1893 = vmatpush1.msra.mxu0 %v6120_v43  ;;  %v1701_v43 = vmul.f32 %v6149_v48, %v4297_v49  ;;  %v6180_v22 = vld [vmem:[#allocation68_spill] sm:$0xff]  ;;  %v6190_v38 = vld [vmem:[#allocation54_spill] sm:$0xff]  ;;  %v6192_v28 = vld [vmem:[#allocation49_spill] sm:$0xff] }
 0x2bd   : > { %1894 = vmatprep.subr.mxu0 %v6123_v1  ;;  %v6152_v1 = vld [vmem:[#allocation110_spill] sm:$0xff]  ;;  %v6182_v16 = vsub.f32 %v6180_v22, %v6181_v15  ;;  %v6193_v52 = vld [vmem:[#allocation51_spill] sm:$0xff]  ;;  %v6199_v17 = vld [vmem:[#allocation45_spill] sm:$0xff] }
 0x2be   : > { %1895 = vmatpush1.msra.mxu0 %v6126_v41  ;;  %v1699_v10 = vmul.f32 %v6152_v1, %v4293_v47  ;;  %v1765_v49 = vsub.f32 %v1701_v43, %v1733_v0  ;;  %v1762_v47 = vsub.f32 %v1698_v29, %v1730_v5  ;;  %v6155_v41 = vsub.f32 %v6153_v50, %v6154_v25  ;;  %v6195_v48 = vld [vmem:[#allocation46_spill] sm:$0xff]  ;;  %v6196_v43 = vld [vmem:[#allocation48_spill] sm:$0xff]  ;;  %v6204_v1 = vld [vmem:[#allocation37_spill] sm:$0xff] }
 0x2bf   : > { %1896 = vmatprep.subr.mxu0 %v6130_v31  ;;  %v6165_v31 = vld [vmem:[#allocation84_spill] sm:$0xff]  ;;  %v6188_v0 = vsub.f32 %v6186_v55, %v6187_v62  ;;  %v6202_v5 = vld [vmem:[#allocation42_spill] sm:$0xff]  ;;  %v4852_v51 = vld [vmem:[#allocation5] sm:$0xff] }
 0x2c0   : > { %1897 = vmatpush1.msra.mxu0 %v6134_v13  ;;  %v1763_v18 = vsub.f32 %v1699_v10, %v1731_v32  ;;  %v6167_v61 = vsub.f32 %v6165_v31, %v6166_v40  ;;  %v6171_v13 = vld [vmem:[#allocation80_spill] sm:$0xff]  ;;  %v6197_v32 = vsub.f32 %v6195_v48, %v6196_v43  ;;  %v6205_v10 = vld [vmem:[#allocation39_spill] sm:$0xff]  ;;  %6210 = vst [vmem:[#allocation22_spill] sm:$0xff] %v4852_v51  ;;  %v6214_v50 = vld [vmem:[#allocation29_spill] sm:$0xff] }
 0x2c1   : > { %1898 = vmatprep.subr.mxu0 %v6139_v63  ;;  %v6173_v56 = vsub.f32 %v6171_v13, %v6172_v39  ;;  %v6178_v63 = vld [vmem:[#allocation74_spill] sm:$0xff]  ;;  %v6201_v42 = vld [vmem:[#allocation40_spill] sm:$0xff]  ;;  %v6206_v27 = vsub.f32 %v6204_v1, %v6205_v10  ;;  %v4862_v46 = vld [vmem:[#allocation5 + $0x10] sm:$0xff] }
 0x2c2   : > { %1899 = vmatpush1.msra.mxu0 %v6142_v37  ;;  %v6184_v37 = vld [vmem:[#allocation64_spill] sm:$0xff]  ;;  %v6215_v25 = vld [vmem:[#allocation30_spill] sm:$0xff]  ;;  %6217 = vst [vmem:[#allocation79_spill] sm:$0xff] %v4862_v46  ;;  %v6222_v59 = vld [vmem:[#allocation17_spill] sm:$0xff] }
 0x2c3   : > { %1933 = vmatmul.mubr.f32.vlgmr.msra.gmra.mxu0 %v4753_v54  ;;  %1945 = vmatprep.subr.mxu0 %v1771_v7  ;;  %v6177_v7 = vld [vmem:[#allocation73_spill] sm:$0xff]  ;;  %v6208_v29 = vld [vmem:[#allocation36_spill] sm:$0xff]  ;;  %v591_v13 = vsub.s32 4, %v6222_v59  ;;  %v3655_v43 = vld [vmem:[%s5805_s3 + $0x28] sm:$0xff] }
 0x2c4   : > { %1946 = vmatpush1.msra.mxu0 %v1770_v11  ;;  %1938 = vmatprep.mubr.f32.mxu0 %v6147_v44  ;;  %v6179_v9 = vsub.f32 %v6177_v7, %v6178_v63  ;;  %v6183_v11 = vld [vmem:[#allocation62_spill] sm:$0xff]  ;;  %v3649_v58 = vld [vmem:[%s5804_s2] sm:$0x3f]  ;;  %v3664_v10 = vld [vmem:[%s5805_s3 + $0x70] sm:$0xff] }
 0x2c5   : > { %1947 = vmatprep.subr.mxu0 %v1769_v35  ;;  %v6185_v36 = vsub.f32 %v6183_v11, %v6184_v37  ;;  %v6189_v35 = vld [vmem:[#allocation52_spill] sm:$0xff]  ;;  %v3654_v48 = vld [vmem:[%s5805_s3 + $0x20] sm:$0xff]  ;;  %v3663_v1 = vld [vmem:[%s5805_s3 + $0x68] sm:$0xff] }
 0x2c6   : > { %1948 = vmatpush1.msra.mxu0 %v1768_v21  ;;  %v6191_v4 = vsub.f32 %v6189_v35, %v6190_v38  ;;  %v6194_v21 = vsub.f32 %v6192_v28, %v6193_v52  ;;  %v3651_v28 = vld [vmem:[%s5805_s3 + $0x8] sm:$0xff]  ;;  %v3652_v52 = vld [vmem:[%s5805_s3 + $0x10] sm:$0xff] }
 0x2c7   : > { %1949 = vmatprep.subr.mxu0 %v1767_v33  ;;  %1939 = vmatmul.mubr.f32.gmra.mxu0 %v4775_v8  ;;  %v6198_v33 = vld [vmem:[#allocation43_spill] sm:$0xff] }
 0x2c8   : > { %1950 = vmatpush1.msra.mxu0 %v1766_v24  ;;  %2009 = vmatprep.mubr.f32.mxu0 %v6147_v44  ;;  %v6200_v19 = vsub.f32 %v6198_v33, %v6199_v17  ;;  %v6203_v24 = vsub.f32 %v6201_v42, %v6202_v5  ;;  %v3657_v33 = vld [vmem:[%s5805_s3 + $0x38] sm:$0xff]  ;;  %v3658_v17 = vld [vmem:[%s5805_s3 + $0x40] sm:$0xff]  ;;  %v3660_v42 = vld [vmem:[%s5805_s3 + $0x50] sm:$0xff] }
 0x2c9   : > { %1951 = vmatprep.subr.mxu0 %v1765_v49  ;;  %v6207_v49 = vld [vmem:[#allocation34_spill] sm:$0xff]  ;;  %v3661_v5 = vld [vmem:[%s5805_s3 + $0x58] sm:$0xff] }
 0x2ca   : > { %1952 = vmatpush1.msra.mxu0 %v1764_v60  ;;  %v6209_v60 = vsub.f32 %v6207_v49, %v6208_v29  ;;  %v3666_v49 = vld [vmem:[%s5805_s3 + $0x80] sm:$0xff]  ;;  %v3667_v29 = vld [vmem:[%s5805_s3 + $0x88] sm:$0xff] }
 0x2cb   : > { %1953 = vmatprep.subr.mxu0 %v1763_v18  ;;  %v6211_v18 = vld [vmem:[#allocation31_spill] sm:$0xff] }
 0x2cc   : > { %1954 = vmatpush1.msra.mxu0 %v1762_v47  ;;  %v6212_v47 = vld [vmem:[#allocation33_spill] sm:$0xff] }
 0x2cd   : > { %1955 = vmatprep.subr.mxu0 %v1761_v14  ;;  %v6213_v14 = vsub.f32 %v6211_v18, %v6212_v47  ;;  %v3669_v18 = vld [vmem:[%s5805_s3 + $0x98] sm:$0xff]  ;;  %v3670_v47 = vld [vmem:[%s5805_s3 + $0xa0] sm:$0xff] }
 0x2ce   : > { %1956 = vmatpush1.msra.mxu0 %v6155_v41  ;;  %v6216_v41 = vsub.f32 %v6214_v50, %v6215_v25  ;;  %v3672_v50 = vld [vmem:[%s5805_s3 + $0xb0] sm:$0xff]  ;;  %v3673_v25 = vld [vmem:[%s5805_s3 + $0xb8] sm:$0xff] }
 0x2cf   : > { %1957 = vmatprep.subr.mxu0 %v6158_v2  ;;  %v4868_v2 = vpop.f32.mrf.mxu0 }
 0x2d0   : > { %1958 = vmatpush1.msra.mxu0 %v6161_v30  ;;  %6219 = vst [vmem:[#allocation66_spill] sm:$0xff] %v4868_v2 }
 0x2d1   : > { %1959 = vmatprep.subr.mxu0 %v6164_v12  ;;  %v4870_v6 = vpop.f32.mrf.mxu0 }
 0x2d2   : > { %1960 = vmatpush1.msra.mxu0 %v6167_v61  ;;  %6220 = vst [vmem:[#allocation21_spill] sm:$0xff] %v4870_v6 }
 0x2d3   : > { %1961 = vmatprep.subr.mxu0 %v6170_v23  ;;  %v4872_v3 = vpop.f32.mrf.mxu0  ;;  %v595_v23 = vsub.s32 5, %v6222_v59 }
 0x2d4   : > { %1962 = vmatpush1.msra.mxu0 %v6173_v56  ;;  %6221 = vst [vmem:[#allocation75_spill] sm:$0xff] %v4872_v3 }
 0x2d5   : > { %1963 = vmatprep.subr.mxu0 %v6176_v53  ;;  %v1213_v30 = vpop.f32.mrf.mxu0  ;;  %v596_v20 = vrot.slane %v3649_v58, %v595_v23  ;;  %v592_v53 = vrot.slane %v3649_v58, %v591_v13 }
 0x2d6   : > { %1964 = vmatpush1.msra.mxu0 %v6179_v9 }
 0x2d7   : > { %1965 = vmatprep.subr.mxu0 %v6182_v16  ;;  %v1215_v45 = vpop.f32.mrf.mxu0  ;;  %v1214_v62 = vadd.f32 %v1213_v30, %v592_v53  ;;  %v3675_v30 = vld [vmem:[%s5805_s3 + $0xc8] sm:$0xff] }
 0x2d8   : > { %1966 = vmatpush1.msra.mxu0 %v6185_v36  ;;  %v1216_v36 = vadd.f32 %v1215_v45, %v596_v20  ;;  %v3676_v45 = vld [vmem:[%s5805_s3 + $0xd0] sm:$0xff] }
 0x2d9   : > { %1967 = vmatprep.subr.mxu0 %v6188_v0  ;;  %v1217_v57 = vpop.f32.mrf.mxu0 }
 0x2da   : > { %1968 = vmatpush1.msra.mxu0 %v6191_v4  ;;  %v1218_v11 = vadd.f32 %v1217_v57, %v592_v53  ;;  %v3650_v4 = vld [vmem:[%s5805_s3] sm:$0xff]  ;;  %v3677_v57 = vld [vmem:[%s5805_s3 + $0xd8] sm:$0xff] }
 0x2db   : > { %1969 = vmatprep.subr.mxu0 %v6194_v21  ;;  %v1219_v12 = vpop.f32.mrf.mxu0  ;;  %v3653_v21 = vld [vmem:[%s5805_s3 + $0x18] sm:$0xff] }
 0x2dc   : > { %1970 = vmatpush1.msra.mxu0 %v6197_v32  ;;  %v1220_v22 = vadd.f32 %v1219_v12, %v596_v20  ;;  %v3656_v32 = vld [vmem:[%s5805_s3 + $0x30] sm:$0xff]  ;;  %v3678_v12 = vld [vmem:[%s5805_s3 + $0xe0] sm:$0xff] }
 0x2dd   : > { %1971 = vmatprep.subr.mxu0 %v6200_v19  ;;  %v3659_v19 = vld [vmem:[%s5805_s3 + $0x48] sm:$0xff] }
 0x2de   : > { %1972 = vmatpush1.msra.mxu0 %v6203_v24  ;;  %v3662_v24 = vld [vmem:[%s5805_s3 + $0x60] sm:$0xff] }
 0x2df   : > { %1973 = vmatprep.subr.mxu0 %v6206_v27  ;;  %v3665_v27 = vld [vmem:[%s5805_s3 + $0x78] sm:$0xff] }
 0x2e0   : > { %1974 = vmatpush1.msra.mxu0 %v6209_v60  ;;  %v3668_v60 = vld [vmem:[%s5805_s3 + $0x90] sm:$0xff] }
 0x2e1   : > { %1975 = vmatprep.subr.mxu0 %v6213_v14  ;;  %v3671_v14 = vld [vmem:[%s5805_s3 + $0xa8] sm:$0xff] }
 0x2e2   : > { %1976 = vmatpush1.msra.mxu0 %v6216_v41  ;;  %v3674_v41 = vld [vmem:[%s5805_s3 + $0xc0] sm:$0xff] }
 0x2e3   : > { %2010 = vmatmul.mubr.f32.vlgmr.msra.gmra.mxu0 %v4852_v51 }
 0x2e4   : > { %2015 = vmatprep.mubr.f32.mxu0 %v6147_v44 }
 0x2e7   : > { %2016 = vmatmul.mubr.f32.gmra.mxu0 %v4862_v46 }
 0x2e8   : > { %2090 = vmatprep.mubr.f32.mxu0 %v6147_v44 }
 0x383   : > { %v1934_v31 = vpop.f32.mrf.mxu0 }
 0x385   : > { %v1936_v40 = vpop.f32.mrf.mxu0 }
 0x387   : > { %v1940_v61 = vpop.f32.mrf.mxu0 }
 0x389   : > { %v1942_v34 = vpop.f32.mrf.mxu0 }
 0x3a3   : > { %v2011_v39 = vpop.f32.mrf.mxu0 }
 0x3a4   : > { %v2012_v37 = vadd.f32 %v2011_v39, %v1934_v31  ;;  %v3679_v31 = vld [vmem:[%s5805_s3 + $0xe8] sm:$0xff] }
 0x3a5   : > { %v2013_v56 = vpop.f32.mrf.mxu0 }
 0x3a6   : > { %v2014_v15 = vadd.f32 %v2013_v56, %v1936_v40  ;;  %v2022_v38 = vmul.f32 %v2012_v37, %v1214_v62  ;;  %v3680_v40 = vld [vmem:[%s5805_s3 + $0xf0] sm:$0xff] }
 0x3a7   : > { %v2017_v7 = vpop.f32.mrf.mxu0 }
 0x3a8   : > { %v2018_v63 = vadd.f32 %v2017_v7, %v1940_v61  ;;  %v2023_v35 = vmul.f32 %v2014_v15, %v1216_v36  ;;  %v3681_v61 = vld [vmem:[%s5805_s3 + $0xf8] sm:$0xff] }
 0x3a9   : > { %v2019_v9 = vpop.f32.mrf.mxu0 }
 0x3aa   : > { %v2020_v16 = vadd.f32 %v2019_v9, %v1942_v34  ;;  %v2024_v0 = vmul.f32 %v2018_v63, %v1218_v11 }
 0x3ac   : > { %v2025_v55 = vmul.f32 %v2020_v16, %v1220_v22 }
 0x3ae   : > { %2054 = vmatprep.subr.mxu0 %v2025_v55 }
 0x3af   : > { %2055 = vmatpush1.msra.mxu0 %v2024_v0 }
 0x3b0   : > { %2056 = vmatprep.subr.mxu0 %v2023_v35 }
 0x3b1   : > { %2057 = vmatpush1.msra.mxu0 %v2022_v38 }
 0x3b2   : > { %3280 = vmatmul.mubr.msk.f32.vlgmr.msra.gmra.mxu0 %vm1258_vm0, %v3650_v4 }
 0x3b3   : > { %2096 = vmatprep.mubr.f32.mxu0 %v6147_v44 }
 0x3b6   : > { %3281 = vmatmul.mubr.msk.f32.gmra.mxu0 %vm1258_vm0, %v3651_v28 }
 0x3b7   : > { %2102 = vmatprep.mubr.f32.mxu0 %v6147_v44 }
 0x3ba   : > { %3282 = vmatmul.mubr.msk.f32.gmra.mxu0 %vm1258_vm0, %v3652_v52 }
 0x3bb   : > { %2108 = vmatprep.mubr.f32.mxu0 %v6147_v44 }
 0x3be   : > { %3283 = vmatmul.mubr.msk.f32.gmra.mxu0 %vm1258_vm0, %v3653_v21 }
 0x3bf   : > { %2114 = vmatprep.mubr.f32.mxu0 %v6147_v44 }
 0x3c2   : > { %3284 = vmatmul.mubr.msk.f32.gmra.mxu0 %vm1258_vm0, %v3654_v48 }
 0x3c3   : > { %2120 = vmatprep.mubr.f32.mxu0 %v6147_v44 }
 0x3c6   : > { %3285 = vmatmul.mubr.msk.f32.gmra.mxu0 %vm1258_vm0, %v3655_v43 }
 0x3c7   : > { %2126 = vmatprep.mubr.f32.mxu0 %v6147_v44 }
 0x3ca   : > { %3286 = vmatmul.mubr.msk.f32.gmra.mxu0 %vm1258_vm0, %v3656_v32 }
 0x3cb   : > { %2132 = vmatprep.mubr.f32.mxu0 %v6147_v44 }
 0x3ce   : > { %3287 = vmatmul.mubr.msk.f32.gmra.mxu0 %vm1258_vm0, %v3657_v33 }
 0x3cf   : > { %2138 = vmatprep.mubr.f32.mxu0 %v6147_v44 }
 0x3d2   : > { %3288 = vmatmul.mubr.msk.f32.gmra.mxu0 %vm1258_vm0, %v3658_v17 }
 0x3d3   : > { %2144 = vmatprep.mubr.f32.mxu0 %v6147_v44 }
 0x3d6   : > { %3289 = vmatmul.mubr.msk.f32.gmra.mxu0 %vm1258_vm0, %v3659_v19  ;;  %v2283_v19 = vld [vmem:[#allocation8] sm:$0xff] }
 0x3d7   : > { %2150 = vmatprep.mubr.f32.mxu0 %v6147_v44 }
 0x3da   : > { %3290 = vmatmul.mubr.msk.f32.gmra.mxu0 %vm1258_vm0, %v3660_v42  ;;  %v2315_v42 = vld [vmem:[#allocation8 + $0x100] sm:$0xff] }
 0x3db   : > { %2156 = vmatprep.mubr.f32.mxu0 %v6147_v44 }
 0x3de   : > { %3291 = vmatmul.mubr.msk.f32.gmra.mxu0 %vm1258_vm0, %v3661_v5 }
 0x3df   : > { %2162 = vmatprep.mubr.f32.mxu0 %v6147_v44 }
 0x3e2   : > { %3292 = vmatmul.mubr.msk.f32.gmra.mxu0 %vm1258_vm0, %v3662_v24  ;;  %v2284_v24 = vld [vmem:[#allocation8 + $0x8] sm:$0xff] }
 0x3e3   : > { %2168 = vmatprep.mubr.f32.mxu0 %v6147_v44 }
 0x3e6   : > { %3293 = vmatmul.mubr.msk.f32.gmra.mxu0 %vm1258_vm0, %v3663_v1  ;;  %v2316_v1 = vld [vmem:[#allocation8 + $0x108] sm:$0xff] }
 0x3e7   : > { %2174 = vmatprep.mubr.f32.mxu0 %v6147_v44 }
 0x3ea   : > { %3294 = vmatmul.mubr.msk.f32.gmra.mxu0 %vm1258_vm0, %v3664_v10 }
 0x3eb   : > { %2180 = vmatprep.mubr.f32.mxu0 %v6147_v44 }
 0x3ee   : > { %3295 = vmatmul.mubr.msk.f32.gmra.mxu0 %vm1258_vm0, %v3665_v27 }
 0x3ef   : > { %2186 = vmatprep.mubr.f32.mxu0 %v6147_v44 }
 0x3f2   : > { %3296 = vmatmul.mubr.msk.f32.gmra.mxu0 %vm1258_vm0, %v3666_v49 }
 0x3f3   : > { %2192 = vmatprep.mubr.f32.mxu0 %v6147_v44 }
 0x3f6   : > { %3297 = vmatmul.mubr.msk.f32.gmra.mxu0 %vm1258_vm0, %v3667_v29  ;;  %v2285_v29 = vld [vmem:[#allocation8 + $0x10] sm:$0xff] }
 0x3f7   : > { %2198 = vmatprep.mubr.f32.mxu0 %v6147_v44 }
 0x3fa   : > { %3298 = vmatmul.mubr.msk.f32.gmra.mxu0 %vm1258_vm0, %v3668_v60  ;;  %v2317_v60 = vld [vmem:[#allocation8 + $0x110] sm:$0xff] }
 0x3fb   : > { %2204 = vmatprep.mubr.f32.mxu0 %v6147_v44 }
 0x3fe   : > { %3299 = vmatmul.mubr.msk.f32.gmra.mxu0 %vm1258_vm0, %v3669_v18 }
 0x3ff   : > { %2210 = vmatprep.mubr.f32.mxu0 %v6147_v44 }
 0x402   : > { %3300 = vmatmul.mubr.msk.f32.gmra.mxu0 %vm1258_vm0, %v3670_v47 }
 0x403   : > { %2216 = vmatprep.mubr.f32.mxu0 %v6147_v44 }
 0x406   : > { %3301 = vmatmul.mubr.msk.f32.gmra.mxu0 %vm1258_vm0, %v3671_v14 }
 0x407   : > { %2222 = vmatprep.mubr.f32.mxu0 %v6147_v44 }
 0x40a   : > { %3302 = vmatmul.mubr.msk.f32.gmra.mxu0 %vm1258_vm0, %v3672_v50 }
 0x40b   : > { %2228 = vmatprep.mubr.f32.mxu0 %v6147_v44 }
 0x40e   : > { %3303 = vmatmul.mubr.msk.f32.gmra.mxu0 %vm1258_vm0, %v3673_v25 }
 0x40f   : > { %2234 = vmatprep.mubr.f32.mxu0 %v6147_v44 }
 0x412   : > { %3304 = vmatmul.mubr.msk.f32.gmra.mxu0 %vm1258_vm0, %v3674_v41  ;;  %v2286_v41 = vld [vmem:[#allocation8 + $0x18] sm:$0xff] }
 0x413   : > { %2240 = vmatprep.mubr.f32.mxu0 %v6147_v44 }
 0x416   : > { %3305 = vmatmul.mubr.msk.f32.gmra.mxu0 %vm1258_vm0, %v3675_v30  ;;  %v2318_v30 = vld [vmem:[#allocation8 + $0x118] sm:$0xff] }
 0x417   : > { %2246 = vmatprep.mubr.f32.mxu0 %v6147_v44 }
 0x41a   : > { %3306 = vmatmul.mubr.msk.f32.gmra.mxu0 %vm1258_vm0, %v3676_v45 }
 0x41b   : > { %2252 = vmatprep.mubr.f32.mxu0 %v6147_v44 }
 0x41e   : > { %3307 = vmatmul.mubr.msk.f32.gmra.mxu0 %vm1258_vm0, %v3677_v57 }
 0x41f   : > { %2258 = vmatprep.mubr.f32.mxu0 %v6147_v44 }
 0x422   : > { %3308 = vmatmul.mubr.msk.f32.gmra.mxu0 %vm1258_vm0, %v3678_v12 }
 0x423   : > { %2264 = vmatprep.mubr.f32.mxu0 %v6147_v44 }
 0x426   : > { %3309 = vmatmul.mubr.msk.f32.gmra.mxu0 %vm1258_vm0, %v3679_v31 }
 0x427   : > { %2270 = vmatprep.mubr.f32.mxu0 %v6147_v44 }
 0x42a   : > { %3310 = vmatmul.mubr.msk.f32.gmra.mxu0 %vm1258_vm0, %v3680_v40 }
 0x42b   : > { %2276 = vmatprep.mubr.f32.mxu0 %v6147_v44 }
 0x42e   : > { %3311 = vmatmul.mubr.msk.f32.gmra.mxu0 %vm1258_vm0, %v3681_v61 }
 0x472   : > { %v2092_v34 = vpop.f32.mrf.mxu0 }
 0x473   : > { %v5094_v27 = vmul.f32 %v2283_v19, %v2092_v34  ;;  %v2475_v49 = vmul.f32 %v2315_v42, %v2092_v34 }
 0x474   : > { %v2094_v23 = vpop.f32.mrf.mxu0 }
 0x475   : > { %6234 = vst [vmem:[#allocation57_spill] sm:$0xff] %v5094_v27  ;;  %v5098_v14 = vmul.f32 %v2284_v24, %v2094_v23  ;;  %v2476_v50 = vmul.f32 %v2316_v1, %v2094_v23 }
 0x476   : > { %v2098_v13 = vpop.f32.mrf.mxu0 }
 0x477   : > { %6236 = vst [vmem:[#allocation50_spill] sm:$0xff] %v5098_v14  ;;  %v5106_v40 = vmul.f32 %v2285_v29, %v2098_v13  ;;  %v2477_v61 = vmul.f32 %v2317_v60, %v2098_v13  ;;  %v2322_v13 = vld [vmem:[#allocation8 + $0x138] sm:$0xff] }
 0x478   : > { %v2100_v39 = vpop.f32.mrf.mxu0 }
 0x479   : > { %6239 = vst [vmem:[#allocation47_spill] sm:$0xff] %v5106_v40  ;;  %v5114_v45 = vmul.f32 %v2286_v41, %v2100_v39 }
 0x47a   : > { %v5038_v56 = vpop.f32.mrf.mxu0 }
 0x47b   : > { %6242 = vst [vmem:[#allocation44_spill] sm:$0xff] %v5114_v45 }
 0x47c   : > { %v5040_v58 = vpop.f32.mrf.mxu0 }
 0x47e   : > { %v5042_v20 = vpop.f32.mrf.mxu0 }
 0x480   : > { %v5044_v53 = vpop.f32.mrf.mxu0 }
 0x482   : > { %v5046_v7 = vpop.f32.mrf.mxu0 }
 0x484   : > { %v5048_v63 = vpop.f32.mrf.mxu0 }
 0x486   : > { %v5050_v9 = vpop.f32.mrf.mxu0 }
 0x487   : > { %6223 = vst [vmem:[#allocation67_spill] sm:$0xff] %v5050_v9 }
 0x488   : > { %v5052_v22 = vpop.f32.mrf.mxu0 }
 0x489   : > { %6224 = vst [vmem:[#allocation60_spill] sm:$0xff] %v5052_v22 }
 0x48a   : > { %v5054_v15 = vpop.f32.mrf.mxu0 }
 0x48b   : > { %6225 = vst [vmem:[#allocation20_spill] sm:$0xff] %v5054_v15 }
 0x48c   : > { %v5056_v16 = vpop.f32.mrf.mxu0 }
 0x48d   : > { %6226 = vst [vmem:[#allocation70_spill] sm:$0xff] %v5056_v16 }
 0x48e   : > { %v5058_v11 = vpop.f32.mrf.mxu0 }
 0x48f   : > { %6227 = vst [vmem:[#allocation61_spill] sm:$0xff] %v5058_v11 }
 0x490   : > { %v5060_v37 = vpop.f32.mrf.mxu0 }
 0x492   : > { %v5062_v36 = vpop.f32.mrf.mxu0 }
 0x494   : > { %v5064_v55 = vpop.f32.mrf.mxu0 }
 0x496   : > { %v5066_v62 = vpop.f32.mrf.mxu0 }
 0x498   : > { %v5068_v0 = vpop.f32.mrf.mxu0 }
 0x49a   : > { %v5070_v35 = vpop.f32.mrf.mxu0 }
 0x49c   : > { %v5072_v38 = vpop.f32.mrf.mxu0 }
 0x49e   : > { %v5074_v4 = vpop.f32.mrf.mxu0 }
 0x4a0   : > { %v5076_v28 = vpop.f32.mrf.mxu0 }
 0x4a2   : > { %v5078_v52 = vpop.f32.mrf.mxu0 }
 0x4a3   : > { %6228 = vst [vmem:[#allocation56_spill] sm:$0xff] %v5078_v52 }
 0x4a4   : > { %v5080_v21 = vpop.f32.mrf.mxu0 }
 0x4a6   : > { %v5082_v48 = vpop.f32.mrf.mxu0 }
 0x4a7   : > { %6229 = vst [vmem:[#allocation19_spill] sm:$0xff] %v5082_v48 }
 0x4a8   : > { %v5084_v43 = vpop.f32.mrf.mxu0 }
 0x4a9   : > { %6230 = vst [vmem:[#allocation65_spill] sm:$0xff] %v5084_v43 }
 0x4aa   : > { %v5086_v32 = vpop.f32.mrf.mxu0 }
 0x4ac   : > { %v5088_v33 = vpop.f32.mrf.mxu0 }
 0x4ad   : > { %6231 = vst [vmem:[#allocation18_spill] sm:$0xff] %v5088_v33 }
 0x4ae   : > { %v5090_v17 = vpop.f32.mrf.mxu0 }
 0x4af   : > { %6232 = vst [vmem:[#allocation59_spill] sm:$0xff] %v5090_v17 }
 0x4b0   : > { %v5092_v5 = vpop.f32.mrf.mxu0 }
 0x4b1   : > { %6233 = vst [vmem:[#allocation63_spill] sm:$0xff] %v5092_v5 }
 0x4b2   : > { %v2188_v10 = vpop.f32.mrf.mxu0 }
 0x4b3   : > { %v5096_v18 = vmul.f32 %v2315_v42, %v2188_v10  ;;  %v2443_v47 = vmul.f32 %v2283_v19, %v2188_v10  ;;  %v2287_v42 = vld [vmem:[#allocation8 + $0x20] sm:$0xff] }
 0x4b4   : > { %v2190_v25 = vpop.f32.mrf.mxu0  ;;  %v2319_v19 = vld [vmem:[#allocation8 + $0x120] sm:$0xff] }
 0x4b5   : > { %6235 = vst [vmem:[#allocation53_spill] sm:$0xff] %v5096_v18  ;;  %v5102_v57 = vadd.f32 %v2475_v49, %v2443_v47  ;;  %v5104_v12 = vmul.f32 %v2316_v1, %v2190_v25  ;;  %v2444_v31 = vmul.f32 %v2284_v24, %v2190_v25  ;;  %v2478_v49 = vmul.f32 %v2318_v30, %v2100_v39  ;;  %v2288_v47 = vld [vmem:[#allocation8 + $0x28] sm:$0xff]  ;;  %v2323_v39 = vld [vmem:[#allocation8 + $0x140] sm:$0xff] }
 0x4b6   : > { %v2194_v34 = vpop.f32.mrf.mxu0  ;;  %v2320_v24 = vld [vmem:[#allocation8 + $0x128] sm:$0xff] }
 0x4b7   : > { %6237 = vst [vmem:[#allocation104_spill] sm:$0xff] %v5102_v57  ;;  %6238 = vst [vmem:[#allocation98_spill] sm:$0xff] %v5104_v12  ;;  %v5110_v10 = vadd.f32 %v2476_v50, %v2444_v31  ;;  %v5112_v3 = vmul.f32 %v2317_v60, %v2194_v34  ;;  %v2445_v2 = vmul.f32 %v2285_v29, %v2194_v34  ;;  %v2289_v31 = vld [vmem:[#allocation8 + $0x30] sm:$0xff] }
 0x4b8   : > { %v2196_v1 = vpop.f32.mrf.mxu0  ;;  %v5123_v50 = vmul.f32 %v2287_v42, %v5038_v56  ;;  %v2479_v60 = vmul.f32 %v2319_v19, %v5038_v56  ;;  %v2321_v34 = vld [vmem:[#allocation8 + $0x130] sm:$0xff]  ;;  %v2324_v56 = vld [vmem:[#allocation8 + $0x148] sm:$0xff] }
 0x4b9   : > { %6240 = vst [vmem:[#allocation99_spill] sm:$0xff] %v5110_v10  ;;  %6241 = vst [vmem:[#allocation101_spill] sm:$0xff] %v5112_v3  ;;  %v5118_v25 = vadd.f32 %v2477_v61, %v2445_v2  ;;  %v5120_v6 = vmul.f32 %v2318_v30, %v2196_v1  ;;  %v2446_v26 = vmul.f32 %v2286_v41, %v2196_v1  ;;  %v2290_v1 = vld [vmem:[#allocation8 + $0x38] sm:$0xff] }
 0x4ba   : > { %6245 = vst [vmem:[#allocation97_spill] sm:$0xff] %v5123_v50  ;;  %v2200_v29 = vpop.f32.mrf.mxu0  ;;  %v5133_v30 = vmul.f32 %v2288_v47, %v5040_v58  ;;  %v2480_v41 = vmul.f32 %v2320_v24, %v5040_v58  ;;  %v5236_v50 = vld [vmem:[#allocation8 + $0x70] sm:$0xff] }
 0x4bb   : > { %6243 = vst [vmem:[#allocation28_spill] sm:$0xff] %v5118_v25  ;;  %6244 = vst [vmem:[#allocation103_spill] sm:$0xff] %v5120_v6  ;;  %v5128_v23 = vadd.f32 %v2478_v49, %v2446_v26  ;;  %v5130_v59 = vmul.f32 %v2319_v19, %v2200_v29  ;;  %v2447_v2 = vmul.f32 %v2287_v42, %v2200_v29  ;;  %v2291_v29 = vld [vmem:[#allocation8 + $0x40] sm:$0xff] }
 0x4bc   : > { %6248 = vst [vmem:[#allocation100_spill] sm:$0xff] %v5133_v30  ;;  %v2202_v61 = vpop.f32.mrf.mxu0  ;;  %v5143_v19 = vmul.f32 %v2289_v31, %v5042_v20  ;;  %v2481_v42 = vmul.f32 %v2321_v34, %v5042_v20 }
 0x4bd   : > { %6246 = vst [vmem:[#allocation41_spill] sm:$0xff] %v5128_v23  ;;  %6247 = vst [vmem:[#allocation27_spill] sm:$0xff] %v5130_v59  ;;  %v5138_v46 = vadd.f32 %v2479_v60, %v2447_v2  ;;  %v5140_v51 = vmul.f32 %v2320_v24, %v2202_v61  ;;  %v2448_v26 = vmul.f32 %v2288_v47, %v2202_v61  ;;  %v2292_v61 = vld [vmem:[#allocation8 + $0x48] sm:$0xff] }
 0x4be   : > { %6251 = vst [vmem:[#allocation26_spill] sm:$0xff] %v5143_v19  ;;  %v2206_v49 = vpop.f32.mrf.mxu0  ;;  %v5153_v24 = vmul.f32 %v2290_v1, %v5044_v53  ;;  %v2482_v47 = vmul.f32 %v2322_v13, %v5044_v53  ;;  %v5234_v59 = vld [vmem:[#allocation8 + $0x168] sm:$0xff]  ;;  %v5250_v19 = vld [vmem:[#allocation8 + $0x170] sm:$0xff] }
 0x4bf   : > { %6249 = vst [vmem:[#allocation96_spill] sm:$0xff] %v5138_v46  ;;  %6250 = vst [vmem:[#allocation38_spill] sm:$0xff] %v5140_v51  ;;  %v5148_v18 = vadd.f32 %v2480_v41, %v2448_v26  ;;  %v5150_v27 = vmul.f32 %v2321_v34, %v2206_v49  ;;  %v2449_v60 = vmul.f32 %v2289_v31, %v2206_v49 }
 0x4c0   : > { %6254 = vst [vmem:[#allocation35_spill] sm:$0xff] %v5153_v24  ;;  %v2208_v2 = vpop.f32.mrf.mxu0  ;;  %v5163_v34 = vmul.f32 %v2291_v29, %v5046_v7  ;;  %v2483_v31 = vmul.f32 %v2323_v39, %v5046_v7  ;;  %6280 = vst [vmem:[#allocation77_spill] sm:$0xff] %v5234_v59 }
 0x4c1   : > { %6252 = vst [vmem:[#allocation102_spill] sm:$0xff] %v5148_v18  ;;  %6253 = vst [vmem:[#allocation95_spill] sm:$0xff] %v5150_v27  ;;  %v5158_v12 = vadd.f32 %v2481_v42, %v2449_v60  ;;  %v5160_v14 = vmul.f32 %v2322_v13, %v2208_v2  ;;  %v2450_v41 = vmul.f32 %v2290_v1, %v2208_v2  ;;  %v5176_v1 = vld [vmem:[#allocation8 + $0x50] sm:$0xff] }
 0x4c2   : > { %6257 = vst [vmem:[#allocation32_spill] sm:$0xff] %v5163_v34  ;;  %v2212_v26 = vpop.f32.mrf.mxu0  ;;  %v5173_v42 = vmul.f32 %v2292_v61, %v5048_v63  ;;  %v2484_v13 = vmul.f32 %v2324_v56, %v5048_v63  ;;  %6261 = vst [vmem:[#allocation107_spill] sm:$0xff] %v5176_v1  ;;  %v5192_v63 = vmul.f32 %v5176_v1, %v5050_v9  ;;  %v5382_v1 = vld [vmem:[#allocation8 + $0x1f8] sm:$0xff] }
 0x4c3   : > { %6255 = vst [vmem:[#allocation105_spill] sm:$0xff] %v5158_v12  ;;  %6256 = vst [vmem:[#allocation94_spill] sm:$0xff] %v5160_v14  ;;  %v5168_v49 = vadd.f32 %v2482_v47, %v2450_v41  ;;  %v5170_v58 = vmul.f32 %v2323_v39, %v2212_v26  ;;  %v2451_v3 = vmul.f32 %v2291_v29, %v2212_v26  ;;  %v5184_v41 = vld [vmem:[#allocation8 + $0x150] sm:$0xff]  ;;  %v5186_v39 = vld [vmem:[#allocation8 + $0x58] sm:$0xff] }
 0x4c4   : > { %6260 = vst [vmem:[#allocation24_spill] sm:$0xff] %v5173_v42  ;;  %v2214_v60 = vpop.f32.mrf.mxu0  ;;  %6264 = vst [vmem:[#allocation109_spill] sm:$0xff] %v5184_v41  ;;  %v5220_v26 = vld [vmem:[#allocation8 + $0x68] sm:$0xff]  ;;  %v5252_v14 = vld [vmem:[#allocation8 + $0x78] sm:$0xff] }
 0x4c5   : > { %6258 = vst [vmem:[#allocation25_spill] sm:$0xff] %v5168_v49  ;;  %6259 = vst [vmem:[#allocation106_spill] sm:$0xff] %v5170_v58  ;;  %v5180_v2 = vadd.f32 %v2483_v31, %v2451_v3  ;;  %v5182_v20 = vmul.f32 %v2324_v56, %v2214_v60  ;;  %v2452_v47 = vmul.f32 %v2292_v61, %v2214_v60  ;;  %v5202_v56 = vld [vmem:[#allocation8 + $0x158] sm:$0xff]  ;;  %v5204_v61 = vld [vmem:[#allocation8 + $0x60] sm:$0xff] }
 0x4c6   : > { %6265 = vst [vmem:[#allocation110_spill] sm:$0xff] %v5186_v39  ;;  %v5188_v29 = vpop.f32.mrf.mxu0  ;;  %6267 = vst [vmem:[#allocation93_spill] sm:$0xff] %v5192_v63  ;;  %v5210_v60 = vmul.f32 %v5186_v39, %v5052_v22  ;;  %v5226_v6 = vmul.f32 %v5204_v61, %v5054_v15  ;;  %v5242_v30 = vmul.f32 %v5220_v26, %v5056_v16  ;;  %v5268_v42 = vld [vmem:[#allocation8 + $0x80] sm:$0xff]  ;;  %v5396_v39 = vld [vmem:[#allocation8 + $0xf8] sm:$0xff] }
 0x4c7   : > { %6262 = vst [vmem:[#allocation108_spill] sm:$0xff] %v5180_v2  ;;  %6263 = vst [vmem:[#allocation23_spill] sm:$0xff] %v5182_v20  ;;  %v5196_v53 = vadd.f32 %v2484_v13, %v2452_v47  ;;  %v5200_v3 = vmul.f32 %v5184_v41, %v5188_v29  ;;  %v5218_v47 = vld [vmem:[#allocation8 + $0x160] sm:$0xff]  ;;  %v5258_v58 = vmul.f32 %v5236_v50, %v5058_v11  ;;  %v5266_v20 = vld [vmem:[#allocation8 + $0x178] sm:$0xff] }
 0x4c8   : > { %6266 = vst [vmem:[#allocation92_spill] sm:$0xff] %v5188_v29  ;;  %6270 = vst [vmem:[#allocation88_spill] sm:$0xff] %v5202_v56  ;;  %v5206_v31 = vpop.f32.mrf.mxu0  ;;  %v5274_v63 = vmul.f32 %v5252_v14, %v5060_v37  ;;  %v5390_v29 = vld [vmem:[#allocation8 + $0x1e8] sm:$0xff] }
 0x4c9   : > { %6268 = vst [vmem:[#allocation90_spill] sm:$0xff] %v5196_v53  ;;  %6269 = vst [vmem:[#allocation91_spill] sm:$0xff] %v5200_v3  ;;  %v5216_v13 = vmul.f32 %v5202_v56, %v5206_v31 }
 0x4ca   : > { %6271 = vst [vmem:[#allocation89_spill] sm:$0xff] %v5204_v61  ;;  %6272 = vst [vmem:[#allocation86_spill] sm:$0xff] %v5206_v31  ;;  %v5222_v40 = vpop.f32.mrf.mxu0  ;;  %v5398_v31 = vld [vmem:[#allocation8 + $0xe0] sm:$0xff] }
 0x4cb   : > { %6273 = vst [vmem:[#allocation87_spill] sm:$0xff] %v5210_v60  ;;  %6274 = vst [vmem:[#allocation84_spill] sm:$0xff] %v5216_v13  ;;  %v5232_v7 = vmul.f32 %v5218_v47, %v5222_v40  ;;  %v5282_v60 = vld [vmem:[#allocation8 + $0x180] sm:$0xff] }
 0x4cc   : > { %6275 = vst [vmem:[#allocation85_spill] sm:$0xff] %v5218_v47  ;;  %6276 = vst [vmem:[#allocation82_spill] sm:$0xff] %v5220_v26  ;;  %v5238_v51 = vpop.f32.mrf.mxu0  ;;  %v5416_v26 = vld [vmem:[#allocation8 + $0xd0] sm:$0xff] }
 0x4cd   : > { %6277 = vst [vmem:[#allocation83_spill] sm:$0xff] %v5222_v40  ;;  %6278 = vst [vmem:[#allocation80_spill] sm:$0xff] %v5226_v6  ;;  %v5248_v45 = vmul.f32 %v5234_v59, %v5238_v51  ;;  %v5400_v59 = vld [vmem:[#allocation8 + $0x1e0] sm:$0xff]  ;;  %v2506_v40 = vmul.f32 %v5382_v1, %v5092_v5 }
 0x4ce   : > { %6279 = vst [vmem:[#allocation81_spill] sm:$0xff] %v5232_v7  ;;  %6281 = vst [vmem:[#allocation78_spill] sm:$0xff] %v5238_v51  ;;  %v5254_v24 = vpop.f32.mrf.mxu0  ;;  %v5284_v7 = vld [vmem:[#allocation8 + $0x88] sm:$0xff]  ;;  %v5418_v51 = vld [vmem:[#allocation8 + $0x1d0] sm:$0xff] }
 0x4cf   : > { %6282 = vst [vmem:[#allocation73_spill] sm:$0xff] %v5242_v30  ;;  %6283 = vst [vmem:[#allocation74_spill] sm:$0xff] %v5248_v45  ;;  %v5264_v27 = vmul.f32 %v5250_v19, %v5254_v24  ;;  %v5290_v45 = vmul.f32 %v5268_v42, %v5062_v36  ;;  %v5306_v44 = vmul.f32 %v5284_v7, %v5064_v55 }
 0x4d0   : > { %6284 = vst [vmem:[#allocation68_spill] sm:$0xff] %v5250_v19  ;;  %6285 = vst [vmem:[#allocation69_spill] sm:$0xff] %v5258_v58  ;;  %v5270_v3 = vpop.f32.mrf.mxu0  ;;  %v5300_v58 = vld [vmem:[#allocation8 + $0x90] sm:$0xff]  ;;  %v5408_v19 = vld [vmem:[#allocation8 + $0xd8] sm:$0xff] }
 0x4d1   : > { %6286 = vst [vmem:[#allocation62_spill] sm:$0xff] %v5264_v27  ;;  %6287 = vst [vmem:[#allocation64_spill] sm:$0xff] %v5274_v63  ;;  %v5280_v34 = vmul.f32 %v5266_v20, %v5270_v3  ;;  %v5298_v27 = vld [vmem:[#allocation8 + $0x188] sm:$0xff]  ;;  %v5316_v63 = vld [vmem:[#allocation8 + $0x98] sm:$0xff]  ;;  %v5322_v10 = vmul.f32 %v5300_v58, %v5066_v62 }
 0x4d2   : > { %v5286_v6 = vpop.f32.mrf.mxu0  ;;  %6289 = vst [vmem:[#allocation58_spill] sm:$0xff] %v5290_v45  ;;  %6291 = vst [vmem:[#allocation54_spill] sm:$0xff] %v5306_v44  ;;  %v5332_v45 = vld [vmem:[#allocation8 + $0xa0] sm:$0xff]  ;;  %v5338_v46 = vmul.f32 %v5316_v63, %v5068_v0 }
 0x4d3   : > { %6288 = vst [vmem:[#allocation55_spill] sm:$0xff] %v5280_v34  ;;  %v5296_v13 = vmul.f32 %v5282_v60, %v5286_v6  ;;  %v5314_v34 = vld [vmem:[#allocation8 + $0x190] sm:$0xff]  ;;  %6293 = vst [vmem:[#allocation51_spill] sm:$0xff] %v5322_v10  ;;  %v5352_v12 = vmul.f32 %v5332_v45, %v5070_v35 }
 0x4d4   : > { %v5302_v8 = vpop.f32.mrf.mxu0  ;;  %6295 = vst [vmem:[#allocation48_spill] sm:$0xff] %v5338_v46  ;;  %6304 = vst [vmem:[#allocation31_spill] sm:$0xff] %v5382_v1  ;;  %v5426_v1 = vld [vmem:[#allocation8 + $0x1c8] sm:$0xff] }
 0x4d5   : > { %6290 = vst [vmem:[#allocation52_spill] sm:$0xff] %v5296_v13  ;;  %v5312_v30 = vmul.f32 %v5298_v27, %v5302_v8  ;;  %v5330_v13 = vld [vmem:[#allocation8 + $0x198] sm:$0xff]  ;;  %6297 = vst [vmem:[#allocation45_spill] sm:$0xff] %v5352_v12  ;;  %v5388_v12 = vld [vmem:[#allocation8 + $0xe8] sm:$0xff] }
 0x4d6   : > { %v5318_v57 = vpop.f32.mrf.mxu0  ;;  %6307 = vst [vmem:[#allocation30_spill] sm:$0xff] %v5388_v12  ;;  %6309 = vst [vmem:[#allocation112_spill] sm:$0xff] %v5396_v39 }
 0x4d7   : > { %6292 = vst [vmem:[#allocation49_spill] sm:$0xff] %v5312_v30  ;;  %v5328_v54 = vmul.f32 %v5314_v34, %v5318_v57  ;;  %v5346_v30 = vld [vmem:[#allocation8 + $0x1a0] sm:$0xff]  ;;  %6310 = vst [vmem:[#allocation113_spill] sm:$0xff] %v5398_v31 }
 0x4d8   : > { %v5334_v23 = vpop.f32.mrf.mxu0  ;;  %6311 = vst [vmem:[#allocation114_spill] sm:$0xff] %v5408_v19  ;;  %6312 = vst [vmem:[#allocation115_spill] sm:$0xff] %v5416_v26 }
 0x4d9   : > { %6294 = vst [vmem:[#allocation46_spill] sm:$0xff] %v5328_v54  ;;  %v5344_v25 = vmul.f32 %v5330_v13, %v5334_v23  ;;  %v5384_v54 = vld [vmem:[#allocation8 + $0xf0] sm:$0xff] }
 0x4da   : > { %v5348_v44 = vpop.f32.mrf.mxu0  ;;  %6305 = vst [vmem:[#allocation33_spill] sm:$0xff] %v5384_v54 }
 0x4db   : > { %6296 = vst [vmem:[#allocation43_spill] sm:$0xff] %v5344_v25  ;;  %v5358_v2 = vmul.f32 %v5346_v30, %v5348_v44 }
 0x4dc   : > { %v5360_v18 = vpop.f32.mrf.mxu0 }
 0x4dd   : > { %6298 = vst [vmem:[#allocation40_spill] sm:$0xff] %v5358_v2  ;;  %v5386_v2 = vld [vmem:[#allocation8 + $0x1f0] sm:$0xff] }
 0x4de   : > { %v5364_v10 = vpop.f32.mrf.mxu0  ;;  %6306 = vst [vmem:[#allocation29_spill] sm:$0xff] %v5386_v2 }
 0x4e0   : > { %v5366_v53 = vpop.f32.mrf.mxu0 }
 0x4e2   : > { %v5368_v41 = vpop.f32.mrf.mxu0 }
 0x4e4   : > { %v5370_v9 = vpop.f32.mrf.mxu0 }
 0x4e6   : > { %v5372_v56 = vpop.f32.mrf.mxu0 }
 0x4e7   : > { %6299 = vst [vmem:[#allocation42_spill] sm:$0xff] %v5372_v56 }
 0x4e8   : > { %v5374_v49 = vpop.f32.mrf.mxu0 }
 0x4e9   : > { %6300 = vst [vmem:[#allocation37_spill] sm:$0xff] %v5374_v49 }
 0x4ea   : > { %v5376_v25 = vpop.f32.mrf.mxu0 }
 0x4eb   : > { %6301 = vst [vmem:[#allocation39_spill] sm:$0xff] %v5376_v25  ;;  %v2471_v11 = vmul.f32 %v5398_v31, %v5376_v25  ;;  %v2469_v31 = vmul.f32 %v5416_v26, %v5372_v56  ;;  %v2501_v26 = vmul.f32 %v5418_v51, %v5082_v48  ;;  %v5448_v56 = vld [vmem:[#allocation8 + $0xb0] sm:$0xff]  ;;  %v5458_v48 = vld [vmem:[#allocation8 + $0x1a8] sm:$0xff] }
 0x4ec   : > { %v5378_v46 = vpop.f32.mrf.mxu0 }
 0x4ed   : > { %6302 = vst [vmem:[#allocation34_spill] sm:$0xff] %v5378_v46  ;;  %v2472_v16 = vmul.f32 %v5388_v12, %v5378_v46  ;;  %v2504_v12 = vmul.f32 %v5390_v29, %v5088_v33  ;;  %v5424_v46 = vld [vmem:[#allocation8 + $0xc8] sm:$0xff] }
 0x4ee   : > { %v5380_v22 = vpop.f32.mrf.mxu0  ;;  %6313 = vst [vmem:[#allocation116_spill] sm:$0xff] %v5424_v46 }
 0x4ef   : > { %6303 = vst [vmem:[#allocation36_spill] sm:$0xff] %v5380_v22  ;;  %v2473_v47 = vmul.f32 %v5384_v54, %v5380_v22  ;;  %v5410_v54 = vld [vmem:[#allocation8 + $0x1d8] sm:$0xff]  ;;  %v2505_v22 = vmul.f32 %v5386_v2, %v5090_v17  ;;  %v2503_v17 = vmul.f32 %v5400_v59, %v5086_v32  ;;  %v5432_v2 = vld [vmem:[#allocation8 + $0xc0] sm:$0xff] }
 0x4f0   : > { %v5394_v15 = vpop.f32.mrf.mxu0  ;;  %6314 = vst [vmem:[#allocation117_spill] sm:$0xff] %v5432_v2  ;;  %v2502_v33 = vmul.f32 %v5410_v54, %v5084_v43  ;;  %v5450_v43 = vld [vmem:[#allocation8 + $0x1b0] sm:$0xff] }
 0x4f1   : > { %6308 = vst [vmem:[#allocation111_spill] sm:$0xff] %v5394_v15  ;;  %v2474_v61 = vmul.f32 %v5396_v39, %v5394_v15  ;;  %v2470_v39 = vmul.f32 %v5408_v19, %v5374_v49  ;;  %v2537_v25 = vadd.f32 %v2505_v22, %v2473_v47  ;;  %v5434_v15 = vld [vmem:[#allocation8 + $0x1c0] sm:$0xff]  ;;  %v5440_v19 = vld [vmem:[#allocation8 + $0xb8] sm:$0xff]  ;;  %v2467_v22 = vmul.f32 %v5432_v2, %v5368_v41 }
 0x4f2   : > { %6315 = vst [vmem:[#allocation118_spill] sm:$0xff] %v5440_v19  ;;  %v5442_v49 = vld [vmem:[#allocation8 + $0x1b8] sm:$0xff]  ;;  %v2535_v47 = vadd.f32 %v2503_v17, %v2471_v11  ;;  %v2499_v11 = vmul.f32 %v5434_v15, %v5078_v52  ;;  %v2465_v17 = vmul.f32 %v5448_v56, %v5364_v10 }
 0x4f3   : > { %v2538_v5 = vadd.f32 %v2506_v40, %v2474_v61  ;;  %v2468_v40 = vmul.f32 %v5424_v46, %v5370_v9  ;;  %v2536_v61 = vadd.f32 %v2504_v12, %v2472_v16  ;;  %v2500_v16 = vmul.f32 %v5426_v1, %v5080_v21  ;;  %v5456_v46 = vld [vmem:[#allocation8 + $0xa8] sm:$0xff] }
 0x4f4   : > { %v2534_v12 = vadd.f32 %v2502_v33, %v2470_v39  ;;  %v2498_v2 = vmul.f32 %v5442_v49, %v5076_v28  ;;  %v2497_v39 = vmul.f32 %v5450_v43, %v5074_v4  ;;  %v2531_v52 = vadd.f32 %v2499_v11, %v2467_v22 }
 0x4f5   : > { %2539 = vmatprep.subr.mxu1 %v2538_v5  ;;  %v2466_v5 = vmul.f32 %v5440_v19, %v5366_v53  ;;  %v2464_v19 = vmul.f32 %v5456_v46, %v5360_v18  ;;  %v2532_v33 = vadd.f32 %v2500_v16, %v2468_v40  ;;  %v2495_v40 = vmul.f32 %v5346_v30, %v5070_v35 }
 0x4f6   : > { %2540 = vmatpush1.msra.mxu1 %v2537_v25  ;;  %v2533_v25 = vadd.f32 %v2501_v26, %v2469_v31  ;;  %v2496_v26 = vmul.f32 %v5458_v48, %v5072_v38  ;;  %v2462_v31 = vmul.f32 %v5316_v63, %v5334_v23  ;;  %v2461_v16 = vmul.f32 %v5300_v58, %v5318_v57  ;;  %v6317_v58 = vld [vmem:[#allocation82_spill] sm:$0xff]  ;;  %v6321_v63 = vld [vmem:[#allocation89_spill] sm:$0xff] }
 0x4f7   : > { %2541 = vmatprep.subr.mxu1 %v2536_v61  ;;  %v2463_v61 = vmul.f32 %v5332_v45, %v5348_v44  ;;  %v2494_v44 = vmul.f32 %v5330_v13, %v5068_v0  ;;  %v2460_v45 = vmul.f32 %v5284_v7, %v5302_v8  ;;  %v2493_v23 = vmul.f32 %v5314_v34, %v5066_v62  ;;  %v6320_v7 = vld [vmem:[#allocation83_spill] sm:$0xff]  ;;  %v6324_v13 = vld [vmem:[#allocation86_spill] sm:$0xff] }
 0x4f8   : > { %2542 = vmatpush1.msra.mxu1 %v2535_v47  ;;  %v2530_v47 = vadd.f32 %v2498_v2, %v2466_v5  ;;  %v2528_v22 = vadd.f32 %v2496_v26, %v2464_v19  ;;  %v2459_v2 = vmul.f32 %v5268_v42, %v5286_v6  ;;  %v2492_v57 = vmul.f32 %v5298_v27, %v5064_v55  ;;  %v6316_v19 = vld [vmem:[#allocation78_spill] sm:$0xff]  ;;  %v6318_v27 = vld [vmem:[#allocation61_spill] sm:$0xff] }
 0x4f9   : > { %2543 = vmatprep.subr.mxu1 %v2534_v12  ;;  %v2529_v12 = vadd.f32 %v2497_v39, %v2465_v17  ;;  %v2527_v35 = vadd.f32 %v2495_v40, %v2463_v61  ;;  %v2526_v0 = vadd.f32 %v2494_v44, %v2462_v31  ;;  %v2491_v8 = vmul.f32 %v5282_v60, %v5062_v36  ;;  %v6322_v60 = vld [vmem:[#allocation70_spill] sm:$0xff]  ;;  %v6327_v17 = vld [vmem:[#allocation85_spill] sm:$0xff]  ;;  %v6329_v39 = vld [vmem:[#allocation107_spill] sm:$0xff] }
 0x4fa   : > { %2544 = vmatpush1.msra.mxu1 %v2533_v25  ;;  %v2457_v30 = vmul.f32 %v5236_v50, %v5254_v24  ;;  %v2525_v62 = vadd.f32 %v2493_v23, %v2461_v16  ;;  %v2490_v6 = vmul.f32 %v5266_v20, %v5060_v37  ;;  %v2456_v34 = vmul.f32 %v6317_v58, %v6316_v19  ;;  %v6323_v50 = vld [vmem:[#allocation77_spill] sm:$0xff]  ;;  %v6325_v5 = vld [vmem:[#allocation110_spill] sm:$0xff]  ;;  %v6326_v20 = vld [vmem:[#allocation20_spill] sm:$0xff] }
 0x4fb   : > { %2545 = vmatprep.subr.mxu1 %v2532_v33  ;;  %v2524_v55 = vadd.f32 %v2492_v57, %v2460_v45  ;;  %v2523_v36 = vadd.f32 %v2491_v8, %v2459_v2  ;;  %v2488_v24 = vmul.f32 %v6323_v50, %v6322_v60  ;;  %v2454_v11 = vmul.f32 %v6325_v5, %v6324_v13  ;;  %v6328_v33 = vld [vmem:[#allocation92_spill] sm:$0xff]  ;;  %v6333_v44 = vld [vmem:[#allocation109_spill] sm:$0xff]  ;;  %v6338_v8 = vld [vmem:[#allocation111_spill] sm:$0xff] }
 0x4fc   : > { %2546 = vmatpush1.msra.mxu1 %v2531_v52  ;;  %v2458_v52 = vmul.f32 %v5252_v14, %v5270_v3  ;;  %v6319_v14 = vld [vmem:[#allocation68_spill] sm:$0xff]  ;;  %v2455_v3 = vmul.f32 %v6321_v63, %v6320_v7  ;;  %v2487_v25 = vmul.f32 %v6327_v17, %v6326_v20  ;;  %v2453_v61 = vmul.f32 %v6329_v39, %v6328_v33  ;;  %v6342_v58 = vld [vmem:[#allocation29_spill] sm:$0xff]  ;;  %v6355_v33 = vld [vmem:[#allocation99_spill] sm:$0xff] }
 0x4fd   : > { %2547 = vmatprep.subr.mxu1 %v2530_v47  ;;  %v2489_v42 = vmul.f32 %v6319_v14, %v6318_v27  ;;  %v6330_v31 = vld [vmem:[#allocation60_spill] sm:$0xff]  ;;  %v2520_v16 = vadd.f32 %v2488_v24, %v2456_v34  ;;  %v6344_v27 = vld [vmem:[#allocation34_spill] sm:$0xff]  ;;  %v6349_v60 = vld [vmem:[#allocation33_spill] sm:$0xff] }
 0x4fe   : > { %2548 = vmatpush1.msra.mxu1 %v2529_v12  ;;  %v2522_v37 = vadd.f32 %v2490_v6, %v2458_v52  ;;  %v6331_v47 = vld [vmem:[#allocation88_spill] sm:$0xff]  ;;  %v6332_v12 = vld [vmem:[#allocation67_spill] sm:$0xff]  ;;  %v6336_v52 = vld [vmem:[#allocation25_spill] sm:$0xff]  ;;  %v2408_v14 = vmul.f32 %v5390_v29, %v6344_v27 }
 0x4ff   : > { %2549 = vmatprep.subr.mxu1 %v2528_v22  ;;  %v2521_v26 = vadd.f32 %v2489_v42, %v2457_v30  ;;  %v2486_v40 = vmul.f32 %v6331_v47, %v6330_v31  ;;  %v2485_v45 = vmul.f32 %v6333_v44, %v6332_v12  ;;  %v2519_v22 = vadd.f32 %v2487_v25, %v2455_v3  ;;  %v6335_v57 = vld [vmem:[#allocation108_spill] sm:$0xff]  ;;  %v6339_v30 = vld [vmem:[#allocation31_spill] sm:$0xff]  ;;  %v6340_v6 = vld [vmem:[#allocation102_spill] sm:$0xff] }
 0x500   : > { %2550 = vmatpush1.msra.mxu1 %v2527_v35  ;;  %v6334_v35 = vld [vmem:[#allocation90_spill] sm:$0xff]  ;;  %v6341_v19 = vld [vmem:[#allocation36_spill] sm:$0xff]  ;;  %v6345_v42 = vld [vmem:[#allocation63_spill] sm:$0xff]  ;;  %v2404_v44 = vmul.f32 %v5426_v1, %v5370_v9  ;;  %v2402_v9 = vmul.f32 %v5442_v49, %v5366_v53  ;;  %v2369_v53 = vmul.f32 %v5448_v56, %v5074_v4 }
 0x501   : > { %2551 = vmatprep.subr.mxu1 %v2526_v0  ;;  %v2518_v23 = vadd.f32 %v2486_v40, %v2454_v11  ;;  %v2517_v2 = vadd.f32 %v2485_v45, %v2453_v61  ;;  %v6337_v0 = vld [vmem:[#allocation105_spill] sm:$0xff]  ;;  %v2409_v34 = vmul.f32 %v6342_v58, %v6341_v19  ;;  %v6346_v7 = vld [vmem:[#allocation112_spill] sm:$0xff]  ;;  %v6350_v24 = vld [vmem:[#allocation39_spill] sm:$0xff]  ;;  %v2400_v19 = vmul.f32 %v5458_v48, %v5360_v18 }
 0x502   : > { %2552 = vmatpush1.msra.mxu1 %v2525_v62  ;;  %v2410_v62 = vmul.f32 %v6339_v30, %v6338_v8  ;;  %v2378_v63 = vmul.f32 %v6346_v7, %v6345_v42  ;;  %v6347_v3 = vld [vmem:[#allocation41_spill] sm:$0xff]  ;;  %v2407_v13 = vmul.f32 %v5400_v59, %v6350_v24  ;;  %v6351_v5 = vld [vmem:[#allocation28_spill] sm:$0xff]  ;;  %v6352_v11 = vld [vmem:[#allocation18_spill] sm:$0xff] }
 0x503   : > { %2553 = vmatprep.subr.mxu1 %v2524_v55  ;;  %v6343_v55 = vld [vmem:[#allocation96_spill] sm:$0xff]  ;;  %v6354_v17 = vld [vmem:[#allocation37_spill] sm:$0xff]  ;;  %v6369_v58 = vld [vmem:[#allocation71_spill] sm:$0xff] }
 0x504   : > { %2554 = vmatpush1.msra.mxu1 %v2523_v36  ;;  %v6348_v36 = vld [vmem:[#allocation59_spill] sm:$0xff]  ;;  %v2406_v25 = vmul.f32 %v5410_v54, %v6354_v17  ;;  %v2442_v29 = vsub.f32 %v2378_v63, %v2410_v62  ;;  %v6356_v39 = vld [vmem:[#allocation113_spill] sm:$0xff]  ;;  %v6358_v40 = vld [vmem:[#allocation104_spill] sm:$0xff]  ;;  %v2401_v62 = vmul.f32 %v5450_v43, %v5364_v10  ;;  %v2368_v43 = vmul.f32 %v5456_v46, %v5072_v38 }
 0x505   : > { %2555 = vmatprep.subr.mxu1 %v2522_v37  ;;  %v2377_v50 = vmul.f32 %v6349_v60, %v6348_v36  ;;  %v6353_v37 = vld [vmem:[#allocation30_spill] sm:$0xff]  ;;  %v2375_v61 = vmul.f32 %v6356_v39, %v5086_v32  ;;  %v6359_v59 = vld [vmem:[#allocation65_spill] sm:$0xff]  ;;  %v6361_v54 = vld [vmem:[#allocation76_spill] sm:$0xff]  ;;  %v2403_v32 = vmul.f32 %v5434_v15, %v5368_v41 }
 0x506   : > { %2556 = vmatpush1.msra.mxu1 %v2521_v26  ;;  %v2376_v20 = vmul.f32 %v6353_v37, %v6352_v11  ;;  %v6357_v26 = vld [vmem:[#allocation42_spill] sm:$0xff]  ;;  %v6367_v8 = vld [vmem:[#allocation117_spill] sm:$0xff]  ;;  %v6371_v18 = vld [vmem:[#allocation40_spill] sm:$0xff] }
 0x507   : > { %2557 = vmatprep.subr.mxu1 %v2520_v16  ;;  %v2405_v31 = vmul.f32 %v5418_v51, %v6357_v26  ;;  %v2441_v47 = vsub.f32 %v2377_v50, %v2409_v34  ;;  %v6360_v16 = vld [vmem:[#allocation114_spill] sm:$0xff]  ;;  %v2439_v51 = vsub.f32 %v2375_v61, %v2407_v13  ;;  %v2432_v34 = vsub.f32 %v2368_v43, %v2400_v19  ;;  %v6370_v48 = vld [vmem:[#allocation45_spill] sm:$0xff]  ;;  %v6373_v4 = vld [vmem:[#allocation48_spill] sm:$0xff] }
 0x508   : > { %2558 = vmatpush1.msra.mxu1 %v2519_v22  ;;  %v2374_v12 = vmul.f32 %v6360_v16, %v6359_v59  ;;  %v2440_v45 = vsub.f32 %v2376_v20, %v2408_v14  ;;  %v6362_v22 = vld [vmem:[#allocation19_spill] sm:$0xff]  ;;  %v6368_v15 = vld [vmem:[#allocation118_spill] sm:$0xff]  ;;  %v6380_v38 = vld [vmem:[#allocation49_spill] sm:$0xff] }
 0x509   : > { %2559 = vmatprep.subr.mxu1 %v2518_v23  ;;  %v6363_v23 = vld [vmem:[#allocation115_spill] sm:$0xff]  ;;  %v2370_v41 = vmul.f32 %v6368_v15, %v5076_v28  ;;  %v2433_v28 = vsub.f32 %v2369_v53, %v2401_v62  ;;  %v6377_v42 = vld [vmem:[#allocation46_spill] sm:$0xff]  ;;  %v6383_v36 = vld [vmem:[#allocation52_spill] sm:$0xff] }
 0x50a   : > { %2560 = vmatpush1.msra.mxu1 %v2517_v2  ;;  %v2373_v2 = vmul.f32 %v6363_v23, %v6362_v22  ;;  %v2438_v1 = vsub.f32 %v2374_v12, %v2406_v25  ;;  %v6374_v56 = vld [vmem:[#allocation43_spill] sm:$0xff]  ;;  %v6379_v46 = vld [vmem:[#allocation54_spill] sm:$0xff]  ;;  %v6385_v50 = vld [vmem:[#allocation64_spill] sm:$0xff] }
 0x50b   : > { %2561 = vmatprep.subr.mxu1 %v6334_v35  ;;  %v6364_v35 = vmov 0.0   ;;  %v2434_v10 = vsub.f32 %v2370_v41, %v2402_v9  ;;  %v6375_v27 = vsub.f32 %v6373_v4, %v6374_v56  ;;  %v6376_v14 = vld [vmem:[#allocation51_spill] sm:$0xff]  ;;  %v6381_v63 = vsub.f32 %v6379_v46, %v6380_v38  ;;  %v6389_v11 = vld [vmem:[#allocation62_spill] sm:$0xff]  ;;  %v6391_v20 = vld [vmem:[#allocation73_spill] sm:$0xff] }
 0x50c   : > { %2562 = vmatpush1.msra.mxu1 %v6335_v57  ;;  %v6365_v57 = vld [vmem:[#allocation116_spill] sm:$0xff]  ;;  %v6378_v7 = vsub.f32 %v6376_v14, %v6377_v42  ;;  %v6386_v24 = vld [vmem:[#allocation55_spill] sm:$0xff]  ;;  %v6392_v17 = vld [vmem:[#allocation74_spill] sm:$0xff] }
 0x50d   : > { %2563 = vmatprep.subr.mxu1 %v6336_v52  ;;  %v2372_v52 = vmul.f32 %v6365_v57, %v5080_v21  ;;  %v6387_v13 = vsub.f32 %v6385_v50, %v6386_v24  ;;  %v6393_v25 = vsub.f32 %v6391_v20, %v6392_v17  ;;  %v6397_v61 = vld [vmem:[#allocation87_spill] sm:$0xff]  ;;  %v6398_v26 = vld [vmem:[#allocation84_spill] sm:$0xff]  ;;  %v6427_v43 = vld [vmem:[#allocation50_spill] sm:$0xff] }
 0x50e   : > { %2564 = vmatpush1.msra.mxu1 %v6337_v0  ;;  %v6366_v0 = vld [vmem:[#allocation56_spill] sm:$0xff]  ;;  %v6404_v12 = vld [vmem:[#allocation23_spill] sm:$0xff]  ;;  %v6433_v4 = vld [vmem:[#allocation22_spill] sm:$0xff] }
 0x50f   : > { %2565 = vmatprep.subr.mxu1 %v6340_v6  ;;  %v2371_v30 = vmul.f32 %v6367_v8, %v6366_v0  ;;  %v2437_v6 = vsub.f32 %v2373_v2, %v2405_v31  ;;  %v2436_v21 = vsub.f32 %v2372_v52, %v2404_v44  ;;  %v6399_v31 = vsub.f32 %v6397_v61, %v6398_v26  ;;  %v6403_v16 = vld [vmem:[#allocation24_spill] sm:$0xff]  ;;  %v6409_v23 = vld [vmem:[#allocation35_spill] sm:$0xff]  ;;  %v6410_v2 = vld [vmem:[#allocation94_spill] sm:$0xff] }
 0x510   : > { %2566 = vmatpush1.msra.mxu1 %v6343_v55  ;;  %v6372_v55 = vsub.f32 %v6370_v48, %v6371_v18  ;;  %v6405_v44 = vsub.f32 %v6403_v16, %v6404_v12  ;;  %v6413_v57 = vld [vmem:[#allocation95_spill] sm:$0xff]  ;;  %v6415_v9 = vld [vmem:[#allocation100_spill] sm:$0xff]  ;;  %v6418_v8 = vld [vmem:[#allocation97_spill] sm:$0xff] }
 0x511   : > { %2567 = vmatprep.subr.mxu1 %v6347_v3  ;;  %v2435_v49 = vsub.f32 %v2371_v30, %v2403_v32  ;;  %v6382_v3 = vld [vmem:[#allocation58_spill] sm:$0xff]  ;;  %v6411_v32 = vsub.f32 %v6409_v23, %v6410_v2  ;;  %v6419_v30 = vld [vmem:[#allocation27_spill] sm:$0xff]  ;;  %v6430_v48 = vld [vmem:[#allocation57_spill] sm:$0xff] }
 0x512   : > { %2568 = vmatpush1.msra.mxu1 %v6351_v5  ;;  %v6384_v60 = vsub.f32 %v6382_v3, %v6383_v36  ;;  %v6388_v5 = vld [vmem:[#allocation69_spill] sm:$0xff]  ;;  %v6420_v62 = vsub.f32 %v6418_v8, %v6419_v30  ;;  %v6422_v15 = vld [vmem:[#allocation103_spill] sm:$0xff] }
 0x513   : > { %2569 = vmatprep.subr.mxu1 %v6355_v33  ;;  %v6390_v37 = vsub.f32 %v6388_v5, %v6389_v11  ;;  %v6395_v33 = vld [vmem:[#allocation81_spill] sm:$0xff]  ;;  %v3603_v19 = vld [vmem:[%s5809_s7 + $0x74] ss:$8 sps:$4 sm:$0xff]   ;;  %v3607_v42 = vld [vmem:[%s5809_s7 + $0x50] ss:$8 sps:$4 sm:$0xff]  }
 0x514   : > { %2570 = vmatpush1.msra.mxu1 %v6358_v40  ;;  %v6401_v40 = vld [vmem:[#allocation91_spill] sm:$0xff]  ;;  %v6431_v18 = vld [vmem:[#allocation53_spill] sm:$0xff] }
 0x515   : > { %2616 = vmatprep.subr.mxu1 %v2442_v29  ;;  %2604 = vmatmul.mubr.f32.vlgmr.msra.gmra.mxu1 %v6361_v54  ;;  %v6394_v29 = vld [vmem:[#allocation80_spill] sm:$0xff]  ;;  %v6407_v54 = vld [vmem:[#allocation106_spill] sm:$0xff]  ;;  %v6434_v14 = vld [vmem:[#allocation79_spill] sm:$0xff] }
 0x516   : > { %2617 = vmatpush1.msra.mxu1 %v2441_v47  ;;  %2609 = vmatprep.mubr.f32.mxu1 %v6364_v35  ;;  %v6396_v39 = vsub.f32 %v6394_v29, %v6395_v33  ;;  %v6400_v47 = vld [vmem:[#allocation93_spill] sm:$0xff]  ;;  %v3615_v46 = vld [vmem:[%s5809_s7 + $0x34] ss:$8 sps:$4 sm:$0xff]   ;;  %v3613_v38 = vld [vmem:[%s5809_s7 + $0x30] ss:$8 sps:$4 sm:$0xff]  }
 0x517   : > { %2618 = vmatprep.subr.mxu1 %v2440_v45  ;;  %v6402_v59 = vsub.f32 %v6400_v47, %v6401_v40  ;;  %v6406_v45 = vld [vmem:[#allocation32_spill] sm:$0xff]  ;;  %v3604_v56 = vld [vmem:[%s5809_s7 + $0x60] ss:$8 sps:$4 sm:$0xff]   ;;  %v3624_v50 = vld [vmem:[%s5809_s7 + $0x4] ss:$8 sps:$4 sm:$0xff]  }
 0x518   : > { %2619 = vmatpush1.msra.mxu1 %v2439_v51  ;;  %v6408_v22 = vsub.f32 %v6406_v45, %v6407_v54  ;;  %v6412_v51 = vld [vmem:[#allocation26_spill] sm:$0xff]  ;;  %v3621_v36 = vld [vmem:[%s5809_s7 + $0x14] ss:$8 sps:$4 sm:$0xff]   ;;  %v3625_v5 = vld [vmem:[%s5809_s7 + $0xf0] ss:$8 sps:$4 sm:$0xff]  }
 0x519   : > { %2620 = vmatprep.subr.mxu1 %v2438_v1  ;;  %2610 = vmatmul.mubr.f32.gmra.mxu1 %v6369_v58  ;;  %v6414_v52 = vsub.f32 %v6412_v51, %v6413_v57  ;;  %v6416_v1 = vld [vmem:[#allocation38_spill] sm:$0xff]  ;;  %v6425_v58 = vld [vmem:[#allocation101_spill] sm:$0xff]  ;;  %v3633_v20 = vld [vmem:[%s5809_s7 + $0xd4] ss:$8 sps:$4 sm:$0xff]  }
 0x51a   : > { %2621 = vmatpush1.msra.mxu1 %v2437_v6  ;;  %2680 = vmatprep.mubr.f32.mxu1 %v6364_v35  ;;  %v6417_v0 = vsub.f32 %v6415_v9, %v6416_v1  ;;  %v6421_v6 = vld [vmem:[#allocation44_spill] sm:$0xff]  ;;  %v3616_v3 = vld [vmem:[%s5809_s7 + $0x20] ss:$8 sps:$4 sm:$0xff]   ;;  %v3630_v11 = vld [vmem:[%s5809_s7 + $0xe4] ss:$8 sps:$4 sm:$0xff]  }
 0x51b   : > { %2622 = vmatprep.subr.mxu1 %v2436_v21  ;;  %v6423_v41 = vsub.f32 %v6421_v6, %v6422_v15  ;;  %v6424_v21 = vld [vmem:[#allocation47_spill] sm:$0xff]  ;;  %v3622_v24 = vld [vmem:[%s5809_s7] ss:$8 sps:$4 sm:$0xff]   ;;  %v3642_v61 = vld [vmem:[%s5809_s7 + $0xa4] ss:$8 sps:$4 sm:$0xff]  }
 0x51c   : > { %2623 = vmatpush1.msra.mxu1 %v2435_v49  ;;  %v6426_v53 = vsub.f32 %v6424_v21, %v6425_v58  ;;  %v3601_v49 = vld [vmem:[%s5809_s7 + $0x70] ss:$8 sps:$4 sm:$0xff]   ;;  %v3634_v29 = vld [vmem:[%s5809_s7 + $0xc0] ss:$8 sps:$4 sm:$0xff]   ;;  %v3639_v33 = vld [vmem:[%s5809_s7 + $0xb4] ss:$8 sps:$4 sm:$0xff]  }
 0x51d   : > { %2624 = vmatprep.subr.mxu1 %v2434_v10  ;;  %v6428_v10 = vld [vmem:[#allocation98_spill] sm:$0xff]  ;;  %v3631_v17 = vld [vmem:[%s5809_s7 + $0xd0] ss:$8 sps:$4 sm:$0xff]   ;;  %v6435_v45 = vld [vmem:[#allocation17_spill] sm:$0xff] }
 0x51e   : > { %2625 = vmatpush1.msra.mxu1 %v2433_v28  ;;  %v6429_v28 = vsub.f32 %v6427_v43, %v6428_v10  ;;  %v3640_v26 = vld [vmem:[%s5809_s7 + $0xa0] ss:$8 sps:$4 sm:$0xff]   ;;  %v3643_v47 = vld [vmem:[%s5809_s7 + $0x90] ss:$8 sps:$4 sm:$0xff]   ;;  %v3648_v40 = vld [vmem:[%s5809_s7 + $0x84] ss:$8 sps:$4 sm:$0xff]  }
 0x51f   : > { %2626 = vmatprep.subr.mxu1 %v2432_v34  ;;  %v3606_v34 = vld [vmem:[%s5809_s7 + $0x64] ss:$8 sps:$4 sm:$0xff]   ;;  %v575_v54 = vsub.s32 0, %v6435_v45  ;;  %v6439_v58 = vld [vmem:[#allocation75_spill] sm:$0xff] }
 0x520   : > { %2627 = vmatpush1.msra.mxu1 %v6372_v55  ;;  %v6432_v55 = vsub.f32 %v6430_v48, %v6431_v18  ;;  %v6437_v30 = vld [vmem:[#allocation21_spill] sm:$0xff] }
 0x521   : > { %2628 = vmatprep.subr.mxu1 %v6375_v27  ;;  %v3609_v27 = vld [vmem:[%s5809_s7 + $0x54] ss:$8 sps:$4 sm:$0xff]  }
 0x522   : > { %2629 = vmatpush1.msra.mxu1 %v6378_v7  ;;  %v3610_v7 = vld [vmem:[%s5809_s7 + $0x40] ss:$8 sps:$4 sm:$0xff]  }
 0x523   : > { %2630 = vmatprep.subr.mxu1 %v6381_v63  ;;  %v3618_v63 = vld [vmem:[%s5809_s7 + $0x24] ss:$8 sps:$4 sm:$0xff]  }
 0x524   : > { %2631 = vmatpush1.msra.mxu1 %v6384_v60  ;;  %v3619_v60 = vld [vmem:[%s5809_s7 + $0x10] ss:$8 sps:$4 sm:$0xff]  }
 0x525   : > { %2632 = vmatprep.subr.mxu1 %v6387_v13  ;;  %v3627_v13 = vld [vmem:[%s5809_s7 + $0xf4] ss:$8 sps:$4 sm:$0xff]  }
 0x526   : > { %2633 = vmatpush1.msra.mxu1 %v6390_v37  ;;  %v3628_v37 = vld [vmem:[%s5809_s7 + $0xe0] ss:$8 sps:$4 sm:$0xff]  }
 0x527   : > { %2634 = vmatprep.subr.mxu1 %v6393_v25  ;;  %v3636_v25 = vld [vmem:[%s5809_s7 + $0xc4] ss:$8 sps:$4 sm:$0xff]  }
 0x528   : > { %2635 = vmatpush1.msra.mxu1 %v6396_v39  ;;  %v3637_v39 = vld [vmem:[%s5809_s7 + $0xb0] ss:$8 sps:$4 sm:$0xff]  }
 0x529   : > { %2636 = vmatprep.subr.mxu1 %v6399_v31  ;;  %v3645_v31 = vld [vmem:[%s5809_s7 + $0x94] ss:$8 sps:$4 sm:$0xff]  }
 0x52a   : > { %2637 = vmatpush1.msra.mxu1 %v6402_v59  ;;  %v3646_v59 = vld [vmem:[%s5809_s7 + $0x80] ss:$8 sps:$4 sm:$0xff]  }
 0x52b   : > { %2638 = vmatprep.subr.mxu1 %v6405_v44 }
 0x52c   : > { %2639 = vmatpush1.msra.mxu1 %v6408_v22  ;;  %v579_v22 = vsub.s32 1, %v6435_v45 }
 0x52d   : > { %2640 = vmatprep.subr.mxu1 %v6411_v32  ;;  %v3682_v32 = vld [vmem:[%s5804_s2] sm:$0x3f] }
 0x52e   : > { %2641 = vmatpush1.msra.mxu1 %v6414_v52  ;;  %v576_v51 = vrot.slane %v3682_v32, %v575_v54  ;;  %v580_v57 = vrot.slane %v3682_v32, %v579_v22 }
 0x52f   : > { %2642 = vmatprep.subr.mxu1 %v6417_v0  ;;  %v6436_v0 = vld [vmem:[#allocation72_spill] sm:$0xff] }
 0x530   : > { %2643 = vmatpush1.msra.mxu1 %v6420_v62  ;;  %v1128_v8 = vadd.f32 %v6436_v0, %v576_v51  ;;  %v1132_v62 = vadd.f32 %v6437_v30, %v576_v51 }
 0x531   : > { %2644 = vmatprep.subr.mxu1 %v6423_v41  ;;  %v6438_v41 = vld [vmem:[#allocation66_spill] sm:$0xff] }
 0x532   : > { %2645 = vmatpush1.msra.mxu1 %v6426_v53  ;;  %v1134_v53 = vadd.f32 %v6439_v58, %v580_v57 }
 0x533   : > { %2646 = vmatprep.subr.mxu1 %v6429_v28 }
 0x534   : > { %2647 = vmatpush1.msra.mxu1 %v6432_v55  ;;  %v2938_v55 = vld [vmem:[%s5810_s8] sm:$0x3] }
 0x535   : > { %2681 = vmatmul.mubr.f32.vlgmr.msra.gmra.mxu1 %v6433_v4  ;;  %2891 = vmatprep.subr.bf16.mxu1 %v3603_v19  ;;  %v1130_v19 = vadd.f32 %v6438_v41, %v580_v57  ;;  %v2943_v4 = vrot.slane %v2938_v55, %v575_v54 }
 0x536   : > { %2686 = vmatprep.mubr.f32.mxu1 %v6364_v35  ;;  %2892 = vmatpush1.bf16.msra.mxu1 %v3601_v49  ;;  %v3612_v35 = vld [vmem:[%s5809_s7 + $0x44] ss:$8 sps:$4 sm:$0xff]  }
 0x537   : > { %2893 = vmatprep.subr.bf16.mxu1 %v3606_v34 }
 0x539   : > { %2687 = vmatmul.mubr.f32.gmra.mxu1 %v6434_v14 }
 0x53a   : > { %2894 = vmatpush1.bf16.msra.mxu1 %v3604_v56  ;;  %v2947_v56 = vrot.slane %v2938_v55, %v579_v22 }
 0x53b   : > { %2895 = vmatprep.subr.bf16.mxu1 %v3609_v27 }
 0x53e   : > { %2896 = vmatpush1.bf16.msra.mxu1 %v3607_v42 }
 0x53f   : > { %2897 = vmatprep.subr.bf16.mxu1 %v3612_v35 }
 0x542   : > { %2898 = vmatpush1.bf16.msra.mxu1 %v3610_v7 }
 0x543   : > { %2899 = vmatprep.subr.bf16.mxu1 %v3615_v46 }
 0x546   : > { %2900 = vmatpush1.bf16.msra.mxu1 %v3613_v38 }
 0x547   : > { %2901 = vmatprep.subr.bf16.mxu1 %v3618_v63 }
 0x54a   : > { %2902 = vmatpush1.bf16.msra.mxu1 %v3616_v3 }
 0x54b   : > { %2903 = vmatprep.subr.bf16.mxu1 %v3621_v36 }
 0x54e   : > { %2904 = vmatpush1.bf16.msra.mxu1 %v3619_v60 }
 0x54f   : > { %2905 = vmatprep.subr.bf16.mxu1 %v3624_v50 }
 0x552   : > { %2906 = vmatpush1.bf16.msra.mxu1 %v3622_v24 }
 0x553   : > { %2907 = vmatprep.subr.bf16.mxu1 %v3627_v13 }
 0x556   : > { %2908 = vmatpush2.bf16.msra.mxu1 %v3625_v5 }
 0x557   : > { %2909 = vmatprep.subr.bf16.mxu1 %v3630_v11 }
 0x55a   : > { %2910 = vmatpush2.bf16.msra.mxu1 %v3628_v37 }
 0x55b   : > { %2911 = vmatprep.subr.bf16.mxu1 %v3633_v20 }
 0x55e   : > { %2912 = vmatpush2.bf16.msra.mxu1 %v3631_v17 }
 0x55f   : > { %2913 = vmatprep.subr.bf16.mxu1 %v3636_v25 }
 0x562   : > { %2914 = vmatpush2.bf16.msra.mxu1 %v3634_v29 }
 0x563   : > { %2915 = vmatprep.subr.bf16.mxu1 %v3639_v33 }
 0x566   : > { %2916 = vmatpush2.bf16.msra.mxu1 %v3637_v39 }
 0x567   : > { %2917 = vmatprep.subr.bf16.mxu1 %v3642_v61 }
 0x56a   : > { %2918 = vmatpush2.bf16.msra.mxu1 %v3640_v26 }
 0x56b   : > { %2919 = vmatprep.subr.bf16.mxu1 %v3645_v31 }
 0x56e   : > { %2920 = vmatpush2.bf16.msra.mxu1 %v3643_v47 }
 0x56f   : > { %2921 = vmatprep.subr.bf16.mxu1 %v3648_v40 }
 0x572   : > { %2922 = vmatpush2.bf16.msra.mxu1 %v3646_v59 }
 0x5d5   : > { %v2605_v16 = vpop.f32.mrf.mxu1 }
 0x5d7   : > { %v2607_v12 = vpop.f32.mrf.mxu1 }
 0x5d9   : > { %v2611_v44 = vpop.f32.mrf.mxu1 }
 0x5db   : > { %v2613_v23 = vpop.f32.mrf.mxu1 }
 0x5f5   : > { %v2682_v2 = vpop.f32.mrf.mxu1 }
 0x5f6   : > { %v2683_v9 = vadd.f32 %v2682_v2, %v2605_v16 }
 0x5f7   : > { %v2684_v52 = vpop.f32.mrf.mxu1 }
 0x5f8   : > { %v2685_v6 = vadd.f32 %v2684_v52, %v2607_v12  ;;  %v2693_v49 = vmul.f32 %v2683_v9, %v1128_v8 }
 0x5f9   : > { %v2688_v1 = vpop.f32.mrf.mxu1 }
 0x5fa   : > { %v2689_v15 = vadd.f32 %v2688_v1, %v2611_v44  ;;  %v2694_v28 = vmul.f32 %v2685_v6, %v1130_v19 }
 0x5fb   : > { %v2690_v21 = vpop.f32.mrf.mxu1 }
 0x5fc   : > { %v2695_v43 = vmul.f32 %v2689_v15, %v1132_v62  ;;  %v2691_v10 = vadd.f32 %v2690_v21, %v2613_v23 }
 0x5fe   : > { %v2697_v34 = vpack.c.bf16 %v2695_v43, %v2693_v49  ;;  %v2696_v48 = vmul.f32 %v2691_v10, %v1134_v53 }
 0x600   : > { %v2698_v18 = vpack.c.bf16 %v2696_v48, %v2694_v28 }
 0x602   : > { %2923 = vmatprep.mubr.bf16.mxu1 %v2698_v18 }
 0x603   : > { %2924 = vmatmul.mubr.bf16.vlgmr.msra.gmra.mxu1 %v2697_v34 }
 0x6c3   : > { %v2925_v27 = vpop.f32.mrf.mxu1 }
 0x6c4   : > { %v2950_v14 = vadd.f32 %v2943_v4, %v2925_v27 }
 0x6c5   : > { %v2927_v42 = vpop.f32.mrf.mxu1 }
 0x6c6   : > { %2954 = vst [vmem:[%s452_s16] sm:$0xff] %v2950_v14  ;;  %v2951_v35 = vadd.f32 %v2947_v56, %v2927_v42 }
 0x6c7   : > { %v2929_v7 = vpop.f32.mrf.mxu1 }
 0x6c8   : > { %2955 = vst [vmem:[%s452_s16 + $0x8] sm:$0xff] %v2951_v35  ;;  %v2952_v46 = vadd.f32 %v2943_v4, %v2929_v7 }
 0x6c9   : > { %v2931_v38 = vpop.f32.mrf.mxu1 }
 0x6ca   : > { %2956 = vst [vmem:[%s452_s16 + $0x10] sm:$0xff] %v2952_v46  ;;  %v2953_v63 = vadd.f32 %v2947_v56, %v2931_v38 }
 0x6cc   : > { %2957 = vst [vmem:[%s452_s16 + $0x18] sm:$0xff] %v2953_v63 }
 0x6cd   : > { %3800 = shalt.err (!%p3797_p12)
}
 0x6ce   : > { %s3801_s13 = scalar_lea.hbm %s5755_s27, 512  ;;  %s3805_s28 = scalar_lea.hbm %s5811_s9, 1024 }
 0x6cf   : > { %p3802_p2 = scmp.ne.s32.totalorder %s5755_s27, %s3801_s13  ;;  %p3806_p5 = scmp.lt.s32.totalorder %s5755_s27, %s5811_s9 }
 0x6d0   : > { %p3807_p10 = scmp.lt.s32.totalorder %s3805_s28, %s3801_s13 }
 0x6d1   : > { %p3803_p1 = pnand %p3802_p2, %p3979_p4 }
 0x6d2   : > { %p3808_p11 = por %p3807_p10, %p3806_p5 }
 0x6d3   : > { %p3804_p3 = pneg %p3803_p1 }
 0x6d5   : > { %p3809_p13 = pnand %p3808_p11, %p3804_p3 }
 0x6d7   : > { %3812 = shalt.err (!%p3809_p13)
}
 0x6d8   : > { %s3887_s23 = smov 256   ;;  %s3888_s24 = smov 16  }
 0x6d9   : > { %3367 = dma.vmem_to_hbm [thread:$0]  (%p3979_p4), %s5750_s4, 512, %s5755_s27, %s5757_s18, %s3887_s23, %s3887_s23, %s3888_s24  }
 0x6da PF: > { %p3394_p0 = scmp.ge.s32.totalorder %s3875_s14, 2  ;;  %s3003_s12 = sand.u32 1, %s3855_s30  }
 0x6db   : > { %s3004_s20 = scalar_lea.sflag [#allocation4], %s3003_s12 }
 0x6dc   : > { %p3383_p6 = pnand %p3394_p0, %p3986_p8 }
 0x6de   : > { %p3384_p7 = pneg %p3383_p6 }
 0x6e0   : > { %3850 = dma.done.wait (%p3384_p7), %s3004_s20, 512  }
 0x6e1   : > { %3852 = vsyncadd (%p3384_p7), %s3004_s20, 4294966784  ;;  %s25_s14 = sadd.s32 1, %s3875_s14   ;;  %s6440_s12 = sld [smem:[#allocation15_spill]] }
 0x6e2   : > { %p22_p9 = scmp.ge.s32.totalorder %s25_s14, 4   ;;  %s6441_s13 = sld [smem:[#allocation16_spill]] }
 0x6e3   : > { %s6442_s30 = smov %s3859_s10  ;;  %s6443_s10 = smov %s3863_s11 }
 0x6e4   : > { %s6444_s11 = smov %s3992_s22  ;;  %24 = sbr.rel (!%p22_p9) target bundleno = 9 (0x9), region = 125 }
 0x6e9   :  { %3009 = vsyncpa [#allocation3], 1 }
 0x6ea   :  { %3011 = vsyncpa [#allocation3 + $0x1], 1 }
 0x6eb   :  { %3012 = vsyncpa [#allocation6], 1 }
 0x6ec   :  { %3013 = vsyncpa [#allocation9], 1 }
 0x6ed   :  { %3014 = vsyncpa [#allocation4], 1 }
 0x6ee   :  { %3016 = vsyncpa [#allocation4 + $0x1], 1 }

</bundles_post_ra>
